<compile_context>
chip_gen: v5e
topology: v5e:2x2
jax: 0.10.0
libtpu: 0.0.40
codegen_flags: <defaults>
</compile_context>

<pallas_src>
import numpy as np

import jax
import jax.numpy as jnp
from jax.experimental import pallas as pl
from jax.experimental.pallas import tpu as pltpu

KH = KW = 5
PAD = 2


# ----------------------------------------------------------------------------
# Pallas kernels
# ----------------------------------------------------------------------------
def conv_pool_kernel(x_ref, w_ref, b_ref, o_ref):
    """Fused 5x5 'same' conv + bias + ReLU + 2x2 max-pool for ONE batch element.

    x_ref: (1, 2, A, L)      row-parity-split zero-padded input:
                             x[0, ib, a, :] is padded input row (2*a + ib),
                             with (W_padded, Cin) flattened into the lane dim L.
    w_ref: (5, 2, L, M*Cout) row-Toeplitz weights: w[dy, wb] maps one full padded
                             input row to every pooled output column of column
                             parity wb for kernel row dy (in-kernel im2col).
    b_ref: (1, M*Cout)       bias tiled across the M pooled output columns (f32).
    o_ref: (1, M, M*Cout)    pooled output; row = pooled h, lane = (pooled w, Cout).
    """
    m = o_ref.shape[1]            # pooled spatial size (14 for conv1, 7 for conv2)
    c = o_ref.shape[2]            # m * Cout  (lane-dense, >= 128)
    pooled = None
    for hb in range(2):           # pool-window row phase
        for wb in range(2):       # pool-window col phase
            acc = jnp.zeros((m, c), jnp.float32)
            for dy in range(KH):
                ib = (hb + dy) % 2        # parity of the needed padded input rows
                a0 = (hb + dy) // 2       # first row of the window inside that parity
                acc = acc + jnp.dot(
                    x_ref[0, ib, a0:a0 + m, :], w_ref[dy, wb],
                    preferred_element_type=jnp.float32)
            pooled = acc if pooled is None else jnp.maximum(pooled, acc)
    # bias-add and ReLU commute with max-pool -> applied once on the pooled tile.
    o_ref[0] = jnp.maximum(pooled + b_ref[...], 0.0).astype(o_ref.dtype)


def fc_softmax_kernel(x_ref, w_ref, b_ref, o_ref):
    """o = softmax(x @ w + b, axis=-1).  x:(N,F) bf16, w:(F,10) bf16, b:(1,10) f32."""
    logits = jnp.dot(x_ref[...], w_ref[...], preferred_element_type=jnp.float32)
    logits = logits + b_ref[...]
    mx = jnp.max(logits, axis=-1, keepdims=True)
    e = jnp.exp(logits - mx)
    denom = jnp.sum(e, axis=-1, keepdims=True)
    o_ref[...] = (e * pl.reciprocal(denom, approx=True)).astype(o_ref.dtype)


# ----------------------------------------------------------------------------
# pallas_call wrappers
# ----------------------------------------------------------------------------
def conv_pool_call(x4, w, b, out_m, out_c):
    """x4:(N,2,A,L) bf16, w:(5,2,L,out_c) bf16, b:(1,out_c) f32 -> (N,out_m,out_c) bf16."""
    n = x4.shape[0]
    k = x4.shape[-1]
    flops = n * 4 * KH * 2 * out_m * k * out_c
    bytes_acc = (x4.size * x4.dtype.itemsize + w.size * w.dtype.itemsize
                 + b.size * 4 + n * out_m * out_c * 2)
    return pl.pallas_call(
        conv_pool_kernel,
        out_shape=jax.ShapeDtypeStruct((n, out_m, out_c), jnp.bfloat16),
        grid=(n,),
        in_specs=[pl.BlockSpec((1,) + x4.shape[1:], lambda i: (i, 0, 0, 0)),
                  pl.BlockSpec(w.shape, lambda i: (0, 0, 0, 0)),
                  pl.BlockSpec(b.shape, lambda i: (0, 0))],
        out_specs=pl.BlockSpec((1, out_m, out_c), lambda i: (i, 0, 0)),
        compiler_params=pltpu.CompilerParams(dimension_semantics=("parallel",)),
        cost_estimate=pl.CostEstimate(flops=flops, transcendentals=0,
                                      bytes_accessed=bytes_acc),
    )(x4, w, b)


def fc_softmax_call(x, w, b):
    n, f = x.shape
    nclass = w.shape[1]
    return pl.pallas_call(
        fc_softmax_kernel,
        out_shape=jax.ShapeDtypeStruct((n, nclass), jnp.float32),
        grid=(1,),
        in_specs=[pl.BlockSpec((n, f), lambda i: (0, 0)),
                  pl.BlockSpec((f, nclass), lambda i: (0, 0)),
                  pl.BlockSpec((1, nclass), lambda i: (0, 0))],
        out_specs=pl.BlockSpec((n, nclass), lambda i: (0, 0)),
        cost_estimate=pl.CostEstimate(
            flops=2 * n * f * nclass, transcendentals=n * nclass,
            bytes_accessed=x.size * 2 + w.size * 2 + n * nclass * 4 + nclass * 4),
    )(x, w, b)


# ----------------------------------------------------------------------------
# Parameter init, pruning, one-time weight packing (hoisted out of forward)
# ----------------------------------------------------------------------------
def xavier_uniform(key, shape, fan_in, fan_out):
    bound = (6.0 / (fan_in + fan_out)) ** 0.5
    return jax.random.uniform(key, shape, jnp.float32, -bound, bound)


def init_params(key):
    k1, k2, k3, k4 = jax.random.split(key, 4)
    return {
        "conv1_w": xavier_uniform(k1, (16, 1, 5, 5), fan_in=1 * 25, fan_out=16 * 25),
        "conv1_b": jnp.zeros((16,), jnp.float32),
        "conv2_w": xavier_uniform(k2, (32, 16, 5, 5), fan_in=16 * 25, fan_out=32 * 25),
        "conv2_b": jnp.zeros((32,), jnp.float32),
        "fc_w": xavier_uniform(k3, (10, 32 * 7 * 7), fan_in=32 * 7 * 7, fan_out=10),
        "fc_b": jax.random.normal(k4, (10,), jnp.float32),
    }


def prune_weight(w, sparsity=0.5):
    """threshold = sorted(|w|)[int(numel*sparsity)]; mask = |w| >= threshold.

    Uses top_k instead of a full sort (same threshold value, cheaper)."""
    a = jnp.abs(w).reshape(-1)
    n = a.shape[0]
    k = n - int(n * sparsity)
    thr = jax.lax.top_k(a, k)[0][-1]          # == sorted_ascending[int(n*sparsity)]
    mask = (jnp.abs(w) >= thr).astype(w.dtype)
    return w * mask
    # TODO(synk): the PyTorch module also persists the updated mask / pruned weight
    # as module state (register_buffer / .data mutation); emulated functionally here
    # (initial mask == ones, so a single forward matches exactly).


def _toeplitz_select(padded_w, pooled_w):
    """M[wb, dx, w, ww] = 1 iff w == 2*ww + wb + dx (stride-1 conv, stride-2 pool)."""
    m = np.zeros((2, KW, padded_w, pooled_w), np.float32)
    for wb in range(2):
        for dx in range(KW):
            for ww in range(pooled_w):
                m[wb, dx, 2 * ww + wb + dx, ww] = 1.0
    return jnp.asarray(m)


def prepare_weights(params):
    """One-time prep: prune + pack conv weights into row-Toeplitz GEMM form,
    permute the FC weight to our (h, w, c) feature ordering."""
    w1 = prune_weight(params["conv1_w"])                 # (16,1,5,5)
    w2 = prune_weight(params["conv2_w"])                 # (32,16,5,5)

    # conv1: taps (dy,dx,co); padded width 32 -> pooled width 14, Cout 16
    w1t = jnp.transpose(w1[:, 0], (1, 2, 0))             # (5,5,16)
    m1 = _toeplitz_select(32, 14)                        # (2,5,32,14)
    w1p = jnp.einsum("yxo,bxwv->ybwvo", w1t, m1).reshape(5, 2, 32, 14 * 16)

    # conv2: taps (dy,dx,ci,co); rows = (padded w, ci) = 288, cols = (ww, co) = 224
    w2t = jnp.transpose(w2, (2, 3, 1, 0))                # (5,5,16,32)
    m2 = _toeplitz_select(18, 7)                         # (2,5,18,7)
    w2p = jnp.einsum("yxio,bxwv->ybwivo", w2t, m2).reshape(5, 2, 18 * 16, 7 * 32)

    # fc: permute columns from PyTorch NCHW flatten (c*49 + h*7 + w) to our (h,w,c)
    fc_wp = params["fc_w"].reshape(10, 32, 49).transpose(2, 1, 0).reshape(32 * 7 * 7, 10)

    return {
        "w1": w1p.astype(jnp.bfloat16),
        "b1": jnp.tile(params["conv1_b"].reshape(1, 16), (1, 14)).astype(jnp.float32),
        "w2": w2p.astype(jnp.bfloat16),
        "b2": jnp.tile(params["conv2_b"].reshape(1, 32), (1, 7)).astype(jnp.float32),
        "fc_w": fc_wp.astype(jnp.bfloat16),
        "fc_b": params["fc_b"].reshape(1, 10).astype(jnp.float32),
    }


# ----------------------------------------------------------------------------
# Forward pass
# ----------------------------------------------------------------------------
@jax.jit
def net_forward(prep, x_nchw):
    n = x_nchw.shape[0]

    # ---- conv1 + bias + relu + maxpool (one fused Pallas kernel) ----
    x = x_nchw[:, 0].astype(jnp.float32)                       # (N,28,28), Cin=1
    xp = jnp.pad(x, ((0, 0), (PAD, PAD), (PAD, PAD)))          # (N,32,32)
    x4 = xp.reshape(n, 16, 2, 32).transpose(0, 2, 1, 3)        # (N,2,16,32) row-parity split
    z1 = conv_pool_call(x4.astype(jnp.bfloat16), prep["w1"], prep["b1"],
                        out_m=14, out_c=14 * 16)               # (N,14,224) bf16

    # ---- conv2 + bias + relu + maxpool (fused kernel, im2col stays in VMEM) ----
    z1 = z1.reshape(n, 14, 14, 16)
    z1p = jnp.pad(z1, ((0, 0), (PAD, PAD), (PAD, PAD), (0, 0)))        # (N,18,18,16)
    z4 = z1p.reshape(n, 9, 2, 18 * 16).transpose(0, 2, 1, 3)           # (N,2,9,288)
    z2 = conv_pool_call(z4, prep["w2"], prep["b2"],
                        out_m=7, out_c=7 * 32)                         # (N,7,224) bf16

    # ---- flatten + fc + softmax ----
    feat = z2.reshape(n, 32 * 7 * 7)      # (h,w,c) ordering; fc weight pre-permuted to match
    return fc_softmax_call(feat, prep["fc_w"], prep["fc_b"])           # (N,10) f32


# ----------------------------------------------------------------------------
# Pure-JAX f32 reference (for validation of the Pallas path)
# ----------------------------------------------------------------------------
def reference_forward(params, x_nchw):
    n = x_nchw.shape[0]
    w1 = prune_weight(params["conv1_w"])
    w2 = prune_weight(params["conv2_w"])
    x = x_nchw[:, 0].astype(jnp.float32)
    xp = jnp.pad(x, ((0, 0), (2, 2), (2, 2)))
    y1 = sum(xp[:, dy:dy + 28, dx:dx + 28, None] * w1[:, 0, dy, dx]
             for dy in range(5) for dx in range(5)) + params["conv1_b"]
    y1 = jnp.maximum(y1, 0.0)
    z1 = y1.reshape(n, 14, 2, 14, 2, 16).max(axis=(2, 4))
    z1p = jnp.pad(z1, ((0, 0), (2, 2), (2, 2), (0, 0)))
    y2 = sum(jnp.einsum("nhwc,cd->nhwd",
                        z1p[:, dy:dy + 14, dx:dx + 14, :], w2[:, :, dy, dx].T)
             for dy in range(5) for dx in range(5)) + params["conv2_b"]
    y2 = jnp.maximum(y2, 0.0)
    z2 = y2.reshape(n, 7, 2, 7, 2, 32).max(axis=(2, 4))
    feat = jnp.transpose(z2, (0, 3, 1, 2)).reshape(n, 32 * 7 * 7)
    logits = feat @ params["fc_w"].T + params["fc_b"]
    return jax.nn.softmax(logits, axis=1)


# ----------------------------------------------------------------------------
if __name__ == "__main__":
    key = jax.random.PRNGKey(0)
    k_param, k_x = jax.random.split(key)

    params = init_params(k_param)
    # MNIST-shaped input; spatial size is fixed by the 32*7*7 FC layer.
    x = jax.random.normal(k_x, (2, 1, 28, 28), jnp.float32)

    prep = prepare_weights(params)          # one-time: prune + pack weights
    probs = net_forward(prep, x)
    probs = jax.block_until_ready(probs)

    assert probs.shape == (2, 10)
    assert bool(jnp.all(jnp.isfinite(probs)))
    # approx-reciprocal softmax -> rows sum to 1 within ~1e-3
    assert bool(jnp.allclose(jnp.sum(probs, axis=1), 1.0, atol=2e-3))
    # loose parity vs. pure-JAX f32 reference (kernel path uses bf16 MXU inputs)
    ref = jax.block_until_ready(reference_forward(params, x))
    assert bool(jnp.max(jnp.abs(probs - ref)) < 5e-2)

    print("KERNEL_OK")
</pallas_src>

<mosaic_0001>
module attributes {stable_mosaic.version = 11 : i64} {
  func.func @conv_pool_kernel(%arg0: i32, %arg1: memref<1x2x16x32xbf16, #tpu.memory_space<vmem>>, %arg2: memref<5x2x32x224xbf16, #tpu.memory_space<vmem>>, %arg3: memref<1x224xf32, #tpu.memory_space<vmem>>, %arg4: memref<1x14x224xbf16, #tpu.memory_space<vmem>>) attributes {dimension_semantics = [#tpu.dimension_semantics<parallel>], iteration_bounds = array<i64: 2>, scalar_prefetch = 0 : i64, scratch_operands = 0 : i64, tpu.core_type = #tpu.core_type<tc>, window_params = [{transform_indices = @transform_0, window_bounds = array<i64: 1, 2, 16, 32>}, {pipeline_mode = #tpu.pipeline_mode<synchronous>, transform_indices = @transform_1, window_bounds = array<i64: 5, 2, 32, 224>}, {pipeline_mode = #tpu.pipeline_mode<synchronous>, transform_indices = @transform_2, window_bounds = array<i64: 1, 224>}, {transform_indices = @transform_3, window_bounds = array<i64: 1, 14, 224>}]} {
    %cst = arith.constant 0.000000e+00 : f32
    %0 = vector.broadcast %cst : f32 to vector<14x224xf32>
    %c0 = arith.constant 0 : index
    %c0_0 = arith.constant 0 : index
    %c0_1 = arith.constant 0 : index
    %c0_2 = arith.constant 0 : index
    %1 = vector.load %arg1[%c0, %c0_0, %c0_1, %c0_2] : memref<1x2x16x32xbf16, #tpu.memory_space<vmem>>, vector<1x1x14x32xbf16>
    %2 = vector.shape_cast %1 : vector<1x1x14x32xbf16> to vector<14x32xbf16>
    %c0_3 = arith.constant 0 : index
    %c0_4 = arith.constant 0 : index
    %c0_5 = arith.constant 0 : index
    %c0_6 = arith.constant 0 : index
    %3 = vector.load %arg2[%c0_3, %c0_4, %c0_5, %c0_6] : memref<5x2x32x224xbf16, #tpu.memory_space<vmem>>, vector<1x1x32x224xbf16>
    %4 = vector.shape_cast %3 : vector<1x1x32x224xbf16> to vector<32x224xbf16>
    %cst_7 = arith.constant dense<0.000000e+00> : vector<14x224xf32>
    %5 = tpu.matmul %2, %4, %cst_7 {dimension_numbers = #tpu.dot_dimension_numbers<[1], [0], [0], [1], [0, 0, 1, 1], [], []>} : vector<14x32xbf16>, vector<32x224xbf16>, vector<14x224xf32> -> vector<14x224xf32>
    %6 = arith.addf %0, %5 : vector<14x224xf32>
    %c0_8 = arith.constant 0 : index
    %c1 = arith.constant 1 : index
    %c0_9 = arith.constant 0 : index
    %c0_10 = arith.constant 0 : index
    %7 = vector.load %arg1[%c0_8, %c1, %c0_9, %c0_10] : memref<1x2x16x32xbf16, #tpu.memory_space<vmem>>, vector<1x1x14x32xbf16>
    %8 = vector.shape_cast %7 : vector<1x1x14x32xbf16> to vector<14x32xbf16>
    %c1_11 = arith.constant 1 : index
    %c0_12 = arith.constant 0 : index
    %c0_13 = arith.constant 0 : index
    %c0_14 = arith.constant 0 : index
    %9 = vector.load %arg2[%c1_11, %c0_12, %c0_13, %c0_14] : memref<5x2x32x224xbf16, #tpu.memory_space<vmem>>, vector<1x1x32x224xbf16>
    %10 = vector.shape_cast %9 : vector<1x1x32x224xbf16> to vector<32x224xbf16>
    %cst_15 = arith.constant dense<0.000000e+00> : vector<14x224xf32>
    %11 = tpu.matmul %8, %10, %cst_15 {dimension_numbers = #tpu.dot_dimension_numbers<[1], [0], [0], [1], [0, 0, 1, 1], [], []>} : vector<14x32xbf16>, vector<32x224xbf16>, vector<14x224xf32> -> vector<14x224xf32>
    %12 = arith.addf %6, %11 : vector<14x224xf32>
    %c0_16 = arith.constant 0 : index
    %c0_17 = arith.constant 0 : index
    %c1_18 = arith.constant 1 : index
    %c0_19 = arith.constant 0 : index
    %13 = vector.load %arg1[%c0_16, %c0_17, %c1_18, %c0_19] : memref<1x2x16x32xbf16, #tpu.memory_space<vmem>>, vector<1x1x14x32xbf16>
    %14 = vector.shape_cast %13 : vector<1x1x14x32xbf16> to vector<14x32xbf16>
    %c2 = arith.constant 2 : index
    %c0_20 = arith.constant 0 : index
    %c0_21 = arith.constant 0 : index
    %c0_22 = arith.constant 0 : index
    %15 = vector.load %arg2[%c2, %c0_20, %c0_21, %c0_22] : memref<5x2x32x224xbf16, #tpu.memory_space<vmem>>, vector<1x1x32x224xbf16>
    %16 = vector.shape_cast %15 : vector<1x1x32x224xbf16> to vector<32x224xbf16>
    %cst_23 = arith.constant dense<0.000000e+00> : vector<14x224xf32>
    %17 = tpu.matmul %14, %16, %cst_23 {dimension_numbers = #tpu.dot_dimension_numbers<[1], [0], [0], [1], [0, 0, 1, 1], [], []>} : vector<14x32xbf16>, vector<32x224xbf16>, vector<14x224xf32> -> vector<14x224xf32>
    %18 = arith.addf %12, %17 : vector<14x224xf32>
    %c0_24 = arith.constant 0 : index
    %c1_25 = arith.constant 1 : index
    %c1_26 = arith.constant 1 : index
    %c0_27 = arith.constant 0 : index
    %19 = vector.load %arg1[%c0_24, %c1_25, %c1_26, %c0_27] : memref<1x2x16x32xbf16, #tpu.memory_space<vmem>>, vector<1x1x14x32xbf16>
    %20 = vector.shape_cast %19 : vector<1x1x14x32xbf16> to vector<14x32xbf16>
    %c3 = arith.constant 3 : index
    %c0_28 = arith.constant 0 : index
    %c0_29 = arith.constant 0 : index
    %c0_30 = arith.constant 0 : index
    %21 = vector.load %arg2[%c3, %c0_28, %c0_29, %c0_30] : memref<5x2x32x224xbf16, #tpu.memory_space<vmem>>, vector<1x1x32x224xbf16>
    %22 = vector.shape_cast %21 : vector<1x1x32x224xbf16> to vector<32x224xbf16>
    %cst_31 = arith.constant dense<0.000000e+00> : vector<14x224xf32>
    %23 = tpu.matmul %20, %22, %cst_31 {dimension_numbers = #tpu.dot_dimension_numbers<[1], [0], [0], [1], [0, 0, 1, 1], [], []>} : vector<14x32xbf16>, vector<32x224xbf16>, vector<14x224xf32> -> vector<14x224xf32>
    %24 = arith.addf %18, %23 : vector<14x224xf32>
    %c0_32 = arith.constant 0 : index
    %c0_33 = arith.constant 0 : index
    %c2_34 = arith.constant 2 : index
    %c0_35 = arith.constant 0 : index
    %25 = vector.load %arg1[%c0_32, %c0_33, %c2_34, %c0_35] : memref<1x2x16x32xbf16, #tpu.memory_space<vmem>>, vector<1x1x14x32xbf16>
    %26 = vector.shape_cast %25 : vector<1x1x14x32xbf16> to vector<14x32xbf16>
    %c4 = arith.constant 4 : index
    %c0_36 = arith.constant 0 : index
    %c0_37 = arith.constant 0 : index
    %c0_38 = arith.constant 0 : index
    %27 = vector.load %arg2[%c4, %c0_36, %c0_37, %c0_38] : memref<5x2x32x224xbf16, #tpu.memory_space<vmem>>, vector<1x1x32x224xbf16>
    %28 = vector.shape_cast %27 : vector<1x1x32x224xbf16> to vector<32x224xbf16>
    %cst_39 = arith.constant dense<0.000000e+00> : vector<14x224xf32>
    %29 = tpu.matmul %26, %28, %cst_39 {dimension_numbers = #tpu.dot_dimension_numbers<[1], [0], [0], [1], [0, 0, 1, 1], [], []>} : vector<14x32xbf16>, vector<32x224xbf16>, vector<14x224xf32> -> vector<14x224xf32>
    %30 = arith.addf %24, %29 : vector<14x224xf32>
    %cst_40 = arith.constant 0.000000e+00 : f32
    %31 = vector.broadcast %cst_40 : f32 to vector<14x224xf32>
    %c0_41 = arith.constant 0 : index
    %c0_42 = arith.constant 0 : index
    %c0_43 = arith.constant 0 : index
    %c0_44 = arith.constant 0 : index
    %32 = vector.load %arg1[%c0_41, %c0_42, %c0_43, %c0_44] : memref<1x2x16x32xbf16, #tpu.memory_space<vmem>>, vector<1x1x14x32xbf16>
    %33 = vector.shape_cast %32 : vector<1x1x14x32xbf16> to vector<14x32xbf16>
    %c0_45 = arith.constant 0 : index
    %c1_46 = arith.constant 1 : index
    %c0_47 = arith.constant 0 : index
    %c0_48 = arith.constant 0 : index
    %34 = vector.load %arg2[%c0_45, %c1_46, %c0_47, %c0_48] : memref<5x2x32x224xbf16, #tpu.memory_space<vmem>>, vector<1x1x32x224xbf16>
    %35 = vector.shape_cast %34 : vector<1x1x32x224xbf16> to vector<32x224xbf16>
    %cst_49 = arith.constant dense<0.000000e+00> : vector<14x224xf32>
    %36 = tpu.matmul %33, %35, %cst_49 {dimension_numbers = #tpu.dot_dimension_numbers<[1], [0], [0], [1], [0, 0, 1, 1], [], []>} : vector<14x32xbf16>, vector<32x224xbf16>, vector<14x224xf32> -> vector<14x224xf32>
    %37 = arith.addf %31, %36 : vector<14x224xf32>
    %c0_50 = arith.constant 0 : index
    %c1_51 = arith.constant 1 : index
    %c0_52 = arith.constant 0 : index
    %c0_53 = arith.constant 0 : index
    %38 = vector.load %arg1[%c0_50, %c1_51, %c0_52, %c0_53] : memref<1x2x16x32xbf16, #tpu.memory_space<vmem>>, vector<1x1x14x32xbf16>
    %39 = vector.shape_cast %38 : vector<1x1x14x32xbf16> to vector<14x32xbf16>
    %c1_54 = arith.constant 1 : index
    %c1_55 = arith.constant 1 : index
    %c0_56 = arith.constant 0 : index
    %c0_57 = arith.constant 0 : index
    %40 = vector.load %arg2[%c1_54, %c1_55, %c0_56, %c0_57] : memref<5x2x32x224xbf16, #tpu.memory_space<vmem>>, vector<1x1x32x224xbf16>
    %41 = vector.shape_cast %40 : vector<1x1x32x224xbf16> to vector<32x224xbf16>
    %cst_58 = arith.constant dense<0.000000e+00> : vector<14x224xf32>
    %42 = tpu.matmul %39, %41, %cst_58 {dimension_numbers = #tpu.dot_dimension_numbers<[1], [0], [0], [1], [0, 0, 1, 1], [], []>} : vector<14x32xbf16>, vector<32x224xbf16>, vector<14x224xf32> -> vector<14x224xf32>
    %43 = arith.addf %37, %42 : vector<14x224xf32>
    %c0_59 = arith.constant 0 : index
    %c0_60 = arith.constant 0 : index
    %c1_61 = arith.constant 1 : index
    %c0_62 = arith.constant 0 : index
    %44 = vector.load %arg1[%c0_59, %c0_60, %c1_61, %c0_62] : memref<1x2x16x32xbf16, #tpu.memory_space<vmem>>, vector<1x1x14x32xbf16>
    %45 = vector.shape_cast %44 : vector<1x1x14x32xbf16> to vector<14x32xbf16>
    %c2_63 = arith.constant 2 : index
    %c1_64 = arith.constant 1 : index
    %c0_65 = arith.constant 0 : index
    %c0_66 = arith.constant 0 : index
    %46 = vector.load %arg2[%c2_63, %c1_64, %c0_65, %c0_66] : memref<5x2x32x224xbf16, #tpu.memory_space<vmem>>, vector<1x1x32x224xbf16>
    %47 = vector.shape_cast %46 : vector<1x1x32x224xbf16> to vector<32x224xbf16>
    %cst_67 = arith.constant dense<0.000000e+00> : vector<14x224xf32>
    %48 = tpu.matmul %45, %47, %cst_67 {dimension_numbers = #tpu.dot_dimension_numbers<[1], [0], [0], [1], [0, 0, 1, 1], [], []>} : vector<14x32xbf16>, vector<32x224xbf16>, vector<14x224xf32> -> vector<14x224xf32>
    %49 = arith.addf %43, %48 : vector<14x224xf32>
    %c0_68 = arith.constant 0 : index
    %c1_69 = arith.constant 1 : index
    %c1_70 = arith.constant 1 : index
    %c0_71 = arith.constant 0 : index
    %50 = vector.load %arg1[%c0_68, %c1_69, %c1_70, %c0_71] : memref<1x2x16x32xbf16, #tpu.memory_space<vmem>>, vector<1x1x14x32xbf16>
    %51 = vector.shape_cast %50 : vector<1x1x14x32xbf16> to vector<14x32xbf16>
    %c3_72 = arith.constant 3 : index
    %c1_73 = arith.constant 1 : index
    %c0_74 = arith.constant 0 : index
    %c0_75 = arith.constant 0 : index
    %52 = vector.load %arg2[%c3_72, %c1_73, %c0_74, %c0_75] : memref<5x2x32x224xbf16, #tpu.memory_space<vmem>>, vector<1x1x32x224xbf16>
    %53 = vector.shape_cast %52 : vector<1x1x32x224xbf16> to vector<32x224xbf16>
    %cst_76 = arith.constant dense<0.000000e+00> : vector<14x224xf32>
    %54 = tpu.matmul %51, %53, %cst_76 {dimension_numbers = #tpu.dot_dimension_numbers<[1], [0], [0], [1], [0, 0, 1, 1], [], []>} : vector<14x32xbf16>, vector<32x224xbf16>, vector<14x224xf32> -> vector<14x224xf32>
    %55 = arith.addf %49, %54 : vector<14x224xf32>
    %c0_77 = arith.constant 0 : index
    %c0_78 = arith.constant 0 : index
    %c2_79 = arith.constant 2 : index
    %c0_80 = arith.constant 0 : index
    %56 = vector.load %arg1[%c0_77, %c0_78, %c2_79, %c0_80] : memref<1x2x16x32xbf16, #tpu.memory_space<vmem>>, vector<1x1x14x32xbf16>
    %57 = vector.shape_cast %56 : vector<1x1x14x32xbf16> to vector<14x32xbf16>
    %c4_81 = arith.constant 4 : index
    %c1_82 = arith.constant 1 : index
    %c0_83 = arith.constant 0 : index
    %c0_84 = arith.constant 0 : index
    %58 = vector.load %arg2[%c4_81, %c1_82, %c0_83, %c0_84] : memref<5x2x32x224xbf16, #tpu.memory_space<vmem>>, vector<1x1x32x224xbf16>
    %59 = vector.shape_cast %58 : vector<1x1x32x224xbf16> to vector<32x224xbf16>
    %cst_85 = arith.constant dense<0.000000e+00> : vector<14x224xf32>
    %60 = tpu.matmul %57, %59, %cst_85 {dimension_numbers = #tpu.dot_dimension_numbers<[1], [0], [0], [1], [0, 0, 1, 1], [], []>} : vector<14x32xbf16>, vector<32x224xbf16>, vector<14x224xf32> -> vector<14x224xf32>
    %61 = arith.addf %55, %60 : vector<14x224xf32>
    %62 = arith.maximumf %30, %61 : vector<14x224xf32>
    %cst_86 = arith.constant 0.000000e+00 : f32
    %63 = vector.broadcast %cst_86 : f32 to vector<14x224xf32>
    %c0_87 = arith.constant 0 : index
    %c1_88 = arith.constant 1 : index
    %c0_89 = arith.constant 0 : index
    %c0_90 = arith.constant 0 : index
    %64 = vector.load %arg1[%c0_87, %c1_88, %c0_89, %c0_90] : memref<1x2x16x32xbf16, #tpu.memory_space<vmem>>, vector<1x1x14x32xbf16>
    %65 = vector.shape_cast %64 : vector<1x1x14x32xbf16> to vector<14x32xbf16>
    %c0_91 = arith.constant 0 : index
    %c0_92 = arith.constant 0 : index
    %c0_93 = arith.constant 0 : index
    %c0_94 = arith.constant 0 : index
    %66 = vector.load %arg2[%c0_91, %c0_92, %c0_93, %c0_94] : memref<5x2x32x224xbf16, #tpu.memory_space<vmem>>, vector<1x1x32x224xbf16>
    %67 = vector.shape_cast %66 : vector<1x1x32x224xbf16> to vector<32x224xbf16>
    %cst_95 = arith.constant dense<0.000000e+00> : vector<14x224xf32>
    %68 = tpu.matmul %65, %67, %cst_95 {dimension_numbers = #tpu.dot_dimension_numbers<[1], [0], [0], [1], [0, 0, 1, 1], [], []>} : vector<14x32xbf16>, vector<32x224xbf16>, vector<14x224xf32> -> vector<14x224xf32>
    %69 = arith.addf %63, %68 : vector<14x224xf32>
    %c0_96 = arith.constant 0 : index
    %c0_97 = arith.constant 0 : index
    %c1_98 = arith.constant 1 : index
    %c0_99 = arith.constant 0 : index
    %70 = vector.load %arg1[%c0_96, %c0_97, %c1_98, %c0_99] : memref<1x2x16x32xbf16, #tpu.memory_space<vmem>>, vector<1x1x14x32xbf16>
    %71 = vector.shape_cast %70 : vector<1x1x14x32xbf16> to vector<14x32xbf16>
    %c1_100 = arith.constant 1 : index
    %c0_101 = arith.constant 0 : index
    %c0_102 = arith.constant 0 : index
    %c0_103 = arith.constant 0 : index
    %72 = vector.load %arg2[%c1_100, %c0_101, %c0_102, %c0_103] : memref<5x2x32x224xbf16, #tpu.memory_space<vmem>>, vector<1x1x32x224xbf16>
    %73 = vector.shape_cast %72 : vector<1x1x32x224xbf16> to vector<32x224xbf16>
    %cst_104 = arith.constant dense<0.000000e+00> : vector<14x224xf32>
    %74 = tpu.matmul %71, %73, %cst_104 {dimension_numbers = #tpu.dot_dimension_numbers<[1], [0], [0], [1], [0, 0, 1, 1], [], []>} : vector<14x32xbf16>, vector<32x224xbf16>, vector<14x224xf32> -> vector<14x224xf32>
    %75 = arith.addf %69, %74 : vector<14x224xf32>
    %c0_105 = arith.constant 0 : index
    %c1_106 = arith.constant 1 : index
    %c1_107 = arith.constant 1 : index
    %c0_108 = arith.constant 0 : index
    %76 = vector.load %arg1[%c0_105, %c1_106, %c1_107, %c0_108] : memref<1x2x16x32xbf16, #tpu.memory_space<vmem>>, vector<1x1x14x32xbf16>
    %77 = vector.shape_cast %76 : vector<1x1x14x32xbf16> to vector<14x32xbf16>
    %c2_109 = arith.constant 2 : index
    %c0_110 = arith.constant 0 : index
    %c0_111 = arith.constant 0 : index
    %c0_112 = arith.constant 0 : index
    %78 = vector.load %arg2[%c2_109, %c0_110, %c0_111, %c0_112] : memref<5x2x32x224xbf16, #tpu.memory_space<vmem>>, vector<1x1x32x224xbf16>
    %79 = vector.shape_cast %78 : vector<1x1x32x224xbf16> to vector<32x224xbf16>
    %cst_113 = arith.constant dense<0.000000e+00> : vector<14x224xf32>
    %80 = tpu.matmul %77, %79, %cst_113 {dimension_numbers = #tpu.dot_dimension_numbers<[1], [0], [0], [1], [0, 0, 1, 1], [], []>} : vector<14x32xbf16>, vector<32x224xbf16>, vector<14x224xf32> -> vector<14x224xf32>
    %81 = arith.addf %75, %80 : vector<14x224xf32>
    %c0_114 = arith.constant 0 : index
    %c0_115 = arith.constant 0 : index
    %c2_116 = arith.constant 2 : index
    %c0_117 = arith.constant 0 : index
    %82 = vector.load %arg1[%c0_114, %c0_115, %c2_116, %c0_117] : memref<1x2x16x32xbf16, #tpu.memory_space<vmem>>, vector<1x1x14x32xbf16>
    %83 = vector.shape_cast %82 : vector<1x1x14x32xbf16> to vector<14x32xbf16>
    %c3_118 = arith.constant 3 : index
    %c0_119 = arith.constant 0 : index
    %c0_120 = arith.constant 0 : index
    %c0_121 = arith.constant 0 : index
    %84 = vector.load %arg2[%c3_118, %c0_119, %c0_120, %c0_121] : memref<5x2x32x224xbf16, #tpu.memory_space<vmem>>, vector<1x1x32x224xbf16>
    %85 = vector.shape_cast %84 : vector<1x1x32x224xbf16> to vector<32x224xbf16>
    %cst_122 = arith.constant dense<0.000000e+00> : vector<14x224xf32>
    %86 = tpu.matmul %83, %85, %cst_122 {dimension_numbers = #tpu.dot_dimension_numbers<[1], [0], [0], [1], [0, 0, 1, 1], [], []>} : vector<14x32xbf16>, vector<32x224xbf16>, vector<14x224xf32> -> vector<14x224xf32>
    %87 = arith.addf %81, %86 : vector<14x224xf32>
    %c0_123 = arith.constant 0 : index
    %c1_124 = arith.constant 1 : index
    %c2_125 = arith.constant 2 : index
    %c0_126 = arith.constant 0 : index
    %88 = vector.load %arg1[%c0_123, %c1_124, %c2_125, %c0_126] : memref<1x2x16x32xbf16, #tpu.memory_space<vmem>>, vector<1x1x14x32xbf16>
    %89 = vector.shape_cast %88 : vector<1x1x14x32xbf16> to vector<14x32xbf16>
    %c4_127 = arith.constant 4 : index
    %c0_128 = arith.constant 0 : index
    %c0_129 = arith.constant 0 : index
    %c0_130 = arith.constant 0 : index
    %90 = vector.load %arg2[%c4_127, %c0_128, %c0_129, %c0_130] : memref<5x2x32x224xbf16, #tpu.memory_space<vmem>>, vector<1x1x32x224xbf16>
    %91 = vector.shape_cast %90 : vector<1x1x32x224xbf16> to vector<32x224xbf16>
    %cst_131 = arith.constant dense<0.000000e+00> : vector<14x224xf32>
    %92 = tpu.matmul %89, %91, %cst_131 {dimension_numbers = #tpu.dot_dimension_numbers<[1], [0], [0], [1], [0, 0, 1, 1], [], []>} : vector<14x32xbf16>, vector<32x224xbf16>, vector<14x224xf32> -> vector<14x224xf32>
    %93 = arith.addf %87, %92 : vector<14x224xf32>
    %94 = arith.maximumf %62, %93 : vector<14x224xf32>
    %cst_132 = arith.constant 0.000000e+00 : f32
    %95 = vector.broadcast %cst_132 : f32 to vector<14x224xf32>
    %c0_133 = arith.constant 0 : index
    %c1_134 = arith.constant 1 : index
    %c0_135 = arith.constant 0 : index
    %c0_136 = arith.constant 0 : index
    %96 = vector.load %arg1[%c0_133, %c1_134, %c0_135, %c0_136] : memref<1x2x16x32xbf16, #tpu.memory_space<vmem>>, vector<1x1x14x32xbf16>
    %97 = vector.shape_cast %96 : vector<1x1x14x32xbf16> to vector<14x32xbf16>
    %c0_137 = arith.constant 0 : index
    %c1_138 = arith.constant 1 : index
    %c0_139 = arith.constant 0 : index
    %c0_140 = arith.constant 0 : index
    %98 = vector.load %arg2[%c0_137, %c1_138, %c0_139, %c0_140] : memref<5x2x32x224xbf16, #tpu.memory_space<vmem>>, vector<1x1x32x224xbf16>
    %99 = vector.shape_cast %98 : vector<1x1x32x224xbf16> to vector<32x224xbf16>
    %cst_141 = arith.constant dense<0.000000e+00> : vector<14x224xf32>
    %100 = tpu.matmul %97, %99, %cst_141 {dimension_numbers = #tpu.dot_dimension_numbers<[1], [0], [0], [1], [0, 0, 1, 1], [], []>} : vector<14x32xbf16>, vector<32x224xbf16>, vector<14x224xf32> -> vector<14x224xf32>
    %101 = arith.addf %95, %100 : vector<14x224xf32>
    %c0_142 = arith.constant 0 : index
    %c0_143 = arith.constant 0 : index
    %c1_144 = arith.constant 1 : index
    %c0_145 = arith.constant 0 : index
    %102 = vector.load %arg1[%c0_142, %c0_143, %c1_144, %c0_145] : memref<1x2x16x32xbf16, #tpu.memory_space<vmem>>, vector<1x1x14x32xbf16>
    %103 = vector.shape_cast %102 : vector<1x1x14x32xbf16> to vector<14x32xbf16>
    %c1_146 = arith.constant 1 : index
    %c1_147 = arith.constant 1 : index
    %c0_148 = arith.constant 0 : index
    %c0_149 = arith.constant 0 : index
    %104 = vector.load %arg2[%c1_146, %c1_147, %c0_148, %c0_149] : memref<5x2x32x224xbf16, #tpu.memory_space<vmem>>, vector<1x1x32x224xbf16>
    %105 = vector.shape_cast %104 : vector<1x1x32x224xbf16> to vector<32x224xbf16>
    %cst_150 = arith.constant dense<0.000000e+00> : vector<14x224xf32>
    %106 = tpu.matmul %103, %105, %cst_150 {dimension_numbers = #tpu.dot_dimension_numbers<[1], [0], [0], [1], [0, 0, 1, 1], [], []>} : vector<14x32xbf16>, vector<32x224xbf16>, vector<14x224xf32> -> vector<14x224xf32>
    %107 = arith.addf %101, %106 : vector<14x224xf32>
    %c0_151 = arith.constant 0 : index
    %c1_152 = arith.constant 1 : index
    %c1_153 = arith.constant 1 : index
    %c0_154 = arith.constant 0 : index
    %108 = vector.load %arg1[%c0_151, %c1_152, %c1_153, %c0_154] : memref<1x2x16x32xbf16, #tpu.memory_space<vmem>>, vector<1x1x14x32xbf16>
    %109 = vector.shape_cast %108 : vector<1x1x14x32xbf16> to vector<14x32xbf16>
    %c2_155 = arith.constant 2 : index
    %c1_156 = arith.constant 1 : index
    %c0_157 = arith.constant 0 : index
    %c0_158 = arith.constant 0 : index
    %110 = vector.load %arg2[%c2_155, %c1_156, %c0_157, %c0_158] : memref<5x2x32x224xbf16, #tpu.memory_space<vmem>>, vector<1x1x32x224xbf16>
    %111 = vector.shape_cast %110 : vector<1x1x32x224xbf16> to vector<32x224xbf16>
    %cst_159 = arith.constant dense<0.000000e+00> : vector<14x224xf32>
    %112 = tpu.matmul %109, %111, %cst_159 {dimension_numbers = #tpu.dot_dimension_numbers<[1], [0], [0], [1], [0, 0, 1, 1], [], []>} : vector<14x32xbf16>, vector<32x224xbf16>, vector<14x224xf32> -> vector<14x224xf32>
    %113 = arith.addf %107, %112 : vector<14x224xf32>
    %c0_160 = arith.constant 0 : index
    %c0_161 = arith.constant 0 : index
    %c2_162 = arith.constant 2 : index
    %c0_163 = arith.constant 0 : index
    %114 = vector.load %arg1[%c0_160, %c0_161, %c2_162, %c0_163] : memref<1x2x16x32xbf16, #tpu.memory_space<vmem>>, vector<1x1x14x32xbf16>
    %115 = vector.shape_cast %114 : vector<1x1x14x32xbf16> to vector<14x32xbf16>
    %c3_164 = arith.constant 3 : index
    %c1_165 = arith.constant 1 : index
    %c0_166 = arith.constant 0 : index
    %c0_167 = arith.constant 0 : index
    %116 = vector.load %arg2[%c3_164, %c1_165, %c0_166, %c0_167] : memref<5x2x32x224xbf16, #tpu.memory_space<vmem>>, vector<1x1x32x224xbf16>
    %117 = vector.shape_cast %116 : vector<1x1x32x224xbf16> to vector<32x224xbf16>
    %cst_168 = arith.constant dense<0.000000e+00> : vector<14x224xf32>
    %118 = tpu.matmul %115, %117, %cst_168 {dimension_numbers = #tpu.dot_dimension_numbers<[1], [0], [0], [1], [0, 0, 1, 1], [], []>} : vector<14x32xbf16>, vector<32x224xbf16>, vector<14x224xf32> -> vector<14x224xf32>
    %119 = arith.addf %113, %118 : vector<14x224xf32>
    %c0_169 = arith.constant 0 : index
    %c1_170 = arith.constant 1 : index
    %c2_171 = arith.constant 2 : index
    %c0_172 = arith.constant 0 : index
    %120 = vector.load %arg1[%c0_169, %c1_170, %c2_171, %c0_172] : memref<1x2x16x32xbf16, #tpu.memory_space<vmem>>, vector<1x1x14x32xbf16>
    %121 = vector.shape_cast %120 : vector<1x1x14x32xbf16> to vector<14x32xbf16>
    %c4_173 = arith.constant 4 : index
    %c1_174 = arith.constant 1 : index
    %c0_175 = arith.constant 0 : index
    %c0_176 = arith.constant 0 : index
    %122 = vector.load %arg2[%c4_173, %c1_174, %c0_175, %c0_176] : memref<5x2x32x224xbf16, #tpu.memory_space<vmem>>, vector<1x1x32x224xbf16>
    %123 = vector.shape_cast %122 : vector<1x1x32x224xbf16> to vector<32x224xbf16>
    %cst_177 = arith.constant dense<0.000000e+00> : vector<14x224xf32>
    %124 = tpu.matmul %121, %123, %cst_177 {dimension_numbers = #tpu.dot_dimension_numbers<[1], [0], [0], [1], [0, 0, 1, 1], [], []>} : vector<14x32xbf16>, vector<32x224xbf16>, vector<14x224xf32> -> vector<14x224xf32>
    %125 = arith.addf %119, %124 : vector<14x224xf32>
    %126 = arith.maximumf %94, %125 : vector<14x224xf32>
    %c0_178 = arith.constant 0 : index
    %c0_179 = arith.constant 0 : index
    %127 = vector.load %arg3[%c0_178, %c0_179] : memref<1x224xf32, #tpu.memory_space<vmem>>, vector<1x224xf32>
    %128 = vector.broadcast %127 : vector<1x224xf32> to vector<14x224xf32>
    %129 = arith.addf %126, %128 : vector<14x224xf32>
    %cst_180 = arith.constant 0.000000e+00 : f32
    %130 = vector.broadcast %cst_180 : f32 to vector<14x224xf32>
    %131 = arith.maximumf %129, %130 : vector<14x224xf32>
    %132 = arith.truncf %131 : vector<14x224xf32> to vector<14x224xbf16>
    %c0_181 = arith.constant 0 : index
    %c0_182 = arith.constant 0 : index
    %c0_183 = arith.constant 0 : index
    %133 = vector.load %arg4[%c0_181, %c0_182, %c0_183] : memref<1x14x224xbf16, #tpu.memory_space<vmem>>, vector<1x14x224xbf16>
    %134 = vector.shape_cast %133 : vector<1x14x224xbf16> to vector<14x224xbf16>
    %135 = vector.shape_cast %132 : vector<14x224xbf16> to vector<1x14x224xbf16>
    tpu.vector_store %arg4[%c0_181, %c0_182, %c0_183], %135 {strides = array<i32>} : memref<1x14x224xbf16, #tpu.memory_space<vmem>>, vector<1x14x224xbf16>,
    return
  }
  func.func @transform_0(%arg0: i32) -> (i32, i32, i32, i32) {
    %c0_i32 = arith.constant 0 : i32
    %c0_i32_0 = arith.constant 0 : i32
    %c0_i32_1 = arith.constant 0 : i32
    %c0_i32_2 = arith.constant 0 : i32
    return %arg0, %c0_i32, %c0_i32_0, %c0_i32_1 : i32, i32, i32, i32
  }
  func.func @transform_1(%arg0: i32) -> (i32, i32, i32, i32) {
    %c0_i32 = arith.constant 0 : i32
    %c0_i32_0 = arith.constant 0 : i32
    %c0_i32_1 = arith.constant 0 : i32
    %c0_i32_2 = arith.constant 0 : i32
    %c0_i32_3 = arith.constant 0 : i32
    return %c0_i32, %c0_i32_0, %c0_i32_1, %c0_i32_2 : i32, i32, i32, i32
  }
  func.func @transform_2(%arg0: i32) -> (i32, i32) {
    %c0_i32 = arith.constant 0 : i32
    %c0_i32_0 = arith.constant 0 : i32
    %c0_i32_1 = arith.constant 0 : i32
    return %c0_i32, %c0_i32_0 : i32, i32
  }
  func.func @transform_3(%arg0: i32) -> (i32, i32, i32) {
    %c0_i32 = arith.constant 0 : i32
    %c0_i32_0 = arith.constant 0 : i32
    %c0_i32_1 = arith.constant 0 : i32
    return %arg0, %c0_i32, %c0_i32_0 : i32, i32, i32
  }
}

module attributes {stable_mosaic.version = 11 : i64} {
  func.func @conv_pool_kernel(%arg0: i32, %arg1: memref<1x2x9x288xbf16, #tpu.memory_space<vmem>>, %arg2: memref<5x2x288x224xbf16, #tpu.memory_space<vmem>>, %arg3: memref<1x224xf32, #tpu.memory_space<vmem>>, %arg4: memref<1x7x224xbf16, #tpu.memory_space<vmem>>) attributes {dimension_semantics = [#tpu.dimension_semantics<parallel>], iteration_bounds = array<i64: 2>, scalar_prefetch = 0 : i64, scratch_operands = 0 : i64, tpu.core_type = #tpu.core_type<tc>, window_params = [{transform_indices = @transform_0, window_bounds = array<i64: 1, 2, 9, 288>}, {pipeline_mode = #tpu.pipeline_mode<synchronous>, transform_indices = @transform_1, window_bounds = array<i64: 5, 2, 288, 224>}, {pipeline_mode = #tpu.pipeline_mode<synchronous>, transform_indices = @transform_2, window_bounds = array<i64: 1, 224>}, {transform_indices = @transform_3, window_bounds = array<i64: 1, 7, 224>}]} {
    %cst = arith.constant 0.000000e+00 : f32
    %0 = vector.broadcast %cst : f32 to vector<7x224xf32>
    %c0 = arith.constant 0 : index
    %c0_0 = arith.constant 0 : index
    %c0_1 = arith.constant 0 : index
    %c0_2 = arith.constant 0 : index
    %1 = vector.load %arg1[%c0, %c0_0, %c0_1, %c0_2] : memref<1x2x9x288xbf16, #tpu.memory_space<vmem>>, vector<1x1x7x288xbf16>
    %2 = vector.shape_cast %1 : vector<1x1x7x288xbf16> to vector<7x288xbf16>
    %c0_3 = arith.constant 0 : index
    %c0_4 = arith.constant 0 : index
    %c0_5 = arith.constant 0 : index
    %c0_6 = arith.constant 0 : index
    %3 = vector.load %arg2[%c0_3, %c0_4, %c0_5, %c0_6] : memref<5x2x288x224xbf16, #tpu.memory_space<vmem>>, vector<1x1x288x224xbf16>
    %4 = vector.shape_cast %3 : vector<1x1x288x224xbf16> to vector<288x224xbf16>
    %cst_7 = arith.constant dense<0.000000e+00> : vector<7x224xf32>
    %5 = tpu.matmul %2, %4, %cst_7 {dimension_numbers = #tpu.dot_dimension_numbers<[1], [0], [0], [1], [0, 0, 1, 1], [], []>} : vector<7x288xbf16>, vector<288x224xbf16>, vector<7x224xf32> -> vector<7x224xf32>
    %6 = arith.addf %0, %5 : vector<7x224xf32>
    %c0_8 = arith.constant 0 : index
    %c1 = arith.constant 1 : index
    %c0_9 = arith.constant 0 : index
    %c0_10 = arith.constant 0 : index
    %7 = vector.load %arg1[%c0_8, %c1, %c0_9, %c0_10] : memref<1x2x9x288xbf16, #tpu.memory_space<vmem>>, vector<1x1x7x288xbf16>
    %8 = vector.shape_cast %7 : vector<1x1x7x288xbf16> to vector<7x288xbf16>
    %c1_11 = arith.constant 1 : index
    %c0_12 = arith.constant 0 : index
    %c0_13 = arith.constant 0 : index
    %c0_14 = arith.constant 0 : index
    %9 = vector.load %arg2[%c1_11, %c0_12, %c0_13, %c0_14] : memref<5x2x288x224xbf16, #tpu.memory_space<vmem>>, vector<1x1x288x224xbf16>
    %10 = vector.shape_cast %9 : vector<1x1x288x224xbf16> to vector<288x224xbf16>
    %cst_15 = arith.constant dense<0.000000e+00> : vector<7x224xf32>
    %11 = tpu.matmul %8, %10, %cst_15 {dimension_numbers = #tpu.dot_dimension_numbers<[1], [0], [0], [1], [0, 0, 1, 1], [], []>} : vector<7x288xbf16>, vector<288x224xbf16>, vector<7x224xf32> -> vector<7x224xf32>
    %12 = arith.addf %6, %11 : vector<7x224xf32>
    %c0_16 = arith.constant 0 : index
    %c0_17 = arith.constant 0 : index
    %c1_18 = arith.constant 1 : index
    %c0_19 = arith.constant 0 : index
    %13 = vector.load %arg1[%c0_16, %c0_17, %c1_18, %c0_19] : memref<1x2x9x288xbf16, #tpu.memory_space<vmem>>, vector<1x1x7x288xbf16>
    %14 = vector.shape_cast %13 : vector<1x1x7x288xbf16> to vector<7x288xbf16>
    %c2 = arith.constant 2 : index
    %c0_20 = arith.constant 0 : index
    %c0_21 = arith.constant 0 : index
    %c0_22 = arith.constant 0 : index
    %15 = vector.load %arg2[%c2, %c0_20, %c0_21, %c0_22] : memref<5x2x288x224xbf16, #tpu.memory_space<vmem>>, vector<1x1x288x224xbf16>
    %16 = vector.shape_cast %15 : vector<1x1x288x224xbf16> to vector<288x224xbf16>
    %cst_23 = arith.constant dense<0.000000e+00> : vector<7x224xf32>
    %17 = tpu.matmul %14, %16, %cst_23 {dimension_numbers = #tpu.dot_dimension_numbers<[1], [0], [0], [1], [0, 0, 1, 1], [], []>} : vector<7x288xbf16>, vector<288x224xbf16>, vector<7x224xf32> -> vector<7x224xf32>
    %18 = arith.addf %12, %17 : vector<7x224xf32>
    %c0_24 = arith.constant 0 : index
    %c1_25 = arith.constant 1 : index
    %c1_26 = arith.constant 1 : index
    %c0_27 = arith.constant 0 : index
    %19 = vector.load %arg1[%c0_24, %c1_25, %c1_26, %c0_27] : memref<1x2x9x288xbf16, #tpu.memory_space<vmem>>, vector<1x1x7x288xbf16>
    %20 = vector.shape_cast %19 : vector<1x1x7x288xbf16> to vector<7x288xbf16>
    %c3 = arith.constant 3 : index
    %c0_28 = arith.constant 0 : index
    %c0_29 = arith.constant 0 : index
    %c0_30 = arith.constant 0 : index
    %21 = vector.load %arg2[%c3, %c0_28, %c0_29, %c0_30] : memref<5x2x288x224xbf16, #tpu.memory_space<vmem>>, vector<1x1x288x224xbf16>
    %22 = vector.shape_cast %21 : vector<1x1x288x224xbf16> to vector<288x224xbf16>
    %cst_31 = arith.constant dense<0.000000e+00> : vector<7x224xf32>
    %23 = tpu.matmul %20, %22, %cst_31 {dimension_numbers = #tpu.dot_dimension_numbers<[1], [0], [0], [1], [0, 0, 1, 1], [], []>} : vector<7x288xbf16>, vector<288x224xbf16>, vector<7x224xf32> -> vector<7x224xf32>
    %24 = arith.addf %18, %23 : vector<7x224xf32>
    %c0_32 = arith.constant 0 : index
    %c0_33 = arith.constant 0 : index
    %c2_34 = arith.constant 2 : index
    %c0_35 = arith.constant 0 : index
    %25 = vector.load %arg1[%c0_32, %c0_33, %c2_34, %c0_35] : memref<1x2x9x288xbf16, #tpu.memory_space<vmem>>, vector<1x1x7x288xbf16>
    %26 = vector.shape_cast %25 : vector<1x1x7x288xbf16> to vector<7x288xbf16>
    %c4 = arith.constant 4 : index
    %c0_36 = arith.constant 0 : index
    %c0_37 = arith.constant 0 : index
    %c0_38 = arith.constant 0 : index
    %27 = vector.load %arg2[%c4, %c0_36, %c0_37, %c0_38] : memref<5x2x288x224xbf16, #tpu.memory_space<vmem>>, vector<1x1x288x224xbf16>
    %28 = vector.shape_cast %27 : vector<1x1x288x224xbf16> to vector<288x224xbf16>
    %cst_39 = arith.constant dense<0.000000e+00> : vector<7x224xf32>
    %29 = tpu.matmul %26, %28, %cst_39 {dimension_numbers = #tpu.dot_dimension_numbers<[1], [0], [0], [1], [0, 0, 1, 1], [], []>} : vector<7x288xbf16>, vector<288x224xbf16>, vector<7x224xf32> -> vector<7x224xf32>
    %30 = arith.addf %24, %29 : vector<7x224xf32>
    %cst_40 = arith.constant 0.000000e+00 : f32
    %31 = vector.broadcast %cst_40 : f32 to vector<7x224xf32>
    %c0_41 = arith.constant 0 : index
    %c0_42 = arith.constant 0 : index
    %c0_43 = arith.constant 0 : index
    %c0_44 = arith.constant 0 : index
    %32 = vector.load %arg1[%c0_41, %c0_42, %c0_43, %c0_44] : memref<1x2x9x288xbf16, #tpu.memory_space<vmem>>, vector<1x1x7x288xbf16>
    %33 = vector.shape_cast %32 : vector<1x1x7x288xbf16> to vector<7x288xbf16>
    %c0_45 = arith.constant 0 : index
    %c1_46 = arith.constant 1 : index
    %c0_47 = arith.constant 0 : index
    %c0_48 = arith.constant 0 : index
    %34 = vector.load %arg2[%c0_45, %c1_46, %c0_47, %c0_48] : memref<5x2x288x224xbf16, #tpu.memory_space<vmem>>, vector<1x1x288x224xbf16>
    %35 = vector.shape_cast %34 : vector<1x1x288x224xbf16> to vector<288x224xbf16>
    %cst_49 = arith.constant dense<0.000000e+00> : vector<7x224xf32>
    %36 = tpu.matmul %33, %35, %cst_49 {dimension_numbers = #tpu.dot_dimension_numbers<[1], [0], [0], [1], [0, 0, 1, 1], [], []>} : vector<7x288xbf16>, vector<288x224xbf16>, vector<7x224xf32> -> vector<7x224xf32>
    %37 = arith.addf %31, %36 : vector<7x224xf32>
    %c0_50 = arith.constant 0 : index
    %c1_51 = arith.constant 1 : index
    %c0_52 = arith.constant 0 : index
    %c0_53 = arith.constant 0 : index
    %38 = vector.load %arg1[%c0_50, %c1_51, %c0_52, %c0_53] : memref<1x2x9x288xbf16, #tpu.memory_space<vmem>>, vector<1x1x7x288xbf16>
    %39 = vector.shape_cast %38 : vector<1x1x7x288xbf16> to vector<7x288xbf16>
    %c1_54 = arith.constant 1 : index
    %c1_55 = arith.constant 1 : index
    %c0_56 = arith.constant 0 : index
    %c0_57 = arith.constant 0 : index
    %40 = vector.load %arg2[%c1_54, %c1_55, %c0_56, %c0_57] : memref<5x2x288x224xbf16, #tpu.memory_space<vmem>>, vector<1x1x288x224xbf16>
    %41 = vector.shape_cast %40 : vector<1x1x288x224xbf16> to vector<288x224xbf16>
    %cst_58 = arith.constant dense<0.000000e+00> : vector<7x224xf32>
    %42 = tpu.matmul %39, %41, %cst_58 {dimension_numbers = #tpu.dot_dimension_numbers<[1], [0], [0], [1], [0, 0, 1, 1], [], []>} : vector<7x288xbf16>, vector<288x224xbf16>, vector<7x224xf32> -> vector<7x224xf32>
    %43 = arith.addf %37, %42 : vector<7x224xf32>
    %c0_59 = arith.constant 0 : index
    %c0_60 = arith.constant 0 : index
    %c1_61 = arith.constant 1 : index
    %c0_62 = arith.constant 0 : index
    %44 = vector.load %arg1[%c0_59, %c0_60, %c1_61, %c0_62] : memref<1x2x9x288xbf16, #tpu.memory_space<vmem>>, vector<1x1x7x288xbf16>
    %45 = vector.shape_cast %44 : vector<1x1x7x288xbf16> to vector<7x288xbf16>
    %c2_63 = arith.constant 2 : index
    %c1_64 = arith.constant 1 : index
    %c0_65 = arith.constant 0 : index
    %c0_66 = arith.constant 0 : index
    %46 = vector.load %arg2[%c2_63, %c1_64, %c0_65, %c0_66] : memref<5x2x288x224xbf16, #tpu.memory_space<vmem>>, vector<1x1x288x224xbf16>
    %47 = vector.shape_cast %46 : vector<1x1x288x224xbf16> to vector<288x224xbf16>
    %cst_67 = arith.constant dense<0.000000e+00> : vector<7x224xf32>
    %48 = tpu.matmul %45, %47, %cst_67 {dimension_numbers = #tpu.dot_dimension_numbers<[1], [0], [0], [1], [0, 0, 1, 1], [], []>} : vector<7x288xbf16>, vector<288x224xbf16>, vector<7x224xf32> -> vector<7x224xf32>
    %49 = arith.addf %43, %48 : vector<7x224xf32>
    %c0_68 = arith.constant 0 : index
    %c1_69 = arith.constant 1 : index
    %c1_70 = arith.constant 1 : index
    %c0_71 = arith.constant 0 : index
    %50 = vector.load %arg1[%c0_68, %c1_69, %c1_70, %c0_71] : memref<1x2x9x288xbf16, #tpu.memory_space<vmem>>, vector<1x1x7x288xbf16>
    %51 = vector.shape_cast %50 : vector<1x1x7x288xbf16> to vector<7x288xbf16>
    %c3_72 = arith.constant 3 : index
    %c1_73 = arith.constant 1 : index
    %c0_74 = arith.constant 0 : index
    %c0_75 = arith.constant 0 : index
    %52 = vector.load %arg2[%c3_72, %c1_73, %c0_74, %c0_75] : memref<5x2x288x224xbf16, #tpu.memory_space<vmem>>, vector<1x1x288x224xbf16>
    %53 = vector.shape_cast %52 : vector<1x1x288x224xbf16> to vector<288x224xbf16>
    %cst_76 = arith.constant dense<0.000000e+00> : vector<7x224xf32>
    %54 = tpu.matmul %51, %53, %cst_76 {dimension_numbers = #tpu.dot_dimension_numbers<[1], [0], [0], [1], [0, 0, 1, 1], [], []>} : vector<7x288xbf16>, vector<288x224xbf16>, vector<7x224xf32> -> vector<7x224xf32>
    %55 = arith.addf %49, %54 : vector<7x224xf32>
    %c0_77 = arith.constant 0 : index
    %c0_78 = arith.constant 0 : index
    %c2_79 = arith.constant 2 : index
    %c0_80 = arith.constant 0 : index
    %56 = vector.load %arg1[%c0_77, %c0_78, %c2_79, %c0_80] : memref<1x2x9x288xbf16, #tpu.memory_space<vmem>>, vector<1x1x7x288xbf16>
    %57 = vector.shape_cast %56 : vector<1x1x7x288xbf16> to vector<7x288xbf16>
    %c4_81 = arith.constant 4 : index
    %c1_82 = arith.constant 1 : index
    %c0_83 = arith.constant 0 : index
    %c0_84 = arith.constant 0 : index
    %58 = vector.load %arg2[%c4_81, %c1_82, %c0_83, %c0_84] : memref<5x2x288x224xbf16, #tpu.memory_space<vmem>>, vector<1x1x288x224xbf16>
    %59 = vector.shape_cast %58 : vector<1x1x288x224xbf16> to vector<288x224xbf16>
    %cst_85 = arith.constant dense<0.000000e+00> : vector<7x224xf32>
    %60 = tpu.matmul %57, %59, %cst_85 {dimension_numbers = #tpu.dot_dimension_numbers<[1], [0], [0], [1], [0, 0, 1, 1], [], []>} : vector<7x288xbf16>, vector<288x224xbf16>, vector<7x224xf32> -> vector<7x224xf32>
    %61 = arith.addf %55, %60 : vector<7x224xf32>
    %62 = arith.maximumf %30, %61 : vector<7x224xf32>
    %cst_86 = arith.constant 0.000000e+00 : f32
    %63 = vector.broadcast %cst_86 : f32 to vector<7x224xf32>
    %c0_87 = arith.constant 0 : index
    %c1_88 = arith.constant 1 : index
    %c0_89 = arith.constant 0 : index
    %c0_90 = arith.constant 0 : index
    %64 = vector.load %arg1[%c0_87, %c1_88, %c0_89, %c0_90] : memref<1x2x9x288xbf16, #tpu.memory_space<vmem>>, vector<1x1x7x288xbf16>
    %65 = vector.shape_cast %64 : vector<1x1x7x288xbf16> to vector<7x288xbf16>
    %c0_91 = arith.constant 0 : index
    %c0_92 = arith.constant 0 : index
    %c0_93 = arith.constant 0 : index
    %c0_94 = arith.constant 0 : index
    %66 = vector.load %arg2[%c0_91, %c0_92, %c0_93, %c0_94] : memref<5x2x288x224xbf16, #tpu.memory_space<vmem>>, vector<1x1x288x224xbf16>
    %67 = vector.shape_cast %66 : vector<1x1x288x224xbf16> to vector<288x224xbf16>
    %cst_95 = arith.constant dense<0.000000e+00> : vector<7x224xf32>
    %68 = tpu.matmul %65, %67, %cst_95 {dimension_numbers = #tpu.dot_dimension_numbers<[1], [0], [0], [1], [0, 0, 1, 1], [], []>} : vector<7x288xbf16>, vector<288x224xbf16>, vector<7x224xf32> -> vector<7x224xf32>
    %69 = arith.addf %63, %68 : vector<7x224xf32>
    %c0_96 = arith.constant 0 : index
    %c0_97 = arith.constant 0 : index
    %c1_98 = arith.constant 1 : index
    %c0_99 = arith.constant 0 : index
    %70 = vector.load %arg1[%c0_96, %c0_97, %c1_98, %c0_99] : memref<1x2x9x288xbf16, #tpu.memory_space<vmem>>, vector<1x1x7x288xbf16>
    %71 = vector.shape_cast %70 : vector<1x1x7x288xbf16> to vector<7x288xbf16>
    %c1_100 = arith.constant 1 : index
    %c0_101 = arith.constant 0 : index
    %c0_102 = arith.constant 0 : index
    %c0_103 = arith.constant 0 : index
    %72 = vector.load %arg2[%c1_100, %c0_101, %c0_102, %c0_103] : memref<5x2x288x224xbf16, #tpu.memory_space<vmem>>, vector<1x1x288x224xbf16>
    %73 = vector.shape_cast %72 : vector<1x1x288x224xbf16> to vector<288x224xbf16>
    %cst_104 = arith.constant dense<0.000000e+00> : vector<7x224xf32>
    %74 = tpu.matmul %71, %73, %cst_104 {dimension_numbers = #tpu.dot_dimension_numbers<[1], [0], [0], [1], [0, 0, 1, 1], [], []>} : vector<7x288xbf16>, vector<288x224xbf16>, vector<7x224xf32> -> vector<7x224xf32>
    %75 = arith.addf %69, %74 : vector<7x224xf32>
    %c0_105 = arith.constant 0 : index
    %c1_106 = arith.constant 1 : index
    %c1_107 = arith.constant 1 : index
    %c0_108 = arith.constant 0 : index
    %76 = vector.load %arg1[%c0_105, %c1_106, %c1_107, %c0_108] : memref<1x2x9x288xbf16, #tpu.memory_space<vmem>>, vector<1x1x7x288xbf16>
    %77 = vector.shape_cast %76 : vector<1x1x7x288xbf16> to vector<7x288xbf16>
    %c2_109 = arith.constant 2 : index
    %c0_110 = arith.constant 0 : index
    %c0_111 = arith.constant 0 : index
    %c0_112 = arith.constant 0 : index
    %78 = vector.load %arg2[%c2_109, %c0_110, %c0_111, %c0_112] : memref<5x2x288x224xbf16, #tpu.memory_space<vmem>>, vector<1x1x288x224xbf16>
    %79 = vector.shape_cast %78 : vector<1x1x288x224xbf16> to vector<288x224xbf16>
    %cst_113 = arith.constant dense<0.000000e+00> : vector<7x224xf32>
    %80 = tpu.matmul %77, %79, %cst_113 {dimension_numbers = #tpu.dot_dimension_numbers<[1], [0], [0], [1], [0, 0, 1, 1], [], []>} : vector<7x288xbf16>, vector<288x224xbf16>, vector<7x224xf32> -> vector<7x224xf32>
    %81 = arith.addf %75, %80 : vector<7x224xf32>
    %c0_114 = arith.constant 0 : index
    %c0_115 = arith.constant 0 : index
    %c2_116 = arith.constant 2 : index
    %c0_117 = arith.constant 0 : index
    %82 = vector.load %arg1[%c0_114, %c0_115, %c2_116, %c0_117] : memref<1x2x9x288xbf16, #tpu.memory_space<vmem>>, vector<1x1x7x288xbf16>
    %83 = vector.shape_cast %82 : vector<1x1x7x288xbf16> to vector<7x288xbf16>
    %c3_118 = arith.constant 3 : index
    %c0_119 = arith.constant 0 : index
    %c0_120 = arith.constant 0 : index
    %c0_121 = arith.constant 0 : index
    %84 = vector.load %arg2[%c3_118, %c0_119, %c0_120, %c0_121] : memref<5x2x288x224xbf16, #tpu.memory_space<vmem>>, vector<1x1x288x224xbf16>
    %85 = vector.shape_cast %84 : vector<1x1x288x224xbf16> to vector<288x224xbf16>
    %cst_122 = arith.constant dense<0.000000e+00> : vector<7x224xf32>
    %86 = tpu.matmul %83, %85, %cst_122 {dimension_numbers = #tpu.dot_dimension_numbers<[1], [0], [0], [1], [0, 0, 1, 1], [], []>} : vector<7x288xbf16>, vector<288x224xbf16>, vector<7x224xf32> -> vector<7x224xf32>
    %87 = arith.addf %81, %86 : vector<7x224xf32>
    %c0_123 = arith.constant 0 : index
    %c1_124 = arith.constant 1 : index
    %c2_125 = arith.constant 2 : index
    %c0_126 = arith.constant 0 : index
    %88 = vector.load %arg1[%c0_123, %c1_124, %c2_125, %c0_126] : memref<1x2x9x288xbf16, #tpu.memory_space<vmem>>, vector<1x1x7x288xbf16>
    %89 = vector.shape_cast %88 : vector<1x1x7x288xbf16> to vector<7x288xbf16>
    %c4_127 = arith.constant 4 : index
    %c0_128 = arith.constant 0 : index
    %c0_129 = arith.constant 0 : index
    %c0_130 = arith.constant 0 : index
    %90 = vector.load %arg2[%c4_127, %c0_128, %c0_129, %c0_130] : memref<5x2x288x224xbf16, #tpu.memory_space<vmem>>, vector<1x1x288x224xbf16>
    %91 = vector.shape_cast %90 : vector<1x1x288x224xbf16> to vector<288x224xbf16>
    %cst_131 = arith.constant dense<0.000000e+00> : vector<7x224xf32>
    %92 = tpu.matmul %89, %91, %cst_131 {dimension_numbers = #tpu.dot_dimension_numbers<[1], [0], [0], [1], [0, 0, 1, 1], [], []>} : vector<7x288xbf16>, vector<288x224xbf16>, vector<7x224xf32> -> vector<7x224xf32>
    %93 = arith.addf %87, %92 : vector<7x224xf32>
    %94 = arith.maximumf %62, %93 : vector<7x224xf32>
    %cst_132 = arith.constant 0.000000e+00 : f32
    %95 = vector.broadcast %cst_132 : f32 to vector<7x224xf32>
    %c0_133 = arith.constant 0 : index
    %c1_134 = arith.constant 1 : index
    %c0_135 = arith.constant 0 : index
    %c0_136 = arith.constant 0 : index
    %96 = vector.load %arg1[%c0_133, %c1_134, %c0_135, %c0_136] : memref<1x2x9x288xbf16, #tpu.memory_space<vmem>>, vector<1x1x7x288xbf16>
    %97 = vector.shape_cast %96 : vector<1x1x7x288xbf16> to vector<7x288xbf16>
    %c0_137 = arith.constant 0 : index
    %c1_138 = arith.constant 1 : index
    %c0_139 = arith.constant 0 : index
    %c0_140 = arith.constant 0 : index
    %98 = vector.load %arg2[%c0_137, %c1_138, %c0_139, %c0_140] : memref<5x2x288x224xbf16, #tpu.memory_space<vmem>>, vector<1x1x288x224xbf16>
    %99 = vector.shape_cast %98 : vector<1x1x288x224xbf16> to vector<288x224xbf16>
    %cst_141 = arith.constant dense<0.000000e+00> : vector<7x224xf32>
    %100 = tpu.matmul %97, %99, %cst_141 {dimension_numbers = #tpu.dot_dimension_numbers<[1], [0], [0], [1], [0, 0, 1, 1], [], []>} : vector<7x288xbf16>, vector<288x224xbf16>, vector<7x224xf32> -> vector<7x224xf32>
    %101 = arith.addf %95, %100 : vector<7x224xf32>
    %c0_142 = arith.constant 0 : index
    %c0_143 = arith.constant 0 : index
    %c1_144 = arith.constant 1 : index
    %c0_145 = arith.constant 0 : index
    %102 = vector.load %arg1[%c0_142, %c0_143, %c1_144, %c0_145] : memref<1x2x9x288xbf16, #tpu.memory_space<vmem>>, vector<1x1x7x288xbf16>
    %103 = vector.shape_cast %102 : vector<1x1x7x288xbf16> to vector<7x288xbf16>
    %c1_146 = arith.constant 1 : index
    %c1_147 = arith.constant 1 : index
    %c0_148 = arith.constant 0 : index
    %c0_149 = arith.constant 0 : index
    %104 = vector.load %arg2[%c1_146, %c1_147, %c0_148, %c0_149] : memref<5x2x288x224xbf16, #tpu.memory_space<vmem>>, vector<1x1x288x224xbf16>
    %105 = vector.shape_cast %104 : vector<1x1x288x224xbf16> to vector<288x224xbf16>
    %cst_150 = arith.constant dense<0.000000e+00> : vector<7x224xf32>
    %106 = tpu.matmul %103, %105, %cst_150 {dimension_numbers = #tpu.dot_dimension_numbers<[1], [0], [0], [1], [0, 0, 1, 1], [], []>} : vector<7x288xbf16>, vector<288x224xbf16>, vector<7x224xf32> -> vector<7x224xf32>
    %107 = arith.addf %101, %106 : vector<7x224xf32>
    %c0_151 = arith.constant 0 : index
    %c1_152 = arith.constant 1 : index
    %c1_153 = arith.constant 1 : index
    %c0_154 = arith.constant 0 : index
    %108 = vector.load %arg1[%c0_151, %c1_152, %c1_153, %c0_154] : memref<1x2x9x288xbf16, #tpu.memory_space<vmem>>, vector<1x1x7x288xbf16>
    %109 = vector.shape_cast %108 : vector<1x1x7x288xbf16> to vector<7x288xbf16>
    %c2_155 = arith.constant 2 : index
    %c1_156 = arith.constant 1 : index
    %c0_157 = arith.constant 0 : index
    %c0_158 = arith.constant 0 : index
    %110 = vector.load %arg2[%c2_155, %c1_156, %c0_157, %c0_158] : memref<5x2x288x224xbf16, #tpu.memory_space<vmem>>, vector<1x1x288x224xbf16>
    %111 = vector.shape_cast %110 : vector<1x1x288x224xbf16> to vector<288x224xbf16>
    %cst_159 = arith.constant dense<0.000000e+00> : vector<7x224xf32>
    %112 = tpu.matmul %109, %111, %cst_159 {dimension_numbers = #tpu.dot_dimension_numbers<[1], [0], [0], [1], [0, 0, 1, 1], [], []>} : vector<7x288xbf16>, vector<288x224xbf16>, vector<7x224xf32> -> vector<7x224xf32>
    %113 = arith.addf %107, %112 : vector<7x224xf32>
    %c0_160 = arith.constant 0 : index
    %c0_161 = arith.constant 0 : index
    %c2_162 = arith.constant 2 : index
    %c0_163 = arith.constant 0 : index
    %114 = vector.load %arg1[%c0_160, %c0_161, %c2_162, %c0_163] : memref<1x2x9x288xbf16, #tpu.memory_space<vmem>>, vector<1x1x7x288xbf16>
    %115 = vector.shape_cast %114 : vector<1x1x7x288xbf16> to vector<7x288xbf16>
    %c3_164 = arith.constant 3 : index
    %c1_165 = arith.constant 1 : index
    %c0_166 = arith.constant 0 : index
    %c0_167 = arith.constant 0 : index
    %116 = vector.load %arg2[%c3_164, %c1_165, %c0_166, %c0_167] : memref<5x2x288x224xbf16, #tpu.memory_space<vmem>>, vector<1x1x288x224xbf16>
    %117 = vector.shape_cast %116 : vector<1x1x288x224xbf16> to vector<288x224xbf16>
    %cst_168 = arith.constant dense<0.000000e+00> : vector<7x224xf32>
    %118 = tpu.matmul %115, %117, %cst_168 {dimension_numbers = #tpu.dot_dimension_numbers<[1], [0], [0], [1], [0, 0, 1, 1], [], []>} : vector<7x288xbf16>, vector<288x224xbf16>, vector<7x224xf32> -> vector<7x224xf32>
    %119 = arith.addf %113, %118 : vector<7x224xf32>
    %c0_169 = arith.constant 0 : index
    %c1_170 = arith.constant 1 : index
    %c2_171 = arith.constant 2 : index
    %c0_172 = arith.constant 0 : index
    %120 = vector.load %arg1[%c0_169, %c1_170, %c2_171, %c0_172] : memref<1x2x9x288xbf16, #tpu.memory_space<vmem>>, vector<1x1x7x288xbf16>
    %121 = vector.shape_cast %120 : vector<1x1x7x288xbf16> to vector<7x288xbf16>
    %c4_173 = arith.constant 4 : index
    %c1_174 = arith.constant 1 : index
    %c0_175 = arith.constant 0 : index
    %c0_176 = arith.constant 0 : index
    %122 = vector.load %arg2[%c4_173, %c1_174, %c0_175, %c0_176] : memref<5x2x288x224xbf16, #tpu.memory_space<vmem>>, vector<1x1x288x224xbf16>
    %123 = vector.shape_cast %122 : vector<1x1x288x224xbf16> to vector<288x224xbf16>
    %cst_177 = arith.constant dense<0.000000e+00> : vector<7x224xf32>
    %124 = tpu.matmul %121, %123, %cst_177 {dimension_numbers = #tpu.dot_dimension_numbers<[1], [0], [0], [1], [0, 0, 1, 1], [], []>} : vector<7x288xbf16>, vector<288x224xbf16>, vector<7x224xf32> -> vector<7x224xf32>
    %125 = arith.addf %119, %124 : vector<7x224xf32>
    %126 = arith.maximumf %94, %125 : vector<7x224xf32>
    %c0_178 = arith.constant 0 : index
    %c0_179 = arith.constant 0 : index
    %127 = vector.load %arg3[%c0_178, %c0_179] : memref<1x224xf32, #tpu.memory_space<vmem>>, vector<1x224xf32>
    %128 = vector.broadcast %127 : vector<1x224xf32> to vector<7x224xf32>
    %129 = arith.addf %126, %128 : vector<7x224xf32>
    %cst_180 = arith.constant 0.000000e+00 : f32
    %130 = vector.broadcast %cst_180 : f32 to vector<7x224xf32>
    %131 = arith.maximumf %129, %130 : vector<7x224xf32>
    %132 = arith.truncf %131 : vector<7x224xf32> to vector<7x224xbf16>
    %c0_181 = arith.constant 0 : index
    %c0_182 = arith.constant 0 : index
    %c0_183 = arith.constant 0 : index
    %133 = vector.load %arg4[%c0_181, %c0_182, %c0_183] : memref<1x7x224xbf16, #tpu.memory_space<vmem>>, vector<1x7x224xbf16>
    %134 = vector.shape_cast %133 : vector<1x7x224xbf16> to vector<7x224xbf16>
    %135 = vector.shape_cast %132 : vector<7x224xbf16> to vector<1x7x224xbf16>
    tpu.vector_store %arg4[%c0_181, %c0_182, %c0_183], %135 {strides = array<i32>} : memref<1x7x224xbf16, #tpu.memory_space<vmem>>, vector<1x7x224xbf16>,
    return
  }
  func.func @transform_0(%arg0: i32) -> (i32, i32, i32, i32) {
    %c0_i32 = arith.constant 0 : i32
    %c0_i32_0 = arith.constant 0 : i32
    %c0_i32_1 = arith.constant 0 : i32
    %c0_i32_2 = arith.constant 0 : i32
    return %arg0, %c0_i32, %c0_i32_0, %c0_i32_1 : i32, i32, i32, i32
  }
  func.func @transform_1(%arg0: i32) -> (i32, i32, i32, i32) {
    %c0_i32 = arith.constant 0 : i32
    %c0_i32_0 = arith.constant 0 : i32
    %c0_i32_1 = arith.constant 0 : i32
    %c0_i32_2 = arith.constant 0 : i32
    %c0_i32_3 = arith.constant 0 : i32
    return %c0_i32, %c0_i32_0, %c0_i32_1, %c0_i32_2 : i32, i32, i32, i32
  }
  func.func @transform_2(%arg0: i32) -> (i32, i32) {
    %c0_i32 = arith.constant 0 : i32
    %c0_i32_0 = arith.constant 0 : i32
    %c0_i32_1 = arith.constant 0 : i32
    return %c0_i32, %c0_i32_0 : i32, i32
  }
  func.func @transform_3(%arg0: i32) -> (i32, i32, i32) {
    %c0_i32 = arith.constant 0 : i32
    %c0_i32_0 = arith.constant 0 : i32
    %c0_i32_1 = arith.constant 0 : i32
    return %arg0, %c0_i32, %c0_i32_0 : i32, i32, i32
  }
}

module attributes {stable_mosaic.version = 11 : i64} {
  func.func @fc_softmax_kernel(%arg0: i32, %arg1: memref<2x1568xbf16, #tpu.memory_space<vmem>>, %arg2: memref<1568x10xbf16, #tpu.memory_space<vmem>>, %arg3: memref<1x10xf32, #tpu.memory_space<vmem>>, %arg4: memref<2x10xf32, #tpu.memory_space<vmem>>) attributes {dimension_semantics = [#tpu.dimension_semantics<arbitrary>], iteration_bounds = array<i64: 1>, scalar_prefetch = 0 : i64, scratch_operands = 0 : i64, tpu.core_type = #tpu.core_type<tc>, window_params = [{pipeline_mode = #tpu.pipeline_mode<synchronous>, transform_indices = @transform_0, window_bounds = array<i64: 2, 1568>}, {pipeline_mode = #tpu.pipeline_mode<synchronous>, transform_indices = @transform_1, window_bounds = array<i64: 1568, 10>}, {pipeline_mode = #tpu.pipeline_mode<synchronous>, transform_indices = @transform_2, window_bounds = array<i64: 1, 10>}, {pipeline_mode = #tpu.pipeline_mode<synchronous>, transform_indices = @transform_3, window_bounds = array<i64: 2, 10>}]} {
    %c0 = arith.constant 0 : index
    %c0_0 = arith.constant 0 : index
    %0 = vector.load %arg1[%c0, %c0_0] : memref<2x1568xbf16, #tpu.memory_space<vmem>>, vector<2x1568xbf16>
    %c0_1 = arith.constant 0 : index
    %c0_2 = arith.constant 0 : index
    %1 = vector.load %arg2[%c0_1, %c0_2] : memref<1568x10xbf16, #tpu.memory_space<vmem>>, vector<1568x10xbf16>
    %cst = arith.constant dense<0.000000e+00> : vector<2x10xf32>
    %2 = tpu.matmul %0, %1, %cst {dimension_numbers = #tpu.dot_dimension_numbers<[1], [0], [0], [1], [0, 0, 1, 1], [], []>} : vector<2x1568xbf16>, vector<1568x10xbf16>, vector<2x10xf32> -> vector<2x10xf32>
    %c0_3 = arith.constant 0 : index
    %c0_4 = arith.constant 0 : index
    %3 = vector.load %arg3[%c0_3, %c0_4] : memref<1x10xf32, #tpu.memory_space<vmem>>, vector<1x10xf32>
    %4 = vector.broadcast %3 : vector<1x10xf32> to vector<2x10xf32>
    %5 = arith.addf %2, %4 : vector<2x10xf32>
    %cst_5 = arith.constant dense<0xFF800000> : vector<2xf32>
    %6 = vector.multi_reduction <maximumf>, %5, %cst_5 [1] : vector<2x10xf32> to vector<2xf32>
    %7 = vector.shape_cast %6 : vector<2xf32> to vector<2x1xf32>
    %8 = vector.broadcast %7 : vector<2x1xf32> to vector<2x10xf32>
    %9 = arith.subf %5, %8 : vector<2x10xf32>
    %10 = math.exp %9 : vector<2x10xf32>
    %cst_6 = arith.constant dense<0.000000e+00> : vector<2xf32>
    %11 = vector.multi_reduction <add>, %10, %cst_6 [1] : vector<2x10xf32> to vector<2xf32>
    %12 = vector.shape_cast %11 : vector<2xf32> to vector<2x1xf32>
    %13 = tpu.reciprocal %12 {approx = true} : vector<2x1xf32> -> vector<2x1xf32>
    %14 = vector.broadcast %13 : vector<2x1xf32> to vector<2x10xf32>
    %15 = arith.mulf %10, %14 : vector<2x10xf32>
    %c0_7 = arith.constant 0 : index
    %c0_8 = arith.constant 0 : index
    %16 = vector.load %arg4[%c0_7, %c0_8] : memref<2x10xf32, #tpu.memory_space<vmem>>, vector<2x10xf32>
    tpu.vector_store %arg4[%c0_7, %c0_8], %15 {strides = array<i32>} : memref<2x10xf32, #tpu.memory_space<vmem>>, vector<2x10xf32>,
    return
  }
  func.func @transform_0(%arg0: i32) -> (i32, i32) {
    %c0_i32 = arith.constant 0 : i32
    %c0_i32_0 = arith.constant 0 : i32
    %c0_i32_1 = arith.constant 0 : i32
    return %c0_i32, %c0_i32_0 : i32, i32
  }
  func.func @transform_1(%arg0: i32) -> (i32, i32) {
    %c0_i32 = arith.constant 0 : i32
    %c0_i32_0 = arith.constant 0 : i32
    %c0_i32_1 = arith.constant 0 : i32
    return %c0_i32, %c0_i32_0 : i32, i32
  }
  func.func @transform_2(%arg0: i32) -> (i32, i32) {
    %c0_i32 = arith.constant 0 : i32
    %c0_i32_0 = arith.constant 0 : i32
    %c0_i32_1 = arith.constant 0 : i32
    return %c0_i32, %c0_i32_0 : i32, i32
  }
  func.func @transform_3(%arg0: i32) -> (i32, i32) {
    %c0_i32 = arith.constant 0 : i32
    %c0_i32_0 = arith.constant 0 : i32
    %c0_i32_1 = arith.constant 0 : i32
    return %c0_i32, %c0_i32_0 : i32, i32
  }
}

</mosaic_0001>

<bundles_post_ra>
// kernel: net_forward.3
= control target key start
LH: loop header
LB: loop body
LE: loop exit
PB: predicated region body
PF: predicated region fallthrough
CT: control target
= control target key end

     0   :  { %8 = vsyncpa [#allocation3], 0  ;;  %s1999_s0 = inlined_call_operand.vmem [shape: bf16[2,2,16,32], index: 0, kind: input, shape index: {}]   ;;  %s2000_s1 = inlined_call_operand.hbm [shape: bf16[5,2,32,224], index: 1, kind: input, shape index: {}]   ;;  %s2001_s2 = inlined_call_operand.hbm [shape: f32[1,224], index: 2, kind: input, shape index: {}]   ;;  %s2002_s3 = inlined_call_operand.vmem [shape: bf16[2,14,224], index: 3, kind: output, shape index: {}]  }
   0x1   :  { %9 = vsyncpa [#allocation5], 0  ;;  %s1648_s12 = smov 0  }
   0x2 LB: > { %s125_s15 = sshll.u32 %s2000_s1, 4  ;;  %s1240_s16 = sadd.s32 4294967295, %s1622_s12   ;;  %s1622_s12 = sphi %s1648_s12, %s15_s12   ;;  %s126_s15 = int_to_ptr.hbm [resolvable:$true] %s125_s15 }
   0x3   : > { %p1242_p0 = scmp.ge.s32.totalorder %s1622_s12, 1  ;;  %p114_p1 = scmp.lt.s32.totalorder %s1622_s12, 3 }
   0x4   : > { %p1516_p2 = scmp.eq.s32.totalorder %s1240_s16, 0  ;;  %s1624_s18 = smov [#allocation2]  }
   0x5   : > { %p1659_p3 = pnand %p1242_p0, %p114_p1  ;;  %s127_s19 = sshll.u32 %s1624_s18, 4  ;;  %s128_s19 = int_to_ptr.vmem [resolvable:$true] %s127_s19 }
   0x6   : > { %s140_s22 = sshll.u32 %s2001_s2, 4  ;;  %s1625_s23 = smov [#allocation4]   ;;  %s141_s22 = int_to_ptr.hbm [resolvable:$true] %s140_s22 }
   0x7   : > { %p1509_p4 = pneg %p1659_p3  ;;  %s142_s24 = sshll.u32 %s1625_s23, 4  ;;  %s143_s24 = int_to_ptr.vmem [resolvable:$true] %s142_s24 }
   0x8   : > { %s1626_s25 = smov 128   ;;  %s1627_s26 = smov 8  }
   0x9   : > { %p1510_p5 = pnand %p1516_p2, %p1509_p4  ;;  %163 = sbr.rel (%p1659_p3) target bundleno = 326 (0x146), region = 32 }
   0xb   : > { %1512 = dma.hbm_to_vmem [thread:$0]  (!%p1510_p5), %s126_s15, 5120, %s128_s19, [#allocation3], %s1626_s25, %s1626_s25, %s1627_s26  }
   0xc   : > { %1515 = dma.hbm_to_vmem [thread:$0]  (!%p1510_p5), %s141_s22, 32, %s143_s24, [#allocation5]  }
   0xe   : > { %1603 = dma.done.wait (%p1516_p2), [#allocation3], 5120  }
   0xf   : > { %1605 = vsyncadd (%p1516_p2), [#allocation3], 4294962176 }
  0x10   : > { %1607 = dma.done.wait (%p1516_p2), [#allocation5], 32  }
  0x11   : > { %1609 = vsyncadd (%p1516_p2), [#allocation5], 4294967264  ;;  %p193_p6 = scmp.lt.s32.totalorder %s1240_s16, 1  ;;  %v1265_v0 = vld [vmem:[#allocation2 + $0x50] sm:$0xf]  ;;  %vm243_vm0 = vcmask 261120  }
  0x12   : > { %v1468_v1 = vld [vmem:[#allocation2 + $0x54] sm:$0xf0]  ;;  %v1467_v2 = vld [vmem:[#allocation2 + $0x54] sm:$0xf]  ;;  %v1267_v4 = vld [vmem:[#allocation2 + $0x58] sm:$0xf0] }
  0x13   : > { %s2005_s16 = smov (!%p193_p6, %s1240_s16), 1  ;;  %v1678_v3 = vor.u32 %v1468_v1, %v1265_v0  ;;  %v1283_v5 = vld [vmem:[#allocation2 + $0x10] sm:$0xf]  ;;  %v1464_v6 = vld [vmem:[#allocation2 + $0x14] sm:$0xf0]  ;;  %v1680_v7 = vor.u32 %v1467_v2, %v1267_v4  ;;  %vm1155_vm1 = vcmask 1043456  }
  0x14   : > { %s1459_s27 = sshll.u32 %s2005_s16, 4  ;;  %v1682_v8 = vor.u32 %v1464_v6, %v1283_v5  ;;  %v1463_v9 = vld [vmem:[#allocation2 + $0x14] sm:$0xf]  ;;  %v1285_v10 = vld [vmem:[#allocation2 + $0x18] sm:$0xf0]  ;;  %vm1156_vm2 = vcmask 785412  }
  0x15   : > { %v1257_v11 = vld [vmem:[#allocation2 + $0x40] sm:$0xf]  ;;  %s1689_s30 = scalar_lea.vmem %s1999_s0, %s1459_s27  ;;  %253 = vmatpush.bf16.msra.mxu0 %v1678_v3  ;;  %v1692_v12 = vor.u32 %v1463_v9, %v1285_v10  ;;  %v1466_v13 = vld [vmem:[#allocation2 + $0x44] sm:$0xf0]  ;;  %v1465_v14 = vld [vmem:[#allocation2 + $0x44] sm:$0xf]  ;;  %267 = vmatpush.bf16.msra.mxu1 %v1680_v7  ;;  %s202_s6 = scalar_lea.vmem %s2002_s3, %s1459_s27 }
  0x16   : > { %v1259_v15 = vld [vmem:[#allocation2 + $0x48] sm:$0xf0]  ;;  %309 = vmatpush.bf16.msra.mxu2 %v1682_v8  ;;  %v1696_v16 = vor.u32 %v1466_v13, %v1257_v11  ;;  %v1275_v18 = vld [vmem:[#allocation2] sm:$0xf]  ;;  %v1462_v19 = vld [vmem:[#allocation2 + $0x4] sm:$0xf0] }
  0x17   : > { %v1698_v17 = vor.u32 %v1465_v14, %v1259_v15  ;;  %v1461_v20 = vld [vmem:[#allocation2 + $0x4] sm:$0xf]  ;;  %323 = vmatpush.bf16.msra.mxu3 %v1692_v12  ;;  %v1701_v21 = vor.u32 %v1462_v19, %v1275_v18  ;;  %v1277_v22 = vld [vmem:[#allocation2 + $0x8] sm:$0xf0]  ;;  %v1612_v24 = vld [vmem:[%s1689_s30 + $0x8] sm:$0xf]  }
  0x18   : > { %v1704_v23 = vld [vmem:[%s1689_s30 + $0x8] sm:$0xff]   ;;  %v1711_v27 = vor.u32 %v1461_v20, %v1277_v22  ;;  %v1714_v28 = vld [vmem:[%s1689_s30] sm:$0xff]   ;;  %v1320_v32 = vld [vmem:[#allocation2 + $0xd0] sm:$0xf]  ;;  %vm1159_vm4 = vcmask 1042432   ;;  %vm1160_vm5 = vcmask 784388  }
  0x19   : > { %v1708_v25 = vld [vmem:[%s1689_s30 + $0x8] sm:$0xf0]  ;;  %v1616_v29 = vld [vmem:[%s1689_s30] sm:$0xf]   ;;  %v1718_v30 = vld [vmem:[%s1689_s30] sm:$0xf0]  ;;  %254 = vmatpush.bf16.msra.mxu0 %v1696_v16  ;;  %268 = vmatpush.bf16.msra.mxu1 %v1698_v17 }
  0x1a   : > { %v1618_v26 = vld [vmem:[%s1689_s30 + $0x8] sm:$0x70]  ;;  %v1619_v31 = vld [vmem:[%s1689_s30] sm:$0x70]  ;;  %v1476_v33 = vld [vmem:[#allocation2 + $0xd4] sm:$0xf0]  ;;  %310 = vmatpush.bf16.msra.mxu2 %v1701_v21 }
  0x1b   : > { %v1475_v34 = vld [vmem:[#allocation2 + $0xd4] sm:$0xf]  ;;  %v1724_v35 = vor.u32 %v1618_v26, %v1612_v24  ;;  %v1726_v36 = vor.u32 %v1476_v33, %v1320_v32  ;;  %v1322_v37 = vld [vmem:[#allocation2 + $0xd8] sm:$0xf0]  ;;  %v1301_v38 = vld [vmem:[#allocation2 + $0x90] sm:$0xf]  ;;  %324 = vmatpush.bf16.msra.mxu3 %v1711_v27  ;;  %v1729_v40 = vor.u32 %v1619_v31, %v1616_v29 }
  0x1c   : > { %v1472_v39 = vld [vmem:[#allocation2 + $0x94] sm:$0xf0]  ;;  %v1731_v41 = vor.u32 %v1475_v34, %v1322_v37  ;;  %v1471_v42 = vld [vmem:[#allocation2 + $0x94] sm:$0xf]  ;;  %v1303_v43 = vld [vmem:[#allocation2 + $0x98] sm:$0xf0] }
  0x1d   : > { %v1312_v44 = vld [vmem:[#allocation2 + $0xc0] sm:$0xf]  ;;  %1271 = vmatmul.msk.bf16.vlgmr.msra.gmra.mxu0 %vm243_vm0, %v1724_v35  ;;  %v1736_v45 = vor.u32 %v1472_v39, %v1301_v38  ;;  %v1738_v46 = vor.u32 %v1471_v42, %v1303_v43  ;;  %v1474_v47 = vld [vmem:[#allocation2 + $0xc4] sm:$0xf0]  ;;  %v1473_v48 = vld [vmem:[#allocation2 + $0xc4] sm:$0xf]  ;;  %1272 = vmatmul.msk.bf16.vlgmr.msra.gmra.mxu1 %vm243_vm0, %v1724_v35 }
  0x1e   : > { %447 = vmatpush.bf16.msrb.mxu2 %v1726_v36  ;;  %v1314_v49 = vld [vmem:[#allocation2 + $0xc8] sm:$0xf0]  ;;  %v343_v50 = vshll.u32 %v1714_v28, 16  ;;  %v1745_v51 = vor.u32 %v1474_v47, %v1312_v44  ;;  %v1293_v52 = vld [vmem:[#allocation2 + $0x80] sm:$0xf]  ;;  %1290 = vmatmul.msk.bf16.vlgmr.msra.gmra.mxu3 %vm243_vm0, %v1729_v40  ;;  %v414_v61 = vshll.u32 %v1704_v23, 16  ;;  %vm1157_vm3 = vmor %vm1156_vm2, %vm1155_vm1 }
  0x1f   : > { %1289 = vmatmul.msk.bf16.vlgmr.msra.gmra.mxu2 %vm243_vm0, %v1729_v40  ;;  %376 = vmatpush.bf16.msrb.mxu0 %v1736_v45  ;;  %v1470_v53 = vld [vmem:[#allocation2 + $0x84] sm:$0xf0]  ;;  %v1469_v54 = vld [vmem:[#allocation2 + $0x84] sm:$0xf]  ;;  %v1295_v55 = vld [vmem:[#allocation2 + $0x88] sm:$0xf0]  ;;  %v1752_v56 = vor.u32 %v1473_v48, %v1314_v49 }
  0x20   : > { %461 = vmatpush.bf16.msrb.mxu3 %v1731_v41  ;;  %390 = vmatpush.bf16.msrb.mxu1 %v1738_v46  ;;  %v1754_v57 = vor.u32 %v1470_v53, %v1293_v52  ;;  %v1756_v58 = vor.u32 %v1469_v54, %v1295_v55  ;;  %v1356_v59 = vld [vmem:[#allocation2 + $0x70] sm:$0xf]  ;;  %v1488_v60 = vld [vmem:[#allocation2 + $0x74] sm:$0xf0]  ;;  %v1487_v63 = vld [vmem:[#allocation2 + $0x74] sm:$0xf] }
  0x21   : > { %v1760_v62 = vor.u32 %v1488_v60, %v1356_v59  ;;  %v1358_v0 = vld [vmem:[#allocation2 + $0x78] sm:$0xf0]  ;;  %v1338_v2 = vld [vmem:[#allocation2 + $0x110] sm:$0xf]  ;;  %v1480_v4 = vld [vmem:[#allocation2 + $0x114] sm:$0xf0] }
  0x22   : > { %448 = vmatpush.bf16.msrb.mxu2 %v1745_v51  ;;  %v1762_v1 = vor.u32 %v1487_v63, %v1358_v0  ;;  %v1479_v5 = vld [vmem:[#allocation2 + $0x114] sm:$0xf]  ;;  %v341_v6 = vshrl.u32 %v1714_v28, 16  ;;  %v345_v9 = vrot.slane %v343_v50, 1  ;;  %v1767_v10 = vor.u32 %v1480_v4, %v1338_v2  ;;  %v1340_v11 = vld [vmem:[#allocation2 + $0x118] sm:$0xf0]  ;;  %vm1161_vm6 = vmor %vm1160_vm5, %vm1159_vm4 }
  0x23   : > { %377 = vmatpush.bf16.msrb.mxu0 %v1754_v57  ;;  %v1348_v13 = vld [vmem:[#allocation2 + $0x60] sm:$0xf]  ;;  %v1771_v14 = vor.u32 %v1479_v5, %v1340_v11  ;;  %v1486_v15 = vld [vmem:[#allocation2 + $0x64] sm:$0xf0]  ;;  %v1485_v18 = vld [vmem:[#allocation2 + $0x64] sm:$0xf] }
  0x24   : > { %462 = vmatpush.bf16.msrb.mxu3 %v1752_v56  ;;  %391 = vmatpush.bf16.msrb.mxu1 %v1756_v58  ;;  %v1350_v19 = vld [vmem:[#allocation2 + $0x68] sm:$0xf0]  ;;  %v1775_v20 = vor.u32 %v1486_v15, %v1348_v13  ;;  %v1330_v24 = vld [vmem:[#allocation2 + $0x100] sm:$0xf]  ;;  %v1478_v26 = vld [vmem:[#allocation2 + $0x104] sm:$0xf0]  ;;  %v1786_v42 = vor.u32 %v345_v9, %v341_v6 }
  0x25   : > { %v1777_v22 = vor.u32 %v1485_v18, %v1350_v19  ;;  %v1477_v28 = vld [vmem:[#allocation2 + $0x104] sm:$0xf]  ;;  %v412_v29 = vshrl.u32 %v1704_v23, 16  ;;  %v416_v31 = vrot.slane %v414_v61, 1  ;;  %v1781_v32 = vor.u32 %v1478_v26, %v1330_v24  ;;  %v1332_v33 = vld [vmem:[#allocation2 + $0x108] sm:$0xf0] }
  0x26   : > { %574 = vmatpush.bf16.msra.mxu2 %v1760_v62  ;;  %v1784_v34 = vor.u32 %v1477_v28, %v1332_v33  ;;  %v1392_v37 = vld [vmem:[#allocation2 + $0xb0] sm:$0xf]  ;;  %v1492_v38 = vld [vmem:[#allocation2 + $0xb4] sm:$0xf0]  ;;  %v1491_v39 = vld [vmem:[#allocation2 + $0xb4] sm:$0xf] }
  0x27   : > { %512 = vmatpush.bf16.msra.mxu0 %v1767_v10  ;;  %v1394_v23 = vld [vmem:[#allocation2 + $0xb8] sm:$0xf0]  ;;  %v1374_v43 = vld [vmem:[#allocation2 + $0x30] sm:$0xf]  ;;  %v1484_v44 = vld [vmem:[#allocation2 + $0x34] sm:$0xf0]  ;;  %v1790_v47 = vor.u32 %v416_v31, %v412_v29  ;;  %v1794_v52 = vor.u32 %v1492_v38, %v1392_v37 }
  0x28   : > { %588 = vmatpush.bf16.msra.mxu3 %v1762_v1  ;;  %526 = vmatpush.bf16.msra.mxu1 %v1771_v14  ;;  %v1483_v48 = vld [vmem:[#allocation2 + $0x34] sm:$0xf]  ;;  %v1376_v49 = vld [vmem:[#allocation2 + $0x38] sm:$0xf0]  ;;  %v1533_v50 = vld [vmem:[%s1689_s30] sm:$0xe]  ;;  %v1796_v53 = vor.u32 %v1491_v39, %v1394_v23  ;;  %v1798_v54 = vor.u32 %v1484_v44, %v1374_v43 }
  0x29   : > { %v1384_v55 = vld [vmem:[#allocation2 + $0xa0] sm:$0xf]  ;;  %v1490_v59 = vld [vmem:[#allocation2 + $0xa4] sm:$0xf0]  ;;  %v1489_v60 = vld [vmem:[#allocation2 + $0xa4] sm:$0xf]  ;;  %v1802_v61 = vor.u32 %v1483_v48, %v1376_v49  ;;  %v1534_v15 = vor.u32 %v1533_v50, %v1718_v30 }
  0x2a   : > { %575 = vmatpush.bf16.msra.mxu2 %v1775_v20  ;;  %v1386_v63 = vld [vmem:[#allocation2 + $0xa8] sm:$0xf0]  ;;  %v1366_v0 = vld [vmem:[#allocation2 + $0x20] sm:$0xf]  ;;  %v1482_v2 = vld [vmem:[#allocation2 + $0x24] sm:$0xf0]  ;;  %v1811_v6 = vor.u32 %v1490_v59, %v1384_v55 }
  0x2b   : > { %513 = vmatpush.bf16.msra.mxu0 %v1781_v32  ;;  %v1481_v4 = vld [vmem:[#allocation2 + $0x24] sm:$0xf]  ;;  %v1368_v5 = vld [vmem:[#allocation2 + $0x28] sm:$0xf0]  ;;  %v1815_v9 = vor.u32 %v1489_v60, %v1386_v63  ;;  %v1817_v11 = vor.u32 %v1482_v2, %v1366_v0  ;;  %v1827_v18 = vrot.slane %v1534_v15, 1 }
  0x2c   : > { %589 = vmatpush.bf16.msra.mxu3 %v1777_v22  ;;  %527 = vmatpush.bf16.msra.mxu1 %v1784_v34  ;;  %v1820_v13 = vor.u32 %v1481_v4, %v1368_v5  ;;  %v1428_v19 = vld [vmem:[#allocation2 + $0x130] sm:$0xf]  ;;  %v1500_v24 = vld [vmem:[#allocation2 + $0x134] sm:$0xf0]  ;;  %v1499_v26 = vld [vmem:[#allocation2 + $0x134] sm:$0xf] }
  0x2d   : > { %1307 = vmatmul.msk.bf16.vlgmr.msrb.gmra.mxu0 %vm243_vm0, %v1786_v42  ;;  %1308 = vmatmul.msk.bf16.vlgmr.msrb.gmra.mxu1 %vm243_vm0, %v1786_v42  ;;  %v1430_v28 = vld [vmem:[#allocation2 + $0x138] sm:$0xf0]  ;;  %v1410_v29 = vld [vmem:[#allocation2 + $0xf0] sm:$0xf]  ;;  %v1496_v31 = vld [vmem:[#allocation2 + $0xf4] sm:$0xf0]  ;;  %v1829_v38 = vor.u32 %v1500_v24, %v1428_v19 }
  0x2e   : > { %1327 = vmatmul.msk.bf16.vlgmr.msrb.gmra.mxu3 %vm243_vm0, %v1790_v47  ;;  %v1495_v33 = vld [vmem:[#allocation2 + $0xf4] sm:$0xf]  ;;  %v1412_v37 = vld [vmem:[#allocation2 + $0xf8] sm:$0xf0]  ;;  %v1831_v30 = vor.u32 %v1499_v26, %v1430_v28  ;;  %v1833_v39 = vor.u32 %v1496_v31, %v1410_v29  ;;  %v1420_v23 = vld [vmem:[#allocation2 + $0x120] sm:$0xf] }
  0x2f   : > { %1326 = vmatmul.msk.bf16.vlgmr.msrb.gmra.mxu2 %vm243_vm0, %v1790_v47  ;;  %622 = vmatpush.bf16.msrb.mxu0 %v1798_v54  ;;  %v1498_v43 = vld [vmem:[#allocation2 + $0x124] sm:$0xf0]  ;;  %v1497_v44 = vld [vmem:[#allocation2 + $0x124] sm:$0xf]  ;;  %v1837_v48 = vor.u32 %v1495_v33, %v1412_v37  ;;  %v1422_v49 = vld [vmem:[#allocation2 + $0x128] sm:$0xf0] }
  0x30   : > { %675 = vmatpush.bf16.msrb.mxu2 %v1794_v52  ;;  %689 = vmatpush.bf16.msrb.mxu3 %v1796_v53  ;;  %v1402_v50 = vld [vmem:[#allocation2 + $0xe0] sm:$0xf]  ;;  %v1494_v55 = vld [vmem:[#allocation2 + $0xe4] sm:$0xf0]  ;;  %v1493_v59 = vld [vmem:[#allocation2 + $0xe4] sm:$0xf]  ;;  %v1846_v63 = vor.u32 %v1498_v43, %v1420_v23  ;;  %v1850_v0 = vor.u32 %v1497_v44, %v1422_v49 }
  0x31   : > { %636 = vmatpush.bf16.msrb.mxu1 %v1802_v61  ;;  %v1404_v60 = vld [vmem:[#allocation2 + $0xe8] sm:$0xf0]  ;;  %v1852_v2 = vor.u32 %v1494_v55, %v1402_v50 }
  0x32   : > { %v1855_v4 = vor.u32 %v1493_v59, %v1404_v60 }
  0x33   : > { %623 = vmatpush.bf16.msrb.mxu0 %v1817_v11 }
  0x34   : > { %676 = vmatpush.bf16.msrb.mxu2 %v1811_v6  ;;  %690 = vmatpush.bf16.msrb.mxu3 %v1815_v9 }
  0x35   : > { %637 = vmatpush.bf16.msrb.mxu1 %v1820_v13 }
  0x3d   : > { %1344 = vmatmul.msk.bf16.vlgmr.msra.gmra.mxu0 %vm243_vm0, %v1827_v18  ;;  %1345 = vmatmul.msk.bf16.vlgmr.msra.gmra.mxu1 %vm243_vm0, %v1827_v18 }
  0x3e   : > { %1363 = vmatmul.msk.bf16.vlgmr.msra.gmra.mxu3 %vm243_vm0, %v1724_v35  ;;  %732 = vmatpush.bf16.msra.mxu0 %v1833_v39 }
  0x3f   : > { %1362 = vmatmul.msk.bf16.vlgmr.msra.gmra.mxu2 %vm243_vm0, %v1724_v35  ;;  %803 = vmatpush.bf16.msra.mxu3 %v1831_v30 }
  0x40   : > { %789 = vmatpush.bf16.msra.mxu2 %v1829_v38  ;;  %746 = vmatpush.bf16.msra.mxu1 %v1837_v48 }
  0x42   : > { %733 = vmatpush.bf16.msra.mxu0 %v1852_v2 }
  0x43   : > { %804 = vmatpush.bf16.msra.mxu3 %v1850_v0 }
  0x44   : > { %790 = vmatpush.bf16.msra.mxu2 %v1846_v63  ;;  %747 = vmatpush.bf16.msra.mxu1 %v1855_v4 }
  0x4d   : > { %1380 = vmatmul.msk.bf16.vlgmr.msrb.gmra.mxu0 %vm243_vm0, %v1729_v40  ;;  %1381 = vmatmul.msk.bf16.vlgmr.msrb.gmra.mxu1 %vm243_vm0, %v1729_v40 }
  0x4e   : > { %1399 = vmatmul.msk.bf16.vlgmr.msrb.gmra.mxu3 %vm243_vm0, %v1786_v42  ;;  %825 = vmatpush.bf16.msrb.mxu0 %v1678_v3  ;;  %v1536_v3 = vld [vmem:[%s1689_s30 + $0x8] sm:$0xe] }
  0x4f   : > { %1398 = vmatmul.msk.bf16.vlgmr.msrb.gmra.mxu2 %vm243_vm0, %v1786_v42  ;;  %867 = vmatpush.bf16.msrb.mxu3 %v1692_v12 }
  0x50   : > { %853 = vmatpush.bf16.msrb.mxu2 %v1682_v8  ;;  %839 = vmatpush.bf16.msrb.mxu1 %v1680_v7  ;;  %v1537_v7 = vor.u32 %v1536_v3, %v1708_v25 }
  0x52   : > { %826 = vmatpush.bf16.msrb.mxu0 %v1696_v16  ;;  %v943_v8 = vrot.slane %v1537_v7, 1 }
  0x53   : > { %868 = vmatpush.bf16.msrb.mxu3 %v1711_v27 }
  0x54   : > { %854 = vmatpush.bf16.msrb.mxu2 %v1701_v21  ;;  %840 = vmatpush.bf16.msrb.mxu1 %v1698_v17 }
  0x5d   : > { %1416 = vmatmul.msk.bf16.vlgmr.msra.gmra.mxu0 %vm243_vm0, %v1790_v47  ;;  %1417 = vmatmul.msk.bf16.vlgmr.msra.gmra.mxu1 %vm243_vm0, %v1790_v47 }
  0x5e   : > { %1435 = vmatmul.msk.bf16.vlgmr.msra.gmra.mxu3 %vm243_vm0, %v1827_v18  ;;  %881 = vmatpush.bf16.msra.mxu0 %v1736_v45 }
  0x5f   : > { %1434 = vmatmul.msk.bf16.vlgmr.msra.gmra.mxu2 %vm243_vm0, %v1827_v18  ;;  %927 = vmatpush.bf16.msra.mxu3 %v1731_v41 }
  0x60   : > { %913 = vmatpush.bf16.msra.mxu2 %v1726_v36  ;;  %895 = vmatpush.bf16.msra.mxu1 %v1738_v46 }
  0x62   : > { %882 = vmatpush.bf16.msra.mxu0 %v1754_v57 }
  0x63   : > { %928 = vmatpush.bf16.msra.mxu3 %v1752_v56 }
  0x64   : > { %914 = vmatpush.bf16.msra.mxu2 %v1745_v51  ;;  %896 = vmatpush.bf16.msra.mxu1 %v1756_v58 }
  0x6d   : > { %1436 = vmatmul.msk.bf16.vlgmr.msrb.gmra.mxu0 %vm243_vm0, %v1786_v42  ;;  %1437 = vmatmul.msk.bf16.vlgmr.msrb.gmra.mxu1 %vm243_vm0, %v1786_v42 }
  0x6e   : > { %1439 = vmatmul.msk.bf16.vlgmr.msrb.gmra.mxu3 %vm243_vm0, %v1724_v35  ;;  %953 = vmatpush.bf16.msrb.mxu0 %v1767_v10 }
  0x6f   : > { %1438 = vmatmul.msk.bf16.vlgmr.msrb.gmra.mxu2 %vm243_vm0, %v1724_v35  ;;  %1003 = vmatpush.bf16.msrb.mxu3 %v1762_v1 }
  0x70   : > { %989 = vmatpush.bf16.msrb.mxu2 %v1760_v62  ;;  %967 = vmatpush.bf16.msrb.mxu1 %v1771_v14 }
  0x72   : > { %954 = vmatpush.bf16.msrb.mxu0 %v1781_v32 }
  0x73   : > { %1004 = vmatpush.bf16.msrb.mxu3 %v1777_v22 }
  0x74   : > { %990 = vmatpush.bf16.msrb.mxu2 %v1775_v20  ;;  %968 = vmatpush.bf16.msrb.mxu1 %v1784_v34 }
  0x7d   : > { %1440 = vmatmul.msk.bf16.vlgmr.msra.gmra.mxu0 %vm243_vm0, %v1790_v47  ;;  %1441 = vmatmul.msk.bf16.vlgmr.msra.gmra.mxu1 %vm243_vm0, %v1790_v47 }
  0x7e   : > { %1443 = vmatmul.msk.bf16.vlgmr.msra.gmra.mxu3 %vm243_vm0, %v1827_v18  ;;  %1017 = vmatpush.bf16.msra.mxu0 %v1798_v54 }
  0x7f   : > { %1442 = vmatmul.msk.bf16.vlgmr.msra.gmra.mxu2 %vm243_vm0, %v1827_v18  ;;  %1059 = vmatpush.bf16.msra.mxu3 %v1796_v53 }
  0x80   : > { %1045 = vmatpush.bf16.msra.mxu2 %v1794_v52  ;;  %1031 = vmatpush.bf16.msra.mxu1 %v1802_v61 }
  0x82   : > { %1018 = vmatpush.bf16.msra.mxu0 %v1817_v11 }
  0x83   : > { %1060 = vmatpush.bf16.msra.mxu3 %v1815_v9 }
  0x84   : > { %1046 = vmatpush.bf16.msra.mxu2 %v1811_v6  ;;  %1032 = vmatpush.bf16.msra.mxu1 %v1820_v13 }
  0x8d   : > { %1445 = vmatmul.msk.bf16.vlgmr.msrb.gmra.mxu0 %vm243_vm0, %v943_v8  ;;  %1446 = vmatmul.msk.bf16.vlgmr.msrb.gmra.mxu1 %vm243_vm0, %v943_v8 }
  0x8e   : > { %1448 = vmatmul.msk.bf16.vlgmr.msrb.gmra.mxu3 %vm243_vm0, %v1786_v42  ;;  %1077 = vmatpush.bf16.msrb.mxu0 %v1833_v39 }
  0x8f   : > { %1447 = vmatmul.msk.bf16.vlgmr.msrb.gmra.mxu2 %vm243_vm0, %v1786_v42  ;;  %1123 = vmatpush.bf16.msrb.mxu3 %v1831_v30 }
  0x90   : > { %1109 = vmatpush.bf16.msrb.mxu2 %v1829_v38  ;;  %1091 = vmatpush.bf16.msrb.mxu1 %v1837_v48 }
  0x92   : > { %1078 = vmatpush.bf16.msrb.mxu0 %v1852_v2 }
  0x93   : > { %1124 = vmatpush.bf16.msrb.mxu3 %v1850_v0 }
  0x94   : > { %1110 = vmatpush.bf16.msrb.mxu2 %v1846_v63  ;;  %1092 = vmatpush.bf16.msrb.mxu1 %v1855_v4 }
  0x9a   : > { %v256_v12 = vpop.f32.mrf.mxu0  ;;  %v270_v16 = vpop.f32.mrf.mxu1 }
  0x9d   : > { %1449 = vmatmul.msk.bf16.vlgmr.msra.gmra.mxu0 %vm243_vm0, %v1724_v35  ;;  %1450 = vmatmul.msk.bf16.vlgmr.msra.gmra.mxu1 %vm243_vm0, %v1724_v35 }
  0x9e   : > { %1452 = vmatmul.msk.bf16.vlgmr.msra.gmra.mxu3 %vm243_vm0, %v1790_v47 }
  0x9f   : > { %1451 = vmatmul.msk.bf16.vlgmr.msra.gmra.mxu2 %vm243_vm0, %v1790_v47 }
  0xa1   : > { %v326_v25 = vpop.f32.mrf.mxu3 }
  0xa2   : > { %v312_v17 = vpop.f32.mrf.mxu2  ;;  %v258_v27 = vpop.f32.mrf.mxu0  ;;  %v327_v36 = vadd.f32 %v326_v25, %v270_v16 }
  0xa3   : > { %v313_v21 = vadd.f32 %v312_v17, %v256_v12  ;;  %v272_v40 = vpop.f32.mrf.mxu1 }
  0xa9   : > { %v328_v46 = vpop.f32.mrf.mxu3 }
  0xaa   : > { %v314_v41 = vpop.f32.mrf.mxu2  ;;  %v379_v51 = vpop.f32.mrf.mxu0  ;;  %v329_v56 = vadd.f32 %v328_v46, %v272_v40 }
  0xab   : > { %v315_v45 = vadd.f32 %v314_v41, %v258_v27  ;;  %v398_v57 = vadd.f32 %v379_v51, %v313_v21  ;;  %v393_v58 = vpop.f32.mrf.mxu1 }
  0xac   : > { %v399_v35 = vadd.f32 %v393_v58, %v327_v36 }
  0xad   : > { %1453 = vmatmul.msk.bf16.vlgmr.msrb.gmra.mxu0 %vm243_vm0, %v1827_v18  ;;  %1454 = vmatmul.msk.bf16.vlgmr.msrb.gmra.mxu1 %vm243_vm0, %v1827_v18 }
  0xae   : > { %1456 = vmatmul.msk.bf16.vlgmr.msrb.gmra.mxu3 %vm243_vm0, %v943_v8 }
  0xaf   : > { %1455 = vmatmul.msk.bf16.vlgmr.msrb.gmra.mxu2 %vm243_vm0, %v943_v8 }
  0xb1   : > { %v464_v10 = vpop.f32.mrf.mxu3 }
  0xb2   : > { %v450_v62 = vpop.f32.mrf.mxu2  ;;  %v381_v14 = vpop.f32.mrf.mxu0  ;;  %v470_v20 = vadd.f32 %v464_v10, %v399_v35 }
  0xb3   : > { %v469_v1 = vadd.f32 %v450_v62, %v398_v57  ;;  %v400_v22 = vadd.f32 %v381_v14, %v315_v45  ;;  %v395_v32 = vpop.f32.mrf.mxu1 }
  0xb4   : > { %v401_v34 = vadd.f32 %v395_v32, %v329_v56 }
  0xb9   : > { %v466_v52 = vpop.f32.mrf.mxu3 }
  0xba   : > { %v452_v42 = vpop.f32.mrf.mxu2  ;;  %v515_v53 = vpop.f32.mrf.mxu0  ;;  %v472_v54 = vadd.f32 %v466_v52, %v401_v34 }
  0xbb   : > { %v471_v47 = vadd.f32 %v452_v42, %v400_v22  ;;  %v1955_v61 = vadd.f32 %v515_v53, %v469_v1  ;;  %v529_v5 = vpop.f32.mrf.mxu1 }
  0xbc   : > { %v1957_v6 = vadd.f32 %v529_v5, %v470_v20 }
  0xc1   : > { %v591_v11 = vpop.f32.mrf.mxu3 }
  0xc2   : > { %v577_v9 = vpop.f32.mrf.mxu2  ;;  %v517_v13 = vpop.f32.mrf.mxu0 }
  0xc3   : > { %v1959_v15 = vadd.f32 %v517_v13, %v471_v47  ;;  %v531_v18 = vpop.f32.mrf.mxu1 }
  0xc4   : > { %v1961_v19 = vadd.f32 %v531_v18, %v472_v54 }
  0xc9   : > { %v593_v26 = vpop.f32.mrf.mxu3 }
  0xca   : > { %v579_v24 = vpop.f32.mrf.mxu2  ;;  %v625_v28 = vpop.f32.mrf.mxu0 }
  0xcb   : > { %v626_v29 = vadd.f32 %v625_v28, %v577_v9  ;;  %v639_v31 = vpop.f32.mrf.mxu1 }
  0xcc   : > { %v640_v33 = vadd.f32 %v639_v31, %v591_v11 }
  0xd1   : > { %v692_v30 = vpop.f32.mrf.mxu3 }
  0xd2   : > { %v678_v37 = vpop.f32.mrf.mxu2  ;;  %v627_v39 = vpop.f32.mrf.mxu0  ;;  %v698_v23 = vadd.f32 %v692_v30, %v640_v33 }
  0xd3   : > { %v697_v38 = vadd.f32 %v678_v37, %v626_v29  ;;  %v628_v43 = vadd.f32 %v627_v39, %v579_v24  ;;  %v641_v44 = vpop.f32.mrf.mxu1 }
  0xd4   : > { %v642_v48 = vadd.f32 %v641_v44, %v593_v26 }
  0xd9   : > { %v694_v55 = vpop.f32.mrf.mxu3 }
  0xda   : > { %v680_v49 = vpop.f32.mrf.mxu2  ;;  %v735_v59 = vpop.f32.mrf.mxu0  ;;  %v700_v60 = vadd.f32 %v694_v55, %v642_v48 }
  0xdb   : > { %v699_v50 = vadd.f32 %v680_v49, %v628_v43  ;;  %v754_v63 = vadd.f32 %v735_v59, %v697_v38  ;;  %v749_v0 = vpop.f32.mrf.mxu1 }
  0xdc   : > { %v755_v2 = vadd.f32 %v749_v0, %v698_v23 }
  0xe1   : > { %v806_v7 = vpop.f32.mrf.mxu3 }
  0xe2   : > { %v792_v4 = vpop.f32.mrf.mxu2  ;;  %v737_v8 = vpop.f32.mrf.mxu0  ;;  %v1965_v12 = vadd.f32 %v806_v7, %v755_v2 }
  0xe3   : > { %v1963_v3 = vadd.f32 %v792_v4, %v754_v63  ;;  %v756_v16 = vadd.f32 %v737_v8, %v699_v50  ;;  %v751_v17 = vpop.f32.mrf.mxu1 }
  0xe4   : > { %v757_v25 = vadd.f32 %v751_v17, %v700_v60  ;;  %v816_v27 = vmax.f32 %v1957_v6, %v1965_v12 }
  0xe5   : > { %v815_v21 = vmax.f32 %v1955_v61, %v1963_v3 }
  0xe9   : > { %v808_v41 = vpop.f32.mrf.mxu3 }
  0xea   : > { %v794_v36 = vpop.f32.mrf.mxu2  ;;  %v828_v45 = vpop.f32.mrf.mxu0  ;;  %v1973_v46 = vadd.f32 %v808_v41, %v757_v25 }
  0xeb   : > { %v1971_v40 = vadd.f32 %v794_v36, %v756_v16  ;;  %v842_v51 = vpop.f32.mrf.mxu1  ;;  %v1139_v16 = vld [vmem:[#allocation4] sm:$0x3] }
  0xec   : > { %v818_v57 = vmax.f32 %v1961_v19, %v1973_v46 }
  0xed   : > { %v817_v56 = vmax.f32 %v1959_v15, %v1971_v40 }
  0xf1   : > { %v870_v35 = vpop.f32.mrf.mxu3 }
  0xf2   : > { %v856_v58 = vpop.f32.mrf.mxu2  ;;  %v830_v62 = vpop.f32.mrf.mxu0  ;;  %v871_v39 = vadd.f32 %v870_v35, %v842_v51 }
  0xf3   : > { %v844_v1 = vpop.f32.mrf.mxu1  ;;  %v857_v30 = vadd.f32 %v856_v58, %v828_v45 }
  0xf9   : > { %v872_v14 = vpop.f32.mrf.mxu3 }
  0xfa   : > { %v858_v10 = vpop.f32.mrf.mxu2  ;;  %v884_v20 = vpop.f32.mrf.mxu0  ;;  %v873_v17 = vadd.f32 %v872_v14, %v844_v1 }
  0xfb   : > { %v898_v22 = vpop.f32.mrf.mxu1  ;;  %v903_v43 = vadd.f32 %v884_v20, %v857_v30  ;;  %v859_v4 = vadd.f32 %v858_v10, %v830_v62  ;;  %v1141_v20 = vperm.slane %v1139_v16, 0 }
  0xfc   : > { %v904_v48 = vadd.f32 %v898_v22, %v871_v39 }
 0x101   : > { %v930_v34 = vpop.f32.mrf.mxu3 }
 0x102   : > { %v916_v32 = vpop.f32.mrf.mxu2  ;;  %v886_v42 = vpop.f32.mrf.mxu0  ;;  %v936_v60 = vadd.f32 %v930_v34, %v904_v48 }
 0x103   : > { %v900_v47 = vpop.f32.mrf.mxu1  ;;  %v935_v50 = vadd.f32 %v916_v32, %v903_v43  ;;  %v905_v36 = vadd.f32 %v886_v42, %v859_v4  ;;  %v1142_v32 = vperm.slane %v1139_v16, 1 }
 0x104   : > { %v906_v51 = vadd.f32 %v900_v47, %v873_v17 }
 0x109   : > { %v932_v53 = vpop.f32.mrf.mxu3 }
 0x10a   : > { %v918_v52 = vpop.f32.mrf.mxu2  ;;  %v956_v54 = vpop.f32.mrf.mxu0  ;;  %v938_v1 = vadd.f32 %v932_v53, %v906_v51 }
 0x10b   : > { %v970_v5 = vpop.f32.mrf.mxu1  ;;  %v975_v0 = vadd.f32 %v956_v54, %v935_v50  ;;  %v937_v34 = vadd.f32 %v918_v52, %v905_v36 }
 0x10c   : > { %v976_v7 = vadd.f32 %v970_v5, %v936_v60 }
 0x10d   : > { %v979_v58 = vmax.f32 %v815_v21, %v975_v0 }
 0x10e   : > { %v980_v62 = vmax.f32 %v816_v27, %v976_v7 }
 0x111   : > { %v1006_v11 = vpop.f32.mrf.mxu3 }
 0x112   : > { %v992_v9 = vpop.f32.mrf.mxu2  ;;  %v958_v13 = vpop.f32.mrf.mxu0 }
 0x113   : > { %v972_v18 = vpop.f32.mrf.mxu1 }
 0x114   : > { %v978_v61 = vadd.f32 %v972_v18, %v938_v1 }
 0x119   : > { %v1008_v26 = vpop.f32.mrf.mxu3 }
 0x11a   : > { %v994_v24 = vpop.f32.mrf.mxu2  ;;  %v1020_v28 = vpop.f32.mrf.mxu0 }
 0x11b   : > { %v1034_v29 = vpop.f32.mrf.mxu1  ;;  %v1021_v55 = vadd.f32 %v1020_v28, %v992_v9  ;;  %v977_v9 = vadd.f32 %v958_v13, %v937_v34 }
 0x11c   : > { %v1035_v63 = vadd.f32 %v1034_v29, %v1006_v11 }
 0x121   : > { %v1062_v33 = vpop.f32.mrf.mxu3 }
 0x122   : > { %v1048_v31 = vpop.f32.mrf.mxu2  ;;  %v1022_v37 = vpop.f32.mrf.mxu0  ;;  %v1068_v8 = vadd.f32 %v1062_v33, %v1035_v63 }
 0x123   : > { %v1036_v38 = vpop.f32.mrf.mxu1  ;;  %v1067_v2 = vadd.f32 %v1048_v31, %v1021_v55  ;;  %v1023_v14 = vadd.f32 %v1022_v37, %v994_v24  ;;  %v981_v24 = vmax.f32 %v817_v56, %v977_v9 }
 0x124   : > { %v1037_v54 = vadd.f32 %v1036_v38, %v1008_v26  ;;  %v982_v26 = vmax.f32 %v818_v57, %v978_v61 }
 0x129   : > { %v1064_v44 = vpop.f32.mrf.mxu3 }
 0x12a   : > { %v1050_v23 = vpop.f32.mrf.mxu2  ;;  %v1080_v49 = vpop.f32.mrf.mxu0  ;;  %v1070_v28 = vadd.f32 %v1064_v44, %v1037_v54 }
 0x12b   : > { %v1094_v59 = vpop.f32.mrf.mxu1  ;;  %v1099_v25 = vadd.f32 %v1080_v49, %v1067_v2  ;;  %v1069_v3 = vadd.f32 %v1050_v23, %v1023_v14 }
 0x12c   : > { %v1100_v41 = vadd.f32 %v1094_v59, %v1068_v8 }
 0x131   : > { %v1126_v22 = vpop.f32.mrf.mxu3 }
 0x132   : > { %v1112_v45 = vpop.f32.mrf.mxu2  ;;  %v1132_v10 = vadd.f32 %v1126_v22, %v1100_v41  ;;  %v1082_v47 = vpop.f32.mrf.mxu0 }
 0x133   : > { %v1131_v35 = vadd.f32 %v1112_v45, %v1099_v25  ;;  %v1096_v11 = vpop.f32.mrf.mxu1  ;;  %v1101_v12 = vadd.f32 %v1082_v47, %v1069_v3 }
 0x134   : > { %v1136_v5 = vmax.f32 %v980_v62, %v1132_v10  ;;  %v1102_v52 = vadd.f32 %v1096_v11, %v1070_v28 }
 0x135   : > { %v1135_v42 = vmax.f32 %v979_v58, %v1131_v35 }
 0x136   : > { %v1146_v29 = vadd.f32 %v1142_v32, %v1136_v5 }
 0x137   : > { %v1145_v21 = vadd.f32 %v1141_v20, %v1135_v42 }
 0x138   : > { %v1150_v27 = vmax.f32 %v1146_v29, 0.0 }
 0x139   : > { %v1149_v6 = vmax.f32 %v1145_v21, 0.0  ;;  %v1128_v18 = vpop.f32.mrf.mxu3 }
 0x13a   : > { %v1114_v53 = vpop.f32.mrf.mxu2  ;;  %v1134_v33 = vadd.f32 %v1128_v18, %v1102_v52 }
 0x13b   : > { %v1133_v13 = vadd.f32 %v1114_v53, %v1101_v12  ;;  %v1153_v31 = vpack.c.bf16 %v1150_v27, %v1149_v6 }
 0x13c   : > { %v1138_v38 = vmax.f32 %v982_v26, %v1134_v33 }
 0x13d   : > { %v1137_v37 = vmax.f32 %v981_v24, %v1133_v13  ;;  %1158 = vst.msk [vmem:[%s202_s6] sm:$0xff] %vm1157_vm3, %v1153_v31 }
 0x13e   : > { %v1148_v15 = vadd.f32 %v1142_v32, %v1138_v38 }
 0x13f   : > { %v1147_v30 = vadd.f32 %v1141_v20, %v1137_v37 }
 0x140   : > { %v1152_v56 = vmax.f32 %v1148_v15, 0.0 }
 0x141   : > { %v1151_v40 = vmax.f32 %v1147_v30, 0.0 }
 0x143   : > { %v1154_v39 = vpack.c.bf16 %v1152_v56, %v1151_v40 }
 0x145   : > { %1162 = vst.msk [vmem:[%s202_s6 + $0x8] sm:$0x77] %vm1161_vm6, %v1154_v39 }
 0x146 PF: > { %s15_s12 = sadd.s32 1, %s1622_s12  }
 0x147   : > { %p12_p7 = scmp.ge.s32.totalorder %s15_s12, 4  }
 0x149   :  { %14 = sbr.rel (!%p12_p7) target bundleno = 2 (0x2), region = 81 }
 0x14e   :  { %1184 = vsyncpa [#allocation3], 1 }
 0x14f   :  { %1186 = vsyncpa [#allocation3 + $0x1], 1 }
 0x150   :  { %1187 = vsyncpa [#allocation5], 1 }

// kernel: net_forward.5
= control target key start
LH: loop header
LB: loop body
LE: loop exit
PB: predicated region body
PF: predicated region fallthrough
CT: control target
= control target key end

     0   :  { %s1892_s0 = inlined_call_operand.vmem [shape: bf16[2,1568], index: 0, kind: input, shape index: {}]   ;;  %s1893_s1 = inlined_call_operand.vmem [shape: bf16[1568,10], index: 1, kind: input, shape index: {}]   ;;  %s1894_s2 = inlined_call_operand.vmem [shape: f32[1,10], index: 2, kind: input, shape index: {}]   ;;  %s1895_s3 = inlined_call_operand.hbm [shape: f32[2,10], index: 3, kind: output, shape index: {}]  }
   0x1   :  { %v1436_v0 = vld [vmem:[%s1893_s1 + $0x38] sm:$0xff]  ;;  %v1435_v4 = vld [vmem:[%s1893_s1 + $0x30] sm:$0xff]  ;;  %v1434_v8 = vld [vmem:[%s1893_s1 + $0x28] sm:$0xff] }
   0x2   :  { %v1452_v1 = vld [vmem:[%s1893_s1 + $0xb8] sm:$0xff]  ;;  %838 = vmatpush.bf16.msra.mxu0 %v1436_v0  ;;  %v1451_v5 = vld [vmem:[%s1893_s1 + $0xb0] sm:$0xff]  ;;  %v1450_v9 = vld [vmem:[%s1893_s1 + $0xa8] sm:$0xff] }
   0x3   :  { %v1460_v2 = vld [vmem:[%s1893_s1 + $0xf8] sm:$0xff]  ;;  %864 = vmatpush.bf16.msra.mxu2 %v1452_v1  ;;  %v1459_v6 = vld [vmem:[%s1893_s1 + $0xf0] sm:$0xff]  ;;  %v1458_v10 = vld [vmem:[%s1893_s1 + $0xe8] sm:$0xff] }
   0x4   :  { %v1444_v3 = vld [vmem:[%s1893_s1 + $0x78] sm:$0xff]  ;;  %877 = vmatpush.bf16.msra.mxu3 %v1460_v2  ;;  %v1443_v7 = vld [vmem:[%s1893_s1 + $0x70] sm:$0xff]  ;;  %v1442_v11 = vld [vmem:[%s1893_s1 + $0x68] sm:$0xff] }
   0x5   :  { %851 = vmatpush.bf16.msra.mxu1 %v1444_v3  ;;  %v1433_v12 = vld [vmem:[%s1893_s1 + $0x20] sm:$0xff]  ;;  %v1432_v16 = vld [vmem:[%s1893_s1 + $0x18] sm:$0xff]  ;;  %v1431_v21 = vld [vmem:[%s1893_s1 + $0x10] sm:$0xff] }
   0x6   :  { %839 = vmatpush.bf16.msra.mxu0 %v1435_v4  ;;  %v1449_v13 = vld [vmem:[%s1893_s1 + $0xa0] sm:$0xff]  ;;  %v1448_v17 = vld [vmem:[%s1893_s1 + $0x98] sm:$0xff]  ;;  %v1447_v22 = vld [vmem:[%s1893_s1 + $0x90] sm:$0xff] }
   0x7   :  { %865 = vmatpush.bf16.msra.mxu2 %v1451_v5  ;;  %v1457_v14 = vld [vmem:[%s1893_s1 + $0xe0] sm:$0xff]  ;;  %v1456_v18 = vld [vmem:[%s1893_s1 + $0xd8] sm:$0xff]  ;;  %v1455_v23 = vld [vmem:[%s1893_s1 + $0xd0] sm:$0xff] }
   0x8   :  { %878 = vmatpush.bf16.msra.mxu3 %v1459_v6  ;;  %v1441_v15 = vld [vmem:[%s1893_s1 + $0x60] sm:$0xff]  ;;  %v1440_v19 = vld [vmem:[%s1893_s1 + $0x58] sm:$0xff]  ;;  %v1439_v24 = vld [vmem:[%s1893_s1 + $0x50] sm:$0xff] }
   0x9   :  { %852 = vmatpush.bf16.msra.mxu1 %v1443_v7  ;;  %v16_v20 = vld [vmem:[%s1892_s0] sm:$0xff] }
   0xa   :  { %840 = vmatpush.bf16.msra.mxu0 %v1434_v8  ;;  %219 = vst [vmem:[#allocation1] ss:$9 sm:$0xff] %v16_v20 }
   0xb   :  { %866 = vmatpush.bf16.msra.mxu2 %v1450_v9 }
   0xc   :  { %879 = vmatpush.bf16.msra.mxu3 %v1458_v10 }
   0xd   :  { %853 = vmatpush.bf16.msra.mxu1 %v1442_v11 }
   0xe   :  { %841 = vmatpush.bf16.msra.mxu0 %v1433_v12 }
   0xf   :  { %867 = vmatpush.bf16.msra.mxu2 %v1449_v13 }
  0x10   :  { %880 = vmatpush.bf16.msra.mxu3 %v1457_v14 }
  0x11   :  { %854 = vmatpush.bf16.msra.mxu1 %v1441_v15 }
  0x12   :  { %842 = vmatpush.bf16.msra.mxu0 %v1432_v16 }
  0x13   :  { %868 = vmatpush.bf16.msra.mxu2 %v1448_v17 }
  0x14   :  { %881 = vmatpush.bf16.msra.mxu3 %v1456_v18 }
  0x15   :  { %855 = vmatpush.bf16.msra.mxu1 %v1440_v19 }
  0x16   :  { %8 = vsyncpa [#allocation3], 0  ;;  %843 = vmatpush.bf16.msra.mxu0 %v1431_v21  ;;  %v1430_v25 = vld [vmem:[%s1893_s1 + $0x8] sm:$0xff]  ;;  %v1429_v29 = vld [vmem:[%s1893_s1] sm:$0xff]  ;;  %vm835_vm0 = vcmask 261120   ;;  %vm1007_vm1 = vcmask 74752  }
  0x17   :  { %869 = vmatpush.bf16.msra.mxu2 %v1447_v22  ;;  %v1446_v26 = vld [vmem:[%s1893_s1 + $0x88] sm:$0xff]  ;;  %v1445_v30 = vld [vmem:[%s1893_s1 + $0x80] sm:$0xff]  ;;  %v1468_v32 = vld [vmem:[%s1893_s1 + $0x138] sm:$0xff]  ;;  %s1027_s23 = sshll.u32 %s1895_s3, 4  ;;  %s1028_s23 = int_to_ptr.hbm [resolvable:$true] %s1027_s23 }
  0x18   :  { %882 = vmatpush.bf16.msra.mxu3 %v1455_v23  ;;  %v1454_v27 = vld [vmem:[%s1893_s1 + $0xc8] sm:$0xff]  ;;  %v1453_v31 = vld [vmem:[%s1893_s1 + $0xc0] sm:$0xff]  ;;  %v1484_v33 = vld [vmem:[%s1893_s1 + $0x1b8] sm:$0xff] }
  0x19   :  { %856 = vmatpush.bf16.msra.mxu1 %v1439_v24  ;;  %v1438_v28 = vld [vmem:[%s1893_s1 + $0x48] sm:$0xff]  ;;  %v1492_v34 = vld [vmem:[%s1893_s1 + $0x1f8] sm:$0xff]  ;;  %v1437_v35 = vld [vmem:[%s1893_s1 + $0x40] sm:$0xff] }
  0x1a   :  { %844 = vmatpush.bf16.msra.mxu0 %v1430_v25  ;;  %v1476_v36 = vld [vmem:[%s1893_s1 + $0x178] sm:$0xff]  ;;  %v1467_v38 = vld [vmem:[%s1893_s1 + $0x130] sm:$0xff]  ;;  %v220_v39 = vld [vmem:[#allocation1] sm:$0xff] }
  0x1b   :  { %870 = vmatpush.bf16.msra.mxu2 %v1446_v26  ;;  %v222_v37 = vld [vmem:[#allocation1 + $0x12] sm:$0xff]  ;;  %v223_v42 = vld [vmem:[#allocation1 + $0x1b] sm:$0xff]  ;;  %v221_v44 = vld [vmem:[#allocation1 + $0x9] sm:$0xff] }
  0x1c   :  { %883 = vmatpush.bf16.msra.mxu3 %v1454_v27  ;;  %v1483_v40 = vld [vmem:[%s1893_s1 + $0x1b0] sm:$0xff]  ;;  %v1466_v45 = vld [vmem:[%s1893_s1 + $0x128] sm:$0xff]  ;;  %v227_v51 = vld [vmem:[#allocation1 + $0x3f] sm:$0xff] }
  0x1d   :  { %857 = vmatpush.bf16.msra.mxu1 %v1438_v28  ;;  %v1491_v41 = vld [vmem:[%s1893_s1 + $0x1f0] sm:$0xff]  ;;  %v1482_v46 = vld [vmem:[%s1893_s1 + $0x1a8] sm:$0xff]  ;;  %v1465_v54 = vld [vmem:[%s1893_s1 + $0x120] sm:$0xff] }
  0x1e   :  { %845 = vmatpush.bf16.msra.mxu0 %v1429_v29  ;;  %v1475_v43 = vld [vmem:[%s1893_s1 + $0x170] sm:$0xff]  ;;  %v1490_v47 = vld [vmem:[%s1893_s1 + $0x1e8] sm:$0xff]  ;;  %v1481_v55 = vld [vmem:[%s1893_s1 + $0x1a0] sm:$0xff] }
  0x1f   :  { %871 = vmatpush.bf16.msra.mxu2 %v1445_v30  ;;  %v1474_v48 = vld [vmem:[%s1893_s1 + $0x168] sm:$0xff]  ;;  %v226_v49 = vld [vmem:[#allocation1 + $0x36] sm:$0xff]  ;;  %v1489_v56 = vld [vmem:[%s1893_s1 + $0x1e0] sm:$0xff] }
  0x20   :  { %884 = vmatpush.bf16.msra.mxu3 %v1453_v31  ;;  %v224_v50 = vld [vmem:[#allocation1 + $0x24] sm:$0xff]  ;;  %v1718_v53 = vld [vmem:[#allocation1 + $0x2d] sm:$0xff]  ;;  %v1464_v58 = vld [vmem:[%s1893_s1 + $0x118] sm:$0xff] }
  0x21   :  { %858 = vmatpush.bf16.msra.mxu1 %v1437_v35  ;;  %846 = vmatmul.bf16.vlgmr.msra.gmra.mxu0 %v220_v39  ;;  %v17_v52 = vld [vmem:[%s1892_s0 + $0x8] sm:$0x1f]  ;;  %v1473_v57 = vld [vmem:[%s1893_s1 + $0x160] sm:$0xff]  ;;  %v1480_v59 = vld [vmem:[%s1893_s1 + $0x198] sm:$0xff] }
  0x22   :  { %890 = vmatpush.bf16.msrb.mxu0 %v1468_v32  ;;  %872 = vmatmul.bf16.vlgmr.msra.gmra.mxu2 %v222_v37  ;;  %229 = vst [vmem:[#allocation1] ss:$9 sm:$0xff] %v17_v52  ;;  %v1488_v60 = vld [vmem:[%s1893_s1 + $0x1d8] sm:$0xff]  ;;  %v1463_v62 = vld [vmem:[%s1893_s1 + $0x110] sm:$0xff]  ;;  %v1462_v2 = vld [vmem:[%s1893_s1 + $0x108] sm:$0xff] }
  0x23   :  { %916 = vmatpush.bf16.msrb.mxu2 %v1484_v33  ;;  %885 = vmatmul.bf16.vlgmr.msra.gmra.mxu3 %v223_v42  ;;  %v1472_v61 = vld [vmem:[%s1893_s1 + $0x158] sm:$0xff]  ;;  %v1479_v63 = vld [vmem:[%s1893_s1 + $0x190] sm:$0xff]  ;;  %v1478_v3 = vld [vmem:[%s1893_s1 + $0x188] sm:$0xff] }
  0x24   :  { %929 = vmatpush.bf16.msrb.mxu3 %v1492_v34  ;;  %859 = vmatmul.bf16.vlgmr.msra.gmra.mxu1 %v221_v44  ;;  %v1487_v0 = vld [vmem:[%s1893_s1 + $0x1d0] sm:$0xff]  ;;  %v1486_v4 = vld [vmem:[%s1893_s1 + $0x1c8] sm:$0xff]  ;;  %v1461_v6 = vld [vmem:[%s1893_s1 + $0x100] sm:$0xff] }
  0x25   :  { %903 = vmatpush.bf16.msrb.mxu1 %v1476_v36  ;;  %v1471_v1 = vld [vmem:[%s1893_s1 + $0x150] sm:$0xff]  ;;  %v1470_v5 = vld [vmem:[%s1893_s1 + $0x148] sm:$0xff]  ;;  %v1477_v7 = vld [vmem:[%s1893_s1 + $0x180] sm:$0xff] }
  0x26   :  { %891 = vmatpush.bf16.msrb.mxu0 %v1467_v38  ;;  %v1485_v8 = vld [vmem:[%s1893_s1 + $0x1c0] sm:$0xff]  ;;  %v1500_v9 = vld [vmem:[%s1893_s1 + $0x238] sm:$0xff]  ;;  %v1499_v14 = vld [vmem:[%s1893_s1 + $0x230] sm:$0xff] }
  0x27   :  { %917 = vmatpush.bf16.msrb.mxu2 %v1483_v40  ;;  %v1516_v10 = vld [vmem:[%s1893_s1 + $0x2b8] sm:$0xff]  ;;  %v1469_v12 = vld [vmem:[%s1893_s1 + $0x140] sm:$0xff]  ;;  %v1515_v15 = vld [vmem:[%s1893_s1 + $0x2b0] sm:$0xff] }
  0x28   :  { %930 = vmatpush.bf16.msrb.mxu3 %v1491_v41  ;;  %v1524_v11 = vld [vmem:[%s1893_s1 + $0x2f8] sm:$0xff]  ;;  %v1523_v16 = vld [vmem:[%s1893_s1 + $0x2f0] sm:$0xff]  ;;  %v1498_v18 = vld [vmem:[%s1893_s1 + $0x228] sm:$0xff] }
  0x29   :  { %904 = vmatpush.bf16.msrb.mxu1 %v1475_v43  ;;  %v1508_v13 = vld [vmem:[%s1893_s1 + $0x278] sm:$0xff]  ;;  %v1507_v17 = vld [vmem:[%s1893_s1 + $0x270] sm:$0xff]  ;;  %v1514_v19 = vld [vmem:[%s1893_s1 + $0x2a8] sm:$0xff] }
  0x2a   :  { %892 = vmatpush.bf16.msrb.mxu0 %v1466_v45  ;;  %v1522_v20 = vld [vmem:[%s1893_s1 + $0x2e8] sm:$0xff]  ;;  %v1497_v22 = vld [vmem:[%s1893_s1 + $0x220] sm:$0xff]  ;;  %v1496_v26 = vld [vmem:[%s1893_s1 + $0x218] sm:$0xff] }
  0x2b   :  { %918 = vmatpush.bf16.msrb.mxu2 %v1482_v46  ;;  %v1506_v21 = vld [vmem:[%s1893_s1 + $0x268] sm:$0xff]  ;;  %v1513_v23 = vld [vmem:[%s1893_s1 + $0x2a0] sm:$0xff]  ;;  %v1512_v27 = vld [vmem:[%s1893_s1 + $0x298] sm:$0xff] }
  0x2c   :  { %931 = vmatpush.bf16.msrb.mxu3 %v1490_v47  ;;  %v1521_v24 = vld [vmem:[%s1893_s1 + $0x2e0] sm:$0xff]  ;;  %v1520_v28 = vld [vmem:[%s1893_s1 + $0x2d8] sm:$0xff]  ;;  %v1495_v30 = vld [vmem:[%s1893_s1 + $0x210] sm:$0xff] }
  0x2d   :  { %905 = vmatpush.bf16.msrb.mxu1 %v1474_v48  ;;  %v1505_v25 = vld [vmem:[%s1893_s1 + $0x260] sm:$0xff]  ;;  %v1504_v29 = vld [vmem:[%s1893_s1 + $0x258] sm:$0xff]  ;;  %v1511_v31 = vld [vmem:[%s1893_s1 + $0x290] sm:$0xff] }
  0x2e   :  { %893 = vmatpush.bf16.msrb.mxu0 %v1465_v54  ;;  %v1519_v32 = vld [vmem:[%s1893_s1 + $0x2d0] sm:$0xff]  ;;  %v1494_v34 = vld [vmem:[%s1893_s1 + $0x208] sm:$0xff]  ;;  %v1493_v38 = vld [vmem:[%s1893_s1 + $0x200] sm:$0xff] }
  0x2f   :  { %919 = vmatpush.bf16.msrb.mxu2 %v1481_v55  ;;  %v1503_v33 = vld [vmem:[%s1893_s1 + $0x250] sm:$0xff]  ;;  %v1510_v35 = vld [vmem:[%s1893_s1 + $0x288] sm:$0xff]  ;;  %v1509_v39 = vld [vmem:[%s1893_s1 + $0x280] sm:$0xff] }
  0x30   :  { %932 = vmatpush.bf16.msrb.mxu3 %v1489_v56  ;;  %v1518_v36 = vld [vmem:[%s1893_s1 + $0x2c8] sm:$0xff]  ;;  %v1517_v40 = vld [vmem:[%s1893_s1 + $0x2c0] sm:$0xff]  ;;  %v232_v44 = vld [vmem:[#allocation1 + $0x12] sm:$0xff] }
  0x31   :  { %906 = vmatpush.bf16.msrb.mxu1 %v1473_v57  ;;  %v1502_v37 = vld [vmem:[%s1893_s1 + $0x248] sm:$0xff]  ;;  %v1501_v42 = vld [vmem:[%s1893_s1 + $0x240] sm:$0xff] }
  0x32   :  { %894 = vmatpush.bf16.msrb.mxu0 %v1464_v58  ;;  %v1526_v41 = vld [vmem:[%s1893_s1 + $0x308] sm:$0xff]  ;;  %v230_v43 = vld [vmem:[#allocation1] sm:$0xff] }
  0x33   :  { %920 = vmatpush.bf16.msrb.mxu2 %v1480_v59  ;;  %v233_v45 = vld [vmem:[#allocation1 + $0x1b] sm:$0xff]  ;;  %v231_v47 = vld [vmem:[#allocation1 + $0x9] sm:$0xff] }
  0x34   :  { %933 = vmatpush.bf16.msrb.mxu3 %v1488_v60  ;;  %v1525_v46 = vld [vmem:[%s1893_s1 + $0x300] sm:$0xff] }
  0x35   :  { %907 = vmatpush.bf16.msrb.mxu1 %v1472_v61  ;;  %v234_v48 = vld [vmem:[#allocation1 + $0x24] sm:$0xff]  ;;  %v1528_v57 = vld [vmem:[%s1894_s2] ss:$0 sm:$0xff]  ;;  %s1559_s2 = smov [#allocation2]  }
  0x36   :  { %895 = vmatpush.bf16.msrb.mxu0 %v1463_v62  ;;  %s1025_s20 = sshll.u32 %s1559_s2, 4  ;;  %s1026_s20 = int_to_ptr.vmem [resolvable:$true] %s1025_s20 }
  0x37   :  { %921 = vmatpush.bf16.msrb.mxu2 %v1479_v63 }
  0x38   :  { %934 = vmatpush.bf16.msrb.mxu3 %v1487_v0 }
  0x39   :  { %908 = vmatpush.bf16.msrb.mxu1 %v1471_v1 }
  0x3a   :  { %896 = vmatpush.bf16.msrb.mxu0 %v1462_v2 }
  0x3b   :  { %922 = vmatpush.bf16.msrb.mxu2 %v1478_v3 }
  0x3c   :  { %935 = vmatpush.bf16.msrb.mxu3 %v1486_v4 }
  0x3d   :  { %909 = vmatpush.bf16.msrb.mxu1 %v1470_v5 }
  0x3e   :  { %897 = vmatpush.bf16.msrb.mxu0 %v1461_v6 }
  0x3f   :  { %923 = vmatpush.bf16.msrb.mxu2 %v1477_v7 }
  0x40   :  { %936 = vmatpush.bf16.msrb.mxu3 %v1485_v8 }
  0x41   :  { %910 = vmatpush.bf16.msrb.mxu1 %v1469_v12  ;;  %898 = vmatmul.bf16.vlgmr.msrb.gmra.mxu0 %v224_v50 }
  0x42   :  { %942 = vmatpush.bf16.msra.mxu0 %v1500_v9  ;;  %924 = vmatmul.bf16.vlgmr.msrb.gmra.mxu2 %v226_v49 }
  0x43   :  { %968 = vmatpush.bf16.msra.mxu2 %v1516_v10  ;;  %937 = vmatmul.bf16.vlgmr.msrb.gmra.mxu3 %v227_v51 }
  0x44   :  { %981 = vmatpush.bf16.msra.mxu3 %v1524_v11  ;;  %911 = vmatmul.bf16.vlgmr.msrb.gmra.mxu1 %v1718_v53 }
  0x45   :  { %955 = vmatpush.bf16.msra.mxu1 %v1508_v13 }
  0x46   :  { %943 = vmatpush.bf16.msra.mxu0 %v1499_v14 }
  0x47   :  { %969 = vmatpush.bf16.msra.mxu2 %v1515_v15 }
  0x48   :  { %982 = vmatpush.bf16.msra.mxu3 %v1523_v16 }
  0x49   :  { %956 = vmatpush.bf16.msra.mxu1 %v1507_v17 }
  0x4a   :  { %944 = vmatpush.bf16.msra.mxu0 %v1498_v18 }
  0x4b   :  { %970 = vmatpush.bf16.msra.mxu2 %v1514_v19 }
  0x4c   :  { %983 = vmatpush.bf16.msra.mxu3 %v1522_v20 }
  0x4d   :  { %957 = vmatpush.bf16.msra.mxu1 %v1506_v21 }
  0x4e   :  { %945 = vmatpush.bf16.msra.mxu0 %v1497_v22 }
  0x4f   :  { %971 = vmatpush.bf16.msra.mxu2 %v1513_v23 }
  0x50   :  { %984 = vmatpush.bf16.msra.mxu3 %v1521_v24 }
  0x51   :  { %958 = vmatpush.bf16.msra.mxu1 %v1505_v25 }
  0x52   :  { %946 = vmatpush.bf16.msra.mxu0 %v1496_v26 }
  0x53   :  { %972 = vmatpush.bf16.msra.mxu2 %v1512_v27 }
  0x54   :  { %985 = vmatpush.bf16.msra.mxu3 %v1520_v28 }
  0x55   :  { %959 = vmatpush.bf16.msra.mxu1 %v1504_v29 }
  0x56   :  { %947 = vmatpush.bf16.msra.mxu0 %v1495_v30 }
  0x57   :  { %973 = vmatpush.bf16.msra.mxu2 %v1511_v31 }
  0x58   :  { %986 = vmatpush.bf16.msra.mxu3 %v1519_v32 }
  0x59   :  { %960 = vmatpush.bf16.msra.mxu1 %v1503_v33 }
  0x5a   :  { %948 = vmatpush.bf16.msra.mxu0 %v1494_v34 }
  0x5b   :  { %974 = vmatpush.bf16.msra.mxu2 %v1510_v35 }
  0x5c   :  { %987 = vmatpush.bf16.msra.mxu3 %v1518_v36 }
  0x5d   :  { %961 = vmatpush.bf16.msra.mxu1 %v1502_v37 }
  0x5e   :  { %949 = vmatpush.bf16.msra.mxu0 %v1493_v38 }
  0x5f   :  { %975 = vmatpush.bf16.msra.mxu2 %v1509_v39 }
  0x60   :  { %988 = vmatpush.bf16.msra.mxu3 %v1517_v40 }
  0x61   :  { %962 = vmatpush.bf16.msra.mxu1 %v1501_v42  ;;  %950 = vmatmul.bf16.vlgmr.msra.gmra.mxu0 %v230_v43 }
  0x62   :  { %1000 = vmatpush.bf16.msrb.mxu0 %v1526_v41  ;;  %976 = vmatmul.bf16.vlgmr.msra.gmra.mxu2 %v232_v44 }
  0x63   :  { %989 = vmatmul.bf16.vlgmr.msra.gmra.mxu3 %v233_v45 }
  0x64   :  { %963 = vmatmul.bf16.vlgmr.msra.gmra.mxu1 %v231_v47 }
  0x66   :  { %1001 = vmatpush.bf16.msrb.mxu0 %v1525_v46 }
  0x71   :  { %1428 = vmatmul.msk.bf16.vlgmr.msrb.gmra.mxu0 %vm835_vm0, %v234_v48 }
  0x9e   :  { %v847_v49 = vpop.f32.mrf.mxu0 }
  0x9f   :  { %v848_v60 = vadd.f32 %v1528_v57, %v847_v49 }
  0xa1   :  { %v860_v50 = vpop.f32.mrf.mxu1 }
  0xa2   :  { %v861_v63 = vadd.f32 %v860_v50, %v848_v60 }
  0xa5   :  { %v873_v51 = vpop.f32.mrf.mxu2 }
  0xa6   :  { %v886_v52 = vpop.f32.mrf.mxu3  ;;  %v849_v53 = vpop.f32.mrf.mxu0  ;;  %v874_v2 = vadd.f32 %v873_v51, %v861_v63 }
  0xa8   :  { %v887_v5 = vadd.f32 %v886_v52, %v874_v2 }
  0xa9   :  { %v862_v54 = vpop.f32.mrf.mxu1 }
  0xad   :  { %v875_v55 = vpop.f32.mrf.mxu2 }
  0xae   :  { %v888_v56 = vpop.f32.mrf.mxu3 }
  0xbe   :  { %v899_v58 = vpop.f32.mrf.mxu0 }
  0xbf   :  { %v900_v6 = vadd.f32 %v899_v58, %v887_v5 }
  0xc1   :  { %v912_v59 = vpop.f32.mrf.mxu1 }
  0xc2   :  { %v913_v7 = vadd.f32 %v912_v59, %v900_v6 }
  0xc5   :  { %v925_v61 = vpop.f32.mrf.mxu2 }
  0xc6   :  { %v938_v62 = vpop.f32.mrf.mxu3  ;;  %v901_v0 = vpop.f32.mrf.mxu0  ;;  %v926_v8 = vadd.f32 %v925_v61, %v913_v7 }
  0xc8   :  { %v939_v11 = vadd.f32 %v938_v62, %v926_v8 }
  0xc9   :  { %v914_v1 = vpop.f32.mrf.mxu1 }
  0xcd   :  { %v927_v3 = vpop.f32.mrf.mxu2 }
  0xce   :  { %v940_v4 = vpop.f32.mrf.mxu3 }
  0xde   :  { %v951_v9 = vpop.f32.mrf.mxu0 }
  0xdf   :  { %v952_v12 = vadd.f32 %v951_v9, %v939_v11 }
  0xe1   :  { %v964_v10 = vpop.f32.mrf.mxu1 }
  0xe2   :  { %v965_v16 = vadd.f32 %v964_v10, %v952_v12 }
  0xe5   :  { %v977_v13 = vpop.f32.mrf.mxu2 }
  0xe6   :  { %v990_v14 = vpop.f32.mrf.mxu3  ;;  %v953_v15 = vpop.f32.mrf.mxu0  ;;  %v978_v18 = vadd.f32 %v977_v13, %v965_v16 }
  0xe8   :  { %v991_v20 = vadd.f32 %v990_v14, %v978_v18 }
  0xe9   :  { %v966_v17 = vpop.f32.mrf.mxu1 }
  0xed   :  { %v979_v19 = vpop.f32.mrf.mxu2 }
  0xee   :  { %v992_v21 = vpop.f32.mrf.mxu3  ;;  %v1003_v22 = vpop.f32.mrf.mxu0 }
  0xef   :  { %v1004_v23 = vadd.f32 %v1003_v22, %v991_v20 }
  0xf1   :  { %v1008_v24 = vsel %vm1007_vm1, %v1004_v23, -inf }
  0xf2   :  { %1009 = vmax.xlane.f32.xlu0 %v1008_v24 }
  0xf6   :  { %v1005_v25 = vpop.f32.mrf.mxu0 }
 0x165   :  { %v1010_v26 = vpop.xlane.xlu0 %1009 }
 0x166   :  { %v1011_v27 = vsub.f32 %v1004_v23, %v1010_v26 }
 0x168   :  { %v1012_v28 = vmul.f32 1.442695, %v1011_v27 }
 0x16a   :  { %1529 = vpow2.f32 %v1012_v28 }
 0x170   :  { %v1530_v29 = vpop.eup %1529 }
 0x171   :  { %v1014_v30 = vsel %vm1007_vm1, %v1530_v29, 0.0 }
 0x172   :  { %1015 = vadd.xlane.f32.xlu0 %v1014_v30 }
 0x1e5   :  { %v1016_v31 = vpop.xlane.xlu0 %1015 }
 0x1e6   :  { %1531 = vrcp.f32 %v1016_v31 }
 0x1ec   :  { %v1532_v32 = vpop.eup %1531 }
 0x1ed   :  { %v1018_v33 = vmul.f32 %v1532_v32, %v1530_v29 }
 0x1ef   :  { %1019 = vst.msk [vmem:[#allocation2] sm:$0x3] %vm1007_vm1, %v1018_v33 }
 0x1f0   :  { %1030 = dma.vmem_to_hbm [thread:$0]  %s1026_s20, 32, %s1028_s23, [#allocation3]  }
 0x1f1   :  { %1557 = dma.done.wait [#allocation3], 32  }
 0x1f2   :  { %1558 = vsyncadd [#allocation3], 4294967264 }
 0x1f3   :  { %1035 = vsyncpa [#allocation3], 1 }

// kernel: net_forward.4
= control target key start
LH: loop header
LB: loop body
LE: loop exit
PB: predicated region body
PF: predicated region fallthrough
CT: control target
= control target key end

     0   :  { %8 = vsyncpa [#allocation3], 0  ;;  %s8012_s0 = inlined_call_operand.vmem [shape: bf16[2,2,9,288], index: 0, kind: input, shape index: {}]   ;;  %s8013_s1 = inlined_call_operand.hbm [shape: bf16[5,2,288,224], index: 1, kind: input, shape index: {}]   ;;  %s8014_s2 = inlined_call_operand.hbm [shape: f32[1,224], index: 2, kind: input, shape index: {}]   ;;  %s8015_s3 = inlined_call_operand.vmem [shape: bf16[2,7,224], index: 3, kind: output, shape index: {}]  }
   0x1   :  { %9 = vsyncpa [#allocation5], 0  ;;  %s6216_s12 = smov 0  }
   0x2 LB: > { %s125_s15 = sshll.u32 %s8013_s1, 4  ;;  %s4193_s16 = sadd.s32 4294967295, %s6190_s12   ;;  %s6190_s12 = sphi %s6216_s12, %s15_s12   ;;  %s126_s15 = int_to_ptr.hbm [resolvable:$true] %s125_s15 }
   0x3   : > { %p4195_p0 = scmp.ge.s32.totalorder %s6190_s12, 1  ;;  %p114_p1 = scmp.lt.s32.totalorder %s6190_s12, 3 }
   0x4   : > { %p6100_p2 = scmp.eq.s32.totalorder %s4193_s16, 0  ;;  %s6192_s18 = smov [#allocation2]  }
   0x5   : > { %p6227_p3 = pnand %p4195_p0, %p114_p1  ;;  %s127_s19 = sshll.u32 %s6192_s18, 4  ;;  %s128_s19 = int_to_ptr.vmem [resolvable:$true] %s127_s19 }
   0x6   : > { %s140_s22 = sshll.u32 %s8014_s2, 4  ;;  %s6193_s23 = smov [#allocation4]   ;;  %s141_s22 = int_to_ptr.hbm [resolvable:$true] %s140_s22 }
   0x7   : > { %p6093_p4 = pneg %p6227_p3  ;;  %s142_s24 = sshll.u32 %s6193_s23, 4  ;;  %s143_s24 = int_to_ptr.vmem [resolvable:$true] %s142_s24 }
   0x8   : > { %s6194_s25 = smov 128   ;;  %s6195_s26 = smov 8  }
   0x9   : > { %p6094_p5 = pnand %p6100_p2, %p6093_p4  ;;  %163 = sbr.rel (%p6227_p3) target bundleno = 891 (0x37b), region = 32 }
   0xb   : > { %6096 = dma.hbm_to_vmem [thread:$0]  (!%p6094_p5), %s126_s15, 46080, %s128_s19, [#allocation3], %s6194_s25, %s6194_s25, %s6195_s26  }
   0xc   : > { %6099 = dma.hbm_to_vmem [thread:$0]  (!%p6094_p5), %s141_s22, 32, %s143_s24, [#allocation5]  }
   0xe   : > { %6181 = dma.done.wait (%p6100_p2), [#allocation3], 46080  }
   0xf   : > { %6183 = vsyncadd (%p6100_p2), [#allocation3], 4294921216 }
  0x10   : > { %6185 = dma.done.wait (%p6100_p2), [#allocation5], 32  }
  0x11   : > { %6187 = vsyncadd (%p6100_p2), [#allocation5], 4294967264  ;;  %p193_p6 = scmp.lt.s32.totalorder %s4193_s16, 1  ;;  %v4265_v0 = vld [vmem:[#allocation2 + $0x2b0] sm:$0xf]  ;;  %vm472_vm0 = vcmask 261120  }
  0x12   : > { %v5769_v1 = vld [vmem:[#allocation2 + $0x2b4] sm:$0xf0]  ;;  %v4329_v2 = vld [vmem:[#allocation2 + $0x330] sm:$0xf]  ;;  %v5784_v9 = vld [vmem:[#allocation2 + $0x334] sm:$0xf] }
  0x13   : > { %s8981_s16 = smov (!%p193_p6, %s4193_s16), 1  ;;  %v6246_v3 = vor.u32 %v5769_v1, %v4265_v0  ;;  %v5785_v4 = vld [vmem:[#allocation2 + $0x334] sm:$0xf0]  ;;  %v4345_v5 = vld [vmem:[#allocation2 + $0x350] sm:$0xf]  ;;  %vm4106_vm1 = vcmask 1043456  }
  0x14   : > { %s6084_s27 = smul.u32 48, %s8981_s16  ;;  %v5789_v6 = vld [vmem:[#allocation2 + $0x354] sm:$0xf0]  ;;  %v6248_v7 = vor.u32 %v5785_v4, %v4329_v2  ;;  %v4331_v10 = vld [vmem:[#allocation2 + $0x338] sm:$0xf0]  ;;  %s5717_s4 = sshll.u32 %s8981_s16, 3 }
  0x15   : > { %v6250_v8 = vor.u32 %v5789_v6, %v4345_v5  ;;  %v4257_v11 = vld [vmem:[#allocation2 + $0x2a0] sm:$0xf]  ;;  %476 = vmatpush.bf16.msra.mxu0 %v6246_v3  ;;  %v6253_v12 = vor.u32 %v5784_v9, %v4331_v10  ;;  %v5767_v13 = vld [vmem:[#allocation2 + $0x2a4] sm:$0xf0]  ;;  %v5782_v20 = vld [vmem:[#allocation2 + $0x324] sm:$0xf]  ;;  %s202_s7 = scalar_lea.vmem %s8015_s3, %s5717_s4 }
  0x16   : > { %v4321_v14 = vld [vmem:[#allocation2 + $0x320] sm:$0xf]  ;;  %v5783_v15 = vld [vmem:[#allocation2 + $0x324] sm:$0xf0]  ;;  %489 = vmatpush.bf16.msra.mxu1 %v6248_v7  ;;  %v6257_v16 = vor.u32 %v5767_v13, %v4257_v11  ;;  %v4323_v22 = vld [vmem:[#allocation2 + $0x328] sm:$0xf0]  ;;  %s6298_s30 = scalar_lea.vmem %s8012_s0, %s6084_s27 }
  0x17   : > { %508 = vmatpush.bf16.msra.mxu3 %v6250_v8  ;;  %v6259_v17 = vor.u32 %v5783_v15, %v4321_v14  ;;  %v4337_v18 = vld [vmem:[#allocation2 + $0x340] sm:$0xf]  ;;  %v5787_v19 = vld [vmem:[#allocation2 + $0x344] sm:$0xf0]  ;;  %528 = vmatpush.bf16.msra.mxu2 %v6253_v12  ;;  %v5768_v23 = vld [vmem:[#allocation2 + $0x2b4] sm:$0xf]  ;;  %v6264_v25 = vor.u32 %v5782_v20, %v4323_v22 }
  0x18   : > { %v6262_v21 = vor.u32 %v5787_v19, %v4337_v18  ;;  %v4267_v24 = vld [vmem:[#allocation2 + $0x2b8] sm:$0xf0]  ;;  %v4249_v27 = vld [vmem:[#allocation2 + $0x290] sm:$0xf]  ;;  %v5765_v28 = vld [vmem:[#allocation2 + $0x294] sm:$0xf0] }
  0x19   : > { %v6266_v26 = vor.u32 %v5768_v23, %v4267_v24  ;;  %v4313_v29 = vld [vmem:[#allocation2 + $0x310] sm:$0xf]  ;;  %477 = vmatpush.bf16.msra.mxu0 %v6257_v16  ;;  %v6269_v30 = vor.u32 %v5765_v28, %v4249_v27  ;;  %v5781_v31 = vld [vmem:[#allocation2 + $0x314] sm:$0xf0]  ;;  %v5780_v32 = vld [vmem:[#allocation2 + $0x314] sm:$0xf] }
  0x1a   : > { %v4315_v33 = vld [vmem:[#allocation2 + $0x318] sm:$0xf0]  ;;  %490 = vmatpush.bf16.msra.mxu1 %v6259_v17  ;;  %v6273_v34 = vor.u32 %v5781_v31, %v4313_v29  ;;  %v5766_v35 = vld [vmem:[#allocation2 + $0x2a4] sm:$0xf]  ;;  %v4259_v36 = vld [vmem:[#allocation2 + $0x2a8] sm:$0xf0] }
  0x1b   : > { %509 = vmatpush.bf16.msra.mxu3 %v6262_v21  ;;  %v4241_v37 = vld [vmem:[#allocation2 + $0x280] sm:$0xf]  ;;  %529 = vmatpush.bf16.msra.mxu2 %v6264_v25  ;;  %v6277_v38 = vor.u32 %v5780_v32, %v4315_v33  ;;  %v6279_v39 = vor.u32 %v5766_v35, %v4259_v36  ;;  %v5763_v40 = vld [vmem:[#allocation2 + $0x284] sm:$0xf0]  ;;  %v5778_v43 = vld [vmem:[#allocation2 + $0x304] sm:$0xf] }
  0x1c   : > { %v4305_v41 = vld [vmem:[#allocation2 + $0x300] sm:$0xf]  ;;  %v5779_v42 = vld [vmem:[#allocation2 + $0x304] sm:$0xf0]  ;;  %v4307_v44 = vld [vmem:[#allocation2 + $0x308] sm:$0xf0]  ;;  %v6282_v46 = vor.u32 %v5763_v40, %v4241_v37 }
  0x1d   : > { %v5764_v45 = vld [vmem:[#allocation2 + $0x294] sm:$0xf]  ;;  %478 = vmatpush.bf16.msra.mxu0 %v6269_v30  ;;  %v4251_v47 = vld [vmem:[#allocation2 + $0x298] sm:$0xf0]  ;;  %v6285_v48 = vor.u32 %v5779_v42, %v4305_v41  ;;  %v4233_v49 = vld [vmem:[#allocation2 + $0x270] sm:$0xf]  ;;  %v6289_v51 = vor.u32 %v5778_v43, %v4307_v44 }
  0x1e   : > { %491 = vmatpush.bf16.msra.mxu1 %v6273_v34  ;;  %v5761_v50 = vld [vmem:[#allocation2 + $0x274] sm:$0xf0]  ;;  %v6291_v52 = vor.u32 %v5764_v45, %v4251_v47  ;;  %v4297_v53 = vld [vmem:[#allocation2 + $0x2f0] sm:$0xf]  ;;  %v5776_v55 = vld [vmem:[#allocation2 + $0x2f4] sm:$0xf] }
  0x1f   : > { %515 = vmatpush.bf16.msrb.mxu3 %v6266_v26  ;;  %530 = vmatpush.bf16.msra.mxu2 %v6277_v38  ;;  %8338 = vst [vmem:[#allocation8_spill] sm:$0xff] %v6289_v51  ;;  %v5777_v54 = vld [vmem:[#allocation2 + $0x2f4] sm:$0xf0]  ;;  %v4299_v56 = vld [vmem:[#allocation2 + $0x2f8] sm:$0xf0]  ;;  %v6301_v59 = vor.u32 %v5761_v50, %v4233_v49  ;;  %vm4109_vm3 = vcmask 785412  }
  0x20   : > { %v5762_v57 = vld [vmem:[#allocation2 + $0x284] sm:$0xf]  ;;  %v4243_v58 = vld [vmem:[#allocation2 + $0x288] sm:$0xf0]  ;;  %v6304_v60 = vor.u32 %v5777_v54, %v4297_v53  ;;  %v4225_v61 = vld [vmem:[#allocation2 + $0x260] sm:$0xf]  ;;  %v6309_v0 = vor.u32 %v5776_v55, %v4299_v56 }
  0x21   : > { %479 = vmatpush.bf16.msra.mxu0 %v6282_v46  ;;  %v5759_v62 = vld [vmem:[#allocation2 + $0x264] sm:$0xf0]  ;;  %v4206_v63 = vld [vmem:[%s6298_s30 + $0x20] sm:$0xf]  ;;  %v6311_v1 = vor.u32 %v5762_v57, %v4243_v58  ;;  %v5774_v5 = vld [vmem:[#allocation2 + $0x2e4] sm:$0xf] }
  0x22   : > { %492 = vmatpush.bf16.msra.mxu1 %v6285_v48  ;;  %8339 = vst [vmem:[#allocation9_spill] sm:$0xff] %v6309_v0  ;;  %v4289_v2 = vld [vmem:[#allocation2 + $0x2e0] sm:$0xf]  ;;  %v5775_v4 = vld [vmem:[#allocation2 + $0x2e4] sm:$0xf0]  ;;  %v286_v6 = vunpack.c.l.b16 %v4206_v63  ;;  %v6314_v13 = vor.u32 %v5759_v62, %v4225_v61  ;;  %v4205_v42 = vld [vmem:[%s6298_s30 + $0x18] sm:$0xff] }
  0x23   : > { %516 = vmatpush.bf16.msrb.mxu3 %v6279_v39  ;;  %531 = vmatpush.bf16.msra.mxu2 %v6289_v51  ;;  %v4291_v9 = vld [vmem:[#allocation2 + $0x2e8] sm:$0xf0]  ;;  %v5760_v10 = vld [vmem:[#allocation2 + $0x274] sm:$0xf]  ;;  %v4235_v11 = vld [vmem:[#allocation2 + $0x278] sm:$0xf0]  ;;  %v6319_v15 = vor.u32 %v5775_v4, %v4289_v2  ;;  %v284_v61 = vunpack.c.l.b16 %v4205_v42  ;;  %v285_v2 = vunpack.c.h.b16 %v4205_v42 }
  0x24   : > { %v6316_v14 = vpack.c.b16 %v286_v6, %v286_v6  ;;  %v4217_v18 = vld [vmem:[#allocation2 + $0x250] sm:$0xf]  ;;  %v5757_v19 = vld [vmem:[#allocation2 + $0x254] sm:$0xf0]  ;;  %v6323_v20 = vor.u32 %v5774_v5, %v4291_v9  ;;  %v6325_v22 = vor.u32 %v5760_v10, %v4235_v11  ;;  %v5772_v27 = vld [vmem:[#allocation2 + $0x2d4] sm:$0xf] }
  0x25   : > { %480 = vmatpush.bf16.msra.mxu0 %v6301_v59  ;;  %8340 = vst [vmem:[#allocation10_spill] sm:$0xff] %v6319_v15  ;;  %v4281_v23 = vld [vmem:[#allocation2 + $0x2d0] sm:$0xf]  ;;  %v5773_v24 = vld [vmem:[#allocation2 + $0x2d4] sm:$0xf0]  ;;  %v6330_v32 = vor.u32 %v5757_v19, %v4217_v18 }
  0x26   : > { %493 = vmatpush.bf16.msra.mxu1 %v6304_v60  ;;  %8341 = vst [vmem:[#allocation11_spill] sm:$0xff] %v6323_v20  ;;  %4351 = vmatmul.msk.bf16.vlgmr.msra.gmra.mxu3 %vm472_vm0, %v6316_v14  ;;  %v4283_v28 = vld [vmem:[#allocation2 + $0x2d8] sm:$0xf0]  ;;  %v5758_v29 = vld [vmem:[#allocation2 + $0x264] sm:$0xf]  ;;  %v6333_v37 = vor.u32 %v5773_v24, %v4281_v23 }
  0x27   : > { %517 = vmatpush.bf16.msrb.mxu3 %v6291_v52  ;;  %532 = vmatpush.bf16.msra.mxu2 %v6309_v0  ;;  %v4227_v31 = vld [vmem:[#allocation2 + $0x268] sm:$0xf0]  ;;  %8342 = vst [vmem:[#allocation12_spill] sm:$0xff] %v6330_v32  ;;  %v4209_v33 = vld [vmem:[#allocation2 + $0x240] sm:$0xf]  ;;  %v6338_v43 = vor.u32 %v5772_v27, %v4283_v28 }
  0x28   : > { %v5755_v35 = vld [vmem:[#allocation2 + $0x244] sm:$0xf0]  ;;  %v4273_v36 = vld [vmem:[#allocation2 + $0x2c0] sm:$0xf]  ;;  %8343 = vst [vmem:[#allocation13_spill] sm:$0xff] %v6333_v37  ;;  %v6340_v44 = vor.u32 %v5758_v29, %v4227_v31  ;;  %v6361_v29 = vpack.c.b16 %v284_v61, %v284_v61 }
  0x29   : > { %481 = vmatpush.bf16.msra.mxu0 %v6314_v13  ;;  %v5771_v40 = vld [vmem:[#allocation2 + $0x2c4] sm:$0xf0]  ;;  %v5770_v41 = vld [vmem:[#allocation2 + $0x2c4] sm:$0xf]  ;;  %8344 = vst [vmem:[#allocation14_spill] sm:$0xff] %v6338_v43  ;;  %v6343_v55 = vor.u32 %v5755_v35, %v4209_v33 }
  0x2a   : > { %494 = vmatpush.bf16.msra.mxu1 %v6319_v15  ;;  %8345 = vst [vmem:[#allocation15_spill] sm:$0xff] %v6340_v44  ;;  %v4275_v45 = vld [vmem:[#allocation2 + $0x2c8] sm:$0xf0]  ;;  %v5788_v47 = vld [vmem:[#allocation2 + $0x354] sm:$0xf]  ;;  %v6346_v62 = vor.u32 %v5771_v40, %v4273_v36  ;;  %v6365_v36 = vpack.c.b16 %v285_v2, %v285_v2 }
  0x2b   : > { %518 = vmatpush.bf16.msrb.mxu3 %v6311_v1  ;;  %533 = vmatpush.bf16.msra.mxu2 %v6323_v20  ;;  %v4347_v49 = vld [vmem:[#allocation2 + $0x358] sm:$0xf0]  ;;  %v5756_v50 = vld [vmem:[#allocation2 + $0x254] sm:$0xf]  ;;  %v4411_v54 = vld [vmem:[#allocation2 + $0x70] sm:$0xf]  ;;  %v6352_v6 = vor.u32 %v5770_v41, %v4275_v45 }
  0x2c   : > { %v4219_v53 = vld [vmem:[#allocation2 + $0x258] sm:$0xf0]  ;;  %8346 = vst [vmem:[#allocation16_spill] sm:$0xff] %v6343_v55  ;;  %v5733_v56 = vld [vmem:[#allocation2 + $0x74] sm:$0xf0]  ;;  %v6348_v63 = vor.u32 %v5788_v47, %v4347_v49 }
  0x2d   : > { %482 = vmatpush.bf16.msra.mxu0 %v6330_v32  ;;  %v4491_v57 = vld [vmem:[#allocation2 + $0x110] sm:$0xf]  ;;  %v5753_v58 = vld [vmem:[#allocation2 + $0x114] sm:$0xf0]  ;;  %8347 = vst [vmem:[#allocation17_spill] sm:$0xff] %v6346_v62  ;;  %v6354_v9 = vor.u32 %v5756_v50, %v4219_v53  ;;  %v6356_v19 = vor.u32 %v5733_v56, %v4411_v54 }
  0x2e   : > { %495 = vmatpush.bf16.msra.mxu1 %v6333_v37  ;;  %8348 = vst [vmem:[#allocation18_spill] sm:$0xff] %v6348_v63  ;;  %v5754_v4 = vld [vmem:[#allocation2 + $0x244] sm:$0xf]  ;;  %v4211_v5 = vld [vmem:[#allocation2 + $0x248] sm:$0xf0]  ;;  %v6358_v23 = vor.u32 %v5753_v58, %v4491_v57 }
  0x2f   : > { %519 = vmatpush.bf16.msrb.mxu3 %v6325_v22  ;;  %534 = vmatpush.bf16.msra.mxu2 %v6338_v43  ;;  %8349 = vst [vmem:[#allocation19_spill] sm:$0xff] %v6352_v6  ;;  %v5786_v10 = vld [vmem:[#allocation2 + $0x344] sm:$0xf]  ;;  %v4339_v11 = vld [vmem:[#allocation2 + $0x348] sm:$0xf0]  ;;  %v6371_v47 = vor.u32 %v5754_v4, %v4211_v5 }
  0x30   : > { %8350 = vst [vmem:[#allocation20_spill] sm:$0xff] %v6354_v9  ;;  %v4403_v18 = vld [vmem:[#allocation2 + $0x60] sm:$0xf]  ;;  %v5731_v24 = vld [vmem:[#allocation2 + $0x64] sm:$0xf0]  ;;  %v6367_v40 = vor.u32 %v5786_v10, %v4339_v11 }
  0x31   : > { %8351 = vst [vmem:[#allocation21_spill] sm:$0xff] %v6356_v19  ;;  %v5732_v27 = vld [vmem:[#allocation2 + $0x74] sm:$0xf]  ;;  %v4413_v28 = vld [vmem:[#allocation2 + $0x78] sm:$0xf0]  ;;  %483 = vmatpush.bf16.msra.mxu0 %v6343_v55  ;;  %v6377_v50 = vor.u32 %v5731_v24, %v4403_v18 }
  0x32   : > { %8352 = vst [vmem:[#allocation22_spill] sm:$0xff] %v6358_v23  ;;  %v4483_v31 = vld [vmem:[#allocation2 + $0x100] sm:$0xf]  ;;  %v5751_v33 = vld [vmem:[#allocation2 + $0x104] sm:$0xf0]  ;;  %496 = vmatpush.bf16.msra.mxu1 %v6346_v62  ;;  %v6373_v49 = vor.u32 %v5732_v27, %v4413_v28 }
  0x33   : > { %520 = vmatpush.bf16.msrb.mxu3 %v6340_v44  ;;  %v4475_v35 = vld [vmem:[#allocation2 + $0xf0] sm:$0xf]  ;;  %8353 = vst [vmem:[#allocation23_spill] sm:$0xff] %v6367_v40  ;;  %v5749_v41 = vld [vmem:[#allocation2 + $0xf4] sm:$0xf0]  ;;  %535 = vmatpush.bf16.msra.mxu2 %v6352_v6  ;;  %v6379_v53 = vor.u32 %v5751_v33, %v4483_v31 }
  0x34   : > { %v5748_v42 = vld [vmem:[#allocation2 + $0xf4] sm:$0xf]  ;;  %v4477_v45 = vld [vmem:[#allocation2 + $0xf8] sm:$0xf0]  ;;  %8354 = vst [vmem:[#allocation24_spill] sm:$0xff] %v6371_v47  ;;  %484 = vmatmul.bf16.vlgmr.msra.gmra.mxu0 %v6361_v29  ;;  %v6383_v57 = vor.u32 %v5749_v41, %v4475_v35 }
  0x35   : > { %547 = vmatpush.bf16.msrb.mxu0 %v6348_v63  ;;  %8355 = vst [vmem:[#allocation25_spill] sm:$0xff] %v6373_v49  ;;  %v5730_v54 = vld [vmem:[#allocation2 + $0x64] sm:$0xf]  ;;  %v4405_v56 = vld [vmem:[#allocation2 + $0x68] sm:$0xf0]  ;;  %497 = vmatmul.bf16.vlgmr.msra.gmra.mxu1 %v6365_v36  ;;  %v6385_v58 = vor.u32 %v5748_v42, %v4477_v45 }
  0x36   : > { %747 = vmatpush.bf16.msrb.mxu1 %v6356_v19  ;;  %8356 = vst [vmem:[#allocation26_spill] sm:$0xff] %v6377_v50  ;;  %v4395_v61 = vld [vmem:[#allocation2 + $0x50] sm:$0xf]  ;;  %v5729_v2 = vld [vmem:[#allocation2 + $0x54] sm:$0xf0]  ;;  %536 = vmatmul.bf16.vlgmr.msra.gmra.mxu2 %v6365_v36  ;;  %v6391_v18 = vor.u32 %v5730_v54, %v4405_v56 }
  0x37   : > { %521 = vmatpush.bf16.msrb.mxu3 %v6354_v9  ;;  %779 = vmatpush.bf16.msrb.mxu2 %v6358_v23  ;;  %8357 = vst [vmem:[#allocation27_spill] sm:$0xff] %v6379_v53  ;;  %v4467_v4 = vld [vmem:[#allocation2 + $0xe0] sm:$0xf]  ;;  %v5747_v5 = vld [vmem:[#allocation2 + $0xe4] sm:$0xf0]  ;;  %v6395_v24 = vor.u32 %v5729_v2, %v4395_v61 }
  0x38   : > { %8358 = vst [vmem:[#allocation28_spill] sm:$0xff] %v6383_v57  ;;  %v5746_v10 = vld [vmem:[#allocation2 + $0xe4] sm:$0xf]  ;;  %v4469_v11 = vld [vmem:[#allocation2 + $0xe8] sm:$0xf0]  ;;  %v6399_v31 = vor.u32 %v5747_v5, %v4467_v4 }
  0x39   : > { %8359 = vst [vmem:[#allocation29_spill] sm:$0xff] %v6385_v58  ;;  %548 = vmatpush.bf16.msrb.mxu0 %v6367_v40  ;;  %v5728_v27 = vld [vmem:[#allocation2 + $0x54] sm:$0xf]  ;;  %v4397_v28 = vld [vmem:[#allocation2 + $0x58] sm:$0xf0]  ;;  %v6401_v33 = vor.u32 %v5746_v10, %v4469_v11 }
  0x3a   : > { %8360 = vst [vmem:[#allocation30_spill] sm:$0xff] %v6391_v18  ;;  %748 = vmatpush.bf16.msrb.mxu1 %v6377_v50  ;;  %v4387_v35 = vld [vmem:[#allocation2 + $0x40] sm:$0xf]  ;;  %v5727_v41 = vld [vmem:[#allocation2 + $0x44] sm:$0xf0]  ;;  %v6405_v61 = vor.u32 %v5728_v27, %v4397_v28 }
  0x3b   : > { %522 = vmatpush.bf16.msrb.mxu3 %v6371_v47  ;;  %780 = vmatpush.bf16.msrb.mxu2 %v6379_v53  ;;  %8361 = vst [vmem:[#allocation31_spill] sm:$0xff] %v6395_v24  ;;  %v4459_v42 = vld [vmem:[#allocation2 + $0xd0] sm:$0xf]  ;;  %v5745_v45 = vld [vmem:[#allocation2 + $0xd4] sm:$0xf0] }
  0x3c   : > { %8362 = vst [vmem:[#allocation32_spill] sm:$0xff] %v6399_v31  ;;  %v5744_v54 = vld [vmem:[#allocation2 + $0xd4] sm:$0xf]  ;;  %v4461_v56 = vld [vmem:[#allocation2 + $0xd8] sm:$0xf0]  ;;  %v6413_v10 = vor.u32 %v5745_v45, %v4459_v42 }
  0x3d   : > { %786 = vmatpush.bf16.msra.mxu0 %v6373_v49  ;;  %8363 = vst [vmem:[#allocation33_spill] sm:$0xff] %v6401_v33  ;;  %v205_v2 = vld [vmem:[%s6298_s30 + $0x8] sm:$0xf]  ;;  %v6409_v49 = vor.u32 %v5727_v41, %v4387_v35  ;;  %v5726_v4 = vld [vmem:[#allocation2 + $0x44] sm:$0xf]  ;;  %v6415_v11 = vor.u32 %v5744_v54, %v4461_v56 }
  0x3e   : > { %523 = vmatmul.bf16.vlgmr.msrb.gmra.mxu3 %v6361_v29  ;;  %8364 = vst [vmem:[#allocation34_spill] sm:$0xff] %v6405_v61  ;;  %749 = vmatpush.bf16.msrb.mxu1 %v6395_v24  ;;  %v4389_v5 = vld [vmem:[#allocation2 + $0x48] sm:$0xf0]  ;;  %v4379_v6 = vld [vmem:[#allocation2 + $0x30] sm:$0xf] }
  0x3f   : > { %760 = vmatpush.bf16.msra.mxu3 %v6383_v57  ;;  %799 = vmatpush.bf16.msra.mxu2 %v6385_v58  ;;  %8365 = vst [vmem:[#allocation35_spill] sm:$0xff] %v6409_v49  ;;  %v5725_v43 = vld [vmem:[#allocation2 + $0x34] sm:$0xf0]  ;;  %v5743_v27 = vld [vmem:[#allocation2 + $0xc4] sm:$0xf0]  ;;  %v558_v57 = vunpack.c.l.b16 %v205_v2  ;;  %v6418_v35 = vor.u32 %v5726_v4, %v4389_v5 }
  0x40   : > { %8366 = vst [vmem:[#allocation36_spill] sm:$0xff] %v6413_v10  ;;  %v5742_v28 = vld [vmem:[#allocation2 + $0xc4] sm:$0xf]  ;;  %v4453_v58 = vld [vmem:[#allocation2 + $0xc8] sm:$0xf0]  ;;  %v6421_v41 = vor.u32 %v5725_v43, %v4379_v6 }
  0x41   : > { %787 = vmatpush.bf16.msra.mxu0 %v6391_v18  ;;  %8367 = vst [vmem:[#allocation37_spill] sm:$0xff] %v6415_v11  ;;  %v4451_v18 = vld [vmem:[#allocation2 + $0xc0] sm:$0xf]  ;;  %v4381_v42 = vld [vmem:[#allocation2 + $0x38] sm:$0xf0]  ;;  %v6427_v54 = vor.u32 %v5742_v28, %v4453_v58 }
  0x42   : > { %8368 = vst [vmem:[#allocation38_spill] sm:$0xff] %v6418_v35  ;;  %750 = vmatpush.bf16.msrb.mxu1 %v6409_v49  ;;  %v6425_v45 = vor.u32 %v5743_v27, %v4451_v18  ;;  %v4371_v56 = vld [vmem:[#allocation2 + $0x20] sm:$0xf]  ;;  %v5723_v2 = vld [vmem:[#allocation2 + $0x24] sm:$0xf0] }
  0x43   : > { %761 = vmatpush.bf16.msra.mxu3 %v6399_v31  ;;  %800 = vmatpush.bf16.msra.mxu2 %v6401_v33  ;;  %8369 = vst [vmem:[#allocation39_spill] sm:$0xff] %v6421_v41  ;;  %v5724_v33 = vld [vmem:[#allocation2 + $0x34] sm:$0xf]  ;;  %v4443_v31 = vld [vmem:[#allocation2 + $0xb0] sm:$0xf]  ;;  %v6435_v6 = vor.u32 %v5723_v2, %v4371_v56 }
  0x44   : > { %8370 = vst [vmem:[#allocation40_spill] sm:$0xff] %v6425_v45  ;;  %v5741_v4 = vld [vmem:[#allocation2 + $0xb4] sm:$0xf0]  ;;  %v5740_v5 = vld [vmem:[#allocation2 + $0xb4] sm:$0xf]  ;;  %v6432_v43 = vor.u32 %v5724_v33, %v4381_v42  ;;  %4352 = vmatmul.msk.bf16.vlgmr.msrb.gmra.mxu0 %vm472_vm0, %v6316_v14 }
  0x45   : > { %788 = vmatpush.bf16.msra.mxu0 %v6405_v61  ;;  %8371 = vst [vmem:[#allocation41_spill] sm:$0xff] %v6427_v54  ;;  %v6429_v61 = vpack.c.b16 %v558_v57, %v558_v57  ;;  %v4445_v49 = vld [vmem:[#allocation2 + $0xb8] sm:$0xf0]  ;;  %v5722_v18 = vld [vmem:[#allocation2 + $0x24] sm:$0xf]  ;;  %v6439_v58 = vor.u32 %v5741_v4, %v4443_v31 }
  0x46   : > { %8372 = vst [vmem:[#allocation42_spill] sm:$0xff] %v6432_v43  ;;  %751 = vmatpush.bf16.msrb.mxu1 %v6421_v41  ;;  %v4373_v27 = vld [vmem:[#allocation2 + $0x28] sm:$0xf0]  ;;  %v6441_v57 = vor.u32 %v5740_v5, %v4445_v49  ;;  %v4363_v28 = vld [vmem:[#allocation2 + $0x10] sm:$0xf]  ;;  %v6454_v5 = vld [vmem:[%s6298_s30] sm:$0xff] }
  0x47   : > { %762 = vmatpush.bf16.msra.mxu3 %v6413_v10  ;;  %801 = vmatpush.bf16.msra.mxu2 %v6415_v11  ;;  %8373 = vst [vmem:[#allocation43_spill] sm:$0xff] %v6435_v6  ;;  %v5721_v11 = vld [vmem:[#allocation2 + $0x14] sm:$0xf0]  ;;  %v5739_v33 = vld [vmem:[#allocation2 + $0xa4] sm:$0xf0]  ;;  %v6448_v2 = vor.u32 %v5722_v18, %v4373_v27 }
  0x48   : > { %8374 = vst [vmem:[#allocation44_spill] sm:$0xff] %v6439_v58  ;;  %4497 = vmatmul.msk.bf16.vlgmr.msrb.gmra.mxu2 %vm472_vm0, %v6429_v61  ;;  %v5738_v42 = vld [vmem:[#allocation2 + $0xa4] sm:$0xf]  ;;  %v4437_v56 = vld [vmem:[#allocation2 + $0xa8] sm:$0xf0]  ;;  %v6451_v49 = vor.u32 %v5721_v11, %v4363_v28  ;;  %v556_v28 = vunpack.c.l.b16 %v6454_v5 }
  0x49   : > { %789 = vmatpush.bf16.msra.mxu0 %v6418_v35  ;;  %8375 = vst [vmem:[#allocation45_spill] sm:$0xff] %v6441_v57  ;;  %v4435_v35 = vld [vmem:[#allocation2 + $0xa0] sm:$0xf]  ;;  %v5720_v31 = vld [vmem:[#allocation2 + $0x14] sm:$0xf] }
  0x4a   : > { %8376 = vst [vmem:[#allocation46_spill] sm:$0xff] %v6448_v2  ;;  %752 = vmatpush.bf16.msrb.mxu1 %v6435_v6  ;;  %v4365_v4 = vld [vmem:[#allocation2 + $0x18] sm:$0xf0]  ;;  %v4355_v41 = vld [vmem:[#allocation2] sm:$0xf] }
  0x4b   : > { %763 = vmatpush.bf16.msra.mxu3 %v6425_v45  ;;  %802 = vmatpush.bf16.msra.mxu2 %v6427_v54  ;;  %8377 = vst [vmem:[#allocation47_spill] sm:$0xff] %v6451_v49  ;;  %v6458_v54 = vor.u32 %v5739_v33, %v4435_v35  ;;  %v6460_v45 = vor.u32 %v5738_v42, %v4437_v56  ;;  %v4427_v18 = vld [vmem:[#allocation2 + $0x90] sm:$0xf]  ;;  %v5737_v27 = vld [vmem:[#allocation2 + $0x94] sm:$0xf0] }
  0x4c   : > { %v5736_v10 = vld [vmem:[#allocation2 + $0x94] sm:$0xf]  ;;  %v4429_v6 = vld [vmem:[#allocation2 + $0x98] sm:$0xf0]  ;;  %v6463_v11 = vor.u32 %v5720_v31, %v4365_v4  ;;  %v4419_v33 = vld [vmem:[#allocation2 + $0x80] sm:$0xf] }
  0x4d   : > { %790 = vmatpush.bf16.msra.mxu0 %v6432_v43  ;;  %8378 = vst [vmem:[#allocation48_spill] sm:$0xff] %v6458_v54  ;;  %v5719_v43 = vld [vmem:[#allocation2 + $0x4] sm:$0xf0]  ;;  %v5752_v24 = vld [vmem:[#allocation2 + $0x114] sm:$0xf] }
  0x4e   : > { %8379 = vst [vmem:[#allocation49_spill] sm:$0xff] %v6460_v45  ;;  %753 = vmatpush.bf16.msrb.mxu1 %v6451_v49  ;;  %v6467_v35 = vor.u32 %v5719_v43, %v4355_v41  ;;  %v5718_v42 = vld [vmem:[#allocation2 + $0x4] sm:$0xf]  ;;  %v4357_v56 = vld [vmem:[#allocation2 + $0x8] sm:$0xf0]  ;;  %v6478_v41 = vpack.c.b16 %v556_v28, %v556_v28 }
  0x4f   : > { %764 = vmatpush.bf16.msra.mxu3 %v6439_v58  ;;  %803 = vmatpush.bf16.msra.mxu2 %v6441_v57  ;;  %8380 = vst [vmem:[#allocation50_spill] sm:$0xff] %v6463_v11  ;;  %v4493_v58 = vld [vmem:[#allocation2 + $0x118] sm:$0xf0]  ;;  %v6471_v57 = vor.u32 %v5737_v27, %v4427_v18  ;;  %v5735_v31 = vld [vmem:[#allocation2 + $0x84] sm:$0xf0]  ;;  %v6480_v43 = vor.u32 %v5718_v42, %v4357_v56 }
  0x50   : > { %8381 = vst [vmem:[#allocation51_spill] sm:$0xff] %v6467_v35  ;;  %v4621_v4 = vld [vmem:[#allocation2 + $0x570] sm:$0xf]  ;;  %v5821_v53 = vld [vmem:[#allocation2 + $0x574] sm:$0xf0]  ;;  %v6475_v49 = vor.u32 %v5752_v24, %v4493_v58  ;;  %v6488_v24 = vor.u32 %v5735_v31, %v4419_v33 }
  0x51   : > { %791 = vmatpush.bf16.msra.mxu0 %v6448_v2  ;;  %8382 = vst [vmem:[#allocation52_spill] sm:$0xff] %v6471_v57  ;;  %v6473_v2 = vor.u32 %v5736_v10, %v4429_v6  ;;  %v5734_v50 = vld [vmem:[#allocation2 + $0x84] sm:$0xf]  ;;  %v4421_v40 = vld [vmem:[#allocation2 + $0x88] sm:$0xf0]  ;;  %v6483_v10 = vor.u32 %v5821_v53, %v4621_v4  ;;  %v557_v6 = vunpack.c.h.b16 %v6454_v5 }
  0x52   : > { %v4557_v20 = vld [vmem:[#allocation2 + $0x4f0] sm:$0xf]  ;;  %8384 = vst [vmem:[#allocation54_spill] sm:$0xff] %v6475_v49  ;;  %v4559_v18 = vld [vmem:[#allocation2 + $0x4f8] sm:$0xf0]  ;;  %754 = vmatpush.bf16.msrb.mxu1 %v6467_v35  ;;  %v6490_v58 = vor.u32 %v5734_v50, %v4421_v40 }
  0x53   : > { %765 = vmatpush.bf16.msra.mxu3 %v6458_v54  ;;  %804 = vmatpush.bf16.msra.mxu2 %v6460_v45  ;;  %8383 = vst [vmem:[#allocation53_spill] sm:$0xff] %v6473_v2  ;;  %v5805_v54 = vld [vmem:[#allocation2 + $0x4f4] sm:$0xf0]  ;;  %v5804_v45 = vld [vmem:[#allocation2 + $0x4f4] sm:$0xf] }
  0x54   : > { %8385 = vst [vmem:[#allocation55_spill] sm:$0xff] %v6480_v43  ;;  %v5750_v27 = vld [vmem:[#allocation2 + $0x104] sm:$0xf]  ;;  %v4485_v23 = vld [vmem:[#allocation2 + $0x108] sm:$0xf0]  ;;  %v6492_v56 = vor.u32 %v5805_v54, %v4557_v20  ;;  %v6502_v20 = vpack.c.b16 %v557_v6, %v557_v6 }
  0x55   : > { %792 = vmatpush.bf16.msra.mxu0 %v6463_v11  ;;  %8386 = vst [vmem:[#allocation56_spill] sm:$0xff] %v6483_v10  ;;  %v4549_v28 = vld [vmem:[#allocation2 + $0x4e0] sm:$0xf]  ;;  %v6494_v11 = vor.u32 %v5804_v45, %v4559_v18  ;;  %v5819_v53 = vld [vmem:[#allocation2 + $0x564] sm:$0xf0]  ;;  %755 = vmatmul.bf16.vlgmr.msrb.gmra.mxu1 %v6478_v41  ;;  %v6499_v40 = vor.u32 %v5750_v27, %v4485_v23 }
  0x56   : > { %8387 = vst [vmem:[#allocation57_spill] sm:$0xff] %v6488_v24  ;;  %v4613_v42 = vld [vmem:[#allocation2 + $0x560] sm:$0xf]  ;;  %818 = vmatpush.bf16.msra.mxu1 %v6475_v49  ;;  %v4637_v5 = vld [vmem:[#allocation2 + $0x590] sm:$0xf]  ;;  %v872_v49 = vshll.u32 %v6502_v20, 16 }
  0x57   : > { %766 = vmatpush.bf16.msra.mxu3 %v6471_v57  ;;  %805 = vmatpush.bf16.msra.mxu2 %v6473_v2  ;;  %8388 = vst [vmem:[#allocation58_spill] sm:$0xff] %v6490_v58  ;;  %v5825_v4 = vld [vmem:[#allocation2 + $0x594] sm:$0xf0]  ;;  %v5803_v2 = vld [vmem:[#allocation2 + $0x4e4] sm:$0xf0]  ;;  %v6506_v50 = vor.u32 %v5819_v53, %v4613_v42  ;;  %v870_v47 = vshrl.u32 %v6502_v20, 16 }
  0x58   : > { %8389 = vst [vmem:[#allocation59_spill] sm:$0xff] %v6492_v56  ;;  %v5802_v33 = vld [vmem:[#allocation2 + $0x4e4] sm:$0xf]  ;;  %v4551_v31 = vld [vmem:[#allocation2 + $0x4e8] sm:$0xf0]  ;;  %v6508_v18 = vor.u32 %v5825_v4, %v4637_v5  ;;  %v6512_v23 = vor.u32 %v5803_v2, %v4549_v28 }
  0x59   : > { %8390 = vst [vmem:[#allocation60_spill] sm:$0xff] %v6494_v11  ;;  %793 = vmatpush.bf16.msra.mxu0 %v6480_v43  ;;  %v4541_v45 = vld [vmem:[#allocation2 + $0x4d0] sm:$0xf]  ;;  %v6514_v27 = vor.u32 %v5802_v33, %v4551_v31  ;;  %v5817_v6 = vld [vmem:[#allocation2 + $0x554] sm:$0xf0] }
  0x5a   : > { %8391 = vst [vmem:[#allocation61_spill] sm:$0xff] %v6499_v40  ;;  %v4605_v54 = vld [vmem:[#allocation2 + $0x550] sm:$0xf]  ;;  %v4629_v43 = vld [vmem:[#allocation2 + $0x580] sm:$0xf]  ;;  %819 = vmatpush.bf16.msra.mxu1 %v6499_v40 }
  0x5b   : > { %767 = vmatpush.bf16.msra.mxu3 %v6488_v24  ;;  %806 = vmatpush.bf16.msra.mxu2 %v6490_v58  ;;  %8392 = vst [vmem:[#allocation62_spill] sm:$0xff] %v6506_v50  ;;  %v5801_v42 = vld [vmem:[#allocation2 + $0x4d4] sm:$0xf0]  ;;  %v5800_v53 = vld [vmem:[#allocation2 + $0x4d4] sm:$0xf]  ;;  %v6521_v2 = vor.u32 %v5817_v6, %v4605_v54 }
  0x5c   : > { %8393 = vst [vmem:[#allocation63_spill] sm:$0xff] %v6508_v18  ;;  %794 = vmatmul.bf16.vlgmr.msra.gmra.mxu0 %v6478_v41  ;;  %v4543_v58 = vld [vmem:[#allocation2 + $0x4d8] sm:$0xf0]  ;;  %v6528_v5 = vor.u32 %v5801_v42, %v4541_v45  ;;  %v4533_v33 = vld [vmem:[#allocation2 + $0x4c0] sm:$0xf] }
  0x5d   : > { %1080 = vmatpush.bf16.msrb.mxu0 %v6483_v10  ;;  %8394 = vst [vmem:[#allocation64_spill] sm:$0xff] %v6512_v23  ;;  %v5823_v10 = vld [vmem:[#allocation2 + $0x584] sm:$0xf0]  ;;  %v6530_v4 = vor.u32 %v5800_v53, %v4543_v58  ;;  %v4597_v31 = vld [vmem:[#allocation2 + $0x540] sm:$0xf] }
  0x5e   : > { %8395 = vst [vmem:[#allocation65_spill] sm:$0xff] %v6514_v27  ;;  %768 = vmatmul.bf16.vlgmr.msra.gmra.mxu3 %v6502_v20  ;;  %807 = vmatmul.bf16.vlgmr.msra.gmra.mxu2 %v6502_v20  ;;  %v6524_v28 = vor.u32 %v5823_v10, %v4629_v43  ;;  %v5798_v40 = vld [vmem:[#allocation2 + $0x4c4] sm:$0xf]  ;;  %v5820_v43 = vld [vmem:[#allocation2 + $0x574] sm:$0xf] }
  0x5f   : > { %1067 = vmatpush.bf16.msrb.mxu3 %v6492_v56  ;;  %1106 = vmatpush.bf16.msrb.mxu2 %v6494_v11  ;;  %8396 = vst [vmem:[#allocation66_spill] sm:$0xff] %v6521_v2  ;;  %v5815_v11 = vld [vmem:[#allocation2 + $0x544] sm:$0xf0]  ;;  %v4623_v10 = vld [vmem:[#allocation2 + $0x578] sm:$0xf0] }
  0x60   : > { %1099 = vmatpush.bf16.msrb.mxu1 %v6508_v18  ;;  %8397 = vst [vmem:[#allocation67_spill] sm:$0xff] %v6524_v28  ;;  %v5799_v56 = vld [vmem:[#allocation2 + $0x4c4] sm:$0xf0]  ;;  %v6533_v54 = vor.u32 %v5815_v11, %v4597_v31  ;;  %v4525_v6 = vld [vmem:[#allocation2 + $0x4b0] sm:$0xf]  ;;  %v6542_v11 = vor.u32 %v5820_v43, %v4623_v10 }
  0x61   : > { %1081 = vmatpush.bf16.msrb.mxu0 %v6506_v50  ;;  %8398 = vst [vmem:[#allocation68_spill] sm:$0xff] %v6528_v5  ;;  %v4535_v50 = vld [vmem:[#allocation2 + $0x4c8] sm:$0xf0]  ;;  %v6538_v58 = vor.u32 %v5799_v56, %v4533_v33  ;;  %v4589_v42 = vld [vmem:[#allocation2 + $0x530] sm:$0xf] }
  0x62   : > { %8399 = vst [vmem:[#allocation69_spill] sm:$0xff] %v6530_v4  ;;  %v6540_v45 = vor.u32 %v5798_v40, %v4535_v50  ;;  %v5813_v53 = vld [vmem:[#allocation2 + $0x534] sm:$0xf0]  ;;  %v4517_v50 = vld [vmem:[#allocation2 + $0x4a0] sm:$0xf] }
  0x63   : > { %1068 = vmatpush.bf16.msrb.mxu3 %v6512_v23  ;;  %1107 = vmatpush.bf16.msrb.mxu2 %v6514_v27  ;;  %8400 = vst [vmem:[#allocation70_spill] sm:$0xff] %v6533_v54  ;;  %v5797_v18 = vld [vmem:[#allocation2 + $0x4b4] sm:$0xf0]  ;;  %v5796_v27 = vld [vmem:[#allocation2 + $0x4b4] sm:$0xf]  ;;  %v6545_v31 = vor.u32 %v5813_v53, %v4589_v42 }
  0x64   : > { %1100 = vmatpush.bf16.msrb.mxu1 %v6524_v28  ;;  %8401 = vst [vmem:[#allocation71_spill] sm:$0xff] %v6538_v58  ;;  %v5818_v28 = vld [vmem:[#allocation2 + $0x564] sm:$0xf]  ;;  %v6549_v56 = vor.u32 %v5797_v18, %v4525_v6  ;;  %v4581_v33 = vld [vmem:[#allocation2 + $0x520] sm:$0xf] }
  0x65   : > { %1082 = vmatpush.bf16.msrb.mxu0 %v6521_v2  ;;  %8402 = vst [vmem:[#allocation72_spill] sm:$0xff] %v6540_v45  ;;  %v4527_v2 = vld [vmem:[#allocation2 + $0x4b8] sm:$0xf0]  ;;  %4498 = vmatmul.msk.bf16.vlgmr.msra.gmra.mxu1 %vm472_vm0, %v6429_v61  ;;  %v5795_v43 = vld [vmem:[#allocation2 + $0x4a4] sm:$0xf0] }
  0x66   : > { %8403 = vst [vmem:[#allocation73_spill] sm:$0xff] %v6542_v11  ;;  %v6551_v40 = vor.u32 %v5796_v27, %v4527_v2  ;;  %v5794_v10 = vld [vmem:[#allocation2 + $0x4a4] sm:$0xf]  ;;  %v4519_v42 = vld [vmem:[#allocation2 + $0x4a8] sm:$0xf0]  ;;  %v6563_v6 = vor.u32 %v5795_v43, %v4517_v50 }
  0x67   : > { %1069 = vmatpush.bf16.msrb.mxu3 %v6528_v5  ;;  %1108 = vmatpush.bf16.msrb.mxu2 %v6530_v4  ;;  %8404 = vst [vmem:[#allocation74_spill] sm:$0xff] %v6545_v31  ;;  %v4615_v5 = vld [vmem:[#allocation2 + $0x568] sm:$0xf0]  ;;  %v5811_v4 = vld [vmem:[#allocation2 + $0x524] sm:$0xf0] }
  0x68   : > { %8405 = vst [vmem:[#allocation75_spill] sm:$0xff] %v6549_v56  ;;  %1119 = vmatpush.bf16.msra.mxu1 %v6542_v11  ;;  %v6556_v53 = vor.u32 %v5818_v28, %v4615_v5  ;;  %v5816_v18 = vld [vmem:[#allocation2 + $0x554] sm:$0xf]  ;;  %v4607_v27 = vld [vmem:[#allocation2 + $0x558] sm:$0xf0] }
  0x69   : > { %1083 = vmatpush.bf16.msrb.mxu0 %v6533_v54  ;;  %8406 = vst [vmem:[#allocation76_spill] sm:$0xff] %v6551_v40  ;;  %v4509_v2 = vld [vmem:[#allocation2 + $0x490] sm:$0xf]  ;;  %v6565_v54 = vor.u32 %v5794_v10, %v4519_v42  ;;  %v5809_v11 = vld [vmem:[#allocation2 + $0x514] sm:$0xf0]  ;;  %v865_v42 = vshll.u32 %v6478_v41, 16 }
  0x6a   : > { %8407 = vst [vmem:[#allocation77_spill] sm:$0xff] %v6556_v53  ;;  %v4573_v23 = vld [vmem:[#allocation2 + $0x510] sm:$0xf]  ;;  %v5792_v28 = vld [vmem:[#allocation2 + $0x494] sm:$0xf] }
  0x6b   : > { %1070 = vmatpush.bf16.msrb.mxu3 %v6538_v58  ;;  %1109 = vmatpush.bf16.msrb.mxu2 %v6540_v45  ;;  %v6559_v45 = vor.u32 %v5811_v4, %v4581_v33  ;;  %8409 = vst [vmem:[#allocation79_spill] sm:$0xff] %v6563_v6  ;;  %v5793_v58 = vld [vmem:[#allocation2 + $0x494] sm:$0xf0]  ;;  %v4511_v5 = vld [vmem:[#allocation2 + $0x498] sm:$0xf0]  ;;  %v6569_v4 = vor.u32 %v5816_v18, %v4607_v27  ;;  %v867_v63 = vrot.slane %v865_v42, 1 }
  0x6c   : > { %8410 = vst [vmem:[#allocation80_spill] sm:$0xff] %v6565_v54  ;;  %1120 = vmatpush.bf16.msra.mxu1 %v6556_v53  ;;  %v5814_v33 = vld [vmem:[#allocation2 + $0x544] sm:$0xf]  ;;  %v4599_v24 = vld [vmem:[#allocation2 + $0x548] sm:$0xf0]  ;;  %v6579_v53 = vor.u32 %v5792_v28, %v4511_v5  ;;  %v863_v5 = vshrl.u32 %v6478_v41, 16 }
  0x6d   : > { %1084 = vmatpush.bf16.msrb.mxu0 %v6545_v31  ;;  %8408 = vst [vmem:[#allocation78_spill] sm:$0xff] %v6559_v45  ;;  %v878_v31 = vshll.u32 %v6429_v61, 16  ;;  %v4501_v50 = vld [vmem:[#allocation2 + $0x480] sm:$0xf]  ;;  %v5791_v43 = vld [vmem:[#allocation2 + $0x484] sm:$0xf0]  ;;  %v6584_v35 = vor.u32 %v5814_v33, %v4599_v24 }
  0x6e   : > { %8411 = vst [vmem:[#allocation81_spill] sm:$0xff] %v6569_v4  ;;  %v4565_v10 = vld [vmem:[#allocation2 + $0x500] sm:$0xf]  ;;  %v5807_v18 = vld [vmem:[#allocation2 + $0x504] sm:$0xf0] }
  0x6f   : > { %1071 = vmatpush.bf16.msrb.mxu3 %v6549_v56  ;;  %1110 = vmatpush.bf16.msrb.mxu2 %v6551_v40  ;;  %v6572_v40 = vor.u32 %v5809_v11, %v4573_v23  ;;  %v6577_v56 = vor.u32 %v5793_v58, %v4509_v2  ;;  %8414 = vst [vmem:[#allocation84_spill] sm:$0xff] %v6579_v53  ;;  %v5790_v27 = vld [vmem:[#allocation2 + $0x484] sm:$0xf]  ;;  %v876_v23 = vshrl.u32 %v6429_v61, 16  ;;  %v880_v11 = vrot.slane %v878_v31, 1 }
  0x70   : > { %v5812_v57 = vld [vmem:[#allocation2 + $0x534] sm:$0xf]  ;;  %1121 = vmatpush.bf16.msra.mxu1 %v6569_v4  ;;  %8415 = vst [vmem:[#allocation85_spill] sm:$0xff] %v6584_v35  ;;  %v6587_v58 = vor.u32 %v5807_v18, %v4565_v10  ;;  %v4703_v2 = vld [vmem:[#allocation2 + $0x730] sm:$0xf]  ;;  %v6592_v31 = vor.u32 %v5791_v43, %v4501_v50 }
  0x71   : > { %1085 = vmatpush.bf16.msrb.mxu0 %v6559_v45  ;;  %8412 = vst [vmem:[#allocation82_spill] sm:$0xff] %v6572_v40  ;;  %v4503_v45 = vld [vmem:[#allocation2 + $0x488] sm:$0xf0]  ;;  %v5824_v19 = vld [vmem:[#allocation2 + $0x594] sm:$0xf]  ;;  %v6597_v10 = vor.u32 %v880_v11, %v876_v23 }
  0x72   : > { %8413 = vst [vmem:[#allocation83_spill] sm:$0xff] %v6577_v56  ;;  %v5841_v28 = vld [vmem:[#allocation2 + $0x734] sm:$0xf0]  ;;  %v6594_v24 = vor.u32 %v5790_v27, %v4503_v45  ;;  %v4783_v33 = vld [vmem:[#allocation2 + $0x7d0] sm:$0xf] }
  0x73   : > { %1072 = vmatpush.bf16.msrb.mxu3 %v6563_v6  ;;  %1111 = vmatpush.bf16.msrb.mxu2 %v6565_v54  ;;  %v4591_v6 = vld [vmem:[#allocation2 + $0x538] sm:$0xf0]  ;;  %8416 = vst [vmem:[#allocation86_spill] sm:$0xff] %v6587_v58  ;;  %v5861_v4 = vld [vmem:[#allocation2 + $0x7d4] sm:$0xf0] }
  0x74   : > { %v4639_v54 = vld [vmem:[#allocation2 + $0x598] sm:$0xf0]  ;;  %8417 = vst [vmem:[#allocation87_spill] sm:$0xff] %v6592_v31  ;;  %v5810_v62 = vld [vmem:[#allocation2 + $0x524] sm:$0xf]  ;;  %1122 = vmatpush.bf16.msra.mxu1 %v6584_v35  ;;  %v6602_v42 = vor.u32 %v5812_v57, %v4591_v6  ;;  %v6607_v27 = vor.u32 %v5861_v4, %v4783_v33 }
  0x75   : > { %1086 = vmatpush.bf16.msrb.mxu0 %v6572_v40  ;;  %8418 = vst [vmem:[#allocation88_spill] sm:$0xff] %v6594_v24  ;;  %v874_v40 = vrot.slane %v872_v49, 1  ;;  %v6599_v18 = vor.u32 %v5824_v19, %v4639_v54  ;;  %v4583_v50 = vld [vmem:[#allocation2 + $0x528] sm:$0xf0]  ;;  %v5822_v43 = vld [vmem:[#allocation2 + $0x584] sm:$0xf]  ;;  %4643 = vmatmul.msk.bf16.vlgmr.msrb.gmra.mxu1 %vm472_vm0, %v6597_v10 }
  0x76   : > { %8420 = vst [vmem:[#allocation90_spill] sm:$0xff] %v6602_v42  ;;  %v4631_v45 = vld [vmem:[#allocation2 + $0x588] sm:$0xf0]  ;;  %v4695_v49 = vld [vmem:[#allocation2 + $0x720] sm:$0xf] }
  0x77   : > { %1073 = vmatpush.bf16.msrb.mxu3 %v6577_v56  ;;  %1112 = vmatpush.bf16.msrb.mxu2 %v6579_v53  ;;  %8419 = vst [vmem:[#allocation89_spill] sm:$0xff] %v6599_v18  ;;  %v6604_v56 = vor.u32 %v5841_v28, %v4703_v2  ;;  %v6609_v53 = vor.u32 %v867_v63, %v863_v5  ;;  %v5839_v23 = vld [vmem:[#allocation2 + $0x724] sm:$0xf0]  ;;  %v4775_v19 = vld [vmem:[#allocation2 + $0x7c0] sm:$0xf] }
  0x78   : > { %8422 = vst [vmem:[#allocation92_spill] sm:$0xff] %v6607_v27  ;;  %v5859_v57 = vld [vmem:[#allocation2 + $0x7c4] sm:$0xf0]  ;;  %v4767_v54 = vld [vmem:[#allocation2 + $0x7b0] sm:$0xf]  ;;  %v6613_v11 = vor.u32 %v874_v40, %v870_v47  ;;  %v6618_v4 = vor.u32 %v5822_v43, %v4631_v45  ;;  %1123 = vmatpush.bf16.msra.mxu1 %v6602_v42  ;;  %v6622_v28 = vor.u32 %v5810_v62, %v4583_v50 }
  0x79   : > { %8421 = vst [vmem:[#allocation91_spill] sm:$0xff] %v6604_v56  ;;  %1087 = vmatpush.bf16.msrb.mxu0 %v6587_v58  ;;  %v5857_v6 = vld [vmem:[#allocation2 + $0x7b4] sm:$0xf0]  ;;  %v5856_v63 = vld [vmem:[#allocation2 + $0x7b4] sm:$0xf]  ;;  %v6624_v5 = vor.u32 %v5839_v23, %v4695_v49  ;;  %v6628_v47 = vor.u32 %v5859_v57, %v4775_v19 }
  0x7a   : > { %8423 = vst [vmem:[#allocation93_spill] sm:$0xff] %v6618_v4  ;;  %v4769_v2 = vld [vmem:[#allocation2 + $0x7b8] sm:$0xf0]  ;;  %v5808_v33 = vld [vmem:[#allocation2 + $0x514] sm:$0xf]  ;;  %v6630_v40 = vor.u32 %v5857_v6, %v4767_v54 }
  0x7b   : > { %1074 = vmatpush.bf16.msrb.mxu3 %v6592_v31  ;;  %1113 = vmatpush.bf16.msrb.mxu2 %v6594_v24  ;;  %8424 = vst [vmem:[#allocation94_spill] sm:$0xff] %v6622_v28  ;;  %v4575_v43 = vld [vmem:[#allocation2 + $0x518] sm:$0xf0]  ;;  %v4687_v45 = vld [vmem:[#allocation2 + $0x710] sm:$0xf]  ;;  %v6633_v24 = vor.u32 %v5856_v63, %v4769_v2 }
  0x7c   : > { %8425 = vst [vmem:[#allocation95_spill] sm:$0xff] %v6624_v5  ;;  %1088 = vmatmul.bf16.vlgmr.msrb.gmra.mxu0 %v6613_v11  ;;  %v4759_v62 = vld [vmem:[#allocation2 + $0x7a0] sm:$0xf]  ;;  %v5855_v50 = vld [vmem:[#allocation2 + $0x7a4] sm:$0xf0]  ;;  %1124 = vmatpush.bf16.msra.mxu1 %v6622_v28  ;;  %v6639_v19 = vor.u32 %v5808_v33, %v4575_v43 }
  0x7d   : > { %1389 = vmatpush.bf16.msra.mxu0 %v6604_v56  ;;  %8426 = vst [vmem:[#allocation96_spill] sm:$0xff] %v6628_v47  ;;  %v5854_v49 = vld [vmem:[#allocation2 + $0x7a4] sm:$0xf]  ;;  %v4761_v23 = vld [vmem:[#allocation2 + $0x7a8] sm:$0xf0]  ;;  %v6645_v63 = vor.u32 %v5855_v50, %v4759_v62  ;;  %v1200_v56 = vshll.u32 %v6316_v14, 16 }
  0x7e   : > { %1075 = vmatmul.bf16.vlgmr.msrb.gmra.mxu3 %v6609_v53  ;;  %8427 = vst [vmem:[#allocation97_spill] sm:$0xff] %v6630_v40  ;;  %1114 = vmatmul.bf16.vlgmr.msrb.gmra.mxu2 %v6609_v53  ;;  %v5806_v54 = vld [vmem:[#allocation2 + $0x504] sm:$0xf]  ;;  %v4567_v6 = vld [vmem:[#allocation2 + $0x508] sm:$0xf0]  ;;  %v6648_v28 = vor.u32 %v5854_v49, %v4761_v23 }
  0x7f   : > { %1138 = vmatpush.bf16.msra.mxu3 %v6599_v18  ;;  %1421 = vmatpush.bf16.msra.mxu2 %v6607_v27  ;;  %v5837_v18 = vld [vmem:[#allocation2 + $0x714] sm:$0xf0]  ;;  %8428 = vst [vmem:[#allocation98_spill] sm:$0xff] %v6633_v24  ;;  %v4679_v2 = vld [vmem:[#allocation2 + $0x700] sm:$0xf]  ;;  %v6653_v62 = vor.u32 %v5806_v54, %v4567_v6 }
  0x80   : > { %8429 = vst [vmem:[#allocation99_spill] sm:$0xff] %v6639_v19  ;;  %v6641_v57 = vor.u32 %v5837_v18, %v4687_v45  ;;  %v4751_v27 = vld [vmem:[#allocation2 + $0x790] sm:$0xf]  ;;  %v5840_v33 = vld [vmem:[#allocation2 + $0x734] sm:$0xf]  ;;  %1125 = vmatpush.bf16.msra.mxu1 %v6639_v19 }
  0x81   : > { %1390 = vmatpush.bf16.msra.mxu0 %v6624_v5  ;;  %8431 = vst [vmem:[#allocation101_spill] sm:$0xff] %v6645_v63  ;;  %v5853_v5 = vld [vmem:[#allocation2 + $0x794] sm:$0xf0]  ;;  %v4705_v43 = vld [vmem:[#allocation2 + $0x738] sm:$0xf0] }
  0x82   : > { %8430 = vst [vmem:[#allocation100_spill] sm:$0xff] %v6641_v57  ;;  %v5852_v18 = vld [vmem:[#allocation2 + $0x794] sm:$0xf]  ;;  %v4753_v45 = vld [vmem:[#allocation2 + $0x798] sm:$0xf0]  ;;  %v6660_v49 = vor.u32 %v5840_v33, %v4705_v43 }
  0x83   : > { %1139 = vmatpush.bf16.msra.mxu3 %v6618_v4  ;;  %1422 = vmatpush.bf16.msra.mxu2 %v6628_v47  ;;  %v5835_v4 = vld [vmem:[#allocation2 + $0x704] sm:$0xf0]  ;;  %8432 = vst [vmem:[#allocation102_spill] sm:$0xff] %v6648_v28  ;;  %v4671_v23 = vld [vmem:[#allocation2 + $0x6f0] sm:$0xf]  ;;  %v6663_v58 = vor.u32 %v5852_v18, %v4753_v45 }
  0x84   : > { %8433 = vst [vmem:[#allocation103_spill] sm:$0xff] %v6653_v62  ;;  %v6655_v50 = vor.u32 %v5835_v4, %v4679_v2  ;;  %v4743_v47 = vld [vmem:[#allocation2 + $0x780] sm:$0xf]  ;;  %v5851_v19 = vld [vmem:[#allocation2 + $0x784] sm:$0xf0]  ;;  %v1198_v4 = vshrl.u32 %v6316_v14, 16  ;;  %1126 = vmatpush.bf16.msra.mxu1 %v6653_v62 }
  0x85   : > { %1391 = vmatpush.bf16.msra.mxu0 %v6641_v57  ;;  %8436 = vst [vmem:[#allocation106_spill] sm:$0xff] %v6660_v49  ;;  %v5838_v42 = vld [vmem:[#allocation2 + $0x724] sm:$0xf]  ;;  %v4697_v57 = vld [vmem:[#allocation2 + $0x728] sm:$0xf0]  ;;  %v1202_v2 = vrot.slane %v1200_v56, 1 }
  0x86   : > { %8434 = vst [vmem:[#allocation104_spill] sm:$0xff] %v6655_v50  ;;  %v5850_v54 = vld [vmem:[#allocation2 + $0x784] sm:$0xf]  ;;  %v4745_v6 = vld [vmem:[#allocation2 + $0x788] sm:$0xf0]  ;;  %v6674_v33 = vor.u32 %v5838_v42, %v4697_v57 }
  0x87   : > { %1402 = vmatpush.bf16.msrb.mxu3 %v6630_v40  ;;  %1441 = vmatpush.bf16.msrb.mxu2 %v6633_v24  ;;  %v6658_v24 = vor.u32 %v5853_v5, %v4751_v27  ;;  %v5833_v40 = vld [vmem:[#allocation2 + $0x6f4] sm:$0xf0]  ;;  %8437 = vst [vmem:[#allocation107_spill] sm:$0xff] %v6663_v58  ;;  %v6672_v5 = vor.u32 %v5851_v19, %v4743_v47  ;;  %v4663_v43 = vld [vmem:[#allocation2 + $0x6e0] sm:$0xf] }
  0x88   : > { %v6668_v27 = vor.u32 %v5833_v40, %v4671_v23  ;;  %1428 = vmatpush.bf16.msrb.mxu1 %v6660_v49  ;;  %8440 = vst [vmem:[#allocation110_spill] sm:$0xff] %v6674_v33  ;;  %v5831_v18 = vld [vmem:[#allocation2 + $0x6e4] sm:$0xf0]  ;;  %v4735_v45 = vld [vmem:[#allocation2 + $0x770] sm:$0xf]  ;;  %v6677_v56 = vor.u32 %v5850_v54, %v4745_v6 }
  0x89   : > { %8435 = vst [vmem:[#allocation105_spill] sm:$0xff] %v6658_v24  ;;  %1392 = vmatpush.bf16.msra.mxu0 %v6655_v50  ;;  %v5849_v62 = vld [vmem:[#allocation2 + $0x774] sm:$0xf0]  ;;  %v4689_v50 = vld [vmem:[#allocation2 + $0x718] sm:$0xf0]  ;;  %1127 = vmatmul.bf16.vlgmr.msra.gmra.mxu1 %v6613_v11  ;;  %v6683_v42 = vor.u32 %v5831_v18, %v4663_v43 }
  0x8a   : > { %8438 = vst [vmem:[#allocation108_spill] sm:$0xff] %v6668_v27  ;;  %v5848_v40 = vld [vmem:[#allocation2 + $0x774] sm:$0xf]  ;;  %v4737_v23 = vld [vmem:[#allocation2 + $0x778] sm:$0xf0]  ;;  %v6687_v47 = vor.u32 %v5849_v62, %v4735_v45 }
  0x8b   : > { %1403 = vmatpush.bf16.msrb.mxu3 %v6645_v63  ;;  %1442 = vmatpush.bf16.msrb.mxu2 %v6648_v28  ;;  %8439 = vst [vmem:[#allocation109_spill] sm:$0xff] %v6672_v5  ;;  %v5836_v28 = vld [vmem:[#allocation2 + $0x714] sm:$0xf]  ;;  %v4655_v57 = vld [vmem:[#allocation2 + $0x6d0] sm:$0xf] }
  0x8c   : > { %8441 = vst [vmem:[#allocation111_spill] sm:$0xff] %v6677_v56  ;;  %1429 = vmatpush.bf16.msrb.mxu1 %v6674_v33  ;;  %v6689_v19 = vor.u32 %v5836_v28, %v4689_v50  ;;  %v5829_v54 = vld [vmem:[#allocation2 + $0x6d4] sm:$0xf0]  ;;  %v4727_v6 = vld [vmem:[#allocation2 + $0x760] sm:$0xf]  ;;  %v1187_v28 = vshll.u32 %v6361_v29, 16 }
  0x8d   : > { %1393 = vmatpush.bf16.msra.mxu0 %v6668_v27  ;;  %8442 = vst [vmem:[#allocation112_spill] sm:$0xff] %v6683_v42  ;;  %v5834_v43 = vld [vmem:[#allocation2 + $0x704] sm:$0xf]  ;;  %v4681_v18 = vld [vmem:[#allocation2 + $0x708] sm:$0xf0]  ;;  %v6700_v50 = vor.u32 %v5829_v54, %v4655_v57 }
  0x8e   : > { %8443 = vst [vmem:[#allocation113_spill] sm:$0xff] %v6687_v47  ;;  %4644 = vmatmul.msk.bf16.vlgmr.msra.gmra.mxu3 %vm472_vm0, %v6597_v10  ;;  %v5846_v62 = vld [vmem:[#allocation2 + $0x764] sm:$0xf]  ;;  %v4729_v45 = vld [vmem:[#allocation2 + $0x768] sm:$0xf0]  ;;  %v1189_v35 = vrot.slane %v1187_v28, 1 }
  0x8f   : > { %1404 = vmatpush.bf16.msrb.mxu3 %v6658_v24  ;;  %1443 = vmatpush.bf16.msrb.mxu2 %v6663_v58  ;;  %v6680_v24 = vor.u32 %v1202_v2, %v1198_v4  ;;  %8444 = vst [vmem:[#allocation114_spill] sm:$0xff] %v6689_v19  ;;  %v6694_v4 = vor.u32 %v5848_v40, %v4737_v23  ;;  %v5847_v2 = vld [vmem:[#allocation2 + $0x764] sm:$0xf0]  ;;  %v4719_v27 = vld [vmem:[#allocation2 + $0x750] sm:$0xf] }
  0x90   : > { %8446 = vst [vmem:[#allocation116_spill] sm:$0xff] %v6700_v50  ;;  %1430 = vmatpush.bf16.msrb.mxu1 %v6689_v19  ;;  %v6704_v40 = vor.u32 %v5847_v2, %v4727_v6  ;;  %v6706_v23 = vor.u32 %v5834_v43, %v4681_v18  ;;  %v5845_v33 = vld [vmem:[#allocation2 + $0x754] sm:$0xf0]  ;;  %v5832_v58 = vld [vmem:[#allocation2 + $0x6f4] sm:$0xf]  ;;  %v6709_v49 = vor.u32 %v5846_v62, %v4729_v45  ;;  %v1194_v43 = vshll.u32 %v6365_v36, 16 }
  0x91   : > { %8445 = vst [vmem:[#allocation115_spill] sm:$0xff] %v6694_v4  ;;  %4789 = vmatmul.msk.bf16.vlgmr.msra.gmra.mxu2 %vm472_vm0, %v6680_v24  ;;  %1394 = vmatpush.bf16.msra.mxu0 %v6683_v42  ;;  %v4673_v42 = vld [vmem:[#allocation2 + $0x6f8] sm:$0xf0]  ;;  %v5844_v57 = vld [vmem:[#allocation2 + $0x754] sm:$0xf]  ;;  %v6718_v18 = vor.u32 %v5845_v33, %v4719_v27 }
  0x92   : > { %8447 = vst [vmem:[#allocation117_spill] sm:$0xff] %v6704_v40  ;;  %v4721_v54 = vld [vmem:[#allocation2 + $0x758] sm:$0xf0]  ;;  %v5860_v63 = vld [vmem:[#allocation2 + $0x7d4] sm:$0xf]  ;;  %v6720_v62 = vor.u32 %v5832_v58, %v4673_v42  ;;  %v1192_v42 = vshrl.u32 %v6365_v36, 16 }
  0x93   : > { %1405 = vmatpush.bf16.msrb.mxu3 %v6672_v5  ;;  %1444 = vmatpush.bf16.msrb.mxu2 %v6677_v56  ;;  %v4647_v56 = vld [vmem:[#allocation2 + $0x6c0] sm:$0xf]  ;;  %v5827_v5 = vld [vmem:[#allocation2 + $0x6c4] sm:$0xf0]  ;;  %8448 = vst [vmem:[#allocation118_spill] sm:$0xff] %v6706_v23  ;;  %v6723_v28 = vor.u32 %v5844_v57, %v4721_v54  ;;  %v1196_v9 = vrot.slane %v1194_v43, 1 }
  0x94   : > { %8449 = vst [vmem:[#allocation119_spill] sm:$0xff] %v6709_v49  ;;  %v4785_v31 = vld [vmem:[#allocation2 + $0x7d8] sm:$0xf0]  ;;  %v6713_v6 = vor.u32 %v5827_v5, %v4647_v56  ;;  %v4711_v2 = vld [vmem:[#allocation2 + $0x740] sm:$0xf]  ;;  %1431 = vmatpush.bf16.msrb.mxu1 %v6706_v23 }
  0x95   : > { %1395 = vmatpush.bf16.msra.mxu0 %v6700_v50  ;;  %8451 = vst [vmem:[#allocation121_spill] sm:$0xff] %v6718_v18  ;;  %v5843_v45 = vld [vmem:[#allocation2 + $0x744] sm:$0xf0]  ;;  %v4665_v19 = vld [vmem:[#allocation2 + $0x6e8] sm:$0xf0]  ;;  %v6725_v5 = vor.u32 %v5860_v63, %v4785_v31 }
  0x96   : > { %8450 = vst [vmem:[#allocation120_spill] sm:$0xff] %v6713_v6  ;;  %v5842_v56 = vld [vmem:[#allocation2 + $0x744] sm:$0xf]  ;;  %v4713_v50 = vld [vmem:[#allocation2 + $0x748] sm:$0xf0]  ;;  %v6733_v31 = vor.u32 %v5843_v45, %v4711_v2  ;;  %v6750_v45 = vor.u32 %v1196_v9, %v1192_v42 }
  0x97   : > { %1406 = vmatpush.bf16.msrb.mxu3 %v6687_v47  ;;  %1445 = vmatpush.bf16.msrb.mxu2 %v6694_v4  ;;  %v1185_v47 = vshrl.u32 %v6361_v29, 16  ;;  %8452 = vst [vmem:[#allocation122_spill] sm:$0xff] %v6720_v62  ;;  %v5830_v4 = vld [vmem:[#allocation2 + $0x6e4] sm:$0xf]  ;;  %v4861_v23 = vld [vmem:[#allocation2 + $0x970] sm:$0xf]  ;;  %v6739_v57 = vor.u32 %v5842_v56, %v4713_v50 }
  0x98   : > { %8453 = vst [vmem:[#allocation123_spill] sm:$0xff] %v6723_v28  ;;  %v5858_v0 = vld [vmem:[#allocation2 + $0x7c4] sm:$0xf]  ;;  %v5880_v27 = vld [vmem:[#allocation2 + $0x974] sm:$0xf0]  ;;  %1432 = vmatpush.bf16.msrb.mxu1 %v6720_v62  ;;  %v6735_v63 = vor.u32 %v5830_v4, %v4665_v19 }
  0x99   : > { %8454 = vst [vmem:[#allocation124_spill] sm:$0xff] %v6725_v5  ;;  %v6727_v55 = vor.u32 %v1189_v35, %v1185_v47  ;;  %1396 = vmatpush.bf16.msra.mxu0 %v6713_v6  ;;  %v4925_v58 = vld [vmem:[#allocation2 + $0x9f0] sm:$0xf]  ;;  %v5896_v33 = vld [vmem:[#allocation2 + $0x9f4] sm:$0xf0] }
  0x9a   : > { %8455 = vst [vmem:[#allocation125_spill] sm:$0xff] %v6733_v31  ;;  %v5879_v35 = vld [vmem:[#allocation2 + $0x974] sm:$0xf]  ;;  %v4863_v47 = vld [vmem:[#allocation2 + $0x978] sm:$0xf0]  ;;  %v6746_v2 = vor.u32 %v5896_v33, %v4925_v58 }
  0x9b   : > { %1407 = vmatpush.bf16.msrb.mxu3 %v6704_v40  ;;  %1446 = vmatpush.bf16.msrb.mxu2 %v6709_v49  ;;  %v4777_v40 = vld [vmem:[#allocation2 + $0x7c8] sm:$0xf0]  ;;  %8456 = vst [vmem:[#allocation126_spill] sm:$0xff] %v6735_v63  ;;  %v5828_v6 = vld [vmem:[#allocation2 + $0x6d4] sm:$0xf]  ;;  %v6748_v4 = vor.u32 %v5879_v35, %v4863_v47 }
  0x9c   : > { %8457 = vst [vmem:[#allocation127_spill] sm:$0xff] %v6739_v57  ;;  %v6741_v54 = vor.u32 %v5858_v0, %v4777_v40  ;;  %v4657_v43 = vld [vmem:[#allocation2 + $0x6d8] sm:$0xf0]  ;;  %1397 = vmatmul.bf16.vlgmr.msra.gmra.mxu0 %v6727_v55  ;;  %v4853_v19 = vld [vmem:[#allocation2 + $0x960] sm:$0xf]  ;;  %1433 = vmatpush.bf16.msrb.mxu1 %v6735_v63 }
  0x9d   : > { %1460 = vmatpush.bf16.msrb.mxu0 %v6725_v5  ;;  %8460 = vst [vmem:[#allocation130_spill] sm:$0xff] %v6746_v2  ;;  %v4917_v62 = vld [vmem:[#allocation2 + $0x9e0] sm:$0xf]  ;;  %v5894_v5 = vld [vmem:[#allocation2 + $0x9e4] sm:$0xf0]  ;;  %v6754_v0 = vor.u32 %v5828_v6, %v4657_v43 }
  0x9e   : > { %8458 = vst [vmem:[#allocation128_spill] sm:$0xff] %v6741_v54  ;;  %v5877_v50 = vld [vmem:[#allocation2 + $0x964] sm:$0xf]  ;;  %v4855_v40 = vld [vmem:[#allocation2 + $0x968] sm:$0xf0] }
  0x9f   : > { %1408 = vmatpush.bf16.msrb.mxu3 %v6718_v18  ;;  %1447 = vmatpush.bf16.msrb.mxu2 %v6723_v28  ;;  %v6744_v18 = vor.u32 %v5880_v27, %v4861_v23  ;;  %8461 = vst [vmem:[#allocation131_spill] sm:$0xff] %v6748_v4  ;;  %v5878_v28 = vld [vmem:[#allocation2 + $0x964] sm:$0xf0]  ;;  %v5826_v23 = vld [vmem:[#allocation2 + $0x6c4] sm:$0xf]  ;;  %v6762_v27 = vor.u32 %v5894_v5, %v4917_v62 }
  0xa0   : > { %8462 = vst [vmem:[#allocation132_spill] sm:$0xff] %v6754_v0  ;;  %v4649_v56 = vld [vmem:[#allocation2 + $0x6c8] sm:$0xf0]  ;;  %v6760_v9 = vor.u32 %v5878_v28, %v4853_v19  ;;  %v4845_v58 = vld [vmem:[#allocation2 + $0x950] sm:$0xf]  ;;  %v6766_v42 = vor.u32 %v5877_v50, %v4855_v40  ;;  %1434 = vmatpush.bf16.msrb.mxu1 %v6754_v0 }
  0xa1   : > { %8459 = vst [vmem:[#allocation129_spill] sm:$0xff] %v6744_v18  ;;  %1461 = vmatpush.bf16.msrb.mxu0 %v6741_v54  ;;  %v4941_v33 = vld [vmem:[#allocation2 + $0xa10] sm:$0xf]  ;;  %v5900_v6 = vld [vmem:[#allocation2 + $0xa14] sm:$0xf0]  ;;  %v6770_v28 = vor.u32 %v5826_v23, %v4649_v56 }
  0xa2   : > { %8463 = vst [vmem:[#allocation133_spill] sm:$0xff] %v6760_v9  ;;  %v5876_v35 = vld [vmem:[#allocation2 + $0x954] sm:$0xf0]  ;;  %v4909_v47 = vld [vmem:[#allocation2 + $0x9d0] sm:$0xf]  ;;  %v6772_v19 = vor.u32 %v5900_v6, %v4941_v33 }
  0xa3   : > { %1409 = vmatpush.bf16.msrb.mxu3 %v6733_v31  ;;  %1448 = vmatpush.bf16.msrb.mxu2 %v6739_v57  ;;  %8464 = vst [vmem:[#allocation134_spill] sm:$0xff] %v6762_v27  ;;  %v5892_v43 = vld [vmem:[#allocation2 + $0x9d4] sm:$0xf0]  ;;  %v5875_v62 = vld [vmem:[#allocation2 + $0x954] sm:$0xf] }
  0xa4   : > { %8465 = vst [vmem:[#allocation135_spill] sm:$0xff] %v6766_v42  ;;  %v4847_v5 = vld [vmem:[#allocation2 + $0x958] sm:$0xf0]  ;;  %v6778_v50 = vor.u32 %v5892_v43, %v4909_v47  ;;  %v4837_v40 = vld [vmem:[#allocation2 + $0x940] sm:$0xf]  ;;  %1435 = vmatpush.bf16.msrb.mxu1 %v6770_v28 }
  0xa5   : > { %1724 = vmatpush.bf16.msra.mxu0 %v6746_v2  ;;  %8466 = vst [vmem:[#allocation136_spill] sm:$0xff] %v6770_v28  ;;  %v4933_v2 = vld [vmem:[#allocation2 + $0xa00] sm:$0xf]  ;;  %v6781_v0 = vor.u32 %v5875_v62, %v4847_v5  ;;  %v5874_v23 = vld [vmem:[#allocation2 + $0x944] sm:$0xf0] }
  0xa6   : > { %1410 = vmatmul.bf16.vlgmr.msrb.gmra.mxu3 %v6750_v45  ;;  %1449 = vmatmul.bf16.vlgmr.msrb.gmra.mxu2 %v6750_v45  ;;  %8467 = vst [vmem:[#allocation137_spill] sm:$0xff] %v6772_v19  ;;  %v4901_v56 = vld [vmem:[#allocation2 + $0x9c0] sm:$0xf]  ;;  %v5890_v57 = vld [vmem:[#allocation2 + $0x9c4] sm:$0xf0]  ;;  %v6789_v43 = vor.u32 %v5874_v23, %v4837_v40 }
  0xa7   : > { %1711 = vmatpush.bf16.msra.mxu3 %v6744_v18  ;;  %1750 = vmatpush.bf16.msra.mxu2 %v6748_v4  ;;  %v6776_v4 = vor.u32 %v5876_v35, %v4845_v58  ;;  %8469 = vst [vmem:[#allocation139_spill] sm:$0xff] %v6778_v50  ;;  %v5898_v18 = vld [vmem:[#allocation2 + $0xa04] sm:$0xf0]  ;;  %v5873_v33 = vld [vmem:[#allocation2 + $0x944] sm:$0xf]  ;;  %v6791_v62 = vor.u32 %v5890_v57, %v4901_v56 }
  0xa8   : > { %8470 = vst [vmem:[#allocation140_spill] sm:$0xff] %v6781_v0  ;;  %v4839_v6 = vld [vmem:[#allocation2 + $0x948] sm:$0xf0]  ;;  %1743 = vmatpush.bf16.msra.mxu1 %v6772_v19  ;;  %v6785_v58 = vor.u32 %v5898_v18, %v4933_v2  ;;  %v5895_v35 = vld [vmem:[#allocation2 + $0x9f4] sm:$0xf] }
  0xa9   : > { %1725 = vmatpush.bf16.msra.mxu0 %v6762_v27  ;;  %8468 = vst [vmem:[#allocation138_spill] sm:$0xff] %v6776_v4  ;;  %v4927_v47 = vld [vmem:[#allocation2 + $0x9f8] sm:$0xf0]  ;;  %v4829_v5 = vld [vmem:[#allocation2 + $0x930] sm:$0xf]  ;;  %1436 = vmatmul.bf16.vlgmr.msrb.gmra.mxu1 %v6727_v55  ;;  %v6795_v28 = vor.u32 %v5873_v33, %v4839_v6 }
  0xaa   : > { %8471 = vst [vmem:[#allocation141_spill] sm:$0xff] %v6785_v58  ;;  %v5872_v19 = vld [vmem:[#allocation2 + $0x934] sm:$0xf0]  ;;  %v4893_v18 = vld [vmem:[#allocation2 + $0x9b0] sm:$0xf] }
  0xab   : > { %1712 = vmatpush.bf16.msra.mxu3 %v6760_v9  ;;  %1751 = vmatpush.bf16.msra.mxu2 %v6766_v42  ;;  %8472 = vst [vmem:[#allocation142_spill] sm:$0xff] %v6789_v43  ;;  %v5888_v2 = vld [vmem:[#allocation2 + $0x9b4] sm:$0xf0]  ;;  %v6797_v42 = vor.u32 %v5895_v35, %v4927_v47  ;;  %v5871_v27 = vld [vmem:[#allocation2 + $0x934] sm:$0xf]  ;;  %v6802_v57 = vor.u32 %v5872_v19, %v4829_v5 }
  0xac   : > { %8473 = vst [vmem:[#allocation143_spill] sm:$0xff] %v6791_v62  ;;  %1744 = vmatpush.bf16.msra.mxu1 %v6785_v58  ;;  %v5893_v40 = vld [vmem:[#allocation2 + $0x9e4] sm:$0xf]  ;;  %v4919_v23 = vld [vmem:[#allocation2 + $0x9e8] sm:$0xf0]  ;;  %v6804_v56 = vor.u32 %v5888_v2, %v4893_v18  ;;  %4790 = vmatmul.msk.bf16.vlgmr.msrb.gmra.mxu0 %vm472_vm0, %v6680_v24 }
  0xad   : > { %1726 = vmatpush.bf16.msra.mxu0 %v6778_v50  ;;  %8474 = vst [vmem:[#allocation144_spill] sm:$0xff] %v6795_v28  ;;  %v4821_v33 = vld [vmem:[#allocation2 + $0x920] sm:$0xf]  ;;  %v5870_v6 = vld [vmem:[#allocation2 + $0x924] sm:$0xf0] }
  0xae   : > { %8475 = vst [vmem:[#allocation145_spill] sm:$0xff] %v6797_v42  ;;  %v4885_v47 = vld [vmem:[#allocation2 + $0x9a0] sm:$0xf]  ;;  %v5886_v58 = vld [vmem:[#allocation2 + $0x9a4] sm:$0xf0] }
  0xaf   : > { %1713 = vmatpush.bf16.msra.mxu3 %v6776_v4  ;;  %1752 = vmatpush.bf16.msra.mxu2 %v6781_v0  ;;  %v4831_v4 = vld [vmem:[#allocation2 + $0x938] sm:$0xf0]  ;;  %8476 = vst [vmem:[#allocation146_spill] sm:$0xff] %v6802_v57  ;;  %v5869_v0 = vld [vmem:[#allocation2 + $0x924] sm:$0xf] }
  0xb0   : > { %8477 = vst [vmem:[#allocation147_spill] sm:$0xff] %v6804_v56  ;;  %v6809_v35 = vor.u32 %v5871_v27, %v4831_v4  ;;  %1763 = vmatpush.bf16.msrb.mxu1 %v6797_v42  ;;  %v4823_v19 = vld [vmem:[#allocation2 + $0x928] sm:$0xf0]  ;;  %v4801_v5 = vld [vmem:[%s6298_s30 + $0x8] sm:$0xe]  ;;  %v6820_v4 = vor.u32 %v5886_v58, %v4885_v47 }
  0xb1   : > { %1727 = vmatpush.bf16.msra.mxu0 %v6791_v62  ;;  %v5864_v18 = vld [vmem:[%s6298_s30 + $0x10] sm:$0x10]  ;;  %v4911_v62 = vld [vmem:[#allocation2 + $0x9d8] sm:$0xf0]  ;;  %v4813_v27 = vld [vmem:[#allocation2 + $0x910] sm:$0xf]  ;;  %v6823_v42 = vor.u32 %v5869_v0, %v4823_v19 }
  0xb2   : > { %8478 = vst [vmem:[#allocation148_spill] sm:$0xff] %v6809_v35  ;;  %v5891_v2 = vld [vmem:[#allocation2 + $0x9d4] sm:$0xf]  ;;  %v5868_v50 = vld [vmem:[#allocation2 + $0x914] sm:$0xf0]  ;;  %v4802_v54 = vor.u32 %v5864_v18, %v4801_v5 }
  0xb3   : > { %1714 = vmatpush.bf16.msra.mxu3 %v6789_v43  ;;  %1753 = vmatpush.bf16.msra.mxu2 %v6795_v28  ;;  %v6812_v43 = vor.u32 %v5893_v40, %v4919_v23  ;;  %v6818_v28 = vor.u32 %v5870_v6, %v4821_v33  ;;  %8481 = vst [vmem:[#allocation151_spill] sm:$0xff] %v6820_v4  ;;  %v4877_v40 = vld [vmem:[#allocation2 + $0x990] sm:$0xf]  ;;  %v5884_v23 = vld [vmem:[#allocation2 + $0x994] sm:$0xf0] }
  0xb4   : > { %8482 = vst [vmem:[#allocation152_spill] sm:$0xff] %v6823_v42  ;;  %v5867_v9 = vld [vmem:[#allocation2 + $0x914] sm:$0xf]  ;;  %v4815_v33 = vld [vmem:[#allocation2 + $0x918] sm:$0xf0]  ;;  %v6830_v19 = vor.u32 %v5868_v50, %v4813_v27  ;;  %v6832_v5 = vor.u32 %v5884_v23, %v4877_v40  ;;  %v6839_v49 = vrot.slane %v4802_v54, 1 }
  0xb5   : > { %8479 = vst [vmem:[#allocation149_spill] sm:$0xff] %v6812_v43  ;;  %1728 = vmatpush.bf16.msra.mxu0 %v6804_v56  ;;  %1764 = vmatpush.bf16.msrb.mxu1 %v6812_v43  ;;  %v5889_v6 = vld [vmem:[#allocation2 + $0x9c4] sm:$0xf]  ;;  %v4903_v58 = vld [vmem:[#allocation2 + $0x9c8] sm:$0xf0]  ;;  %v6837_v63 = vor.u32 %v5867_v9, %v4815_v33 }
  0xb6   : > { %8480 = vst [vmem:[#allocation150_spill] sm:$0xff] %v6818_v28  ;;  %v4805_v47 = vld [vmem:[#allocation2 + $0x900] sm:$0xf]  ;;  %v5866_v56 = vld [vmem:[#allocation2 + $0x904] sm:$0xf0] }
  0xb7   : > { %1715 = vmatpush.bf16.msra.mxu3 %v6802_v57  ;;  %1754 = vmatpush.bf16.msra.mxu2 %v6809_v35  ;;  %v6826_v57 = vor.u32 %v5891_v2, %v4911_v62  ;;  %v4869_v35 = vld [vmem:[#allocation2 + $0x980] sm:$0xf]  ;;  %v5882_v0 = vld [vmem:[#allocation2 + $0x984] sm:$0xf0]  ;;  %8484 = vst [vmem:[#allocation154_spill] sm:$0xff] %v6830_v19  ;;  %v511_v62 = vpop.f32.mrf.mxu3  ;;  %v6848_v9 = vor.u32 %v5866_v56, %v4805_v47 }
  0xb8   : > { %8485 = vst [vmem:[#allocation155_spill] sm:$0xff] %v6832_v5  ;;  %v5865_v18 = vld [vmem:[#allocation2 + $0x904] sm:$0xf]  ;;  %v4807_v2 = vld [vmem:[#allocation2 + $0x908] sm:$0xf0]  ;;  %v6850_v54 = vor.u32 %v5882_v0, %v4869_v35 }
  0xb9   : > { %8483 = vst [vmem:[#allocation153_spill] sm:$0xff] %v6826_v57  ;;  %1729 = vmatpush.bf16.msra.mxu0 %v6820_v4  ;;  %v4793_v43 = vld [vmem:[%s6298_s30] sm:$0xe]  ;;  %v5863_v31 = vld [vmem:[%s6298_s30 + $0x8] sm:$0x10]  ;;  %1765 = vmatpush.bf16.msrb.mxu1 %v6826_v57  ;;  %v6844_v4 = vor.u32 %v5889_v6, %v4903_v58  ;;  %v6855_v6 = vor.u32 %v5865_v18, %v4807_v2  ;;  %v498_v18 = vpop.f32.mrf.mxu1 }
  0xba   : > { %8486 = vst [vmem:[#allocation156_spill] sm:$0xff] %v6837_v63  ;;  %v5862_v37 = vld [vmem:[%s6298_s30 + $0x4] sm:$0xe]  ;;  %v4795_v51 = vld [vmem:[%s6298_s30 + $0xc] sm:$0x10]  ;;  %v4794_v44 = vor.u32 %v5863_v31, %v4793_v43  ;;  %4947 = vmatmul.msk.bf16.vlgmr.msra.gmra.mxu1 %vm472_vm0, %v6839_v49 }
  0xbb   : > { %1716 = vmatpush.bf16.msra.mxu3 %v6818_v28  ;;  %1755 = vmatpush.bf16.msra.mxu2 %v6823_v42  ;;  %8487 = vst [vmem:[#allocation157_spill] sm:$0xff] %v6844_v4  ;;  %v5887_v50 = vld [vmem:[#allocation2 + $0x9b4] sm:$0xf]  ;;  %v4943_v40 = vld [vmem:[#allocation2 + $0xa18] sm:$0xf0]  ;;  %v4798_v57 = vor.u32 %v5862_v37, %v4795_v51 }
  0xbc   : > { %v5899_v27 = vld [vmem:[#allocation2 + $0xa14] sm:$0xf]  ;;  %v4895_v23 = vld [vmem:[#allocation2 + $0x9b8] sm:$0xf0]  ;;  %v5007_v28 = vld [vmem:[#allocation2 + $0x3d0] sm:$0xf] }
  0xbd   : > { %v5952_v32 = vld [vmem:[#allocation2 + $0x3d4] sm:$0xf0]  ;;  %1730 = vmatpush.bf16.msra.mxu0 %v6832_v5  ;;  %8488 = vst [vmem:[#allocation158_spill] sm:$0xff] %v6848_v9  ;;  %v5087_v33 = vld [vmem:[#allocation2 + $0x470] sm:$0xf]  ;;  %v6857_v58 = vor.u32 %v5899_v27, %v4943_v40  ;;  %1766 = vmatpush.bf16.msrb.mxu1 %v6844_v4  ;;  %v6860_v56 = vor.u32 %v5887_v50, %v4895_v23  ;;  %v6866_v5 = vrot.slane %v4794_v44, 1 }
  0xbe   : > { %8489 = vst [vmem:[#allocation159_spill] sm:$0xff] %v6850_v54  ;;  %v5972_v42 = vld [vmem:[#allocation2 + $0x474] sm:$0xf0]  ;;  %v5885_v31 = vld [vmem:[#allocation2 + $0x9a4] sm:$0xf]  ;;  %v6862_v35 = vor.u32 %v5952_v32, %v5007_v28  ;;  %v6870_v28 = vrot.slane %v4798_v57, 1 }
  0xbf   : > { %1717 = vmatpush.bf16.msra.mxu3 %v6830_v19  ;;  %1756 = vmatpush.bf16.msra.mxu2 %v6837_v63  ;;  %8490 = vst [vmem:[#allocation160_spill] sm:$0xff] %v6855_v6  ;;  %v4887_v43 = vld [vmem:[#allocation2 + $0x9a8] sm:$0xf0]  ;;  %v5897_v19 = vld [vmem:[#allocation2 + $0xa04] sm:$0xf]  ;;  %v6864_v0 = vor.u32 %v5972_v42, %v5087_v33  ;;  %v485_v63 = vpop.f32.mrf.mxu0  ;;  %v513_v50 = vpop.f32.mrf.mxu3 }
  0xc0   : > { %8491 = vst [vmem:[#allocation161_spill] sm:$0xff] %v6857_v58  ;;  %v4935_v47 = vld [vmem:[#allocation2 + $0xa08] sm:$0xf0]  ;;  %v4999_v51 = vld [vmem:[#allocation2 + $0x3c0] sm:$0xf]  ;;  %v499_v40 = vadd.f32 %v498_v18, %v485_v63 }
  0xc1   : > { %8492 = vst [vmem:[#allocation162_spill] sm:$0xff] %v6860_v56  ;;  %v5950_v37 = vld [vmem:[#allocation2 + $0x3c4] sm:$0xf0]  ;;  %v5079_v2 = vld [vmem:[#allocation2 + $0x460] sm:$0xf]  ;;  %1731 = vmatpush.bf16.msra.mxu0 %v6850_v54  ;;  %v6874_v42 = vor.u32 %v5897_v19, %v4935_v47  ;;  %1767 = vmatpush.bf16.msrb.mxu1 %v6860_v56 }
  0xc2   : > { %8493 = vst [vmem:[#allocation163_spill] sm:$0xff] %v6862_v35  ;;  %v5970_v27 = vld [vmem:[#allocation2 + $0x464] sm:$0xf0]  ;;  %v5071_v23 = vld [vmem:[#allocation2 + $0x450] sm:$0xf]  ;;  %v6880_v63 = vor.u32 %v5950_v37, %v4999_v51  ;;  %v6882_v50 = vadd.f32 %v511_v62, %v499_v40 }
  0xc3   : > { %8494 = vst [vmem:[#allocation164_spill] sm:$0xff] %v6864_v0  ;;  %1718 = vmatpush.bf16.msra.mxu3 %v6848_v9  ;;  %v5968_v32 = vld [vmem:[#allocation2 + $0x454] sm:$0xf0]  ;;  %1757 = vmatpush.bf16.msra.mxu2 %v6855_v6  ;;  %v5967_v44 = vld [vmem:[#allocation2 + $0x454] sm:$0xf]  ;;  %v6878_v9 = vor.u32 %v5885_v31, %v4887_v43  ;;  %v6886_v57 = vor.u32 %v5970_v27, %v5079_v2  ;;  %v537_v2 = vpop.f32.mrf.mxu2 }
  0xc4   : > { %8495 = vst [vmem:[#allocation165_spill] sm:$0xff] %v6874_v42  ;;  %v5073_v33 = vld [vmem:[#allocation2 + $0x458] sm:$0xf0]  ;;  %v5883_v18 = vld [vmem:[#allocation2 + $0x994] sm:$0xf]  ;;  %v6888_v19 = vor.u32 %v5968_v32, %v5071_v23  ;;  %1732 = vmatmul.bf16.vlgmr.msra.gmra.mxu0 %v6870_v28 }
  0xc5   : > { %2045 = vmatpush.bf16.msrb.mxu0 %v6862_v35  ;;  %8496 = vst [vmem:[#allocation166_spill] sm:$0xff] %v6878_v9  ;;  %v4879_v47 = vld [vmem:[#allocation2 + $0x998] sm:$0xf0]  ;;  %v5948_v6 = vld [vmem:[#allocation2 + $0x3b4] sm:$0xf0]  ;;  %v6891_v31 = vor.u32 %v5967_v44, %v5073_v33  ;;  %1768 = vmatpush.bf16.msrb.mxu1 %v6878_v9  ;;  %v500_v9 = vpop.f32.mrf.mxu1 }
  0xc6   : > { %8497 = vst [vmem:[#allocation167_spill] sm:$0xff] %v6880_v63  ;;  %1719 = vmatmul.bf16.vlgmr.msra.gmra.mxu3 %v6866_v5  ;;  %1758 = vmatmul.bf16.vlgmr.msra.gmra.mxu2 %v6866_v5  ;;  %v5063_v43 = vld [vmem:[#allocation2 + $0x440] sm:$0xf]  ;;  %v5966_v62 = vld [vmem:[#allocation2 + $0x444] sm:$0xf0]  ;;  %v6897_v27 = vor.u32 %v5883_v18, %v4879_v47 }
  0xc7   : > { %1782 = vmatpush.bf16.msrb.mxu3 %v6857_v58  ;;  %2077 = vmatpush.bf16.msrb.mxu2 %v6864_v0  ;;  %8498 = vst [vmem:[#allocation168_spill] sm:$0xff] %v6886_v57  ;;  %v4991_v58 = vld [vmem:[#allocation2 + $0x3b0] sm:$0xf]  ;;  %v5965_v51 = vld [vmem:[#allocation2 + $0x444] sm:$0xf]  ;;  %v487_v44 = vpop.f32.mrf.mxu0  ;;  %v6903_v33 = vor.u32 %v5966_v62, %v5063_v43  ;;  %v524_v62 = vpop.f32.mrf.mxu3 }
  0xc8   : > { %8499 = vst [vmem:[#allocation169_spill] sm:$0xff] %v6888_v19  ;;  %v5065_v37 = vld [vmem:[#allocation2 + $0x448] sm:$0xf0]  ;;  %v6899_v40 = vor.u32 %v5948_v6, %v4991_v58  ;;  %v5881_v23 = vld [vmem:[#allocation2 + $0x984] sm:$0xf]  ;;  %v538_v9 = vadd.f32 %v537_v2, %v524_v62 }
  0xc9   : > { %8500 = vst [vmem:[#allocation170_spill] sm:$0xff] %v6891_v31  ;;  %2046 = vmatpush.bf16.msrb.mxu0 %v6880_v63  ;;  %v4871_v32 = vld [vmem:[#allocation2 + $0x988] sm:$0xf0]  ;;  %v5946_v0 = vld [vmem:[#allocation2 + $0x3a4] sm:$0xf0]  ;;  %v6906_v63 = vor.u32 %v5965_v51, %v5065_v37  ;;  %1769 = vmatpush.bf16.msrb.mxu1 %v6897_v27 }
  0xca   : > { %8501 = vst [vmem:[#allocation171_spill] sm:$0xff] %v6897_v27  ;;  %v5055_v35 = vld [vmem:[#allocation2 + $0x430] sm:$0xf]  ;;  %v5964_v18 = vld [vmem:[#allocation2 + $0x434] sm:$0xf0]  ;;  %v6910_v44 = vor.u32 %v5881_v23, %v4871_v32 }
  0xcb   : > { %1783 = vmatpush.bf16.msrb.mxu3 %v6874_v42  ;;  %8502 = vst [vmem:[#allocation172_spill] sm:$0xff] %v6899_v40  ;;  %2078 = vmatpush.bf16.msrb.mxu2 %v6886_v57  ;;  %v4983_v42 = vld [vmem:[#allocation2 + $0x3a0] sm:$0xf]  ;;  %v5951_v6 = vld [vmem:[#allocation2 + $0x3d4] sm:$0xf] }
  0xcc   : > { %8503 = vst [vmem:[#allocation173_spill] sm:$0xff] %v6903_v33  ;;  %v5009_v58 = vld [vmem:[#allocation2 + $0x3d8] sm:$0xf0]  ;;  %v5963_v47 = vld [vmem:[#allocation2 + $0x434] sm:$0xf]  ;;  %v6912_v43 = vor.u32 %v5946_v0, %v4983_v42 }
  0xcd   : > { %8504 = vst [vmem:[#allocation174_spill] sm:$0xff] %v6906_v63  ;;  %v5057_v54 = vld [vmem:[#allocation2 + $0x438] sm:$0xf0]  ;;  %2047 = vmatpush.bf16.msrb.mxu0 %v6899_v40  ;;  %v6917_v51 = vor.u32 %v5951_v6, %v5009_v58  ;;  %v4975_v37 = vld [vmem:[#allocation2 + $0x390] sm:$0xf]  ;;  %1770 = vmatpush.bf16.msrb.mxu1 %v6910_v44 }
  0xce   : > { %8505 = vst [vmem:[#allocation175_spill] sm:$0xff] %v6910_v44  ;;  %v5047_v57 = vld [vmem:[#allocation2 + $0x420] sm:$0xf]  ;;  %v6920_v27 = vor.u32 %v5963_v47, %v5057_v54  ;;  %v5962_v40 = vld [vmem:[#allocation2 + $0x424] sm:$0xf0] }
  0xcf   : > { %2058 = vmatpush.bf16.msra.mxu3 %v6888_v19  ;;  %2097 = vmatpush.bf16.msra.mxu2 %v6891_v31  ;;  %8506 = vst [vmem:[#allocation176_spill] sm:$0xff] %v6912_v43  ;;  %v6915_v31 = vor.u32 %v5964_v18, %v5055_v35  ;;  %v5944_v19 = vld [vmem:[#allocation2 + $0x394] sm:$0xf0]  ;;  %v5949_v23 = vld [vmem:[#allocation2 + $0x3c4] sm:$0xf]  ;;  %v539_v35 = vpop.f32.mrf.mxu2  ;;  %v6928_v18 = vor.u32 %v5962_v40, %v5047_v57  ;;  %v550_v62 = vpop.f32.mrf.mxu0 }
  0xd0   : > { %8508 = vst [vmem:[#allocation178_spill] sm:$0xff] %v6917_v51  ;;  %v5001_v32 = vld [vmem:[#allocation2 + $0x3c8] sm:$0xf0]  ;;  %v5961_v0 = vld [vmem:[#allocation2 + $0x424] sm:$0xf]  ;;  %v6924_v2 = vor.u32 %v5944_v19, %v4975_v37  ;;  %1771 = vmatmul.bf16.vlgmr.msrb.gmra.mxu1 %v6870_v28  ;;  %v6936_v37 = vadd.f32 %v550_v62, %v538_v9 }
  0xd1   : > { %8507 = vst [vmem:[#allocation177_spill] sm:$0xff] %v6915_v31  ;;  %v5049_v42 = vld [vmem:[#allocation2 + $0x428] sm:$0xf0]  ;;  %2048 = vmatpush.bf16.msrb.mxu0 %v6912_v43  ;;  %2084 = vmatpush.bf16.msra.mxu1 %v6917_v51  ;;  %v6930_v54 = vor.u32 %v5949_v23, %v5001_v32  ;;  %v4967_v6 = vld [vmem:[#allocation2 + $0x380] sm:$0xf]  ;;  %v526_v23 = vpop.f32.mrf.mxu3 }
  0xd2   : > { %8509 = vst [vmem:[#allocation179_spill] sm:$0xff] %v6920_v27  ;;  %v5942_v58 = vld [vmem:[#allocation2 + $0x384] sm:$0xf0]  ;;  %v5039_v47 = vld [vmem:[#allocation2 + $0x410] sm:$0xf]  ;;  %v6933_v44 = vor.u32 %v5961_v0, %v5049_v42 }
  0xd3   : > { %2059 = vmatpush.bf16.msra.mxu3 %v6903_v33  ;;  %2098 = vmatpush.bf16.msra.mxu2 %v6906_v63  ;;  %8510 = vst [vmem:[#allocation180_spill] sm:$0xff] %v6924_v2  ;;  %v5960_v43 = vld [vmem:[#allocation2 + $0x414] sm:$0xf0]  ;;  %v5947_v35 = vld [vmem:[#allocation2 + $0x3b4] sm:$0xf]  ;;  %v6939_v40 = vor.u32 %v5942_v58, %v4967_v6 }
  0xd4   : > { %8511 = vst [vmem:[#allocation181_spill] sm:$0xff] %v6928_v18  ;;  %v4993_v19 = vld [vmem:[#allocation2 + $0x3b8] sm:$0xf0]  ;;  %v6943_v32 = vor.u32 %v5960_v43, %v5039_v47  ;;  %v4959_v42 = vld [vmem:[#allocation2 + $0x370] sm:$0xf] }
  0xd5   : > { %8512 = vst [vmem:[#allocation182_spill] sm:$0xff] %v6930_v54  ;;  %v5041_v57 = vld [vmem:[#allocation2 + $0x418] sm:$0xf0]  ;;  %2049 = vmatpush.bf16.msrb.mxu0 %v6924_v2  ;;  %2085 = vmatpush.bf16.msra.mxu1 %v6930_v54  ;;  %v6945_v0 = vor.u32 %v5947_v35, %v4993_v19  ;;  %v5031_v51 = vld [vmem:[#allocation2 + $0x400] sm:$0xf] }
  0xd6   : > { %8513 = vst [vmem:[#allocation183_spill] sm:$0xff] %v6933_v44  ;;  %4948 = vmatmul.msk.bf16.vlgmr.msrb.gmra.mxu3 %vm472_vm0, %v6839_v49  ;;  %v5958_v6 = vld [vmem:[#allocation2 + $0x404] sm:$0xf0]  ;;  %v5945_v58 = vld [vmem:[#allocation2 + $0x3a4] sm:$0xf]  ;;  %5093 = vmatmul.msk.bf16.vlgmr.msrb.gmra.mxu2 %vm472_vm0, %v6316_v14 }
  0xd7   : > { %2060 = vmatpush.bf16.msra.mxu3 %v6915_v31  ;;  %2099 = vmatpush.bf16.msra.mxu2 %v6920_v27  ;;  %v5959_v31 = vld [vmem:[#allocation2 + $0x414] sm:$0xf]  ;;  %8514 = vst [vmem:[#allocation184_spill] sm:$0xff] %v6939_v40  ;;  %v5940_v27 = vld [vmem:[#allocation2 + $0x374] sm:$0xf0]  ;;  %v6957_v47 = vpop.f32.mrf.mxu2 }
  0xd8   : > { %8515 = vst [vmem:[#allocation185_spill] sm:$0xff] %v6943_v32  ;;  %v6950_v9 = vor.u32 %v5959_v31, %v5041_v57  ;;  %v4985_v62 = vld [vmem:[#allocation2 + $0x3a8] sm:$0xf0]  ;;  %v5957_v23 = vld [vmem:[#allocation2 + $0x404] sm:$0xf]  ;;  %v6955_v43 = vor.u32 %v5940_v27, %v4959_v42  ;;  %v6961_v31 = vor.u32 %v5958_v6, %v5031_v51  ;;  %v552_v27 = vpop.f32.mrf.mxu0 }
  0xd9   : > { %8516 = vst [vmem:[#allocation186_spill] sm:$0xff] %v6945_v0  ;;  %2050 = vmatpush.bf16.msrb.mxu0 %v6939_v40  ;;  %v4951_v35 = vld [vmem:[#allocation2 + $0x360] sm:$0xf]  ;;  %2086 = vmatpush.bf16.msra.mxu1 %v6945_v0  ;;  %v6963_v19 = vor.u32 %v5945_v58, %v4985_v62  ;;  %v5938_v57 = vld [vmem:[#allocation2 + $0x364] sm:$0xf0]  ;;  %v756_v0 = vpop.f32.mrf.mxu1 }
  0xda   : > { %8517 = vst [vmem:[#allocation187_spill] sm:$0xff] %v6950_v9  ;;  %v5956_v2 = vld [vmem:[#allocation2 + $0x3f4] sm:$0xf0]  ;;  %v5943_v42 = vld [vmem:[#allocation2 + $0x394] sm:$0xf]  ;;  %v6969_v51 = vor.u32 %v5938_v57, %v4951_v35 }
  0xdb   : > { %2061 = vmatpush.bf16.msra.mxu3 %v6928_v18  ;;  %2100 = vmatpush.bf16.msra.mxu2 %v6933_v44  ;;  %v5033_v18 = vld [vmem:[#allocation2 + $0x408] sm:$0xf0]  ;;  %8518 = vst [vmem:[#allocation188_spill] sm:$0xff] %v6955_v43  ;;  %v5023_v44 = vld [vmem:[#allocation2 + $0x3f0] sm:$0xf] }
  0xdc   : > { %8519 = vst [vmem:[#allocation189_spill] sm:$0xff] %v6961_v31  ;;  %v6966_v54 = vor.u32 %v5957_v23, %v5033_v18  ;;  %v4977_v40 = vld [vmem:[#allocation2 + $0x398] sm:$0xf0]  ;;  %v5955_v63 = vld [vmem:[#allocation2 + $0x3f4] sm:$0xf]  ;;  %v6973_v6 = vor.u32 %v5956_v2, %v5023_v44  ;;  %v757_v44 = vadd.f32 %v756_v0, %v6882_v50 }
  0xdd   : > { %8520 = vst [vmem:[#allocation190_spill] sm:$0xff] %v6963_v19  ;;  %v5025_v33 = vld [vmem:[#allocation2 + $0x3f8] sm:$0xf0]  ;;  %v5971_v56 = vld [vmem:[#allocation2 + $0x474] sm:$0xf]  ;;  %2051 = vmatpush.bf16.msrb.mxu0 %v6955_v43  ;;  %2087 = vmatpush.bf16.msra.mxu1 %v6963_v19  ;;  %v6975_v58 = vor.u32 %v5943_v42, %v4977_v40 }
  0xde   : > { %8521 = vst [vmem:[#allocation191_spill] sm:$0xff] %v6966_v54  ;;  %v5015_v18 = vld [vmem:[#allocation2 + $0x3e0] sm:$0xf]  ;;  %v5954_v62 = vld [vmem:[#allocation2 + $0x3e4] sm:$0xf0]  ;;  %v6978_v27 = vor.u32 %v5955_v63, %v5025_v33 }
  0xdf   : > { %2062 = vmatpush.bf16.msra.mxu3 %v6943_v32  ;;  %2101 = vmatpush.bf16.msra.mxu2 %v6950_v9  ;;  %v5089_v32 = vld [vmem:[#allocation2 + $0x478] sm:$0xf0]  ;;  %8522 = vst [vmem:[#allocation192_spill] sm:$0xff] %v6969_v51  ;;  %v5941_v23 = vld [vmem:[#allocation2 + $0x384] sm:$0xf]  ;;  %v784_v2 = vpop.f32.mrf.mxu2 }
  0xe0   : > { %8523 = vst [vmem:[#allocation193_spill] sm:$0xff] %v6973_v6  ;;  %v6980_v9 = vor.u32 %v5971_v56, %v5089_v32  ;;  %v4969_v43 = vld [vmem:[#allocation2 + $0x388] sm:$0xf0]  ;;  %v5953_v35 = vld [vmem:[#allocation2 + $0x3e4] sm:$0xf]  ;;  %v6986_v56 = vor.u32 %v5954_v62, %v5015_v18 }
  0xe1   : > { %8524 = vst [vmem:[#allocation194_spill] sm:$0xff] %v6975_v58  ;;  %v5017_v57 = vld [vmem:[#allocation2 + $0x3e8] sm:$0xf0]  ;;  %v5153_v19 = vld [vmem:[#allocation2 + $0x190] sm:$0xf]  ;;  %2052 = vmatpush.bf16.msrb.mxu0 %v6969_v51  ;;  %2088 = vmatpush.bf16.msra.mxu1 %v6975_v58  ;;  %v6988_v63 = vor.u32 %v5941_v23, %v4969_v43  ;;  %v795_v43 = vpop.f32.mrf.mxu0 }
  0xe2   : > { %8525 = vst [vmem:[#allocation195_spill] sm:$0xff] %v6978_v27  ;;  %v5081_v4 = vld [vmem:[#allocation2 + $0x468] sm:$0xf0]  ;;  %v5916_v40 = vld [vmem:[#allocation2 + $0x194] sm:$0xf0]  ;;  %v6992_v51 = vor.u32 %v5953_v35, %v5017_v57 }
  0xe3   : > { %2063 = vmatpush.bf16.msra.mxu3 %v6961_v31  ;;  %2102 = vmatpush.bf16.msra.mxu2 %v6966_v54  ;;  %8526 = vst [vmem:[#allocation196_spill] sm:$0xff] %v6980_v9  ;;  %v5969_v31 = vld [vmem:[#allocation2 + $0x464] sm:$0xf]  ;;  %v5217_v42 = vld [vmem:[#allocation2 + $0x210] sm:$0xf] }
  0xe4   : > { %v5932_v15 = vld [vmem:[#allocation2 + $0x214] sm:$0xf0]  ;;  %8527 = vst [vmem:[#allocation197_spill] sm:$0xff] %v6986_v56  ;;  %v5915_v33 = vld [vmem:[#allocation2 + $0x194] sm:$0xf]  ;;  %v6994_v50 = vor.u32 %v5969_v31, %v5081_v4  ;;  %2053 = vmatmul.bf16.vlgmr.msrb.gmra.mxu0 %v6361_v29 }
  0xe5   : > { %8528 = vst [vmem:[#allocation198_spill] sm:$0xff] %v6988_v63  ;;  %v5155_v32 = vld [vmem:[#allocation2 + $0x198] sm:$0xf0]  ;;  %2116 = vmatpush.bf16.msra.mxu0 %v6980_v9  ;;  %v5939_v0 = vld [vmem:[#allocation2 + $0x374] sm:$0xf]  ;;  %v6999_v18 = vor.u32 %v5932_v15, %v5217_v42  ;;  %2089 = vmatpush.bf16.msra.mxu1 %v6988_v63 }
  0xe6   : > { %8529 = vst [vmem:[#allocation199_spill] sm:$0xff] %v6992_v51  ;;  %v4961_v2 = vld [vmem:[#allocation2 + $0x378] sm:$0xf0]  ;;  %v5145_v62 = vld [vmem:[#allocation2 + $0x180] sm:$0xf]  ;;  %v7001_v23 = vor.u32 %v5915_v33, %v5155_v32 }
  0xe7   : > { %2064 = vmatpush.bf16.msra.mxu3 %v6973_v6  ;;  %2103 = vmatpush.bf16.msra.mxu2 %v6978_v27  ;;  %8530 = vst [vmem:[#allocation200_spill] sm:$0xff] %v6994_v50  ;;  %v6997_v6 = vor.u32 %v5916_v40, %v5153_v19  ;;  %v796_v27 = vadd.f32 %v795_v43, %v6936_v37  ;;  %v5914_v58 = vld [vmem:[#allocation2 + $0x184] sm:$0xf0]  ;;  %v5209_v9 = vld [vmem:[#allocation2 + $0x200] sm:$0xf]  ;;  %v758_v37 = vpop.f32.mrf.mxu1 }
  0xe8   : > { %8532 = vst [vmem:[#allocation202_spill] sm:$0xff] %v6999_v18  ;;  %v5930_v35 = vld [vmem:[#allocation2 + $0x204] sm:$0xf0]  ;;  %v7006_v4 = vor.u32 %v5939_v0, %v4961_v2  ;;  %v5913_v31 = vld [vmem:[#allocation2 + $0x184] sm:$0xf]  ;;  %v7012_v42 = vor.u32 %v5914_v58, %v5145_v62  ;;  %v769_v62 = vpop.f32.mrf.mxu3 }
  0xe9   : > { %8531 = vst [vmem:[#allocation201_spill] sm:$0xff] %v6997_v6  ;;  %v5147_v19 = vld [vmem:[#allocation2 + $0x188] sm:$0xf0]  ;;  %2117 = vmatpush.bf16.msra.mxu0 %v6994_v50  ;;  %v5937_v15 = vld [vmem:[#allocation2 + $0x364] sm:$0xf]  ;;  %v7014_v33 = vor.u32 %v5930_v35, %v5209_v9  ;;  %v808_v35 = vpop.f32.mrf.mxu2  ;;  %v797_v63 = vpop.f32.mrf.mxu0 }
  0xea   : > { %8533 = vst [vmem:[#allocation203_spill] sm:$0xff] %v7001_v23  ;;  %v4953_v57 = vld [vmem:[#allocation2 + $0x368] sm:$0xf0]  ;;  %v5137_v40 = vld [vmem:[#allocation2 + $0x170] sm:$0xf]  ;;  %v7018_v43 = vor.u32 %v5913_v31, %v5147_v19  ;;  %2090 = vmatpush.bf16.msra.mxu1 %v7006_v4  ;;  %v770_v31 = vadd.f32 %v769_v62, %v757_v44  ;;  %v809_v19 = vadd.f32 %v808_v35, %v796_v27 }
  0xeb   : > { %2065 = vmatpush.bf16.msra.mxu3 %v6986_v56  ;;  %8534 = vst [vmem:[#allocation204_spill] sm:$0xff] %v7006_v4  ;;  %2104 = vmatpush.bf16.msra.mxu2 %v6992_v51  ;;  %v5912_v32 = vld [vmem:[#allocation2 + $0x174] sm:$0xf0]  ;;  %v5233_v0 = vld [vmem:[#allocation2 + $0x230] sm:$0xf] }
  0xec   : > { %8535 = vst [vmem:[#allocation205_spill] sm:$0xff] %v7014_v33  ;;  %v5936_v2 = vld [vmem:[#allocation2 + $0x234] sm:$0xf0]  ;;  %v5201_v51 = vld [vmem:[#allocation2 + $0x1f0] sm:$0xf]  ;;  %v7024_v37 = vor.u32 %v5912_v32, %v5137_v40 }
  0xed   : > { %2316 = vmatpush.bf16.msrb.mxu0 %v6999_v18  ;;  %8536 = vst [vmem:[#allocation206_spill] sm:$0xff] %v7018_v43  ;;  %v5928_v50 = vld [vmem:[#allocation2 + $0x1f4] sm:$0xf0]  ;;  %v5911_v58 = vld [vmem:[#allocation2 + $0x174] sm:$0xf]  ;;  %v7026_v18 = vor.u32 %v5936_v2, %v5233_v0  ;;  %v7036_v2 = vadd.f32 %v6957_v47, %v770_v31 }
  0xee   : > { %2066 = vmatmul.bf16.vlgmr.msra.gmra.mxu3 %v6365_v36  ;;  %2105 = vmatmul.bf16.vlgmr.msra.gmra.mxu2 %v6365_v36  ;;  %v5139_v9 = vld [vmem:[#allocation2 + $0x178] sm:$0xf0]  ;;  %8538 = vst [vmem:[#allocation208_spill] sm:$0xff] %v7024_v37  ;;  %v7030_v4 = vor.u32 %v5928_v50, %v5201_v51  ;;  %v5934_v56 = vld [vmem:[#allocation2 + $0x224] sm:$0xf0] }
  0xef   : > { %2303 = vmatpush.bf16.msrb.mxu3 %v6997_v6  ;;  %2342 = vmatpush.bf16.msrb.mxu2 %v7001_v23  ;;  %v7021_v6 = vor.u32 %v5937_v15, %v4953_v57  ;;  %8539 = vst [vmem:[#allocation209_spill] sm:$0xff] %v7026_v18  ;;  %v5129_v23 = vld [vmem:[#allocation2 + $0x160] sm:$0xf]  ;;  %v5910_v15 = vld [vmem:[#allocation2 + $0x164] sm:$0xf0]  ;;  %v7033_v54 = vor.u32 %v5911_v58, %v5139_v9  ;;  %v821_v63 = vpop.f32.mrf.mxu1 }
  0xf0   : > { %8540 = vst [vmem:[#allocation210_spill] sm:$0xff] %v7030_v4  ;;  %v5225_v57 = vld [vmem:[#allocation2 + $0x220] sm:$0xf]  ;;  %v5926_v32 = vld [vmem:[#allocation2 + $0x1e4] sm:$0xf0]  ;;  %v7044_v58 = vor.u32 %v5910_v15, %v5129_v23  ;;  %v7050_v35 = vadd.f32 %v821_v63, %v809_v19 }
  0xf1   : > { %8537 = vst [vmem:[#allocation207_spill] sm:$0xff] %v7021_v6  ;;  %2317 = vmatpush.bf16.msrb.mxu0 %v7014_v33  ;;  %v5193_v40 = vld [vmem:[#allocation2 + $0x1e0] sm:$0xf]  ;;  %v5909_v0 = vld [vmem:[#allocation2 + $0x164] sm:$0xf]  ;;  %2091 = vmatpush.bf16.msra.mxu1 %v7021_v6  ;;  %v7040_v50 = vor.u32 %v5934_v56, %v5225_v57 }
  0xf2   : > { %8541 = vst [vmem:[#allocation211_spill] sm:$0xff] %v7033_v54  ;;  %v5131_v44 = vld [vmem:[#allocation2 + $0x168] sm:$0xf0]  ;;  %v5931_v27 = vld [vmem:[#allocation2 + $0x214] sm:$0xf]  ;;  %v7046_v9 = vor.u32 %v5926_v32, %v5193_v40  ;;  %v771_v40 = vpop.f32.mrf.mxu3  ;;  %v810_v32 = vpop.f32.mrf.mxu2 }
  0xf3   : > { %2304 = vmatpush.bf16.msrb.mxu3 %v7012_v42  ;;  %2343 = vmatpush.bf16.msrb.mxu2 %v7018_v43  ;;  %v5219_v51 = vld [vmem:[#allocation2 + $0x218] sm:$0xf0]  ;;  %8542 = vst [vmem:[#allocation212_spill] sm:$0xff] %v7040_v50  ;;  %v5121_v47 = vld [vmem:[#allocation2 + $0x150] sm:$0xf]  ;;  %v7052_v31 = vor.u32 %v5909_v0, %v5131_v44 }
  0xf4   : > { %8543 = vst [vmem:[#allocation213_spill] sm:$0xff] %v7044_v58  ;;  %v5908_v62 = vld [vmem:[#allocation2 + $0x154] sm:$0xf0]  ;;  %2092 = vmatmul.bf16.vlgmr.msra.gmra.mxu1 %v6361_v29  ;;  %v7054_v56 = vor.u32 %v5931_v27, %v5219_v51  ;;  %v5185_v57 = vld [vmem:[#allocation2 + $0x1d0] sm:$0xf]  ;;  %5094 = vmatmul.msk.bf16.vlgmr.msra.gmra.mxu0 %vm472_vm0, %v6316_v14 }
  0xf5   : > { %2335 = vmatpush.bf16.msrb.mxu1 %v7026_v18  ;;  %2318 = vmatpush.bf16.msrb.mxu0 %v7030_v4  ;;  %8544 = vst [vmem:[#allocation214_spill] sm:$0xff] %v7046_v9  ;;  %v5907_v4 = vld [vmem:[#allocation2 + $0x154] sm:$0xf]  ;;  %v5123_v18 = vld [vmem:[#allocation2 + $0x158] sm:$0xf0]  ;;  %v7059_v19 = vor.u32 %v5908_v62, %v5121_v47 }
  0xf6   : > { %8545 = vst [vmem:[#allocation215_spill] sm:$0xff] %v7052_v31  ;;  %v5929_v23 = vld [vmem:[#allocation2 + $0x204] sm:$0xf]  ;;  %v5211_v15 = vld [vmem:[#allocation2 + $0x208] sm:$0xf0]  ;;  %v7065_v51 = vor.u32 %v5907_v4, %v5123_v18 }
  0xf7   : > { %2305 = vmatpush.bf16.msrb.mxu3 %v7024_v37  ;;  %2344 = vmatpush.bf16.msrb.mxu2 %v7033_v54  ;;  %8546 = vst [vmem:[#allocation216_spill] sm:$0xff] %v7054_v56  ;;  %v5924_v37 = vld [vmem:[#allocation2 + $0x1d4] sm:$0xf0]  ;;  %v5113_v44 = vld [vmem:[#allocation2 + $0x140] sm:$0xf]  ;;  %v7067_v63 = vor.u32 %v5929_v23, %v5211_v15 }
  0xf8   : > { %8547 = vst [vmem:[#allocation217_spill] sm:$0xff] %v7059_v19  ;;  %v7061_v0 = vor.u32 %v5924_v37, %v5185_v57  ;;  %v5906_v27 = vld [vmem:[#allocation2 + $0x144] sm:$0xf0]  ;;  %v5177_v40 = vld [vmem:[#allocation2 + $0x1c0] sm:$0xf]  ;;  %v823_v57 = vpop.f32.mrf.mxu1 }
  0xf9   : > { %2336 = vmatpush.bf16.msrb.mxu1 %v7040_v50  ;;  %2319 = vmatpush.bf16.msrb.mxu0 %v7046_v9  ;;  %8549 = vst [vmem:[#allocation219_spill] sm:$0xff] %v7065_v51  ;;  %v5922_v32 = vld [vmem:[#allocation2 + $0x1c4] sm:$0xf0]  ;;  %v5905_v50 = vld [vmem:[#allocation2 + $0x144] sm:$0xf] }
  0xfa   : > { %8548 = vst [vmem:[#allocation218_spill] sm:$0xff] %v7061_v0  ;;  %v5115_v47 = vld [vmem:[#allocation2 + $0x148] sm:$0xf0]  ;;  %v5927_v62 = vld [vmem:[#allocation2 + $0x1f4] sm:$0xf]  ;;  %v7075_v18 = vor.u32 %v5922_v32, %v5177_v40 }
  0xfb   : > { %2306 = vmatpush.bf16.msrb.mxu3 %v7044_v58  ;;  %2345 = vmatpush.bf16.msrb.mxu2 %v7052_v31  ;;  %8550 = vst [vmem:[#allocation220_spill] sm:$0xff] %v7067_v63  ;;  %v5203_v37 = vld [vmem:[#allocation2 + $0x1f8] sm:$0xf0]  ;;  %v7073_v31 = vor.u32 %v5906_v27, %v5113_v44  ;;  %v5105_v4 = vld [vmem:[#allocation2 + $0x130] sm:$0xf]  ;;  %v7079_v15 = vor.u32 %v5905_v50, %v5115_v47 }
  0xfc   : > { %8552 = vst [vmem:[#allocation222_spill] sm:$0xff] %v7075_v18  ;;  %v5904_v23 = vld [vmem:[#allocation2 + $0x134] sm:$0xf0]  ;;  %v7081_v9 = vor.u32 %v5927_v62, %v5203_v37  ;;  %v5107_v54 = vld [vmem:[#allocation2 + $0x138] sm:$0xf0] }
  0xfd   : > { %2355 = vmatpush.bf16.msra.mxu1 %v7054_v56  ;;  %2320 = vmatpush.bf16.msrb.mxu0 %v7061_v0  ;;  %8551 = vst [vmem:[#allocation221_spill] sm:$0xff] %v7073_v31  ;;  %v5169_v56 = vld [vmem:[#allocation2 + $0x1b0] sm:$0xf]  ;;  %v5920_v58 = vld [vmem:[#allocation2 + $0x1b4] sm:$0xf0]  ;;  %v7085_v44 = vor.u32 %v5904_v23, %v5105_v4 }
  0xfe   : > { %8553 = vst [vmem:[#allocation223_spill] sm:$0xff] %v7079_v15  ;;  %v5925_v0 = vld [vmem:[#allocation2 + $0x1e4] sm:$0xf]  ;;  %v5195_v57 = vld [vmem:[#allocation2 + $0x1e8] sm:$0xf0]  ;;  %v7087_v27 = vor.u32 %v5920_v58, %v5169_v56 }
  0xff   : > { %2307 = vmatpush.bf16.msrb.mxu3 %v7059_v19  ;;  %2346 = vmatpush.bf16.msrb.mxu2 %v7065_v51  ;;  %8554 = vst [vmem:[#allocation224_spill] sm:$0xff] %v7081_v9  ;;  %v5903_v19 = vld [vmem:[#allocation2 + $0x134] sm:$0xf]  ;;  %v5097_v40 = vld [vmem:[#allocation2 + $0x120] sm:$0xf]  ;;  %v7093_v62 = vor.u32 %v5925_v0, %v5195_v57 }
 0x100   : > { %8555 = vst [vmem:[#allocation225_spill] sm:$0xff] %v7085_v44  ;;  %v5902_v32 = vld [vmem:[#allocation2 + $0x124] sm:$0xf0]  ;;  %v5161_v50 = vld [vmem:[#allocation2 + $0x1a0] sm:$0xf]  ;;  %v7091_v47 = vor.u32 %v5903_v19, %v5107_v54 }
 0x101   : > { %2356 = vmatpush.bf16.msra.mxu1 %v7067_v63  ;;  %2321 = vmatpush.bf16.msrb.mxu0 %v7075_v18  ;;  %8556 = vst [vmem:[#allocation226_spill] sm:$0xff] %v7087_v27  ;;  %v5918_v37 = vld [vmem:[#allocation2 + $0x1a4] sm:$0xf0]  ;;  %v5901_v51 = vld [vmem:[#allocation2 + $0x124] sm:$0xf] }
 0x102   : > { %8557 = vst [vmem:[#allocation227_spill] sm:$0xff] %v7091_v47  ;;  %v5923_v63 = vld [vmem:[#allocation2 + $0x1d4] sm:$0xf]  ;;  %v5187_v18 = vld [vmem:[#allocation2 + $0x1d8] sm:$0xf0]  ;;  %v7101_v54 = vor.u32 %v5918_v37, %v5161_v50 }
 0x103   : > { %2308 = vmatpush.bf16.msrb.mxu3 %v7073_v31  ;;  %2347 = vmatpush.bf16.msrb.mxu2 %v7079_v15  ;;  %8558 = vst [vmem:[#allocation228_spill] sm:$0xff] %v7093_v62  ;;  %v5099_v31 = vld [vmem:[#allocation2 + $0x128] sm:$0xf0]  ;;  %v5935_v4 = vld [vmem:[#allocation2 + $0x234] sm:$0xf]  ;;  %v7097_v15 = vpop.f32.mrf.mxu1  ;;  %v7107_v6 = vor.u32 %v5923_v63, %v5187_v18 }
 0x104   : > { %v5235_v23 = vld [vmem:[#allocation2 + $0x238] sm:$0xf0]  ;;  %v5299_v58 = vld [vmem:[#allocation2 + $0x610] sm:$0xf]  ;;  %v5988_v56 = vld [vmem:[#allocation2 + $0x614] sm:$0xf0]  ;;  %v7105_v57 = vor.u32 %v5901_v51, %v5099_v31  ;;  %5239 = vmatmul.msk.bf16.vlgmr.msrb.gmra.mxu1 %vm472_vm0, %v6429_v61  ;;  %v1089_v31 = vpop.f32.mrf.mxu0 }
 0x105   : > { %2357 = vmatpush.bf16.msra.mxu1 %v7081_v9  ;;  %2322 = vmatpush.bf16.msrb.mxu0 %v7087_v27  ;;  %v7099_v9 = vor.u32 %v5902_v32, %v5097_v40  ;;  %8559 = vst [vmem:[#allocation229_spill] sm:$0xff] %v7101_v54  ;;  %v5379_v19 = vld [vmem:[#allocation2 + $0x6b0] sm:$0xf]  ;;  %v6008_v0 = vld [vmem:[#allocation2 + $0x6b4] sm:$0xf0]  ;;  %v7111_v27 = vor.u32 %v5935_v4, %v5235_v23 }
 0x106   : > { %8560 = vst [vmem:[#allocation230_spill] sm:$0xff] %v7105_v57  ;;  %v5921_v43 = vld [vmem:[#allocation2 + $0x1c4] sm:$0xf]  ;;  %v7113_v40 = vor.u32 %v5988_v56, %v5299_v58  ;;  %v5179_v32 = vld [vmem:[#allocation2 + $0x1c8] sm:$0xf0] }
 0x107   : > { %2309 = vmatpush.bf16.msrb.mxu3 %v7085_v44  ;;  %2348 = vmatpush.bf16.msrb.mxu2 %v7091_v47  ;;  %8561 = vst [vmem:[#allocation231_spill] sm:$0xff] %v7107_v6  ;;  %v5933_v50 = vld [vmem:[#allocation2 + $0x224] sm:$0xf]  ;;  %v5227_v37 = vld [vmem:[#allocation2 + $0x228] sm:$0xf0]  ;;  %v7115_v44 = vor.u32 %v6008_v0, %v5379_v19  ;;  %v7121_v4 = vor.u32 %v5921_v43, %v5179_v32 }
 0x108   : > { %8562 = vst [vmem:[#allocation232_spill] sm:$0xff] %v7111_v27  ;;  %v5291_v47 = vld [vmem:[#allocation2 + $0x600] sm:$0xf]  ;;  %v5986_v33 = vld [vmem:[#allocation2 + $0x604] sm:$0xf0]  ;;  %v7125_v56 = vor.u32 %v5933_v50, %v5227_v37  ;;  %v1076_v50 = vpop.f32.mrf.mxu3 }
 0x109   : > { %2358 = vmatpush.bf16.msra.mxu1 %v7093_v62  ;;  %8563 = vst [vmem:[#allocation233_spill] sm:$0xff] %v7113_v40  ;;  %v5371_v62 = vld [vmem:[#allocation2 + $0x6a0] sm:$0xf]  ;;  %2323 = vmatpush.bf16.msrb.mxu0 %v7101_v54  ;;  %v6006_v51 = vld [vmem:[#allocation2 + $0x6a4] sm:$0xf0]  ;;  %v7127_v19 = vor.u32 %v5986_v33, %v5291_v47 }
 0x10a   : > { %8564 = vst [vmem:[#allocation234_spill] sm:$0xff] %v7115_v44  ;;  %v5363_v63 = vld [vmem:[#allocation2 + $0x690] sm:$0xf]  ;;  %v6004_v18 = vld [vmem:[#allocation2 + $0x694] sm:$0xf0] }
 0x10b   : > { %2310 = vmatpush.bf16.msrb.mxu3 %v7099_v9  ;;  %2349 = vmatpush.bf16.msrb.mxu2 %v7105_v57  ;;  %8565 = vst [vmem:[#allocation235_spill] sm:$0xff] %v7121_v4  ;;  %v6003_v23 = vld [vmem:[#allocation2 + $0x694] sm:$0xf]  ;;  %v5365_v58 = vld [vmem:[#allocation2 + $0x698] sm:$0xf0]  ;;  %v7131_v57 = vor.u32 %v6006_v51, %v5371_v62  ;;  %v7133_v43 = vor.u32 %v6004_v18, %v5363_v63  ;;  %v1104_v37 = vpop.f32.mrf.mxu1 }
 0x10c   : > { %8566 = vst [vmem:[#allocation236_spill] sm:$0xff] %v7125_v56  ;;  %v5919_v0 = vld [vmem:[#allocation2 + $0x1b4] sm:$0xf]  ;;  %v5171_v54 = vld [vmem:[#allocation2 + $0x1b8] sm:$0xf0]  ;;  %2324 = vmatmul.bf16.vlgmr.msrb.gmra.mxu0 %v6502_v20 }
 0x10d   : > { %2359 = vmatpush.bf16.msra.mxu1 %v7107_v6  ;;  %2598 = vmatpush.bf16.msra.mxu0 %v7113_v40  ;;  %8567 = vst [vmem:[#allocation237_spill] sm:$0xff] %v7127_v19  ;;  %v5283_v32 = vld [vmem:[#allocation2 + $0x5f0] sm:$0xf]  ;;  %v5984_v6 = vld [vmem:[#allocation2 + $0x5f4] sm:$0xf0]  ;;  %v1115_v40 = vpop.f32.mrf.mxu2  ;;  %v7140_v62 = vor.u32 %v5919_v0, %v5171_v54 }
 0x10e   : > { %2311 = vmatmul.bf16.vlgmr.msrb.gmra.mxu3 %v6478_v41  ;;  %8568 = vst [vmem:[#allocation238_spill] sm:$0xff] %v7131_v57  ;;  %2350 = vmatmul.bf16.vlgmr.msrb.gmra.mxu2 %v6478_v41  ;;  %v5355_v33 = vld [vmem:[#allocation2 + $0x680] sm:$0xf]  ;;  %v6002_v47 = vld [vmem:[#allocation2 + $0x684] sm:$0xf0]  ;;  %v7144_v41 = vor.u32 %v5984_v6, %v5283_v32 }
 0x10f   : > { %2374 = vmatpush.bf16.msra.mxu3 %v7111_v27  ;;  %2630 = vmatpush.bf16.msra.mxu2 %v7115_v44  ;;  %8569 = vst [vmem:[#allocation239_spill] sm:$0xff] %v7133_v43  ;;  %v7136_v27 = vor.u32 %v6003_v23, %v5365_v58  ;;  %v1090_v44 = vadd.f32 %v1089_v31, %v1076_v50  ;;  %v6001_v51 = vld [vmem:[#allocation2 + $0x684] sm:$0xf]  ;;  %v5357_v63 = vld [vmem:[#allocation2 + $0x688] sm:$0xf0] }
 0x110   : > { %8571 = vst [vmem:[#allocation241_spill] sm:$0xff] %v7140_v62  ;;  %v5917_v18 = vld [vmem:[#allocation2 + $0x1a4] sm:$0xf]  ;;  %v5163_v23 = vld [vmem:[#allocation2 + $0x1a8] sm:$0xf0]  ;;  %v7149_v50 = vor.u32 %v6002_v47, %v5355_v33 }
 0x111   : > { %8570 = vst [vmem:[#allocation240_spill] sm:$0xff] %v7136_v27  ;;  %2360 = vmatpush.bf16.msra.mxu1 %v7121_v4  ;;  %2599 = vmatpush.bf16.msra.mxu0 %v7127_v19  ;;  %v5275_v58 = vld [vmem:[#allocation2 + $0x5e0] sm:$0xf]  ;;  %v1103_v31 = vadd.f32 %v7097_v15, %v1090_v44  ;;  %v5982_v54 = vld [vmem:[#allocation2 + $0x5e4] sm:$0xf0]  ;;  %v1091_v4 = vpop.f32.mrf.mxu0  ;;  %v7152_v19 = vor.u32 %v6001_v51, %v5357_v63 }
 0x112   : > { %8572 = vst [vmem:[#allocation242_spill] sm:$0xff] %v7144_v41  ;;  %v5987_v0 = vld [vmem:[#allocation2 + $0x614] sm:$0xf]  ;;  %v5301_v37 = vld [vmem:[#allocation2 + $0x618] sm:$0xf0]  ;;  %v7161_v33 = vor.u32 %v5982_v54, %v5275_v58 }
 0x113   : > { %2375 = vmatpush.bf16.msra.mxu3 %v7125_v56  ;;  %2631 = vmatpush.bf16.msra.mxu2 %v7131_v57  ;;  %8573 = vst [vmem:[#allocation243_spill] sm:$0xff] %v7149_v50  ;;  %v5347_v6 = vld [vmem:[#allocation2 + $0x670] sm:$0xf]  ;;  %v6000_v32 = vld [vmem:[#allocation2 + $0x674] sm:$0xf0]  ;;  %v7155_v56 = vadd.f32 %v1103_v31, %v7036_v2  ;;  %v7163_v4 = vor.u32 %v5987_v0, %v5301_v37 }
 0x114   : > { %8574 = vst [vmem:[#allocation244_spill] sm:$0xff] %v7152_v19  ;;  %v5999_v15 = vld [vmem:[#allocation2 + $0x674] sm:$0xf]  ;;  %v5349_v44 = vld [vmem:[#allocation2 + $0x678] sm:$0xf0]  ;;  %v7166_v51 = vor.u32 %v6000_v32, %v5347_v6 }
 0x115   : > { %2361 = vmatpush.bf16.msra.mxu1 %v7140_v62  ;;  %2600 = vmatpush.bf16.msra.mxu0 %v7144_v41  ;;  %8576 = vst [vmem:[#allocation246_spill] sm:$0xff] %v7161_v33  ;;  %v5267_v47 = vld [vmem:[#allocation2 + $0x5d0] sm:$0xf]  ;;  %v5980_v63 = vld [vmem:[#allocation2 + $0x5d4] sm:$0xf0]  ;;  %v1128_v62 = vpop.f32.mrf.mxu1  ;;  %v1117_v58 = vpop.f32.mrf.mxu2 }
 0x116   : > { %8577 = vst [vmem:[#allocation247_spill] sm:$0xff] %v7163_v4  ;;  %v5985_v2 = vld [vmem:[#allocation2 + $0x604] sm:$0xf]  ;;  %v5293_v31 = vld [vmem:[#allocation2 + $0x608] sm:$0xf0]  ;;  %v1129_v54 = vadd.f32 %v1128_v62, %v1115_v40  ;;  %v7174_v6 = vor.u32 %v5980_v63, %v5267_v47 }
 0x117   : > { %2611 = vmatpush.bf16.msrb.mxu3 %v7133_v43  ;;  %2650 = vmatpush.bf16.msrb.mxu2 %v7136_v27  ;;  %v7158_v43 = vor.u32 %v5917_v18, %v5163_v23  ;;  %8578 = vst [vmem:[#allocation248_spill] sm:$0xff] %v7166_v51  ;;  %v7169_v18 = vor.u32 %v5999_v15, %v5349_v44  ;;  %v1078_v23 = vpop.f32.mrf.mxu3  ;;  %v5339_v27 = vld [vmem:[#allocation2 + $0x660] sm:$0xf]  ;;  %v5998_v41 = vld [vmem:[#allocation2 + $0x664] sm:$0xf0] }
 0x118   : > { %v5997_v0 = vld [vmem:[#allocation2 + $0x664] sm:$0xf]  ;;  %v5341_v37 = vld [vmem:[#allocation2 + $0x668] sm:$0xf0]  ;;  %8580 = vst [vmem:[#allocation250_spill] sm:$0xff] %v7174_v6  ;;  %v7176_v32 = vor.u32 %v5985_v2, %v5293_v31  ;;  %v7179_v44 = vor.u32 %v5998_v41, %v5339_v27 }
 0x119   : > { %8575 = vst [vmem:[#allocation245_spill] sm:$0xff] %v7158_v43  ;;  %2362 = vmatpush.bf16.msra.mxu1 %v7158_v43  ;;  %2601 = vmatpush.bf16.msra.mxu0 %v7161_v33  ;;  %v5259_v15 = vld [vmem:[#allocation2 + $0x5c0] sm:$0xf]  ;;  %v5978_v23 = vld [vmem:[#allocation2 + $0x5c4] sm:$0xf0]  ;;  %v7183_v40 = vor.u32 %v5997_v0, %v5341_v37 }
 0x11a   : > { %8579 = vst [vmem:[#allocation249_spill] sm:$0xff] %v7169_v18  ;;  %v5285_v43 = vld [vmem:[#allocation2 + $0x5f8] sm:$0xf0]  ;;  %v5331_v62 = vld [vmem:[#allocation2 + $0x650] sm:$0xf]  ;;  %v7187_v2 = vor.u32 %v5978_v23, %v5259_v15 }
 0x11b   : > { %2612 = vmatpush.bf16.msrb.mxu3 %v7149_v50  ;;  %2651 = vmatpush.bf16.msrb.mxu2 %v7152_v19  ;;  %8581 = vst [vmem:[#allocation251_spill] sm:$0xff] %v7176_v32  ;;  %v5983_v19 = vld [vmem:[#allocation2 + $0x5f4] sm:$0xf]  ;;  %v5996_v58 = vld [vmem:[#allocation2 + $0x654] sm:$0xf0] }
 0x11c   : > { %8582 = vst [vmem:[#allocation252_spill] sm:$0xff] %v7179_v44  ;;  %2363 = vmatmul.bf16.vlgmr.msra.gmra.mxu1 %v6502_v20  ;;  %v5995_v47 = vld [vmem:[#allocation2 + $0x654] sm:$0xf]  ;;  %v5333_v63 = vld [vmem:[#allocation2 + $0x658] sm:$0xf0]  ;;  %v7189_v27 = vor.u32 %v5983_v19, %v5285_v43  ;;  %v7192_v31 = vor.u32 %v5996_v58, %v5331_v62 }
 0x11d   : > { %2637 = vmatpush.bf16.msrb.mxu1 %v7163_v4  ;;  %8583 = vst [vmem:[#allocation253_spill] sm:$0xff] %v7183_v40  ;;  %2602 = vmatpush.bf16.msra.mxu0 %v7174_v6  ;;  %v5251_v41 = vld [vmem:[#allocation2 + $0x5b0] sm:$0xf]  ;;  %v5976_v20 = vld [vmem:[#allocation2 + $0x5b4] sm:$0xf0]  ;;  %v7197_v6 = vor.u32 %v5995_v47, %v5333_v63  ;;  %v1130_v23 = vpop.f32.mrf.mxu1 }
 0x11e   : > { %8584 = vst [vmem:[#allocation254_spill] sm:$0xff] %v7187_v2  ;;  %v5981_v0 = vld [vmem:[#allocation2 + $0x5e4] sm:$0xf]  ;;  %v5277_v37 = vld [vmem:[#allocation2 + $0x5e8] sm:$0xf0]  ;;  %5240 = vmatmul.msk.bf16.vlgmr.msra.gmra.mxu3 %vm472_vm0, %v6429_v61  ;;  %5385 = vmatmul.msk.bf16.vlgmr.msra.gmra.mxu2 %vm472_vm0, %v6597_v10  ;;  %v7207_v61 = vpop.f32.mrf.mxu2 }
 0x11f   : > { %2613 = vmatpush.bf16.msrb.mxu3 %v7166_v51  ;;  %2652 = vmatpush.bf16.msrb.mxu2 %v7169_v18  ;;  %8585 = vst [vmem:[#allocation255_spill] sm:$0xff] %v7189_v27  ;;  %v5994_v15 = vld [vmem:[#allocation2 + $0x644] sm:$0xf0]  ;;  %v1141_v19 = vpop.f32.mrf.mxu3  ;;  %v5993_v43 = vld [vmem:[#allocation2 + $0x644] sm:$0xf] }
 0x120   : > { %8586 = vst [vmem:[#allocation256_spill] sm:$0xff] %v7192_v31  ;;  %v5325_v62 = vld [vmem:[#allocation2 + $0x648] sm:$0xf0]  ;;  %v1142_v58 = vadd.f32 %v1141_v19, %v1129_v54  ;;  %v5243_v47 = vld [vmem:[#allocation2 + $0x5a0] sm:$0xf] }
 0x121   : > { %2638 = vmatpush.bf16.msrb.mxu1 %v7176_v32  ;;  %8587 = vst [vmem:[#allocation257_spill] sm:$0xff] %v7197_v6  ;;  %v5323_v32 = vld [vmem:[#allocation2 + $0x640] sm:$0xf]  ;;  %2603 = vmatpush.bf16.msra.mxu0 %v7187_v2  ;;  %v5974_v63 = vld [vmem:[#allocation2 + $0x5a4] sm:$0xf0]  ;;  %v7216_v54 = vor.u32 %v5993_v43, %v5325_v62 }
 0x122   : > { %v7210_v23 = vor.u32 %v5994_v15, %v5323_v32  ;;  %v5315_v18 = vld [vmem:[#allocation2 + $0x630] sm:$0xf]  ;;  %v5979_v51 = vld [vmem:[#allocation2 + $0x5d4] sm:$0xf]  ;;  %v5269_v33 = vld [vmem:[#allocation2 + $0x5d8] sm:$0xf0]  ;;  %v7214_v2 = vadd.f32 %v1142_v58, %v7050_v35  ;;  %v7220_v32 = vor.u32 %v5974_v63, %v5243_v47 }
 0x123   : > { %2614 = vmatpush.bf16.msrb.mxu3 %v7179_v44  ;;  %2653 = vmatpush.bf16.msrb.mxu2 %v7183_v40  ;;  %v7203_v40 = vor.u32 %v5976_v20, %v5251_v41  ;;  %v7205_v44 = vor.u32 %v5981_v0, %v5277_v37  ;;  %8591 = vst [vmem:[#allocation261_spill] sm:$0xff] %v7216_v54  ;;  %v5992_v41 = vld [vmem:[#allocation2 + $0x634] sm:$0xf0]  ;;  %v6007_v20 = vld [vmem:[#allocation2 + $0x6b4] sm:$0xf] }
 0x124   : > { %8590 = vst [vmem:[#allocation260_spill] sm:$0xff] %v7210_v23  ;;  %v5381_v0 = vld [vmem:[#allocation2 + $0x6b8] sm:$0xf0]  ;;  %v5991_v37 = vld [vmem:[#allocation2 + $0x634] sm:$0xf]  ;;  %v7222_v15 = vor.u32 %v5979_v51, %v5269_v33  ;;  %v7225_v35 = vor.u32 %v5992_v41, %v5315_v18 }
 0x125   : > { %2639 = vmatpush.bf16.msrb.mxu1 %v7189_v27  ;;  %8588 = vst [vmem:[#allocation258_spill] sm:$0xff] %v7203_v40  ;;  %v5317_v19 = vld [vmem:[#allocation2 + $0x638] sm:$0xf0]  ;;  %2604 = vmatpush.bf16.msra.mxu0 %v7203_v40  ;;  %v7227_v43 = vor.u32 %v6007_v20, %v5381_v0  ;;  %v5977_v62 = vld [vmem:[#allocation2 + $0x5c4] sm:$0xf] }
 0x126   : > { %8589 = vst [vmem:[#allocation259_spill] sm:$0xff] %v7205_v44  ;;  %v5261_v58 = vld [vmem:[#allocation2 + $0x5c8] sm:$0xf0]  ;;  %v5989_v27 = vld [vmem:[#allocation2 + $0x624] sm:$0xf]  ;;  %v7230_v40 = vor.u32 %v5991_v37, %v5317_v19  ;;  %v1426_v37 = vpop.f32.mrf.mxu2 }
 0x127   : > { %2615 = vmatpush.bf16.msrb.mxu3 %v7192_v31  ;;  %2654 = vmatpush.bf16.msrb.mxu2 %v7197_v6  ;;  %8592 = vst [vmem:[#allocation262_spill] sm:$0xff] %v7220_v32  ;;  %v5307_v31 = vld [vmem:[#allocation2 + $0x620] sm:$0xf]  ;;  %v5990_v6 = vld [vmem:[#allocation2 + $0x624] sm:$0xf0]  ;;  %v1143_v63 = vpop.f32.mrf.mxu3  ;;  %v7236_v18 = vor.u32 %v5977_v62, %v5261_v58 }
 0x128   : > { %8593 = vst [vmem:[#allocation263_spill] sm:$0xff] %v7222_v15  ;;  %v5309_v47 = vld [vmem:[#allocation2 + $0x628] sm:$0xf0]  ;;  %v6005_v33 = vld [vmem:[#allocation2 + $0x6a4] sm:$0xf]  ;;  %v7240_v19 = vor.u32 %v5990_v6, %v5307_v31 }
 0x129   : > { %2640 = vmatpush.bf16.msrb.mxu1 %v7205_v44  ;;  %8594 = vst [vmem:[#allocation264_spill] sm:$0xff] %v7225_v35  ;;  %v7232_v44 = vpop.f32.mrf.mxu0  ;;  %v5373_v51 = vld [vmem:[#allocation2 + $0x6a8] sm:$0xf0]  ;;  %v5445_v4 = vld [vmem:[#allocation2 + $0x850] sm:$0xf]  ;;  %2605 = vmatpush.bf16.msra.mxu0 %v7220_v32  ;;  %v7245_v32 = vor.u32 %v5989_v27, %v5309_v47 }
 0x12a   : > { %8595 = vst [vmem:[#allocation265_spill] sm:$0xff] %v7227_v43  ;;  %v6024_v50 = vld [vmem:[#allocation2 + $0x854] sm:$0xf0]  ;;  %v6023_v20 = vld [vmem:[#allocation2 + $0x854] sm:$0xf]  ;;  %v7242_v63 = vor.u32 %v6005_v33, %v5373_v51 }
 0x12b   : > { %2616 = vmatpush.bf16.msrb.mxu3 %v7210_v23  ;;  %2655 = vmatpush.bf16.msrb.mxu2 %v7216_v54  ;;  %8596 = vst [vmem:[#allocation266_spill] sm:$0xff] %v7230_v40  ;;  %v5509_v23 = vld [vmem:[#allocation2 + $0x8d0] sm:$0xf]  ;;  %v6040_v41 = vld [vmem:[#allocation2 + $0x8d4] sm:$0xf0]  ;;  %v7247_v62 = vor.u32 %v6024_v50, %v5445_v4 }
 0x12c   : > { %8597 = vst [vmem:[#allocation267_spill] sm:$0xff] %v7236_v18  ;;  %v5447_v0 = vld [vmem:[#allocation2 + $0x858] sm:$0xf0]  ;;  %v5975_v54 = vld [vmem:[#allocation2 + $0x5b4] sm:$0xf]  ;;  %2606 = vmatmul.bf16.vlgmr.msra.gmra.mxu0 %v6609_v53  ;;  %v7250_v58 = vor.u32 %v6040_v41, %v5509_v23 }
 0x12d   : > { %2641 = vmatpush.bf16.msrb.mxu1 %v7222_v15  ;;  %2669 = vmatpush.bf16.msrb.mxu0 %v7227_v43  ;;  %8598 = vst [vmem:[#allocation268_spill] sm:$0xff] %v7240_v19  ;;  %v5253_v57 = vld [vmem:[#allocation2 + $0x5b8] sm:$0xf0]  ;;  %v7252_v37 = vor.u32 %v6023_v20, %v5447_v0  ;;  %v6022_v43 = vld [vmem:[#allocation2 + $0x844] sm:$0xf0] }
 0x12e   : > { %8599 = vst [vmem:[#allocation269_spill] sm:$0xff] %v7242_v63  ;;  %v5501_v6 = vld [vmem:[#allocation2 + $0x8c0] sm:$0xf]  ;;  %v7255_v31 = vor.u32 %v5975_v54, %v5253_v57  ;;  %v6038_v33 = vld [vmem:[#allocation2 + $0x8c4] sm:$0xf0] }
 0x12f   : > { %2617 = vmatpush.bf16.msrb.mxu3 %v7225_v35  ;;  %2656 = vmatpush.bf16.msrb.mxu2 %v7230_v40  ;;  %8600 = vst [vmem:[#allocation270_spill] sm:$0xff] %v7245_v32  ;;  %v5437_v35 = vld [vmem:[#allocation2 + $0x840] sm:$0xf]  ;;  %v6021_v51 = vld [vmem:[#allocation2 + $0x844] sm:$0xf]  ;;  %v7265_v57 = vor.u32 %v6038_v33, %v5501_v6 }
 0x130   : > { %8601 = vst [vmem:[#allocation271_spill] sm:$0xff] %v7247_v62  ;;  %v5439_v40 = vld [vmem:[#allocation2 + $0x848] sm:$0xf0]  ;;  %v5973_v50 = vld [vmem:[#allocation2 + $0x5a4] sm:$0xf]  ;;  %v7261_v23 = vor.u32 %v6022_v43, %v5437_v35 }
 0x131   : > { %8602 = vst [vmem:[#allocation272_spill] sm:$0xff] %v7250_v58  ;;  %2642 = vmatpush.bf16.msrb.mxu1 %v7236_v18  ;;  %2670 = vmatpush.bf16.msrb.mxu0 %v7242_v63  ;;  %v5245_v4 = vld [vmem:[#allocation2 + $0x5a8] sm:$0xf0]  ;;  %v1400_v27 = vpop.f32.mrf.mxu0  ;;  %v5525_v47 = vld [vmem:[#allocation2 + $0x8f0] sm:$0xf]  ;;  %v7267_v54 = vor.u32 %v6021_v51, %v5439_v40  ;;  %v1450_v51 = vpop.f32.mrf.mxu2 }
 0x132   : > { %8603 = vst [vmem:[#allocation273_spill] sm:$0xff] %v7252_v37  ;;  %v6044_v41 = vld [vmem:[#allocation2 + $0x8f4] sm:$0xf0]  ;;  %v5429_v20 = vld [vmem:[#allocation2 + $0x830] sm:$0xf]  ;;  %v7271_v27 = vor.u32 %v5973_v50, %v5245_v4 }
 0x133   : > { %8604 = vst [vmem:[#allocation274_spill] sm:$0xff] %v7255_v31  ;;  %2618 = vmatpush.bf16.msrb.mxu3 %v7240_v19  ;;  %2657 = vmatpush.bf16.msrb.mxu2 %v7245_v32  ;;  %v6020_v0 = vld [vmem:[#allocation2 + $0x834] sm:$0xf0]  ;;  %v5493_v63 = vld [vmem:[#allocation2 + $0x8b0] sm:$0xf] }
 0x134   : > { %8605 = vst [vmem:[#allocation275_spill] sm:$0xff] %v7261_v23  ;;  %v6036_v35 = vld [vmem:[#allocation2 + $0x8b4] sm:$0xf0]  ;;  %v6019_v43 = vld [vmem:[#allocation2 + $0x834] sm:$0xf]  ;;  %v7278_v33 = vor.u32 %v6020_v0, %v5429_v20 }
 0x135   : > { %2908 = vmatpush.bf16.msra.mxu0 %v7250_v58  ;;  %8606 = vst [vmem:[#allocation276_spill] sm:$0xff] %v7265_v57  ;;  %2643 = vmatpush.bf16.msrb.mxu1 %v7255_v31  ;;  %v1411_v58 = vpop.f32.mrf.mxu3  ;;  %v5421_v6 = vld [vmem:[#allocation2 + $0x820] sm:$0xf]  ;;  %v6018_v32 = vld [vmem:[#allocation2 + $0x824] sm:$0xf0]  ;;  %v7282_v4 = vor.u32 %v6036_v35, %v5493_v63 }
 0x136   : > { %2619 = vmatmul.bf16.vlgmr.msrb.gmra.mxu3 %v6613_v11  ;;  %2658 = vmatmul.bf16.vlgmr.msrb.gmra.mxu2 %v6613_v11  ;;  %v1412_v40 = vadd.f32 %v1411_v58, %v7232_v44  ;;  %8608 = vst [vmem:[#allocation278_spill] sm:$0xff] %v7278_v33  ;;  %v5517_v31 = vld [vmem:[#allocation2 + $0x8e0] sm:$0xf]  ;;  %v6042_v50 = vld [vmem:[#allocation2 + $0x8e4] sm:$0xf0] }
 0x137   : > { %2895 = vmatpush.bf16.msra.mxu3 %v7247_v62  ;;  %2934 = vmatpush.bf16.msra.mxu2 %v7252_v37  ;;  %v5431_v62 = vld [vmem:[#allocation2 + $0x838] sm:$0xf0]  ;;  %v7274_v37 = vor.u32 %v6044_v41, %v5525_v47  ;;  %8609 = vst [vmem:[#allocation279_spill] sm:$0xff] %v7282_v4  ;;  %v1437_v47 = vpop.f32.mrf.mxu1  ;;  %v5485_v41 = vld [vmem:[#allocation2 + $0x8a0] sm:$0xf] }
 0x138   : > { %v7284_v19 = vor.u32 %v6019_v43, %v5431_v62  ;;  %v6039_v18 = vld [vmem:[#allocation2 + $0x8d4] sm:$0xf]  ;;  %v1425_v44 = vadd.f32 %v7207_v61, %v1412_v40  ;;  %v1451_v58 = vadd.f32 %v1450_v51, %v1437_v47  ;;  %v6034_v20 = vld [vmem:[#allocation2 + $0x8a4] sm:$0xf0]  ;;  %v6017_v0 = vld [vmem:[#allocation2 + $0x824] sm:$0xf]  ;;  %v7295_v62 = vor.u32 %v6018_v32, %v5421_v6 }
 0x139   : > { %8607 = vst [vmem:[#allocation277_spill] sm:$0xff] %v7274_v37  ;;  %2909 = vmatpush.bf16.msra.mxu0 %v7265_v57  ;;  %2644 = vmatpush.bf16.msrb.mxu1 %v7271_v27  ;;  %v5423_v15 = vld [vmem:[#allocation2 + $0x828] sm:$0xf0]  ;;  %v7289_v57 = vor.u32 %v6042_v50, %v5517_v31  ;;  %v5413_v61 = vld [vmem:[#allocation2 + $0x810] sm:$0xf]  ;;  %v1463_v40 = vpop.f32.mrf.mxu0  ;;  %v7301_v51 = vor.u32 %v6034_v20, %v5485_v41 }
 0x13a   : > { %8610 = vst [vmem:[#allocation280_spill] sm:$0xff] %v7284_v19  ;;  %v7292_v63 = vadd.f32 %v1425_v44, %v7155_v56  ;;  %v6016_v43 = vld [vmem:[#allocation2 + $0x814] sm:$0xf0]  ;;  %v7303_v31 = vor.u32 %v6017_v0, %v5423_v15  ;;  %v5477_v50 = vld [vmem:[#allocation2 + $0x890] sm:$0xf]  ;;  %v1464_v32 = vadd.f32 %v1463_v40, %v1451_v58  ;;  %v1452_v58 = vpop.f32.mrf.mxu2 }
 0x13b   : > { %2896 = vmatpush.bf16.msra.mxu3 %v7261_v23  ;;  %2935 = vmatpush.bf16.msra.mxu2 %v7267_v54  ;;  %v5511_v23 = vld [vmem:[#allocation2 + $0x8d8] sm:$0xf0]  ;;  %8611 = vst [vmem:[#allocation281_spill] sm:$0xff] %v7289_v57  ;;  %v6037_v56 = vld [vmem:[#allocation2 + $0x8c4] sm:$0xf]  ;;  %v7312_v15 = vor.u32 %v6016_v43, %v5413_v61 }
 0x13c   : > { %8612 = vst [vmem:[#allocation282_spill] sm:$0xff] %v7295_v62  ;;  %v7297_v35 = vor.u32 %v6039_v18, %v5511_v23  ;;  %v5503_v47 = vld [vmem:[#allocation2 + $0x8c8] sm:$0xf0]  ;;  %2645 = vmatmul.bf16.vlgmr.msrb.gmra.mxu1 %v6609_v53  ;;  %v6032_v6 = vld [vmem:[#allocation2 + $0x894] sm:$0xf0]  ;;  %5386 = vmatmul.msk.bf16.vlgmr.msrb.gmra.mxu0 %vm472_vm0, %v6597_v10 }
 0x13d   : > { %2927 = vmatpush.bf16.msra.mxu1 %v7274_v37  ;;  %2910 = vmatpush.bf16.msra.mxu0 %v7282_v4  ;;  %8614 = vst [vmem:[#allocation284_spill] sm:$0xff] %v7301_v51  ;;  %v6015_v18 = vld [vmem:[#allocation2 + $0x814] sm:$0xf]  ;;  %v5415_v23 = vld [vmem:[#allocation2 + $0x818] sm:$0xf0]  ;;  %v1413_v44 = vpop.f32.mrf.mxu3  ;;  %v7308_v4 = vadd.f32 %v1464_v32, %v7214_v2  ;;  %v7314_v41 = vor.u32 %v6037_v56, %v5503_v47 }
 0x13e   : > { %8613 = vst [vmem:[#allocation283_spill] sm:$0xff] %v7297_v35  ;;  %v5405_v20 = vld [vmem:[#allocation2 + $0x800] sm:$0xf]  ;;  %v6014_v0 = vld [vmem:[#allocation2 + $0x804] sm:$0xf0]  ;;  %v7318_v40 = vor.u32 %v6032_v6, %v5477_v50  ;;  %v7320_v44 = vor.u32 %v6015_v18, %v5415_v23 }
 0x13f   : > { %2897 = vmatpush.bf16.msra.mxu3 %v7278_v33  ;;  %2936 = vmatpush.bf16.msra.mxu2 %v7284_v19  ;;  %8615 = vst [vmem:[#allocation285_spill] sm:$0xff] %v7303_v31  ;;  %v1439_v2 = vpop.f32.mrf.mxu1  ;;  %v5469_v32 = vld [vmem:[#allocation2 + $0x880] sm:$0xf]  ;;  %v6030_v61 = vld [vmem:[#allocation2 + $0x884] sm:$0xf0]  ;;  %v7326_v47 = vor.u32 %v6014_v0, %v5405_v20 }
 0x140   : > { %8616 = vst [vmem:[#allocation286_spill] sm:$0xff] %v7312_v15  ;;  %v6013_v43 = vld [vmem:[#allocation2 + $0x804] sm:$0xf]  ;;  %v5407_v56 = vld [vmem:[#allocation2 + $0x808] sm:$0xf0]  ;;  %v7332_v23 = vor.u32 %v6030_v61, %v5469_v32 }
 0x141   : > { %2928 = vmatpush.bf16.msra.mxu1 %v7289_v57  ;;  %8617 = vst [vmem:[#allocation287_spill] sm:$0xff] %v7314_v41  ;;  %2911 = vmatpush.bf16.msra.mxu0 %v7301_v51  ;;  %v5495_v57 = vld [vmem:[#allocation2 + $0x8b8] sm:$0xf0]  ;;  %v5397_v6 = vld [vmem:[#allocation2 + $0x7f0] sm:$0xf]  ;;  %v7334_v58 = vor.u32 %v6013_v43, %v5407_v56 }
 0x142   : > { %8618 = vst [vmem:[#allocation288_spill] sm:$0xff] %v7318_v40  ;;  %v6012_v18 = vld [vmem:[#allocation2 + $0x7f4] sm:$0xf0]  ;;  %v5461_v2 = vld [vmem:[#allocation2 + $0x870] sm:$0xf] }
 0x143   : > { %2898 = vmatpush.bf16.msra.mxu3 %v7295_v62  ;;  %2937 = vmatpush.bf16.msra.mxu2 %v7303_v31  ;;  %8619 = vst [vmem:[#allocation289_spill] sm:$0xff] %v7320_v44  ;;  %v6035_v62 = vld [vmem:[#allocation2 + $0x8b4] sm:$0xf]  ;;  %v6033_v31 = vld [vmem:[#allocation2 + $0x8a4] sm:$0xf] }
 0x144   : > { %8620 = vst [vmem:[#allocation290_spill] sm:$0xff] %v7326_v47  ;;  %v7328_v50 = vor.u32 %v6035_v62, %v5495_v57  ;;  %v5487_v51 = vld [vmem:[#allocation2 + $0x8a8] sm:$0xf0]  ;;  %v5399_v20 = vld [vmem:[#allocation2 + $0x7f8] sm:$0xf0]  ;;  %v7338_v57 = vor.u32 %v6012_v18, %v5397_v6 }
 0x145   : > { %2947 = vmatpush.bf16.msrb.mxu1 %v7297_v35  ;;  %2912 = vmatpush.bf16.msra.mxu0 %v7318_v40  ;;  %8622 = vst [vmem:[#allocation292_spill] sm:$0xff] %v7332_v23  ;;  %v6028_v35 = vld [vmem:[#allocation2 + $0x874] sm:$0xf0]  ;;  %v7340_v62 = vor.u32 %v6033_v31, %v5487_v51  ;;  %v5389_v0 = vld [vmem:[#allocation2 + $0x7e0] sm:$0xf] }
 0x146   : > { %8621 = vst [vmem:[#allocation291_spill] sm:$0xff] %v7328_v50  ;;  %v6010_v32 = vld [vmem:[#allocation2 + $0x7e4] sm:$0xf0]  ;;  %v5453_v61 = vld [vmem:[#allocation2 + $0x860] sm:$0xf]  ;;  %v7344_v43 = vor.u32 %v6028_v35, %v5461_v2 }
 0x147   : > { %2899 = vmatpush.bf16.msra.mxu3 %v7312_v15  ;;  %2938 = vmatpush.bf16.msra.mxu2 %v7320_v44  ;;  %8623 = vst [vmem:[#allocation293_spill] sm:$0xff] %v7334_v58  ;;  %v1465_v15 = vpop.f32.mrf.mxu0  ;;  %v7348_v56 = vpop.f32.mrf.mxu1  ;;  %v6031_v44 = vld [vmem:[#allocation2 + $0x894] sm:$0xf]  ;;  %v6009_v6 = vld [vmem:[#allocation2 + $0x7e4] sm:$0xf] }
 0x148   : > { %8624 = vst [vmem:[#allocation294_spill] sm:$0xff] %v7338_v57  ;;  %v5391_v18 = vld [vmem:[#allocation2 + $0x7e8] sm:$0xf0]  ;;  %v6043_v51 = vld [vmem:[#allocation2 + $0x8f4] sm:$0xf] }
 0x149   : > { %2948 = vmatpush.bf16.msrb.mxu1 %v7314_v41  ;;  %v6011_v41 = vld [vmem:[#allocation2 + $0x7f4] sm:$0xf]  ;;  %8625 = vst [vmem:[#allocation295_spill] sm:$0xff] %v7340_v62  ;;  %2913 = vmatpush.bf16.msra.mxu0 %v7332_v23  ;;  %v5527_v31 = vld [vmem:[#allocation2 + $0x8f8] sm:$0xf0]  ;;  %v7360_v23 = vor.u32 %v6009_v6, %v5391_v18 }
 0x14a   : > { %8626 = vst [vmem:[#allocation296_spill] sm:$0xff] %v7344_v43  ;;  %v7346_v15 = vor.u32 %v6011_v41, %v5399_v20  ;;  %v5591_v40 = vld [vmem:[#allocation2 + $0xa90] sm:$0xf]  ;;  %v6060_v19 = vld [vmem:[#allocation2 + $0xa94] sm:$0xf0] }
 0x14b   : > { %2900 = vmatpush.bf16.msra.mxu3 %v7326_v47  ;;  %2939 = vmatpush.bf16.msra.mxu2 %v7334_v58  ;;  %v6026_v47 = vld [vmem:[#allocation2 + $0x864] sm:$0xf0]  ;;  %v7352_v58 = vor.u32 %v6010_v32, %v5389_v0  ;;  %v5671_v41 = vld [vmem:[#allocation2 + $0xb30] sm:$0xf]  ;;  %v6080_v2 = vld [vmem:[#allocation2 + $0xb34] sm:$0xf0]  ;;  %v7366_v0 = vor.u32 %v6060_v19, %v5591_v40 }
 0x14c   : > { %8627 = vst [vmem:[#allocation297_spill] sm:$0xff] %v7346_v15  ;;  %v7358_v20 = vor.u32 %v6026_v47, %v5453_v61  ;;  %v6029_v33 = vld [vmem:[#allocation2 + $0x884] sm:$0xf]  ;;  %v5471_v37 = vld [vmem:[#allocation2 + $0x888] sm:$0xf0]  ;;  %5531 = vmatmul.msk.bf16.vlgmr.msra.gmra.mxu1 %vm472_vm0, %v6680_v24 }
 0x14d   : > { %2949 = vmatpush.bf16.msrb.mxu1 %v7328_v50  ;;  %v5479_v50 = vld [vmem:[#allocation2 + $0x898] sm:$0xf0]  ;;  %8628 = vst [vmem:[#allocation298_spill] sm:$0xff] %v7352_v58  ;;  %2914 = vmatpush.bf16.msra.mxu0 %v7344_v43  ;;  %v5583_v32 = vld [vmem:[#allocation2 + $0xa80] sm:$0xf]  ;;  %v7372_v61 = vor.u32 %v6029_v33, %v5471_v37 }
 0x14e   : > { %v7354_v35 = vor.u32 %v6031_v44, %v5479_v50  ;;  %8630 = vst [vmem:[#allocation300_spill] sm:$0xff] %v7358_v20  ;;  %v6041_v44 = vld [vmem:[#allocation2 + $0x8e4] sm:$0xf]  ;;  %v5519_v50 = vld [vmem:[#allocation2 + $0x8e8] sm:$0xf0] }
 0x14f   : > { %2901 = vmatpush.bf16.msra.mxu3 %v7338_v57  ;;  %2940 = vmatpush.bf16.msra.mxu2 %v7346_v15  ;;  %8631 = vst [vmem:[#allocation301_spill] sm:$0xff] %v7360_v23  ;;  %v7368_v57 = vor.u32 %v6080_v2, %v5671_v41  ;;  %v6058_v43 = vld [vmem:[#allocation2 + $0xa84] sm:$0xf0]  ;;  %v5663_v15 = vld [vmem:[#allocation2 + $0xb20] sm:$0xf]  ;;  %v1748_v40 = vpop.f32.mrf.mxu1 }
 0x150   : > { %8629 = vst [vmem:[#allocation299_spill] sm:$0xff] %v7354_v35  ;;  %v6078_v47 = vld [vmem:[#allocation2 + $0xb24] sm:$0xf0]  ;;  %v5655_v6 = vld [vmem:[#allocation2 + $0xb10] sm:$0xf]  ;;  %v7380_v37 = vor.u32 %v6058_v43, %v5583_v32 }
 0x151   : > { %2950 = vmatpush.bf16.msrb.mxu1 %v7340_v62  ;;  %v7364_v62 = vor.u32 %v6043_v51, %v5527_v31  ;;  %8633 = vst [vmem:[#allocation303_spill] sm:$0xff] %v7366_v0  ;;  %v6076_v18 = vld [vmem:[#allocation2 + $0xb14] sm:$0xf0]  ;;  %v6075_v51 = vld [vmem:[#allocation2 + $0xb14] sm:$0xf]  ;;  %v1733_v31 = vpop.f32.mrf.mxu0  ;;  %2915 = vmatpush.bf16.msra.mxu0 %v7358_v20  ;;  %v7384_v33 = vor.u32 %v6078_v47, %v5663_v15 }
 0x152   : > { %8634 = vst [vmem:[#allocation304_spill] sm:$0xff] %v7368_v57  ;;  %v5657_v19 = vld [vmem:[#allocation2 + $0xb18] sm:$0xf0]  ;;  %v6027_v41 = vld [vmem:[#allocation2 + $0x874] sm:$0xf]  ;;  %v7386_v20 = vor.u32 %v6076_v18, %v5655_v6 }
 0x153   : > { %8632 = vst [vmem:[#allocation302_spill] sm:$0xff] %v7364_v62  ;;  %2902 = vmatpush.bf16.msra.mxu3 %v7352_v58  ;;  %2941 = vmatpush.bf16.msra.mxu2 %v7360_v23  ;;  %v5463_v2 = vld [vmem:[#allocation2 + $0x878] sm:$0xf0]  ;;  %v7378_v58 = vor.u32 %v6041_v44, %v5519_v50  ;;  %v5575_v23 = vld [vmem:[#allocation2 + $0xa70] sm:$0xf] }
 0x154   : > { %8635 = vst [vmem:[#allocation305_spill] sm:$0xff] %v7372_v61  ;;  %v6056_v40 = vld [vmem:[#allocation2 + $0xa74] sm:$0xf0]  ;;  %v7392_v44 = vor.u32 %v6027_v41, %v5463_v2  ;;  %v5647_v43 = vld [vmem:[#allocation2 + $0xb00] sm:$0xf]  ;;  %2916 = vmatmul.bf16.vlgmr.msra.gmra.mxu0 %v6750_v45 }
 0x155   : > { %2951 = vmatpush.bf16.msrb.mxu1 %v7354_v35  ;;  %3192 = vmatpush.bf16.msrb.mxu0 %v7366_v0  ;;  %8636 = vst [vmem:[#allocation306_spill] sm:$0xff] %v7378_v58  ;;  %v6074_v50 = vld [vmem:[#allocation2 + $0xb04] sm:$0xf0]  ;;  %v6073_v32 = vld [vmem:[#allocation2 + $0xb04] sm:$0xf]  ;;  %v1759_v0 = vpop.f32.mrf.mxu2 }
 0x156   : > { %8637 = vst [vmem:[#allocation307_spill] sm:$0xff] %v7380_v37  ;;  %2903 = vmatmul.bf16.vlgmr.msra.gmra.mxu3 %v6727_v55  ;;  %2942 = vmatmul.bf16.vlgmr.msra.gmra.mxu2 %v6727_v55  ;;  %v5649_v15 = vld [vmem:[#allocation2 + $0xb08] sm:$0xf0]  ;;  %v6025_v47 = vld [vmem:[#allocation2 + $0x864] sm:$0xf]  ;;  %v7401_v41 = vor.u32 %v6074_v50, %v5647_v43 }
 0x157   : > { %2966 = vmatpush.bf16.msrb.mxu3 %v7364_v62  ;;  %3224 = vmatpush.bf16.msrb.mxu2 %v7368_v57  ;;  %8638 = vst [vmem:[#allocation308_spill] sm:$0xff] %v7384_v33  ;;  %v7390_v62 = vor.u32 %v6075_v51, %v5657_v19  ;;  %v1720_v57 = vpop.f32.mrf.mxu3  ;;  %v5455_v6 = vld [vmem:[#allocation2 + $0x868] sm:$0xf0]  ;;  %v6059_v51 = vld [vmem:[#allocation2 + $0xa94] sm:$0xf] }
 0x158   : > { %8639 = vst [vmem:[#allocation309_spill] sm:$0xff] %v7386_v20  ;;  %v1734_v18 = vadd.f32 %v1733_v31, %v1720_v57  ;;  %v5593_v19 = vld [vmem:[#allocation2 + $0xa98] sm:$0xf0]  ;;  %v5567_v2 = vld [vmem:[#allocation2 + $0xa60] sm:$0xf]  ;;  %v7406_v57 = vor.u32 %v6073_v32, %v5649_v15 }
 0x159   : > { %2952 = vmatpush.bf16.msrb.mxu1 %v7372_v61  ;;  %8640 = vst [vmem:[#allocation310_spill] sm:$0xff] %v7390_v62  ;;  %3193 = vmatpush.bf16.msrb.mxu0 %v7380_v37  ;;  %v7397_v61 = vor.u32 %v6056_v40, %v5575_v23  ;;  %v6054_v35 = vld [vmem:[#allocation2 + $0xa64] sm:$0xf0]  ;;  %v7408_v23 = vor.u32 %v6025_v47, %v5455_v6  ;;  %v5639_v31 = vld [vmem:[#allocation2 + $0xaf0] sm:$0xf]  ;;  %v1735_v37 = vpop.f32.mrf.mxu0 }
 0x15a   : > { %8642 = vst [vmem:[#allocation312_spill] sm:$0xff] %v7401_v41  ;;  %v6072_v40 = vld [vmem:[#allocation2 + $0xaf4] sm:$0xf0]  ;;  %v5641_v43 = vld [vmem:[#allocation2 + $0xaf8] sm:$0xf0] }
 0x15b   : > { %2967 = vmatpush.bf16.msrb.mxu3 %v7378_v58  ;;  %8641 = vst [vmem:[#allocation311_spill] sm:$0xff] %v7397_v61  ;;  %3225 = vmatpush.bf16.msrb.mxu2 %v7384_v33  ;;  %v1747_v58 = vadd.f32 %v7348_v56, %v1734_v18  ;;  %v7410_v33 = vor.u32 %v6059_v51, %v5593_v19  ;;  %v6057_v56 = vld [vmem:[#allocation2 + $0xa84] sm:$0xf]  ;;  %v5585_v18 = vld [vmem:[#allocation2 + $0xa88] sm:$0xf0] }
 0x15c   : > { %8643 = vst [vmem:[#allocation313_spill] sm:$0xff] %v7406_v57  ;;  %v7419_v32 = vor.u32 %v6072_v40, %v5639_v31  ;;  %v5559_v15 = vld [vmem:[#allocation2 + $0xa50] sm:$0xf]  ;;  %v6052_v47 = vld [vmem:[#allocation2 + $0xa54] sm:$0xf0]  ;;  %v7426_v51 = vor.u32 %v6057_v56, %v5585_v18 }
 0x15d   : > { %2953 = vmatpush.bf16.msrb.mxu1 %v7392_v44  ;;  %8644 = vst [vmem:[#allocation314_spill] sm:$0xff] %v7408_v23  ;;  %v7413_v50 = vadd.f32 %v1747_v58, %v7292_v63  ;;  %3194 = vmatpush.bf16.msrb.mxu0 %v7397_v61  ;;  %v5631_v63 = vld [vmem:[#allocation2 + $0xae0] sm:$0xf]  ;;  %v6070_v58 = vld [vmem:[#allocation2 + $0xae4] sm:$0xf0]  ;;  %v1761_v40 = vpop.f32.mrf.mxu2 }
 0x15e   : > { %8645 = vst [vmem:[#allocation315_spill] sm:$0xff] %v7410_v33  ;;  %v6069_v19 = vld [vmem:[#allocation2 + $0xae4] sm:$0xf]  ;;  %v5623_v18 = vld [vmem:[#allocation2 + $0xad0] sm:$0xf] }
 0x15f   : > { %3205 = vmatpush.bf16.msra.mxu3 %v7386_v20  ;;  %3244 = vmatpush.bf16.msra.mxu2 %v7390_v62  ;;  %v6071_v20 = vld [vmem:[#allocation2 + $0xaf4] sm:$0xf]  ;;  %v7416_v62 = vor.u32 %v6054_v35, %v5567_v2  ;;  %8647 = vst [vmem:[#allocation317_spill] sm:$0xff] %v7419_v32  ;;  %v1772_v35 = vpop.f32.mrf.mxu1  ;;  %v1722_v6 = vpop.f32.mrf.mxu3  ;;  %v5633_v2 = vld [vmem:[#allocation2 + $0xae8] sm:$0xf0] }
 0x160   : > { %v7423_v37 = vor.u32 %v6071_v20, %v5641_v43  ;;  %8649 = vst [vmem:[#allocation319_spill] sm:$0xff] %v7426_v51  ;;  %v1773_v31 = vadd.f32 %v1772_v35, %v1759_v0  ;;  %v7433_v20 = vor.u32 %v6070_v58, %v5631_v63  ;;  %v5551_v43 = vld [vmem:[#allocation2 + $0xa40] sm:$0xf]  ;;  %v6050_v6 = vld [vmem:[#allocation2 + $0xa44] sm:$0xf0]  ;;  %v7436_v56 = vor.u32 %v6069_v19, %v5633_v2 }
 0x161   : > { %8646 = vst [vmem:[#allocation316_spill] sm:$0xff] %v7416_v62  ;;  %2954 = vmatpush.bf16.msrb.mxu1 %v7408_v23  ;;  %3195 = vmatpush.bf16.msrb.mxu0 %v7416_v62  ;;  %v5577_v23 = vld [vmem:[#allocation2 + $0xa78] sm:$0xf0]  ;;  %v6068_v62 = vld [vmem:[#allocation2 + $0xad4] sm:$0xf0]  ;;  %v7442_v35 = vor.u32 %v6050_v6, %v5551_v43 }
 0x162   : > { %8648 = vst [vmem:[#allocation318_spill] sm:$0xff] %v7423_v37  ;;  %v6053_v63 = vld [vmem:[#allocation2 + $0xa64] sm:$0xf]  ;;  %v5569_v58 = vld [vmem:[#allocation2 + $0xa68] sm:$0xf0]  ;;  %v7445_v40 = vor.u32 %v6068_v62, %v5623_v18 }
 0x163   : > { %3206 = vmatpush.bf16.msra.mxu3 %v7401_v41  ;;  %3245 = vmatpush.bf16.msra.mxu2 %v7406_v57  ;;  %v7429_v41 = vor.u32 %v6052_v47, %v5559_v15  ;;  %v6055_v57 = vld [vmem:[#allocation2 + $0xa74] sm:$0xf]  ;;  %8651 = vst [vmem:[#allocation321_spill] sm:$0xff] %v7433_v20  ;;  %v5625_v47 = vld [vmem:[#allocation2 + $0xad8] sm:$0xf0]  ;;  %v7455_v43 = vor.u32 %v6053_v63, %v5569_v58 }
 0x164   : > { %2955 = vmatmul.bf16.vlgmr.msrb.gmra.mxu1 %v6750_v45  ;;  %8652 = vst [vmem:[#allocation322_spill] sm:$0xff] %v7436_v56  ;;  %v7439_v0 = vor.u32 %v6055_v57, %v5577_v23  ;;  %v6067_v15 = vld [vmem:[#allocation2 + $0xad4] sm:$0xf]  ;;  %v5543_v19 = vld [vmem:[#allocation2 + $0xa30] sm:$0xf] }
 0x165   : > { %3231 = vmatpush.bf16.msra.mxu1 %v7410_v33  ;;  %8650 = vst [vmem:[#allocation320_spill] sm:$0xff] %v7429_v41  ;;  %3196 = vmatpush.bf16.msrb.mxu0 %v7429_v41  ;;  %v6048_v2 = vld [vmem:[#allocation2 + $0xa34] sm:$0xf0]  ;;  %v7450_v57 = vor.u32 %v6067_v15, %v5625_v47  ;;  %v5615_v23 = vld [vmem:[#allocation2 + $0xac0] sm:$0xf]  ;;  %v7463_v63 = vpop.f32.mrf.mxu2 }
 0x166   : > { %8653 = vst [vmem:[#allocation323_spill] sm:$0xff] %v7439_v0  ;;  %5532 = vmatmul.msk.bf16.vlgmr.msrb.gmra.mxu3 %vm472_vm0, %v6680_v24  ;;  %5677 = vmatmul.msk.bf16.vlgmr.msrb.gmra.mxu2 %vm472_vm0, %v6839_v49  ;;  %v6065_v62 = vld [vmem:[#allocation2 + $0xac4] sm:$0xf]  ;;  %v5617_v6 = vld [vmem:[#allocation2 + $0xac8] sm:$0xf0] }
 0x167   : > { %3207 = vmatpush.bf16.msra.mxu3 %v7419_v32  ;;  %3246 = vmatpush.bf16.msra.mxu2 %v7423_v37  ;;  %8654 = vst [vmem:[#allocation324_spill] sm:$0xff] %v7442_v35  ;;  %v1774_v18 = vpop.f32.mrf.mxu1  ;;  %v6051_v41 = vld [vmem:[#allocation2 + $0xa54] sm:$0xf]  ;;  %v5561_v15 = vld [vmem:[#allocation2 + $0xa58] sm:$0xf0]  ;;  %v7466_v58 = vor.u32 %v6065_v62, %v5617_v6 }
 0x168   : > { %8655 = vst [vmem:[#allocation325_spill] sm:$0xff] %v7445_v40  ;;  %v6046_v32 = vld [vmem:[#allocation2 + $0xa24] sm:$0xf0]  ;;  %v5607_v33 = vld [vmem:[#allocation2 + $0xab0] sm:$0xf] }
 0x169   : > { %3232 = vmatpush.bf16.msra.mxu1 %v7426_v51  ;;  %8656 = vst [vmem:[#allocation326_spill] sm:$0xff] %v7450_v57  ;;  %v6066_v51 = vld [vmem:[#allocation2 + $0xac4] sm:$0xf0]  ;;  %3197 = vmatpush.bf16.msrb.mxu0 %v7442_v35  ;;  %v6064_v18 = vld [vmem:[#allocation2 + $0xab4] sm:$0xf0] }
 0x16a   : > { %8657 = vst [vmem:[#allocation327_spill] sm:$0xff] %v7455_v43  ;;  %v7461_v37 = vor.u32 %v6066_v51, %v5615_v23  ;;  %v6079_v35 = vld [vmem:[#allocation2 + $0xb34] sm:$0xf]  ;;  %v7478_v62 = vor.u32 %v6064_v18, %v5607_v33  ;;  %v5601_v61 = vld [vmem:[#allocation2 + $0xaa8] sm:$0xf0] }
 0x16b   : > { %3208 = vmatpush.bf16.msra.mxu3 %v7433_v20  ;;  %3247 = vmatpush.bf16.msra.mxu2 %v7436_v56  ;;  %v1785_v56 = vpop.f32.mrf.mxu3  ;;  %v7458_v20 = vor.u32 %v6048_v2, %v5543_v19  ;;  %v5673_v19 = vld [vmem:[#allocation2 + $0xb38] sm:$0xf0]  ;;  %v6063_v51 = vld [vmem:[#allocation2 + $0xab4] sm:$0xf]  ;;  %vm4107_vm2 = vsmask.f32 3328 }
 0x16c   : > { %v1786_v47 = vadd.f32 %v1785_v56, %v1773_v31  ;;  %v7472_v31 = vor.u32 %v6051_v41, %v5561_v15  ;;  %v5609_v56 = vld [vmem:[#allocation2 + $0xab8] sm:$0xf0]  ;;  %v7480_v6 = vor.u32 %v6079_v35, %v5673_v19  ;;  %v6062_v41 = vld [vmem:[#allocation2 + $0xaa4] sm:$0xf0]  ;;  %v6077_v15 = vld [vmem:[#allocation2 + $0xb24] sm:$0xf] }
 0x16d   : > { %3233 = vmatpush.bf16.msra.mxu1 %v7439_v0  ;;  %8658 = vst [vmem:[#allocation328_spill] sm:$0xff] %v7458_v20  ;;  %v5535_v0 = vld [vmem:[#allocation2 + $0xa20] sm:$0xf]  ;;  %3198 = vmatpush.bf16.msrb.mxu0 %v7458_v20  ;;  %v6061_v20 = vld [vmem:[#allocation2 + $0xaa4] sm:$0xf]  ;;  %vm4108_vm5 = vmand %vm4106_vm1, %vm4107_vm2 }
 0x16e   : > { %v7469_v2 = vadd.f32 %v1786_v47, %v7308_v4  ;;  %v7475_v23 = vor.u32 %v6046_v32, %v5535_v0  ;;  %v5599_v4 = vld [vmem:[#allocation2 + $0xaa0] sm:$0xf]  ;;  %v7483_v47 = vor.u32 %v6063_v51, %v5609_v56  ;;  %v2054_v32 = vpop.f32.mrf.mxu0  ;;  %v6047_v19 = vld [vmem:[#allocation2 + $0xa34] sm:$0xf]  ;;  %v5545_v51 = vld [vmem:[#allocation2 + $0xa38] sm:$0xf0]  ;;  %v2082_v56 = vpop.f32.mrf.mxu2 }
 0x16f   : > { %3209 = vmatpush.bf16.msra.mxu3 %v7445_v40  ;;  %3248 = vmatpush.bf16.msra.mxu2 %v7450_v57  ;;  %v6049_v40 = vld [vmem:[#allocation2 + $0xa44] sm:$0xf]  ;;  %v5553_v57 = vld [vmem:[#allocation2 + $0xa48] sm:$0xf0]  ;;  %v7491_v35 = vor.u32 %v6062_v41, %v5599_v4  ;;  %v8672_v56 = vld [vmem:[#allocation11_spill] sm:$0xff] }
 0x170   : > { %v7486_v0 = vor.u32 %v6049_v40, %v5553_v57  ;;  %v7496_v40 = vor.u32 %v6061_v20, %v5601_v61  ;;  %v7500_v57 = vor.u32 %v6047_v19, %v5545_v51  ;;  %v6045_v4 = vld [vmem:[#allocation2 + $0xa24] sm:$0xf]  ;;  %v8671_v19 = vld [vmem:[#allocation22_spill] sm:$0xff]  ;;  %vm4110_vm4 = vsmask.f32 7424 }
 0x171   : > { %3234 = vmatpush.bf16.msra.mxu1 %v7455_v43  ;;  %v5665_v43 = vld [vmem:[#allocation2 + $0xb28] sm:$0xf0]  ;;  %3199 = vmatpush.bf16.msrb.mxu0 %v7475_v23  ;;  %vm4111_vm6 = vmand %vm4109_vm3, %vm4110_vm4 }
 0x172   : > { %v7493_v18 = vor.u32 %v6077_v15, %v5665_v43  ;;  %v5537_v43 = vld [vmem:[#allocation2 + $0xa28] sm:$0xf0]  ;;  %vm4112_vm7 = vmor %vm4111_vm6, %vm4108_vm5 }
 0x173   : > { %3210 = vmatpush.bf16.msra.mxu3 %v7461_v37  ;;  %3249 = vmatpush.bf16.msra.mxu2 %v7466_v58  ;;  %v1787_v33 = vpop.f32.mrf.mxu3  ;;  %v7510_v20 = vor.u32 %v6045_v4, %v5537_v43  ;;  %v8673_v4 = vld [vmem:[#allocation23_spill] sm:$0xff]  ;;  %v8674_v43 = vld [vmem:[#allocation26_spill] sm:$0xff] }
 0x174   : > { %3200 = vmatmul.bf16.vlgmr.msrb.gmra.mxu0 %v6866_v5 }
 0x175   : > { %3235 = vmatpush.bf16.msra.mxu1 %v7472_v31  ;;  %3263 = vmatpush.bf16.msra.mxu0 %v7480_v6 }
 0x176   : > { %v2056_v61 = vpop.f32.mrf.mxu0 }
 0x177   : > { %3211 = vmatpush.bf16.msra.mxu3 %v7478_v62  ;;  %3250 = vmatpush.bf16.msra.mxu2 %v7483_v47 }
 0x179   : > { %3236 = vmatpush.bf16.msra.mxu1 %v7486_v0  ;;  %3264 = vmatpush.bf16.msra.mxu0 %v7493_v18 }
 0x17b   : > { %3212 = vmatpush.bf16.msra.mxu3 %v7491_v35  ;;  %3251 = vmatpush.bf16.msra.mxu2 %v7496_v40  ;;  %v2067_v41 = vpop.f32.mrf.mxu3 }
 0x17d   : > { %3287 = vmatpush.bf16.msrb.mxu0 %v6248_v7  ;;  %3237 = vmatpush.bf16.msra.mxu1 %v7500_v57  ;;  %v2106_v7 = vpop.f32.mrf.mxu2 }
 0x17e   : > { %3213 = vmatmul.bf16.vlgmr.msra.gmra.mxu3 %v6870_v28  ;;  %3252 = vmatmul.bf16.vlgmr.msra.gmra.mxu2 %v6870_v28 }
 0x17f   : > { %3274 = vmatpush.bf16.msrb.mxu3 %v6246_v3  ;;  %3313 = vmatpush.bf16.msrb.mxu2 %v6266_v26  ;;  %v2068_v3 = vadd.f32 %v2067_v41, %v2054_v32  ;;  %v2093_v26 = vpop.f32.mrf.mxu1  ;;  %v8670_v32 = vld [vmem:[#allocation21_spill] sm:$0xff]  ;;  %v8675_v41 = vld [vmem:[#allocation27_spill] sm:$0xff] }
 0x180   : > { %v2107_v15 = vadd.f32 %v2106_v7, %v2093_v26 }
 0x181   : > { %3288 = vmatpush.bf16.msrb.mxu0 %v6259_v17  ;;  %3238 = vmatpush.bf16.msra.mxu1 %v7510_v20  ;;  %v2081_v33 = vadd.f32 %v7463_v63, %v2068_v3  ;;  %v8669_v63 = vld [vmem:[#allocation18_spill] sm:$0xff]  ;;  %v8676_v3 = vld [vmem:[#allocation28_spill] sm:$0xff] }
 0x183   : > { %3275 = vmatpush.bf16.msrb.mxu3 %v6257_v16  ;;  %3314 = vmatpush.bf16.msrb.mxu2 %v6279_v39  ;;  %v2119_v16 = vpop.f32.mrf.mxu0  ;;  %v8660_v39 = vld [vmem:[#allocation15_spill] sm:$0xff] }
 0x184   : > { %3239 = vmatmul.bf16.vlgmr.msra.gmra.mxu1 %v6866_v5  ;;  %v2120_v17 = vadd.f32 %v2119_v16, %v2107_v15  ;;  %5678 = vmatmul.msk.bf16.vlgmr.msra.gmra.mxu0 %vm472_vm0, %v6839_v49  ;;  %v8677_v15 = vld [vmem:[#allocation29_spill] sm:$0xff] }
 0x185   : > { %3306 = vmatpush.bf16.msrb.mxu1 %v6250_v8  ;;  %3289 = vmatpush.bf16.msrb.mxu0 %v6273_v34  ;;  %v2069_v8 = vpop.f32.mrf.mxu3 }
 0x186   : > { %v8678_v8 = vld [vmem:[#allocation14_spill] sm:$0xff] }
 0x187   : > { %3276 = vmatpush.bf16.msrb.mxu3 %v6269_v30  ;;  %3315 = vmatpush.bf16.msrb.mxu2 %v6291_v52  ;;  %v2108_v30 = vpop.f32.mrf.mxu2  ;;  %v2095_v34 = vpop.f32.mrf.mxu1  ;;  %v8662_v52 = vld [vmem:[#allocation8_spill] sm:$0xff] }
 0x189   : > { %3307 = vmatpush.bf16.msrb.mxu1 %v6262_v21  ;;  %3290 = vmatpush.bf16.msrb.mxu0 %v6285_v48  ;;  %v8659_v21 = vld [vmem:[#allocation10_spill] sm:$0xff]  ;;  %v8661_v48 = vld [vmem:[#allocation12_spill] sm:$0xff] }
 0x18b   : > { %3277 = vmatpush.bf16.msrb.mxu3 %v6282_v46  ;;  %3316 = vmatpush.bf16.msrb.mxu2 %v6311_v1  ;;  %v8666_v1 = vld [vmem:[#allocation9_spill] sm:$0xff] }
 0x18d   : > { %3326 = vmatpush.bf16.msra.mxu1 %v6253_v12  ;;  %3291 = vmatpush.bf16.msrb.mxu0 %v6304_v60  ;;  %v2121_v12 = vpop.f32.mrf.mxu0  ;;  %v8665_v60 = vld [vmem:[#allocation16_spill] sm:$0xff] }
 0x18e   : > { %v8679_v12 = vld [vmem:[#allocation31_spill] sm:$0xff] }
 0x18f   : > { %3278 = vmatpush.bf16.msrb.mxu3 %v6301_v59  ;;  %3317 = vmatpush.bf16.msrb.mxu2 %v6325_v22  ;;  %v2338_v46 = vpop.f32.mrf.mxu1  ;;  %v8663_v59 = vld [vmem:[#allocation13_spill] sm:$0xff] }
 0x191   : > { %3327 = vmatpush.bf16.msra.mxu1 %v6264_v25  ;;  %3292 = vmatpush.bf16.msrb.mxu0 %v8659_v21  ;;  %v8664_v25 = vld [vmem:[#allocation20_spill] sm:$0xff]  ;;  %v2312_v61 = vpop.f32.mrf.mxu3  ;;  %v2351_v26 = vpop.f32.mrf.mxu2 }
 0x192   : > { %v2313_v7 = vadd.f32 %v2312_v61, %v2081_v33  ;;  %v2352_v16 = vadd.f32 %v2351_v26, %v2120_v17  ;;  %v8694_v61 = vld [vmem:[#allocation45_spill] sm:$0xff]  ;;  %v8696_v26 = vld [vmem:[#allocation47_spill] sm:$0xff] }
 0x193   : > { %3279 = vmatpush.bf16.msrb.mxu3 %v6314_v13  ;;  %3318 = vmatpush.bf16.msrb.mxu2 %v8660_v39  ;;  %v8668_v13 = vld [vmem:[#allocation24_spill] sm:$0xff] }
 0x194   : > { %5679 = vmatmul.msk.bf16.vlgmr.msrb.gmra.mxu1 %vm472_vm0, %v6597_v10  ;;  %v8680_v39 = vld [vmem:[#allocation32_spill] sm:$0xff] }
 0x195   : > { %3328 = vmatpush.bf16.msra.mxu1 %v6277_v38  ;;  %3293 = vmatpush.bf16.msrb.mxu0 %v8663_v59  ;;  %v8667_v38 = vld [vmem:[#allocation17_spill] sm:$0xff]  ;;  %v2325_v22 = vpop.f32.mrf.mxu0 }
 0x196   : > { %v2326_v30 = vadd.f32 %v2325_v22, %v2313_v7  ;;  %v8683_v59 = vld [vmem:[#allocation25_spill] sm:$0xff]  ;;  %v8688_v22 = vld [vmem:[#allocation39_spill] sm:$0xff]  ;;  %v8695_v7 = vld [vmem:[#allocation38_spill] sm:$0xff] }
 0x197   : > { %3280 = vmatpush.bf16.msrb.mxu3 %v8661_v48  ;;  %3319 = vmatpush.bf16.msrb.mxu2 %v8664_v25  ;;  %v2340_v51 = vpop.f32.mrf.mxu1  ;;  %v8681_v48 = vld [vmem:[#allocation33_spill] sm:$0xff]  ;;  %v8684_v25 = vld [vmem:[#allocation35_spill] sm:$0xff] }
 0x198   : > { %v7562_v21 = vadd.f32 %v2338_v46, %v2326_v30  ;;  %v8686_v46 = vld [vmem:[#allocation37_spill] sm:$0xff]  ;;  %v8700_v30 = vld [vmem:[#allocation51_spill] sm:$0xff] }
 0x199   : > { %3329 = vmatpush.bf16.msra.mxu1 %v8662_v52  ;;  %3294 = vmatpush.bf16.msrb.mxu0 %v8667_v38  ;;  %v8682_v52 = vld [vmem:[#allocation19_spill] sm:$0xff]  ;;  %v2353_v38 = vpop.f32.mrf.mxu2 }
 0x19a   : > { %v8709_v38 = vld [vmem:[#allocation56_spill] sm:$0xff] }
 0x19b   : > { %3281 = vmatpush.bf16.msrb.mxu3 %v8665_v60  ;;  %3320 = vmatpush.bf16.msrb.mxu2 %v8668_v13  ;;  %v2314_v60 = vpop.f32.mrf.mxu3  ;;  %v8687_v13 = vld [vmem:[#allocation30_spill] sm:$0xff] }
 0x19c   : > { %3295 = vmatmul.bf16.vlgmr.msrb.gmra.mxu0 %v6613_v11  ;;  %v8707_v60 = vld [vmem:[#allocation58_spill] sm:$0xff] }
 0x19d   : > { %3330 = vmatpush.bf16.msra.mxu1 %v8666_v1  ;;  %3352 = vmatpush.bf16.msra.mxu0 %v8670_v32  ;;  %v2327_v34 = vpop.f32.mrf.mxu0  ;;  %v8685_v1 = vld [vmem:[#allocation36_spill] sm:$0xff]  ;;  %v8690_v32 = vld [vmem:[#allocation41_spill] sm:$0xff] }
 0x19e   : > { %3282 = vmatmul.bf16.vlgmr.msrb.gmra.mxu3 %v6609_v53  ;;  %3321 = vmatmul.bf16.vlgmr.msrb.gmra.mxu2 %v6609_v53 }
 0x19f   : > { %3345 = vmatpush.bf16.msra.mxu3 %v8669_v63  ;;  %3384 = vmatpush.bf16.msra.mxu2 %v8671_v19  ;;  %v2364_v33 = vpop.f32.mrf.mxu1  ;;  %v8689_v63 = vld [vmem:[#allocation40_spill] sm:$0xff]  ;;  %v8691_v19 = vld [vmem:[#allocation34_spill] sm:$0xff] }
 0x1a0   : > { %v2365_v17 = vadd.f32 %v2364_v33, %v2352_v16  ;;  %v8698_v16 = vld [vmem:[#allocation49_spill] sm:$0xff]  ;;  %v8704_v33 = vld [vmem:[#allocation46_spill] sm:$0xff] }
 0x1a1   : > { %3331 = vmatpush.bf16.msra.mxu1 %v8672_v56  ;;  %3353 = vmatpush.bf16.msra.mxu0 %v8674_v43  ;;  %v8692_v56 = vld [vmem:[#allocation43_spill] sm:$0xff] }
 0x1a3   : > { %3346 = vmatpush.bf16.msra.mxu3 %v8673_v4  ;;  %3385 = vmatpush.bf16.msra.mxu2 %v8675_v41  ;;  %v8693_v4 = vld [vmem:[#allocation44_spill] sm:$0xff]  ;;  %v2377_v43 = vpop.f32.mrf.mxu3 }
 0x1a4   : > { %v2378_v41 = vadd.f32 %v2377_v43, %v2365_v17  ;;  %v8706_v17 = vld [vmem:[#allocation61_spill] sm:$0xff] }
 0x1a5   : > { %3332 = vmatpush.bf16.msra.mxu1 %v8678_v8  ;;  %3354 = vmatpush.bf16.msra.mxu0 %v8679_v12  ;;  %v8699_v8 = vld [vmem:[#allocation42_spill] sm:$0xff]  ;;  %v8701_v12 = vld [vmem:[#allocation52_spill] sm:$0xff] }
 0x1a7   : > { %3365 = vmatpush.bf16.msrb.mxu3 %v8676_v3  ;;  %3404 = vmatpush.bf16.msrb.mxu2 %v8677_v15  ;;  %v2366_v51 = vpop.f32.mrf.mxu1  ;;  %v2633_v3 = vpop.f32.mrf.mxu2  ;;  %v8697_v15 = vld [vmem:[#allocation48_spill] sm:$0xff] }
 0x1a9   : > { %3333 = vmatpush.bf16.msra.mxu1 %v8682_v52  ;;  %3355 = vmatpush.bf16.msra.mxu0 %v8684_v25  ;;  %v2607_v34 = vpop.f32.mrf.mxu0  ;;  %v8703_v52 = vld [vmem:[#allocation53_spill] sm:$0xff] }
 0x1aa   : > { %v8705_v25 = vld [vmem:[#allocation57_spill] sm:$0xff] }
 0x1ab   : > { %3366 = vmatpush.bf16.msrb.mxu3 %v8680_v39  ;;  %3405 = vmatpush.bf16.msrb.mxu2 %v8681_v48  ;;  %v8702_v39 = vld [vmem:[#allocation54_spill] sm:$0xff]  ;;  %v2379_v48 = vpop.f32.mrf.mxu3 }
 0x1ac   : > { %3334 = vmatmul.bf16.vlgmr.msra.gmra.mxu1 %v6613_v11 }
 0x1ad   : > { %3391 = vmatpush.bf16.msrb.mxu1 %v8683_v59  ;;  %3356 = vmatpush.bf16.msra.mxu0 %v8688_v22 }
 0x1ae   : > { %5680 = vmatmul.msk.bf16.vlgmr.msra.gmra.mxu3 %vm472_vm0, %v6597_v10  ;;  %5681 = vmatmul.msk.bf16.vlgmr.msra.gmra.mxu2 %vm472_vm0, %v6316_v14 }
 0x1af   : > { %3367 = vmatpush.bf16.msrb.mxu3 %v8685_v1  ;;  %3406 = vmatpush.bf16.msrb.mxu2 %v8686_v46  ;;  %v2635_v59 = vpop.f32.mrf.mxu2  ;;  %v8708_v1 = vld [vmem:[#allocation59_spill] sm:$0xff]  ;;  %v8710_v46 = vld [vmem:[#allocation60_spill] sm:$0xff] }
 0x1b0   : > { %v8722_v59 = vld [vmem:[#allocation73_spill] sm:$0xff] }
 0x1b1   : > { %3392 = vmatpush.bf16.msrb.mxu1 %v8687_v13  ;;  %3357 = vmatpush.bf16.msra.mxu0 %v8692_v56  ;;  %v8711_v13 = vld [vmem:[#allocation50_spill] sm:$0xff]  ;;  %v2609_v22 = vpop.f32.mrf.mxu0 }
 0x1b3   : > { %3368 = vmatpush.bf16.msrb.mxu3 %v8689_v63  ;;  %3407 = vmatpush.bf16.msrb.mxu2 %v8690_v32  ;;  %v8712_v63 = vld [vmem:[#allocation64_spill] sm:$0xff]  ;;  %v8713_v32 = vld [vmem:[#allocation62_spill] sm:$0xff] }
 0x1b5   : > { %3393 = vmatpush.bf16.msrb.mxu1 %v8691_v19  ;;  %3358 = vmatpush.bf16.msra.mxu0 %v8696_v26  ;;  %v8714_v19 = vld [vmem:[#allocation65_spill] sm:$0xff] }
 0x1b7   : > { %3369 = vmatpush.bf16.msrb.mxu3 %v8693_v4  ;;  %3408 = vmatpush.bf16.msrb.mxu2 %v8694_v61  ;;  %v8715_v4 = vld [vmem:[#allocation55_spill] sm:$0xff] }
 0x1b8   : > { %v8716_v61 = vld [vmem:[#allocation63_spill] sm:$0xff] }
 0x1b9   : > { %3394 = vmatpush.bf16.msrb.mxu1 %v8695_v7  ;;  %3359 = vmatpush.bf16.msra.mxu0 %v8700_v30  ;;  %v2620_v51 = vpop.f32.mrf.mxu3  ;;  %v2659_v43 = vpop.f32.mrf.mxu2  ;;  %v8719_v30 = vld [vmem:[#allocation69_spill] sm:$0xff] }
 0x1ba   : > { %v2621_v56 = vadd.f32 %v2620_v51, %v2607_v34  ;;  %v2646_v7 = vpop.f32.mrf.mxu1  ;;  %v8720_v34 = vld [vmem:[#allocation67_spill] sm:$0xff] }
 0x1bb   : > { %3370 = vmatpush.bf16.msrb.mxu3 %v8697_v15  ;;  %3409 = vmatpush.bf16.msrb.mxu2 %v8698_v16  ;;  %v8717_v15 = vld [vmem:[#allocation68_spill] sm:$0xff]  ;;  %v2660_v16 = vadd.f32 %v2659_v43, %v2646_v7  ;;  %v8735_v43 = vld [vmem:[#allocation82_spill] sm:$0xff]  ;;  %v8737_v7 = vld [vmem:[#allocation87_spill] sm:$0xff] }
 0x1bc   : > { %3360 = vmatmul.bf16.vlgmr.msra.gmra.mxu0 %v6361_v29  ;;  %v2634_v26 = vadd.f32 %v2633_v3, %v2621_v56  ;;  %v8723_v3 = vld [vmem:[#allocation70_spill] sm:$0xff]  ;;  %v8733_v56 = vld [vmem:[#allocation83_spill] sm:$0xff] }
 0x1bd   : > { %3395 = vmatpush.bf16.msrb.mxu1 %v8699_v8  ;;  %3423 = vmatpush.bf16.msrb.mxu0 %v8702_v39  ;;  %v8718_v8 = vld [vmem:[#allocation66_spill] sm:$0xff]  ;;  %v2672_v39 = vpop.f32.mrf.mxu0 }
 0x1be   : > { %v2673_v48 = vadd.f32 %v2672_v39, %v2660_v16  ;;  %v8740_v16 = vld [vmem:[#allocation88_spill] sm:$0xff] }
 0x1bf   : > { %3371 = vmatpush.bf16.msrb.mxu3 %v8701_v12  ;;  %3410 = vmatpush.bf16.msrb.mxu2 %v8703_v52  ;;  %v2676_v12 = vadd.f32 %v2634_v26, %v7562_v21  ;;  %v8721_v52 = vld [vmem:[#allocation71_spill] sm:$0xff]  ;;  %v8738_v26 = vld [vmem:[#allocation90_spill] sm:$0xff] }
 0x1c1   : > { %3396 = vmatpush.bf16.msrb.mxu1 %v8704_v33  ;;  %3424 = vmatpush.bf16.msrb.mxu0 %v8706_v17  ;;  %v8724_v33 = vld [vmem:[#allocation72_spill] sm:$0xff]  ;;  %v7619_v17 = vadd.f32 %v2673_v48, %v2378_v41  ;;  %v2661_v21 = vpop.f32.mrf.mxu2  ;;  %v8731_v41 = vld [vmem:[#allocation78_spill] sm:$0xff] }
 0x1c2   : > { %v8748_v21 = vld [vmem:[#allocation97_spill] sm:$0xff] }
 0x1c3   : > { %3372 = vmatpush.bf16.msrb.mxu3 %v8705_v25  ;;  %3411 = vmatpush.bf16.msrb.mxu2 %v8707_v60  ;;  %v2622_v25 = vpop.f32.mrf.mxu3  ;;  %v2648_v60 = vpop.f32.mrf.mxu1 }
 0x1c4   : > { %v8747_v25 = vld [vmem:[#allocation96_spill] sm:$0xff] }
 0x1c5   : > { %3443 = vmatpush.bf16.msra.mxu0 %v8709_v38  ;;  %3397 = vmatpush.bf16.msrb.mxu1 %v8711_v13  ;;  %v8726_v38 = vld [vmem:[#allocation77_spill] sm:$0xff]  ;;  %v8728_v13 = vld [vmem:[#allocation76_spill] sm:$0xff]  ;;  %v2674_v22 = vpop.f32.mrf.mxu0 }
 0x1c6   : > { %3373 = vmatmul.bf16.vlgmr.msrb.gmra.mxu3 %v6365_v36  ;;  %3412 = vmatmul.bf16.vlgmr.msrb.gmra.mxu2 %v6365_v36  ;;  %v8751_v22 = vld [vmem:[#allocation100_spill] sm:$0xff] }
 0x1c7   : > { %3430 = vmatpush.bf16.msra.mxu3 %v8708_v1  ;;  %3469 = vmatpush.bf16.msra.mxu2 %v8710_v46  ;;  %v8725_v1 = vld [vmem:[#allocation75_spill] sm:$0xff]  ;;  %v8727_v46 = vld [vmem:[#allocation74_spill] sm:$0xff] }
 0x1c9   : > { %3444 = vmatpush.bf16.msra.mxu0 %v8713_v32  ;;  %3398 = vmatpush.bf16.msrb.mxu1 %v8715_v4  ;;  %v8730_v32 = vld [vmem:[#allocation81_spill] sm:$0xff] }
 0x1ca   : > { %v8734_v4 = vld [vmem:[#allocation85_spill] sm:$0xff] }
 0x1cb   : > { %3431 = vmatpush.bf16.msra.mxu3 %v8712_v63  ;;  %3470 = vmatpush.bf16.msra.mxu2 %v8714_v19  ;;  %v8729_v63 = vld [vmem:[#allocation79_spill] sm:$0xff]  ;;  %v8732_v19 = vld [vmem:[#allocation80_spill] sm:$0xff]  ;;  %v2930_v51 = vpop.f32.mrf.mxu1 }
 0x1cc   : > { %3399 = vmatmul.bf16.vlgmr.msrb.gmra.mxu1 %v6361_v29  ;;  %5682 = vmatmul.msk.bf16.vlgmr.msrb.gmra.mxu0 %vm472_vm0, %v6316_v14 }
 0x1cd   : > { %3462 = vmatpush.bf16.msra.mxu1 %v8716_v61  ;;  %3445 = vmatpush.bf16.msra.mxu0 %v8718_v8  ;;  %v8736_v61 = vld [vmem:[#allocation84_spill] sm:$0xff]  ;;  %v8741_v8 = vld [vmem:[#allocation89_spill] sm:$0xff] }
 0x1cf   : > { %3432 = vmatpush.bf16.msra.mxu3 %v8717_v15  ;;  %3471 = vmatpush.bf16.msra.mxu2 %v8719_v30  ;;  %v8739_v15 = vld [vmem:[#allocation86_spill] sm:$0xff]  ;;  %v8742_v30 = vld [vmem:[#allocation91_spill] sm:$0xff] }
 0x1d1   : > { %3463 = vmatpush.bf16.msra.mxu1 %v8720_v34  ;;  %3446 = vmatpush.bf16.msra.mxu0 %v8723_v3  ;;  %v2917_v39 = vpop.f32.mrf.mxu0  ;;  %v8743_v34 = vld [vmem:[#allocation92_spill] sm:$0xff]  ;;  %v8746_v3 = vld [vmem:[#allocation95_spill] sm:$0xff] }
 0x1d3   : > { %3433 = vmatpush.bf16.msra.mxu3 %v8721_v52  ;;  %3472 = vmatpush.bf16.msra.mxu2 %v8724_v33  ;;  %v2932_v48 = vpop.f32.mrf.mxu1  ;;  %v8744_v52 = vld [vmem:[#allocation94_spill] sm:$0xff] }
 0x1d4   : > { %v8763_v48 = vld [vmem:[#allocation114_spill] sm:$0xff] }
 0x1d5   : > { %3482 = vmatpush.bf16.msrb.mxu1 %v8722_v59  ;;  %3447 = vmatpush.bf16.msra.mxu0 %v8727_v46  ;;  %v8745_v59 = vld [vmem:[#allocation93_spill] sm:$0xff]  ;;  %v8750_v46 = vld [vmem:[#allocation99_spill] sm:$0xff] }
 0x1d7   : > { %3434 = vmatpush.bf16.msra.mxu3 %v8725_v1  ;;  %3473 = vmatpush.bf16.msra.mxu2 %v8728_v13 }
 0x1d9   : > { %3483 = vmatpush.bf16.msrb.mxu1 %v8726_v38  ;;  %3448 = vmatpush.bf16.msra.mxu0 %v8731_v41  ;;  %v2904_v33 = vpop.f32.mrf.mxu3  ;;  %v2943_v1 = vpop.f32.mrf.mxu2  ;;  %v8749_v38 = vld [vmem:[#allocation98_spill] sm:$0xff]  ;;  %v8752_v41 = vld [vmem:[#allocation101_spill] sm:$0xff] }
 0x1da   : > { %v2918_v60 = vadd.f32 %v2917_v39, %v2904_v33  ;;  %v8762_v39 = vld [vmem:[#allocation111_spill] sm:$0xff] }
 0x1db   : > { %3435 = vmatpush.bf16.msra.mxu3 %v8729_v63  ;;  %3474 = vmatpush.bf16.msra.mxu2 %v8732_v19  ;;  %v2919_v63 = vpop.f32.mrf.mxu0  ;;  %v8753_v19 = vld [vmem:[#allocation102_spill] sm:$0xff]  ;;  %v8766_v33 = vld [vmem:[#allocation115_spill] sm:$0xff] }
 0x1dc   : > { %5683 = vmatmul.msk.bf16.vlgmr.msra.gmra.mxu1 %vm472_vm0, %v6680_v24  ;;  %v2931_v13 = vadd.f32 %v2930_v51, %v2918_v60  ;;  %v8767_v60 = vld [vmem:[#allocation118_spill] sm:$0xff]  ;;  %v8772_v63 = vld [vmem:[#allocation120_spill] sm:$0xff] }
 0x1dd   : > { %3484 = vmatpush.bf16.msrb.mxu1 %v8730_v32  ;;  %3449 = vmatpush.bf16.msra.mxu0 %v8735_v43  ;;  %v8755_v43 = vld [vmem:[#allocation106_spill] sm:$0xff] }
 0x1de   : > { %v7655_v32 = vadd.f32 %v2931_v13, %v2676_v12  ;;  %v8758_v12 = vld [vmem:[#allocation107_spill] sm:$0xff] }
 0x1df   : > { %3436 = vmatpush.bf16.msra.mxu3 %v8733_v56  ;;  %3475 = vmatpush.bf16.msra.mxu2 %v8736_v61  ;;  %v8754_v56 = vld [vmem:[#allocation103_spill] sm:$0xff] }
 0x1e0   : > { %v8770_v13 = vld [vmem:[#allocation119_spill] sm:$0xff] }
 0x1e1   : > { %3485 = vmatpush.bf16.msrb.mxu1 %v8734_v4  ;;  %3450 = vmatpush.bf16.msra.mxu0 %v8739_v15  ;;  %v2956_v4 = vpop.f32.mrf.mxu1  ;;  %v8757_v15 = vld [vmem:[#allocation105_spill] sm:$0xff]  ;;  %v2945_v51 = vpop.f32.mrf.mxu2 }
 0x1e2   : > { %v2957_v61 = vadd.f32 %v2956_v4, %v2943_v1  ;;  %v8780_v51 = vld [vmem:[#allocation129_spill] sm:$0xff] }
 0x1e3   : > { %3437 = vmatpush.bf16.msra.mxu3 %v8737_v7  ;;  %3476 = vmatpush.bf16.msra.mxu2 %v8740_v16  ;;  %v8756_v7 = vld [vmem:[#allocation104_spill] sm:$0xff]  ;;  %v8759_v16 = vld [vmem:[#allocation110_spill] sm:$0xff] }
 0x1e4   : > { %3451 = vmatmul.bf16.vlgmr.msra.gmra.mxu0 %v6750_v45 }
 0x1e5   : > { %3486 = vmatpush.bf16.msrb.mxu1 %v8738_v26  ;;  %3510 = vmatpush.bf16.msrb.mxu0 %v8742_v30  ;;  %v2906_v26 = vpop.f32.mrf.mxu3  ;;  %v8761_v30 = vld [vmem:[#allocation109_spill] sm:$0xff] }
 0x1e6   : > { %3438 = vmatmul.bf16.vlgmr.msra.gmra.mxu3 %v6727_v55  ;;  %3477 = vmatmul.bf16.vlgmr.msra.gmra.mxu2 %v6727_v55  ;;  %v8778_v26 = vld [vmem:[#allocation128_spill] sm:$0xff] }
 0x1e7   : > { %3501 = vmatpush.bf16.msrb.mxu3 %v8741_v8  ;;  %3542 = vmatpush.bf16.msrb.mxu2 %v8743_v34  ;;  %v8760_v8 = vld [vmem:[#allocation108_spill] sm:$0xff] }
 0x1e9   : > { %3487 = vmatpush.bf16.msrb.mxu1 %v8744_v52  ;;  %3511 = vmatpush.bf16.msrb.mxu0 %v8746_v3  ;;  %v2958_v34 = vpop.f32.mrf.mxu1  ;;  %v8764_v52 = vld [vmem:[#allocation112_spill] sm:$0xff] }
 0x1ea   : > { %v8785_v34 = vld [vmem:[#allocation134_spill] sm:$0xff] }
 0x1eb   : > { %3502 = vmatpush.bf16.msrb.mxu3 %v8745_v59  ;;  %3543 = vmatpush.bf16.msrb.mxu2 %v8747_v25  ;;  %v8765_v59 = vld [vmem:[#allocation113_spill] sm:$0xff] }
 0x1ed   : > { %3488 = vmatpush.bf16.msrb.mxu1 %v8750_v46  ;;  %3512 = vmatpush.bf16.msrb.mxu0 %v8751_v22  ;;  %v2969_v3 = vpop.f32.mrf.mxu3  ;;  %v8769_v46 = vld [vmem:[#allocation117_spill] sm:$0xff]  ;;  %v8771_v22 = vld [vmem:[#allocation122_spill] sm:$0xff] }
 0x1ee   : > { %v2970_v25 = vadd.f32 %v2969_v3, %v2957_v61  ;;  %v8787_v3 = vld [vmem:[#allocation136_spill] sm:$0xff] }
 0x1ef   : > { %3523 = vmatpush.bf16.msra.mxu3 %v8748_v21  ;;  %3562 = vmatpush.bf16.msra.mxu2 %v8749_v38  ;;  %v3227_v21 = vpop.f32.mrf.mxu2  ;;  %v8768_v38 = vld [vmem:[#allocation116_spill] sm:$0xff] }
 0x1f0   : > { %v2974_v1 = vadd.f32 %v2970_v25, %v7619_v17  ;;  %v8776_v17 = vld [vmem:[#allocation126_spill] sm:$0xff]  ;;  %v8788_v25 = vld [vmem:[#allocation137_spill] sm:$0xff] }
 0x1f1   : > { %3489 = vmatpush.bf16.msrb.mxu1 %v8754_v56  ;;  %3513 = vmatpush.bf16.msrb.mxu0 %v8756_v7  ;;  %v8774_v56 = vld [vmem:[#allocation124_spill] sm:$0xff]  ;;  %v8777_v7 = vld [vmem:[#allocation125_spill] sm:$0xff] }
 0x1f3   : > { %3524 = vmatpush.bf16.msra.mxu3 %v8752_v41  ;;  %3563 = vmatpush.bf16.msra.mxu2 %v8753_v19  ;;  %v3201_v41 = vpop.f32.mrf.mxu0  ;;  %v8773_v19 = vld [vmem:[#allocation121_spill] sm:$0xff] }
 0x1f4   : > { %3490 = vmatmul.bf16.vlgmr.msrb.gmra.mxu1 %v6750_v45 }
 0x1f5   : > { %3549 = vmatpush.bf16.msra.mxu1 %v8755_v43  ;;  %3514 = vmatpush.bf16.msrb.mxu0 %v8760_v8  ;;  %v2971_v4 = vpop.f32.mrf.mxu3  ;;  %v8775_v43 = vld [vmem:[#allocation123_spill] sm:$0xff]  ;;  %v8783_v8 = vld [vmem:[#allocation132_spill] sm:$0xff] }
 0x1f6   : > { %5684 = vmatmul.msk.bf16.vlgmr.msrb.gmra.mxu3 %vm472_vm0, %v6680_v24  ;;  %5685 = vmatmul.msk.bf16.vlgmr.msrb.gmra.mxu2 %vm472_vm0, %v6839_v49 }
 0x1f7   : > { %3525 = vmatpush.bf16.msra.mxu3 %v8757_v15  ;;  %3564 = vmatpush.bf16.msra.mxu2 %v8758_v12  ;;  %v3229_v61 = vpop.f32.mrf.mxu2  ;;  %v8779_v15 = vld [vmem:[#allocation127_spill] sm:$0xff]  ;;  %v8781_v12 = vld [vmem:[#allocation130_spill] sm:$0xff] }
 0x1f8   : > { %v8794_v61 = vld [vmem:[#allocation145_spill] sm:$0xff] }
 0x1f9   : > { %3550 = vmatpush.bf16.msra.mxu1 %v8759_v16  ;;  %3515 = vmatpush.bf16.msrb.mxu0 %v8764_v52  ;;  %v8782_v16 = vld [vmem:[#allocation131_spill] sm:$0xff] }
 0x1fb   : > { %3526 = vmatpush.bf16.msra.mxu3 %v8761_v30  ;;  %3565 = vmatpush.bf16.msra.mxu2 %v8762_v39  ;;  %v3203_v30 = vpop.f32.mrf.mxu0  ;;  %v8784_v39 = vld [vmem:[#allocation133_spill] sm:$0xff] }
 0x1fc   : > { %v8797_v30 = vld [vmem:[#allocation146_spill] sm:$0xff] }
 0x1fd   : > { %3551 = vmatpush.bf16.msra.mxu1 %v8763_v48  ;;  %3516 = vmatpush.bf16.msrb.mxu0 %v8768_v38  ;;  %v8786_v48 = vld [vmem:[#allocation135_spill] sm:$0xff] }
 0x1ff   : > { %3527 = vmatpush.bf16.msra.mxu3 %v8765_v59  ;;  %3566 = vmatpush.bf16.msra.mxu2 %v8766_v33 }
 0x201   : > { %3552 = vmatpush.bf16.msra.mxu1 %v8767_v60  ;;  %3517 = vmatpush.bf16.msrb.mxu0 %v8772_v63  ;;  %v3214_v52 = vpop.f32.mrf.mxu3  ;;  %v3253_v33 = vpop.f32.mrf.mxu2  ;;  %v8791_v63 = vld [vmem:[#allocation140_spill] sm:$0xff] }
 0x202   : > { %v3215_v59 = vadd.f32 %v3214_v52, %v3201_v41  ;;  %v3240_v60 = vpop.f32.mrf.mxu1 }
 0x203   : > { %3528 = vmatpush.bf16.msra.mxu3 %v8769_v46  ;;  %3567 = vmatpush.bf16.msra.mxu2 %v8770_v13  ;;  %v8789_v46 = vld [vmem:[#allocation138_spill] sm:$0xff]  ;;  %v3254_v13 = vadd.f32 %v3253_v33, %v3240_v60  ;;  %v3266_v41 = vpop.f32.mrf.mxu0  ;;  %v8803_v60 = vld [vmem:[#allocation151_spill] sm:$0xff] }
 0x204   : > { %3518 = vmatmul.bf16.vlgmr.msrb.gmra.mxu0 %v6866_v5  ;;  %v3228_v38 = vadd.f32 %v3227_v21, %v3215_v59  ;;  %v8801_v59 = vld [vmem:[#allocation150_spill] sm:$0xff] }
 0x205   : > { %3553 = vmatpush.bf16.msra.mxu1 %v8771_v22  ;;  %3581 = vmatpush.bf16.msra.mxu0 %v8774_v56  ;;  %v8790_v22 = vld [vmem:[#allocation139_spill] sm:$0xff]  ;;  %v8792_v56 = vld [vmem:[#allocation141_spill] sm:$0xff]  ;;  %v3267_v4 = vadd.f32 %v3266_v41, %v3254_v13 }
 0x206   : > { %v5693_v33 = vld [vmem:[%s6298_s30 + $0x18] sm:$0xe]  ;;  %v6081_v13 = vld [vmem:[%s6298_s30 + $0x1c] sm:$0xe] }
 0x207   : > { %3529 = vmatpush.bf16.msra.mxu3 %v8773_v19  ;;  %3568 = vmatpush.bf16.msra.mxu2 %v8775_v43  ;;  %v7707_v19 = vadd.f32 %v3228_v38, %v7655_v32  ;;  %v8793_v43 = vld [vmem:[#allocation142_spill] sm:$0xff]  ;;  %v8804_v38 = vld [vmem:[#allocation152_spill] sm:$0xff] }
 0x209   : > { %3554 = vmatpush.bf16.msra.mxu1 %v8776_v17  ;;  %3582 = vmatpush.bf16.msra.mxu0 %v8778_v26  ;;  %v3272_v21 = vmax.f32 %v7413_v50, %v7707_v19  ;;  %v8795_v17 = vld [vmem:[#allocation143_spill] sm:$0xff]  ;;  %v3216_v32 = vpop.f32.mrf.mxu3  ;;  %v7717_v26 = vadd.f32 %v3267_v4, %v2974_v1  ;;  %v8800_v1 = vld [vmem:[#allocation148_spill] sm:$0xff]  ;;  %v8806_v4 = vld [vmem:[#allocation157_spill] sm:$0xff] }
 0x20a   : > { %v8809_v32 = vld [vmem:[#allocation158_spill] sm:$0xff]  ;;  %v8972_v50 = vld [vmem:[#allocation321_spill] sm:$0xff] }
 0x20b   : > { %3530 = vmatpush.bf16.msra.mxu3 %v8777_v7  ;;  %3569 = vmatpush.bf16.msra.mxu2 %v8779_v15  ;;  %v8796_v7 = vld [vmem:[#allocation144_spill] sm:$0xff]  ;;  %v3255_v15 = vpop.f32.mrf.mxu2  ;;  %v3268_v52 = vpop.f32.mrf.mxu0  ;;  %v8973_v19 = vld [vmem:[#allocation322_spill] sm:$0xff] }
 0x20c   : > { %v8810_v15 = vld [vmem:[#allocation162_spill] sm:$0xff] }
 0x20d   : > { %3628 = vmatpush.bf16.msrb.mxu0 %v8781_v12  ;;  %3555 = vmatpush.bf16.msra.mxu1 %v8783_v8  ;;  %v5701_v12 = vld [vmem:[%s6298_s30 + $0x20] sm:$0xe]  ;;  %v3273_v8 = vmax.f32 %v7469_v2, %v7717_v26  ;;  %v8816_v52 = vld [vmem:[#allocation166_spill] sm:$0xff] }
 0x20e   : > { %3531 = vmatmul.bf16.vlgmr.msra.gmra.mxu3 %v6870_v28  ;;  %3570 = vmatmul.bf16.vlgmr.msra.gmra.mxu2 %v6870_v28 }
 0x20f   : > { %3615 = vmatpush.bf16.msrb.mxu3 %v8780_v51  ;;  %3654 = vmatpush.bf16.msrb.mxu2 %v8782_v16  ;;  %v3242_v51 = vpop.f32.mrf.mxu1  ;;  %v6083_v16 = vld [vmem:[%s6298_s30 + $0x28] sm:$0x10] }
 0x210   : > { %v8811_v51 = vld [vmem:[#allocation159_spill] sm:$0xff] }
 0x211   : > { %3629 = vmatpush.bf16.msrb.mxu0 %v8785_v34  ;;  %3556 = vmatpush.bf16.msra.mxu1 %v8787_v3  ;;  %v8799_v34 = vld [vmem:[#allocation147_spill] sm:$0xff]  ;;  %v8802_v3 = vld [vmem:[#allocation153_spill] sm:$0xff] }
 0x213   : > { %3616 = vmatpush.bf16.msrb.mxu3 %v8784_v39  ;;  %3655 = vmatpush.bf16.msrb.mxu2 %v8786_v48  ;;  %v8798_v39 = vld [vmem:[#allocation149_spill] sm:$0xff]  ;;  %v5702_v48 = vor.u32 %v6083_v16, %v5701_v12  ;;  %v8812_v12 = vld [vmem:[#allocation160_spill] sm:$0xff] }
 0x214   : > { %3557 = vmatmul.bf16.vlgmr.msra.gmra.mxu1 %v6866_v5  ;;  %5686 = vmatmul.msk.bf16.vlgmr.msra.gmra.mxu0 %vm472_vm0, %v6839_v49 }
 0x215   : > { %3647 = vmatpush.bf16.msrb.mxu1 %v8788_v25  ;;  %3630 = vmatpush.bf16.msrb.mxu0 %v8790_v22  ;;  %v6082_v25 = vld [vmem:[%s6298_s30 + $0x20] sm:$0x10]  ;;  %v5695_v22 = vld [vmem:[%s6298_s30 + $0x24] sm:$0x10] }
 0x216   : > { %v5694_v41 = vor.u32 %v6082_v25, %v5693_v33  ;;  %v8819_v25 = vld [vmem:[#allocation168_spill] sm:$0xff] }
 0x217   : > { %3617 = vmatpush.bf16.msrb.mxu3 %v8789_v46  ;;  %3656 = vmatpush.bf16.msrb.mxu2 %v8791_v63  ;;  %v7735_v46 = vrot.slane %v5702_v48, 1  ;;  %v3309_v63 = vpop.f32.mrf.mxu1 }
 0x219   : > { %3648 = vmatpush.bf16.msrb.mxu1 %v8792_v56  ;;  %3631 = vmatpush.bf16.msrb.mxu0 %v8795_v17  ;;  %v8805_v56 = vld [vmem:[#allocation154_spill] sm:$0xff]  ;;  %v5698_v17 = vor.u32 %v6081_v13, %v5695_v22 }
 0x21a   : > { %v8821_v22 = vld [vmem:[#allocation170_spill] sm:$0xff] }
 0x21b   : > { %3618 = vmatpush.bf16.msrb.mxu3 %v8793_v43  ;;  %3657 = vmatpush.bf16.msrb.mxu2 %v8796_v7  ;;  %v8807_v43 = vld [vmem:[#allocation155_spill] sm:$0xff]  ;;  %v7745_v7 = vrot.slane %v5694_v41, 1  ;;  %v7751_v16 = vrot.slane %v5698_v17, 1  ;;  %v8825_v17 = vld [vmem:[#allocation174_spill] sm:$0xff] }
 0x21c   : > { %v8822_v41 = vld [vmem:[#allocation171_spill] sm:$0xff] }
 0x21d   : > { %3667 = vmatpush.bf16.msra.mxu1 %v8794_v61  ;;  %3632 = vmatpush.bf16.msrb.mxu0 %v8799_v34  ;;  %v8808_v61 = vld [vmem:[#allocation156_spill] sm:$0xff]  ;;  %v3296_v34 = vpop.f32.mrf.mxu0 }
 0x21f   : > { %3619 = vmatpush.bf16.msrb.mxu3 %v8797_v30  ;;  %3658 = vmatpush.bf16.msrb.mxu2 %v8800_v1  ;;  %v8813_v30 = vld [vmem:[#allocation161_spill] sm:$0xff]  ;;  %v8815_v1 = vld [vmem:[#allocation164_spill] sm:$0xff]  ;;  %v3311_v48 = vpop.f32.mrf.mxu1 }
 0x220   : > { %v8831_v48 = vld [vmem:[#allocation182_spill] sm:$0xff] }
 0x221   : > { %3668 = vmatpush.bf16.msra.mxu1 %v8798_v39  ;;  %3633 = vmatpush.bf16.msrb.mxu0 %v8803_v60  ;;  %v8814_v39 = vld [vmem:[#allocation163_spill] sm:$0xff]  ;;  %v3283_v33 = vpop.f32.mrf.mxu3  ;;  %v8820_v60 = vld [vmem:[#allocation169_spill] sm:$0xff] }
 0x222   : > { %v3297_v13 = vadd.f32 %v3296_v34, %v3283_v33  ;;  %v8829_v34 = vld [vmem:[#allocation177_spill] sm:$0xff] }
 0x223   : > { %3620 = vmatpush.bf16.msrb.mxu3 %v8801_v59  ;;  %3659 = vmatpush.bf16.msrb.mxu2 %v8804_v38  ;;  %v8817_v59 = vld [vmem:[#allocation165_spill] sm:$0xff]  ;;  %v3322_v38 = vpop.f32.mrf.mxu2 }
 0x224   : > { %5703 = vmatmul.msk.bf16.vlgmr.msrb.gmra.mxu1 %vm472_vm0, %v7735_v46 }
 0x225   : > { %3669 = vmatpush.bf16.msra.mxu1 %v8802_v3  ;;  %3634 = vmatpush.bf16.msrb.mxu0 %v8807_v43  ;;  %v8818_v3 = vld [vmem:[#allocation167_spill] sm:$0xff]  ;;  %v3298_v43 = vpop.f32.mrf.mxu0 }
 0x226   : > { %v8839_v43 = vld [vmem:[#allocation190_spill] sm:$0xff] }
 0x227   : > { %3621 = vmatpush.bf16.msrb.mxu3 %v8805_v56  ;;  %3660 = vmatpush.bf16.msrb.mxu2 %v8808_v61  ;;  %v3310_v56 = vadd.f32 %v3309_v63, %v3297_v13  ;;  %v8824_v61 = vld [vmem:[#allocation173_spill] sm:$0xff]  ;;  %v8830_v63 = vld [vmem:[#allocation179_spill] sm:$0xff] }
 0x229   : > { %3670 = vmatpush.bf16.msra.mxu1 %v8806_v4  ;;  %3635 = vmatpush.bf16.msrb.mxu0 %v8811_v51  ;;  %v8823_v4 = vld [vmem:[#allocation172_spill] sm:$0xff]  ;;  %v8827_v51 = vld [vmem:[#allocation178_spill] sm:$0xff] }
 0x22b   : > { %3622 = vmatpush.bf16.msrb.mxu3 %v8809_v32  ;;  %3661 = vmatpush.bf16.msrb.mxu2 %v8812_v12  ;;  %v8826_v32 = vld [vmem:[#allocation175_spill] sm:$0xff] }
 0x22c   : > { %3636 = vmatmul.bf16.vlgmr.msrb.gmra.mxu0 %v7751_v16 }
 0x22d   : > { %3671 = vmatpush.bf16.msra.mxu1 %v8810_v15  ;;  %3697 = vmatpush.bf16.msra.mxu0 %v8814_v39  ;;  %v3335_v15 = vpop.f32.mrf.mxu1  ;;  %v3285_v39 = vpop.f32.mrf.mxu3 }
 0x22e   : > { %3623 = vmatmul.bf16.vlgmr.msrb.gmra.mxu3 %v7745_v7  ;;  %3662 = vmatmul.bf16.vlgmr.msrb.gmra.mxu2 %v7745_v7  ;;  %v3336_v12 = vadd.f32 %v3335_v15, %v3322_v38  ;;  %v8837_v38 = vld [vmem:[#allocation185_spill] sm:$0xff]  ;;  %v8843_v15 = vld [vmem:[#allocation194_spill] sm:$0xff] }
 0x22f   : > { %3686 = vmatpush.bf16.msra.mxu3 %v8813_v30  ;;  %3729 = vmatpush.bf16.msra.mxu2 %v8815_v1  ;;  %v8828_v30 = vld [vmem:[#allocation176_spill] sm:$0xff]  ;;  %v3324_v1 = vpop.f32.mrf.mxu2  ;;  %v8845_v39 = vld [vmem:[#allocation193_spill] sm:$0xff] }
 0x231   : > { %3672 = vmatpush.bf16.msra.mxu1 %v8816_v52  ;;  %3698 = vmatpush.bf16.msra.mxu0 %v8818_v3  ;;  %v8832_v52 = vld [vmem:[#allocation180_spill] sm:$0xff]  ;;  %v8834_v3 = vld [vmem:[#allocation183_spill] sm:$0xff] }
 0x233   : > { %3687 = vmatpush.bf16.msra.mxu3 %v8817_v59  ;;  %3730 = vmatpush.bf16.msra.mxu2 %v8819_v25  ;;  %v8833_v59 = vld [vmem:[#allocation181_spill] sm:$0xff]  ;;  %v8835_v25 = vld [vmem:[#allocation186_spill] sm:$0xff] }
 0x235   : > { %3673 = vmatpush.bf16.msra.mxu1 %v8822_v41  ;;  %3699 = vmatpush.bf16.msra.mxu0 %v8823_v4  ;;  %v3337_v33 = vpop.f32.mrf.mxu1  ;;  %v3348_v13 = vpop.f32.mrf.mxu3 }
 0x236   : > { %v3349_v41 = vadd.f32 %v3348_v13, %v3336_v12  ;;  %v8851_v33 = vld [vmem:[#allocation199_spill] sm:$0xff] }
 0x237   : > { %3710 = vmatpush.bf16.msrb.mxu3 %v8820_v60  ;;  %3749 = vmatpush.bf16.msrb.mxu2 %v8821_v22  ;;  %v8836_v60 = vld [vmem:[#allocation184_spill] sm:$0xff]  ;;  %v8838_v22 = vld [vmem:[#allocation187_spill] sm:$0xff]  ;;  %v3387_v4 = vpop.f32.mrf.mxu2 }
 0x239   : > { %3674 = vmatpush.bf16.msra.mxu1 %v8826_v32  ;;  %3700 = vmatpush.bf16.msra.mxu0 %v8828_v30  ;;  %v8842_v32 = vld [vmem:[#allocation191_spill] sm:$0xff]  ;;  %v3361_v30 = vpop.f32.mrf.mxu0 }
 0x23a   : > { %v3362_v1 = vadd.f32 %v3361_v30, %v3310_v56  ;;  %v8855_v56 = vld [vmem:[#allocation204_spill] sm:$0xff] }
 0x23b   : > { %3711 = vmatpush.bf16.msrb.mxu3 %v8824_v61  ;;  %3750 = vmatpush.bf16.msrb.mxu2 %v8825_v17  ;;  %v8840_v61 = vld [vmem:[#allocation188_spill] sm:$0xff]  ;;  %v8841_v17 = vld [vmem:[#allocation189_spill] sm:$0xff] }
 0x23c   : > { %3675 = vmatmul.bf16.vlgmr.msra.gmra.mxu1 %v7751_v16 }
 0x23d   : > { %3736 = vmatpush.bf16.msrb.mxu1 %v8827_v51  ;;  %3701 = vmatpush.bf16.msra.mxu0 %v8832_v52  ;;  %v8844_v51 = vld [vmem:[#allocation192_spill] sm:$0xff]  ;;  %v3350_v12 = vpop.f32.mrf.mxu3  ;;  %v8848_v52 = vld [vmem:[#allocation198_spill] sm:$0xff] }
 0x23e   : > { %5704 = vmatmul.msk.bf16.vlgmr.msra.gmra.mxu3 %vm472_vm0, %v7735_v46  ;;  %5705 = vmatmul.msk.bf16.vlgmr.msra.gmra.mxu2 %vm472_vm0, %v6597_v10 }
 0x23f   : > { %3712 = vmatpush.bf16.msrb.mxu3 %v8829_v34  ;;  %3751 = vmatpush.bf16.msrb.mxu2 %v8830_v63  ;;  %v8846_v34 = vld [vmem:[#allocation196_spill] sm:$0xff]  ;;  %v8847_v63 = vld [vmem:[#allocation195_spill] sm:$0xff] }
 0x241   : > { %3737 = vmatpush.bf16.msrb.mxu1 %v8831_v48  ;;  %3702 = vmatpush.bf16.msra.mxu0 %v8836_v60  ;;  %v3389_v48 = vpop.f32.mrf.mxu2  ;;  %v8853_v60 = vld [vmem:[#allocation202_spill] sm:$0xff]  ;;  %v3363_v13 = vpop.f32.mrf.mxu0 }
 0x242   : > { %v8863_v48 = vld [vmem:[#allocation212_spill] sm:$0xff]  ;;  %v8871_v13 = vld [vmem:[#allocation219_spill] sm:$0xff] }
 0x243   : > { %3713 = vmatpush.bf16.msrb.mxu3 %v8833_v59  ;;  %3752 = vmatpush.bf16.msrb.mxu2 %v8834_v3  ;;  %v8849_v59 = vld [vmem:[#allocation197_spill] sm:$0xff]  ;;  %v8850_v3 = vld [vmem:[#allocation200_spill] sm:$0xff] }
 0x245   : > { %3738 = vmatpush.bf16.msrb.mxu1 %v8835_v25  ;;  %3703 = vmatpush.bf16.msra.mxu0 %v8840_v61  ;;  %v8852_v25 = vld [vmem:[#allocation201_spill] sm:$0xff] }
 0x247   : > { %3714 = vmatpush.bf16.msrb.mxu3 %v8837_v38  ;;  %3753 = vmatpush.bf16.msrb.mxu2 %v8838_v22  ;;  %v8854_v38 = vld [vmem:[#allocation203_spill] sm:$0xff]  ;;  %v8856_v22 = vld [vmem:[#allocation205_spill] sm:$0xff] }
 0x249   : > { %3739 = vmatpush.bf16.msrb.mxu1 %v8839_v43  ;;  %3704 = vmatpush.bf16.msra.mxu0 %v8844_v51  ;;  %v8857_v43 = vld [vmem:[#allocation206_spill] sm:$0xff]  ;;  %v3374_v61 = vpop.f32.mrf.mxu3  ;;  %v8859_v51 = vld [vmem:[#allocation209_spill] sm:$0xff]  ;;  %v3400_v30 = vpop.f32.mrf.mxu1 }
 0x24a   : > { %v3401_v12 = vadd.f32 %v3400_v30, %v3349_v41  ;;  %v8878_v30 = vld [vmem:[#allocation226_spill] sm:$0xff] }
 0x24b   : > { %3715 = vmatpush.bf16.msrb.mxu3 %v8841_v17  ;;  %3754 = vmatpush.bf16.msrb.mxu2 %v8842_v32  ;;  %v3375_v17 = vadd.f32 %v3374_v61, %v3362_v1  ;;  %v8858_v32 = vld [vmem:[#allocation207_spill] sm:$0xff]  ;;  %v3426_v1 = vpop.f32.mrf.mxu0  ;;  %v8873_v61 = vld [vmem:[#allocation224_spill] sm:$0xff] }
 0x24c   : > { %3705 = vmatmul.bf16.vlgmr.msra.gmra.mxu0 %v6609_v53 }
 0x24d   : > { %3740 = vmatpush.bf16.msrb.mxu1 %v8843_v15  ;;  %3768 = vmatpush.bf16.msrb.mxu0 %v8846_v34  ;;  %v3413_v15 = vpop.f32.mrf.mxu2  ;;  %v8860_v34 = vld [vmem:[#allocation208_spill] sm:$0xff] }
 0x24f   : > { %3716 = vmatpush.bf16.msrb.mxu3 %v8845_v39  ;;  %3755 = vmatpush.bf16.msrb.mxu2 %v8847_v63  ;;  %v3388_v39 = vadd.f32 %v3387_v4, %v3375_v17  ;;  %v8861_v63 = vld [vmem:[#allocation210_spill] sm:$0xff] }
 0x250   : > { %v8866_v4 = vld [vmem:[#allocation214_spill] sm:$0xff] }
 0x251   : > { %3741 = vmatpush.bf16.msrb.mxu1 %v8848_v52  ;;  %3769 = vmatpush.bf16.msrb.mxu0 %v8850_v3  ;;  %v8864_v52 = vld [vmem:[#allocation213_spill] sm:$0xff]  ;;  %v8865_v3 = vld [vmem:[#allocation216_spill] sm:$0xff]  ;;  %v3376_v41 = vpop.f32.mrf.mxu3  ;;  %v8874_v17 = vld [vmem:[#allocation222_spill] sm:$0xff] }
 0x253   : > { %3717 = vmatpush.bf16.msrb.mxu3 %v8849_v59  ;;  %3756 = vmatpush.bf16.msrb.mxu2 %v8851_v33  ;;  %v8867_v33 = vld [vmem:[#allocation215_spill] sm:$0xff] }
 0x255   : > { %3788 = vmatpush.bf16.msra.mxu0 %v8853_v60  ;;  %3742 = vmatpush.bf16.msrb.mxu1 %v8855_v56  ;;  %v8868_v60 = vld [vmem:[#allocation217_spill] sm:$0xff]  ;;  %v8870_v56 = vld [vmem:[#allocation218_spill] sm:$0xff] }
 0x256   : > { %3718 = vmatmul.bf16.vlgmr.msrb.gmra.mxu3 %v6613_v11  ;;  %3757 = vmatmul.bf16.vlgmr.msrb.gmra.mxu2 %v6613_v11  ;;  %v8862_v11 = vld [vmem:[#allocation211_spill] sm:$0xff] }
 0x257   : > { %3775 = vmatpush.bf16.msra.mxu3 %v8852_v25  ;;  %3814 = vmatpush.bf16.msra.mxu2 %v8854_v38  ;;  %v3415_v25 = vpop.f32.mrf.mxu2  ;;  %v8869_v38 = vld [vmem:[#allocation220_spill] sm:$0xff] }
 0x258   : > { %v8889_v25 = vld [vmem:[#allocation238_spill] sm:$0xff] }
 0x259   : > { %3789 = vmatpush.bf16.msra.mxu0 %v8856_v22  ;;  %3743 = vmatpush.bf16.msrb.mxu1 %v8858_v32  ;;  %v3428_v22 = vpop.f32.mrf.mxu0  ;;  %v8875_v32 = vld [vmem:[#allocation223_spill] sm:$0xff] }
 0x25a   : > { %v8893_v22 = vld [vmem:[#allocation242_spill] sm:$0xff] }
 0x25b   : > { %3776 = vmatpush.bf16.msra.mxu3 %v7012_v42  ;;  %3815 = vmatpush.bf16.msra.mxu2 %v8857_v43  ;;  %v3414_v42 = vadd.f32 %v3413_v15, %v3401_v12  ;;  %v8872_v43 = vld [vmem:[#allocation221_spill] sm:$0xff]  ;;  %v8880_v12 = vld [vmem:[#allocation231_spill] sm:$0xff] }
 0x25c   : > { %3744 = vmatmul.bf16.vlgmr.msrb.gmra.mxu1 %v6609_v53  ;;  %5706 = vmatmul.msk.bf16.vlgmr.msrb.gmra.mxu0 %vm472_vm0, %v6597_v10  ;;  %v3402_v53 = vpop.f32.mrf.mxu1  ;;  %v8876_v15 = vld [vmem:[#allocation225_spill] sm:$0xff] }
 0x25d   : > { %3807 = vmatpush.bf16.msra.mxu1 %v8859_v51  ;;  %3790 = vmatpush.bf16.msra.mxu0 %v8861_v63  ;;  %v7818_v59 = vadd.f32 %v3426_v1, %v3414_v42  ;;  %v8877_v51 = vld [vmem:[#allocation228_spill] sm:$0xff]  ;;  %v8881_v63 = vld [vmem:[#allocation229_spill] sm:$0xff]  ;;  %v8890_v53 = vld [vmem:[#allocation239_spill] sm:$0xff] }
 0x25e   : > { %v8883_v42 = vld [vmem:[#allocation232_spill] sm:$0xff] }
 0x25f   : > { %3777 = vmatpush.bf16.msra.mxu3 %v8860_v34  ;;  %3816 = vmatpush.bf16.msra.mxu2 %v8862_v11  ;;  %v8879_v34 = vld [vmem:[#allocation227_spill] sm:$0xff]  ;;  %v8882_v11 = vld [vmem:[#allocation230_spill] sm:$0xff] }
 0x261   : > { %3808 = vmatpush.bf16.msra.mxu1 %v8863_v48  ;;  %3791 = vmatpush.bf16.msra.mxu0 %v8866_v4  ;;  %v8884_v48 = vld [vmem:[#allocation233_spill] sm:$0xff]  ;;  %v3452_v1 = vpop.f32.mrf.mxu0  ;;  %v8886_v4 = vld [vmem:[#allocation235_spill] sm:$0xff] }
 0x263   : > { %3778 = vmatpush.bf16.msra.mxu3 %v8864_v52  ;;  %3817 = vmatpush.bf16.msra.mxu2 %v8867_v33  ;;  %v8885_v52 = vld [vmem:[#allocation234_spill] sm:$0xff]  ;;  %v8888_v33 = vld [vmem:[#allocation237_spill] sm:$0xff] }
 0x264   : > { %v3465_v10 = vpop.f32.mrf.mxu1 }
 0x265   : > { %3827 = vmatpush.bf16.msrb.mxu1 %v8865_v3  ;;  %3792 = vmatpush.bf16.msra.mxu0 %v8870_v56  ;;  %v8891_v56 = vld [vmem:[#allocation240_spill] sm:$0xff] }
 0x267   : > { %3779 = vmatpush.bf16.msra.mxu3 %v8868_v60  ;;  %3818 = vmatpush.bf16.msra.mxu2 %v8871_v13  ;;  %v8892_v13 = vld [vmem:[#allocation241_spill] sm:$0xff] }
 0x269   : > { %3828 = vmatpush.bf16.msrb.mxu1 %v8869_v38  ;;  %3793 = vmatpush.bf16.msra.mxu0 %v8874_v17  ;;  %v3439_v41 = vpop.f32.mrf.mxu3  ;;  %v3478_v38 = vpop.f32.mrf.mxu2  ;;  %v8894_v17 = vld [vmem:[#allocation243_spill] sm:$0xff] }
 0x26a   : > { %v3453_v60 = vadd.f32 %v3452_v1, %v3439_v41  ;;  %v8903_v1 = vld [vmem:[#allocation252_spill] sm:$0xff]  ;;  %v8908_v41 = vld [vmem:[#allocation257_spill] sm:$0xff] }
 0x26b   : > { %3780 = vmatpush.bf16.msra.mxu3 %v8872_v43  ;;  %3819 = vmatpush.bf16.msra.mxu2 %v8875_v32  ;;  %v3454_v43 = vpop.f32.mrf.mxu0  ;;  %v8895_v32 = vld [vmem:[#allocation244_spill] sm:$0xff] }
 0x26c   : > { %5707 = vmatmul.msk.bf16.vlgmr.msra.gmra.mxu1 %vm472_vm0, %v6316_v14  ;;  %v3467_v3 = vpop.f32.mrf.mxu1 }
 0x26d   : > { %3829 = vmatpush.bf16.msrb.mxu1 %v8873_v61  ;;  %3794 = vmatpush.bf16.msra.mxu0 %v8878_v30  ;;  %v8897_v30 = vld [vmem:[#allocation247_spill] sm:$0xff] }
 0x26f   : > { %3781 = vmatpush.bf16.msra.mxu3 %v8876_v15  ;;  %3820 = vmatpush.bf16.msra.mxu2 %v8879_v34  ;;  %v8896_v15 = vld [vmem:[#allocation245_spill] sm:$0xff] }
 0x271   : > { %3830 = vmatpush.bf16.msrb.mxu1 %v8877_v51  ;;  %3795 = vmatpush.bf16.msra.mxu0 %v8881_v63  ;;  %v3441_v63 = vpop.f32.mrf.mxu3 }
 0x272   : > { %v8921_v63 = vld [vmem:[#allocation270_spill] sm:$0xff] }
 0x273   : > { %3782 = vmatpush.bf16.msra.mxu3 %v7099_v9  ;;  %3821 = vmatpush.bf16.msra.mxu2 %v8882_v11  ;;  %v8887_v9 = vld [vmem:[#allocation236_spill] sm:$0xff] }
 0x274   : > { %3796 = vmatmul.bf16.vlgmr.msra.gmra.mxu0 %v6365_v36  ;;  %v3491_v51 = vpop.f32.mrf.mxu1  ;;  %v8899_v11 = vld [vmem:[#allocation248_spill] sm:$0xff] }
 0x275   : > { %3831 = vmatpush.bf16.msrb.mxu1 %v8880_v12  ;;  %3853 = vmatpush.bf16.msrb.mxu0 %v8884_v48  ;;  %v3492_v34 = vadd.f32 %v3491_v51, %v3478_v38  ;;  %v8898_v12 = vld [vmem:[#allocation246_spill] sm:$0xff] }
 0x276   : > { %3783 = vmatmul.bf16.vlgmr.msra.gmra.mxu3 %v6361_v29  ;;  %3822 = vmatmul.bf16.vlgmr.msra.gmra.mxu2 %v6361_v29  ;;  %v3466_v29 = vadd.f32 %v3465_v10, %v3453_v60  ;;  %v3480_v10 = vpop.f32.mrf.mxu2  ;;  %v8902_v48 = vld [vmem:[#allocation250_spill] sm:$0xff]  ;;  %v8909_v60 = vld [vmem:[#allocation259_spill] sm:$0xff] }
 0x277   : > { %3846 = vmatpush.bf16.msrb.mxu3 %v8883_v42  ;;  %3885 = vmatpush.bf16.msrb.mxu2 %v8885_v52  ;;  %v8901_v42 = vld [vmem:[#allocation251_spill] sm:$0xff]  ;;  %v8904_v52 = vld [vmem:[#allocation253_spill] sm:$0xff]  ;;  %v8917_v51 = vld [vmem:[#allocation266_spill] sm:$0xff] }
 0x278   : > { %v7857_v61 = vadd.f32 %v3466_v29, %v3388_v39  ;;  %v8900_v39 = vld [vmem:[#allocation249_spill] sm:$0xff]  ;;  %v8913_v29 = vld [vmem:[#allocation263_spill] sm:$0xff]  ;;  %v8923_v10 = vld [vmem:[#allocation272_spill] sm:$0xff] }
 0x279   : > { %3832 = vmatpush.bf16.msrb.mxu1 %v8886_v4  ;;  %3854 = vmatpush.bf16.msrb.mxu0 %v8888_v33  ;;  %v8905_v4 = vld [vmem:[#allocation255_spill] sm:$0xff]  ;;  %v3504_v33 = vpop.f32.mrf.mxu3 }
 0x27b   : > { %3847 = vmatpush.bf16.msrb.mxu3 %v8887_v9  ;;  %3886 = vmatpush.bf16.msrb.mxu2 %v8889_v25  ;;  %v8907_v9 = vld [vmem:[#allocation256_spill] sm:$0xff]  ;;  %v3505_v25 = vadd.f32 %v3504_v33, %v3492_v34 }
 0x27c   : > { %v3493_v3 = vpop.f32.mrf.mxu1  ;;  %v8919_v34 = vld [vmem:[#allocation268_spill] sm:$0xff] }
 0x27d   : > { %3833 = vmatpush.bf16.msrb.mxu1 %v8892_v13  ;;  %3855 = vmatpush.bf16.msrb.mxu0 %v8893_v22  ;;  %v3509_v38 = vadd.f32 %v3505_v25, %v7818_v59  ;;  %v8912_v13 = vld [vmem:[#allocation261_spill] sm:$0xff]  ;;  %v8914_v22 = vld [vmem:[#allocation262_spill] sm:$0xff]  ;;  %v8918_v59 = vld [vmem:[#allocation267_spill] sm:$0xff] }
 0x27e   : > { %v8929_v25 = vld [vmem:[#allocation278_spill] sm:$0xff] }
 0x27f   : > { %3866 = vmatpush.bf16.msra.mxu3 %v8890_v53  ;;  %3905 = vmatpush.bf16.msra.mxu2 %v8891_v56  ;;  %v3545_v53 = vpop.f32.mrf.mxu2  ;;  %v8911_v56 = vld [vmem:[#allocation260_spill] sm:$0xff] }
 0x281   : > { %3834 = vmatpush.bf16.msrb.mxu1 %v8896_v15  ;;  %3856 = vmatpush.bf16.msrb.mxu0 %v8898_v12  ;;  %v3519_v43 = vpop.f32.mrf.mxu0  ;;  %v3506_v15 = vpop.f32.mrf.mxu3  ;;  %v8920_v12 = vld [vmem:[#allocation269_spill] sm:$0xff] }
 0x282   : > { %v8937_v15 = vld [vmem:[#allocation286_spill] sm:$0xff] }
 0x283   : > { %3867 = vmatpush.bf16.msra.mxu3 %v8894_v17  ;;  %3906 = vmatpush.bf16.msra.mxu2 %v8895_v32  ;;  %v8915_v17 = vld [vmem:[#allocation264_spill] sm:$0xff]  ;;  %v8916_v32 = vld [vmem:[#allocation265_spill] sm:$0xff] }
 0x284   : > { %3835 = vmatmul.bf16.vlgmr.msrb.gmra.mxu1 %v6365_v36  ;;  %v8906_v36 = vld [vmem:[#allocation254_spill] sm:$0xff] }
 0x285   : > { %3892 = vmatpush.bf16.msra.mxu1 %v8897_v30  ;;  %3857 = vmatpush.bf16.msrb.mxu0 %v8902_v48 }
 0x286   : > { %5708 = vmatmul.msk.bf16.vlgmr.msrb.gmra.mxu3 %vm472_vm0, %v6316_v14  ;;  %5709 = vmatmul.msk.bf16.vlgmr.msrb.gmra.mxu2 %vm472_vm0, %v6680_v24  ;;  %v8910_v14 = vld [vmem:[#allocation258_spill] sm:$0xff] }
 0x287   : > { %3868 = vmatpush.bf16.msra.mxu3 %v8899_v11  ;;  %3907 = vmatpush.bf16.msra.mxu2 %v8900_v39  ;;  %v3547_v30 = vpop.f32.mrf.mxu2  ;;  %v8922_v11 = vld [vmem:[#allocation271_spill] sm:$0xff]  ;;  %v8924_v39 = vld [vmem:[#allocation273_spill] sm:$0xff] }
 0x288   : > { %v8939_v30 = vld [vmem:[#allocation288_spill] sm:$0xff] }
 0x289   : > { %3893 = vmatpush.bf16.msra.mxu1 %v8901_v42  ;;  %3858 = vmatpush.bf16.msrb.mxu0 %v8906_v36  ;;  %v8925_v42 = vld [vmem:[#allocation274_spill] sm:$0xff]  ;;  %v3521_v48 = vpop.f32.mrf.mxu0 }
 0x28a   : > { %v8948_v48 = vld [vmem:[#allocation297_spill] sm:$0xff] }
 0x28b   : > { %3869 = vmatpush.bf16.msra.mxu3 %v8903_v1  ;;  %3908 = vmatpush.bf16.msra.mxu2 %v8904_v52  ;;  %v8926_v1 = vld [vmem:[#allocation275_spill] sm:$0xff]  ;;  %v8927_v52 = vld [vmem:[#allocation276_spill] sm:$0xff] }
 0x28d   : > { %3894 = vmatpush.bf16.msra.mxu1 %v8905_v4  ;;  %3859 = vmatpush.bf16.msrb.mxu0 %v8910_v14  ;;  %v8930_v14 = vld [vmem:[#allocation279_spill] sm:$0xff] }
 0x28f   : > { %3870 = vmatpush.bf16.msra.mxu3 %v8907_v9  ;;  %3909 = vmatpush.bf16.msra.mxu2 %v8908_v41  ;;  %v8928_v9 = vld [vmem:[#allocation277_spill] sm:$0xff] }
 0x291   : > { %3895 = vmatpush.bf16.msra.mxu1 %v8909_v60  ;;  %3860 = vmatpush.bf16.msrb.mxu0 %v8914_v22  ;;  %v3532_v3 = vpop.f32.mrf.mxu3  ;;  %v3571_v36 = vpop.f32.mrf.mxu2  ;;  %v8934_v22 = vld [vmem:[#allocation283_spill] sm:$0xff] }
 0x292   : > { %v3533_v4 = vadd.f32 %v3532_v3, %v3519_v43  ;;  %v3558_v33 = vpop.f32.mrf.mxu1  ;;  %v8936_v43 = vld [vmem:[#allocation285_spill] sm:$0xff]  ;;  %v8951_v3 = vld [vmem:[#allocation300_spill] sm:$0xff] }
 0x293   : > { %3871 = vmatpush.bf16.msra.mxu3 %v8911_v56  ;;  %3910 = vmatpush.bf16.msra.mxu2 %v8912_v13  ;;  %v3572_v60 = vadd.f32 %v3571_v36, %v3558_v33  ;;  %v8932_v13 = vld [vmem:[#allocation281_spill] sm:$0xff]  ;;  %v8953_v36 = vld [vmem:[#allocation302_spill] sm:$0xff] }
 0x294   : > { %3861 = vmatmul.bf16.vlgmr.msrb.gmra.mxu0 %v6727_v55  ;;  %v3546_v41 = vadd.f32 %v3545_v53, %v3533_v4  ;;  %v8935_v53 = vld [vmem:[#allocation284_spill] sm:$0xff]  ;;  %v8952_v4 = vld [vmem:[#allocation301_spill] sm:$0xff] }
 0x295   : > { %3896 = vmatpush.bf16.msra.mxu1 %v8913_v29  ;;  %3924 = vmatpush.bf16.msra.mxu0 %v8916_v32  ;;  %v8933_v29 = vld [vmem:[#allocation282_spill] sm:$0xff] }
 0x296   : > { %v3588_v56 = vadd.f32 %v3546_v41, %v7857_v61  ;;  %v8955_v41 = vld [vmem:[#allocation304_spill] sm:$0xff] }
 0x297   : > { %3872 = vmatpush.bf16.msra.mxu3 %v8915_v17  ;;  %3911 = vmatpush.bf16.msra.mxu2 %v8917_v51  ;;  %v8938_v51 = vld [vmem:[#allocation287_spill] sm:$0xff] }
 0x299   : > { %3897 = vmatpush.bf16.msra.mxu1 %v8918_v59  ;;  %3925 = vmatpush.bf16.msra.mxu0 %v8920_v12  ;;  %v3534_v17 = vpop.f32.mrf.mxu3  ;;  %v3573_v61 = vpop.f32.mrf.mxu2  ;;  %v8940_v59 = vld [vmem:[#allocation289_spill] sm:$0xff]  ;;  %v8941_v12 = vld [vmem:[#allocation290_spill] sm:$0xff] }
 0x29b   : > { %3873 = vmatpush.bf16.msra.mxu3 %v8919_v34  ;;  %3912 = vmatpush.bf16.msra.mxu2 %v8921_v63  ;;  %v8942_v63 = vld [vmem:[#allocation291_spill] sm:$0xff] }
 0x29d   : > { %3946 = vmatpush.bf16.msrb.mxu0 %v8923_v10  ;;  %3898 = vmatpush.bf16.msra.mxu1 %v8925_v42  ;;  %v8945_v10 = vld [vmem:[#allocation294_spill] sm:$0xff]  ;;  %v8947_v42 = vld [vmem:[#allocation296_spill] sm:$0xff] }
 0x29e   : > { %3874 = vmatmul.bf16.vlgmr.msra.gmra.mxu3 %v6750_v45  ;;  %3913 = vmatmul.bf16.vlgmr.msra.gmra.mxu2 %v6750_v45  ;;  %v8931_v45 = vld [vmem:[#allocation280_spill] sm:$0xff] }
 0x29f   : > { %3933 = vmatpush.bf16.msrb.mxu3 %v8922_v11  ;;  %3972 = vmatpush.bf16.msrb.mxu2 %v8924_v39  ;;  %v8944_v11 = vld [vmem:[#allocation293_spill] sm:$0xff]  ;;  %v8946_v39 = vld [vmem:[#allocation295_spill] sm:$0xff] }
 0x2a1   : > { %3947 = vmatpush.bf16.msrb.mxu0 %v8927_v52  ;;  %3899 = vmatpush.bf16.msra.mxu1 %v7271_v27  ;;  %v8950_v52 = vld [vmem:[#allocation299_spill] sm:$0xff] }
 0x2a3   : > { %3934 = vmatpush.bf16.msrb.mxu3 %v8926_v1  ;;  %3973 = vmatpush.bf16.msrb.mxu2 %v7267_v54  ;;  %v3584_v54 = vpop.f32.mrf.mxu0  ;;  %v8949_v1 = vld [vmem:[#allocation298_spill] sm:$0xff] }
 0x2a4   : > { %3900 = vmatmul.bf16.vlgmr.msra.gmra.mxu1 %v6727_v55  ;;  %v3585_v27 = vadd.f32 %v3584_v54, %v3572_v60  ;;  %5710 = vmatmul.msk.bf16.vlgmr.msra.gmra.mxu0 %vm472_vm0, %v6680_v24  ;;  %v3560_v55 = vpop.f32.mrf.mxu1  ;;  %v8956_v60 = vld [vmem:[#allocation305_spill] sm:$0xff] }
 0x2a5   : > { %3965 = vmatpush.bf16.msrb.mxu1 %v8928_v9  ;;  %3948 = vmatpush.bf16.msrb.mxu0 %v8930_v14  ;;  %v8954_v9 = vld [vmem:[#allocation303_spill] sm:$0xff]  ;;  %v8957_v14 = vld [vmem:[#allocation306_spill] sm:$0xff]  ;;  %v8963_v55 = vld [vmem:[#allocation312_spill] sm:$0xff] }
 0x2a6   : > { %v7915_v32 = vadd.f32 %v3585_v27, %v3509_v38  ;;  %v8943_v38 = vld [vmem:[#allocation292_spill] sm:$0xff]  ;;  %v8960_v27 = vld [vmem:[#allocation309_spill] sm:$0xff] }
 0x2a7   : > { %3935 = vmatpush.bf16.msrb.mxu3 %v8929_v25  ;;  %3974 = vmatpush.bf16.msrb.mxu2 %v8931_v45  ;;  %v8958_v45 = vld [vmem:[#allocation307_spill] sm:$0xff] }
 0x2a9   : > { %3966 = vmatpush.bf16.msrb.mxu1 %v8932_v13  ;;  %3949 = vmatpush.bf16.msrb.mxu0 %v8935_v53  ;;  %v8959_v13 = vld [vmem:[#allocation308_spill] sm:$0xff]  ;;  %v8961_v53 = vld [vmem:[#allocation310_spill] sm:$0xff] }
 0x2ab   : > { %3936 = vmatpush.bf16.msrb.mxu3 %v8933_v29  ;;  %3975 = vmatpush.bf16.msrb.mxu2 %v8936_v43  ;;  %v3586_v34 = vpop.f32.mrf.mxu0  ;;  %v8962_v43 = vld [vmem:[#allocation311_spill] sm:$0xff] }
 0x2ac   : > { %v3650_v24 = vpop.f32.mrf.mxu1  ;;  %v8966_v34 = vld [vmem:[#allocation315_spill] sm:$0xff] }
 0x2ad   : > { %3985 = vmatpush.bf16.msra.mxu1 %v8934_v22  ;;  %3950 = vmatpush.bf16.msrb.mxu0 %v8939_v30 }
 0x2af   : > { %3937 = vmatpush.bf16.msrb.mxu3 %v8937_v15  ;;  %3976 = vmatpush.bf16.msrb.mxu2 %v8940_v59  ;;  %v8964_v15 = vld [vmem:[#allocation313_spill] sm:$0xff] }
 0x2b1   : > { %3986 = vmatpush.bf16.msra.mxu1 %v8938_v51  ;;  %3951 = vmatpush.bf16.msrb.mxu0 %v8943_v38  ;;  %v3624_v54 = vpop.f32.mrf.mxu3  ;;  %v3663_v22 = vpop.f32.mrf.mxu2  ;;  %v8965_v51 = vld [vmem:[#allocation314_spill] sm:$0xff]  ;;  %v8968_v38 = vld [vmem:[#allocation317_spill] sm:$0xff] }
 0x2b3   : > { %3938 = vmatpush.bf16.msrb.mxu3 %v8941_v12  ;;  %3977 = vmatpush.bf16.msrb.mxu2 %v8944_v11  ;;  %v3637_v33 = vpop.f32.mrf.mxu0  ;;  %v8967_v12 = vld [vmem:[#allocation316_spill] sm:$0xff]  ;;  %v8969_v11 = vld [vmem:[#allocation318_spill] sm:$0xff] }
 0x2b4   : > { %5711 = vmatmul.msk.bf16.vlgmr.msrb.gmra.mxu1 %vm472_vm0, %v6839_v49  ;;  %v3652_v25 = vpop.f32.mrf.mxu1  ;;  %v3638_v29 = vadd.f32 %v3637_v33, %v3624_v54 }
 0x2b5   : > { %3987 = vmatpush.bf16.msra.mxu1 %v8942_v63  ;;  %3952 = vmatpush.bf16.msrb.mxu0 %v8947_v42  ;;  %v8976_v42 = vld [vmem:[#allocation325_spill] sm:$0xff] }
 0x2b7   : > { %3939 = vmatpush.bf16.msrb.mxu3 %v8945_v10  ;;  %3978 = vmatpush.bf16.msrb.mxu2 %v8948_v48  ;;  %v8971_v10 = vld [vmem:[#allocation320_spill] sm:$0xff] }
 0x2b9   : > { %3988 = vmatpush.bf16.msra.mxu1 %v8946_v39  ;;  %3953 = vmatpush.bf16.msrb.mxu0 %v8951_v3  ;;  %v3626_v63 = vpop.f32.mrf.mxu3  ;;  %v8974_v39 = vld [vmem:[#allocation323_spill] sm:$0xff] }
 0x2bb   : > { %3940 = vmatpush.bf16.msrb.mxu3 %v8949_v1  ;;  %3979 = vmatpush.bf16.msrb.mxu2 %v8952_v4  ;;  %v3639_v17 = vpop.f32.mrf.mxu0  ;;  %v8977_v1 = vld [vmem:[#allocation326_spill] sm:$0xff]  ;;  %v8978_v4 = vld [vmem:[#allocation327_spill] sm:$0xff] }
 0x2bc   : > { %3954 = vmatmul.bf16.vlgmr.msrb.gmra.mxu0 %v6870_v28  ;;  %v3676_v30 = vpop.f32.mrf.mxu1 }
 0x2bd   : > { %3989 = vmatpush.bf16.msra.mxu1 %v8950_v52  ;;  %4013 = vmatpush.bf16.msra.mxu0 %v8954_v9 }
 0x2be   : > { %3941 = vmatmul.bf16.vlgmr.msrb.gmra.mxu3 %v6866_v5  ;;  %3980 = vmatmul.bf16.vlgmr.msrb.gmra.mxu2 %v6866_v5  ;;  %v3651_v5 = vadd.f32 %v3650_v24, %v3638_v29  ;;  %v8970_v24 = vld [vmem:[#allocation319_spill] sm:$0xff] }
 0x2bf   : > { %4004 = vmatpush.bf16.msra.mxu3 %v8953_v36  ;;  %4045 = vmatpush.bf16.msra.mxu2 %v8955_v41 }
 0x2c0   : > { %v3693_v61 = vadd.f32 %v3651_v5, %v3588_v56  ;;  %v3665_v56 = vpop.f32.mrf.mxu2 }
 0x2c1   : > { %3990 = vmatpush.bf16.msra.mxu1 %v8956_v60  ;;  %4014 = vmatpush.bf16.msra.mxu0 %v8958_v45  ;;  %v3689_v48 = vpop.f32.mrf.mxu3 }
 0x2c2   : > { %v7957_v59 = vmax.f32 %v3272_v21, %v3693_v61 }
 0x2c3   : > { %4005 = vmatpush.bf16.msra.mxu3 %v8957_v14  ;;  %4046 = vmatpush.bf16.msra.mxu2 %v8959_v13 }
 0x2c4   : > { %v3678_v21 = vpop.f32.mrf.mxu1 }
 0x2c5   : > { %3991 = vmatpush.bf16.msra.mxu1 %v7392_v44  ;;  %4015 = vmatpush.bf16.msra.mxu0 %v8962_v43  ;;  %v3677_v44 = vadd.f32 %v3676_v30, %v3663_v22 }
 0x2c7   : > { %4026 = vmatpush.bf16.msrb.mxu3 %v8960_v27  ;;  %4065 = vmatpush.bf16.msrb.mxu2 %v8961_v53  ;;  %v3690_v52 = vadd.f32 %v3689_v48, %v3677_v44 }
 0x2c8   : > { %v3732_v3 = vpop.f32.mrf.mxu2 }
 0x2c9   : > { %3992 = vmatpush.bf16.msra.mxu1 %v8965_v51  ;;  %4016 = vmatpush.bf16.msra.mxu0 %v8967_v12  ;;  %v3694_v36 = vadd.f32 %v3690_v52, %v7915_v32  ;;  %v3706_v33 = vpop.f32.mrf.mxu0  ;;  %v3691_v32 = vpop.f32.mrf.mxu3 }
 0x2cb   : > { %4027 = vmatpush.bf16.msrb.mxu3 %v8963_v55  ;;  %4066 = vmatpush.bf16.msrb.mxu2 %v8964_v15  ;;  %v7983_v9 = vmax.f32 %v3273_v8, %v3694_v36 }
 0x2cc   : > { %3993 = vmatmul.bf16.vlgmr.msra.gmra.mxu1 %v6870_v28  ;;  %v8975_v28 = vld [vmem:[#allocation324_spill] sm:$0xff] }
 0x2cd   : > { %4052 = vmatpush.bf16.msrb.mxu1 %v8966_v34  ;;  %4017 = vmatpush.bf16.msra.mxu0 %v8971_v10 }
 0x2ce   : > { %5712 = vmatmul.msk.bf16.vlgmr.msra.gmra.mxu3 %vm472_vm0, %v6839_v49  ;;  %5713 = vmatmul.msk.bf16.vlgmr.msra.gmra.mxu2 %vm472_vm0, %v7735_v46  ;;  %v8979_v49 = vld [vmem:[#allocation328_spill] sm:$0xff] }
 0x2cf   : > { %4028 = vmatpush.bf16.msrb.mxu3 %v8968_v38  ;;  %4067 = vmatpush.bf16.msrb.mxu2 %v8969_v11 }
 0x2d1   : > { %4053 = vmatpush.bf16.msrb.mxu1 %v8970_v24  ;;  %4018 = vmatpush.bf16.msra.mxu0 %v8975_v28 }
 0x2d3   : > { %4029 = vmatpush.bf16.msrb.mxu3 %v8972_v50  ;;  %4068 = vmatpush.bf16.msrb.mxu2 %v8973_v19 }
 0x2d5   : > { %4054 = vmatpush.bf16.msrb.mxu1 %v8974_v39  ;;  %4019 = vmatpush.bf16.msra.mxu0 %v8979_v49 }
 0x2d7   : > { %4030 = vmatpush.bf16.msrb.mxu3 %v8976_v42  ;;  %4069 = vmatpush.bf16.msrb.mxu2 %v8977_v1 }
 0x2d9   : > { %4055 = vmatpush.bf16.msrb.mxu1 %v8978_v4  ;;  %4020 = vmatpush.bf16.msra.mxu0 %v7475_v23  ;;  %v3719_v2 = vpop.f32.mrf.mxu3 }
 0x2db   : > { %4031 = vmatpush.bf16.msrb.mxu3 %v7461_v37  ;;  %4070 = vmatpush.bf16.msrb.mxu2 %v7466_v58  ;;  %v3734_v37 = vpop.f32.mrf.mxu2  ;;  %v3708_v58 = vpop.f32.mrf.mxu0 }
 0x2dc   : > { %4021 = vmatmul.bf16.vlgmr.msra.gmra.mxu0 %v7745_v7 }
 0x2dd   : > { %4056 = vmatpush.bf16.msrb.mxu1 %v7472_v31  ;;  %4084 = vmatpush.bf16.msrb.mxu0 %v7480_v6  ;;  %v3720_v31 = vadd.f32 %v3719_v2, %v3706_v33 }
 0x2df   : > { %4032 = vmatpush.bf16.msrb.mxu3 %v7478_v62  ;;  %4071 = vmatpush.bf16.msrb.mxu2 %v7483_v47  ;;  %v3745_v62 = vpop.f32.mrf.mxu1  ;;  %v3733_v47 = vadd.f32 %v3732_v3, %v3720_v31 }
 0x2e1   : > { %4057 = vmatpush.bf16.msrb.mxu1 %v7486_v0  ;;  %4085 = vmatpush.bf16.msrb.mxu0 %v7493_v18  ;;  %v3721_v18 = vpop.f32.mrf.mxu3 }
 0x2e3   : > { %4033 = vmatpush.bf16.msrb.mxu3 %v7491_v35  ;;  %4072 = vmatpush.bf16.msrb.mxu2 %v7496_v40  ;;  %v3758_v23 = vpop.f32.mrf.mxu2  ;;  %v3771_v0 = vpop.f32.mrf.mxu0 }
 0x2e4   : > { %v3759_v6 = vadd.f32 %v3758_v23, %v3745_v62 }
 0x2e5   : > { %4058 = vmatpush.bf16.msrb.mxu1 %v7500_v57 }
 0x2e6   : > { %4034 = vmatmul.bf16.vlgmr.msrb.gmra.mxu3 %v7751_v16  ;;  %4073 = vmatmul.bf16.vlgmr.msrb.gmra.mxu2 %v7751_v16  ;;  %v3772_v35 = vadd.f32 %v3771_v0, %v3759_v6 }
 0x2e7   : > { %v3747_v57 = vpop.f32.mrf.mxu1 }
 0x2e9   : > { %4059 = vmatpush.bf16.msrb.mxu1 %v7510_v20 }
 0x2eb   : > { %v3760_v40 = vpop.f32.mrf.mxu2  ;;  %v3773_v26 = vpop.f32.mrf.mxu0 }
 0x2ec   : > { %4060 = vmatmul.bf16.vlgmr.msrb.gmra.mxu1 %v7745_v7  ;;  %5714 = vmatmul.msk.bf16.vlgmr.msrb.gmra.mxu0 %vm472_vm0, %v7735_v46 }
 0x2ef   : > { %v3810_v8 = vpop.f32.mrf.mxu1 }
 0x2f3   : > { %v3797_v16 = vpop.f32.mrf.mxu0 }
 0x2f7   : > { %v3812_v41 = vpop.f32.mrf.mxu1 }
 0x2f9   : > { %v3784_v20 = vpop.f32.mrf.mxu3  ;;  %v3823_v60 = vpop.f32.mrf.mxu2 }
 0x2fa   : > { %v3785_v25 = vadd.f32 %v3784_v20, %v3733_v47  ;;  %v3824_v14 = vadd.f32 %v3823_v60, %v3772_v35 }
 0x2fb   : > { %v3799_v7 = vpop.f32.mrf.mxu0 }
 0x2fc   : > { %v3798_v45 = vadd.f32 %v3797_v16, %v3785_v25 }
 0x2fe   : > { %v3811_v54 = vadd.f32 %v3810_v8, %v3798_v45  ;;  %v4095_v8 = vld [vmem:[#allocation4] sm:$0x3] }
 0x2ff   : > { %v4097_v60 = vperm.slane %v4095_v8, 0 }
 0x301   : > { %v3836_v13 = vpop.f32.mrf.mxu1  ;;  %v3786_v29 = vpop.f32.mrf.mxu3 }
 0x302   : > { %v3837_v27 = vadd.f32 %v3836_v13, %v3824_v14  ;;  %v3825_v22 = vpop.f32.mrf.mxu2 }
 0x309   : > { %v3838_v53 = vpop.f32.mrf.mxu1  ;;  %v3849_v46 = vpop.f32.mrf.mxu3 }
 0x30a   : > { %v3850_v5 = vadd.f32 %v3849_v46, %v3837_v27  ;;  %v3888_v43 = vpop.f32.mrf.mxu2 }
 0x311   : > { %v3862_v17 = vpop.f32.mrf.mxu0  ;;  %v3851_v61 = vpop.f32.mrf.mxu3 }
 0x312   : > { %v3890_v55 = vpop.f32.mrf.mxu2 }
 0x319   : > { %v3864_v15 = vpop.f32.mrf.mxu0 }
 0x321   : > { %v3875_v51 = vpop.f32.mrf.mxu3  ;;  %v3914_v34 = vpop.f32.mrf.mxu2 }
 0x322   : > { %v3876_v30 = vadd.f32 %v3875_v51, %v3862_v17  ;;  %v3901_v44 = vpop.f32.mrf.mxu1  ;;  %v3927_v38 = vpop.f32.mrf.mxu0  ;;  %v4113_v17 = vld [vmem:[%s202_s7] sm:$0xff] }
 0x323   : > { %v3915_v58 = vadd.f32 %v3914_v34, %v3901_v44 }
 0x324   : > { %v3889_v12 = vadd.f32 %v3888_v43, %v3876_v30 }
 0x325   : > { %v3928_v23 = vadd.f32 %v3927_v38, %v3915_v58 }
 0x326   : > { %v3931_v63 = vadd.f32 %v3889_v12, %v3811_v54  ;;  %v4098_v54 = vperm.slane %v4095_v8, 1 }
 0x327   : > { %v3932_v16 = vadd.f32 %v3928_v23, %v3850_v5 }
 0x329   : > { %v3877_v56 = vpop.f32.mrf.mxu3  ;;  %v3916_v11 = vpop.f32.mrf.mxu2 }
 0x32a   : > { %v3903_v24 = vpop.f32.mrf.mxu1  ;;  %v3929_v10 = vpop.f32.mrf.mxu0 }
 0x332   : > { %v3968_v50 = vpop.f32.mrf.mxu1 }
 0x339   : > { %v3955_v19 = vpop.f32.mrf.mxu0 }
 0x33a   : > { %v3970_v21 = vpop.f32.mrf.mxu1 }
 0x341   : > { %v3942_v39 = vpop.f32.mrf.mxu3  ;;  %v3981_v28 = vpop.f32.mrf.mxu2 }
 0x342   : > { %v3957_v42 = vpop.f32.mrf.mxu0  ;;  %v3956_v37 = vadd.f32 %v3955_v19, %v3942_v39 }
 0x344   : > { %v3969_v31 = vadd.f32 %v3968_v50, %v3956_v37 }
 0x346   : > { %v4011_v57 = vadd.f32 %v3969_v31, %v3931_v63 }
 0x349   : > { %v3994_v48 = vpop.f32.mrf.mxu1  ;;  %v3944_v1 = vpop.f32.mrf.mxu3 }
 0x34a   : > { %v3983_v52 = vpop.f32.mrf.mxu2  ;;  %v3995_v62 = vadd.f32 %v3994_v48, %v3981_v28 }
 0x351   : > { %v3996_v3 = vpop.f32.mrf.mxu1  ;;  %v4007_v4 = vpop.f32.mrf.mxu3 }
 0x352   : > { %v4048_v36 = vpop.f32.mrf.mxu2  ;;  %v4008_v18 = vadd.f32 %v4007_v4, %v3995_v62 }
 0x354   : > { %v4012_v25 = vadd.f32 %v4008_v18, %v3932_v16 }
 0x359   : > { %v4022_v49 = vpop.f32.mrf.mxu0  ;;  %v4009_v33 = vpop.f32.mrf.mxu3 }
 0x35a   : > { %v4050_v32 = vpop.f32.mrf.mxu2 }
 0x361   : > { %v4024_v2 = vpop.f32.mrf.mxu0 }
 0x369   : > { %v4035_v6 = vpop.f32.mrf.mxu3  ;;  %v4061_v47 = vpop.f32.mrf.mxu1 }
 0x36a   : > { %v4036_v0 = vadd.f32 %v4035_v6, %v4022_v49  ;;  %v4074_v35 = vpop.f32.mrf.mxu2  ;;  %v4087_v20 = vpop.f32.mrf.mxu0 }
 0x36b   : > { %v4075_v40 = vadd.f32 %v4074_v35, %v4061_v47 }
 0x36c   : > { %v4049_v26 = vadd.f32 %v4048_v36, %v4036_v0 }
 0x36d   : > { %v4088_v14 = vadd.f32 %v4087_v20, %v4075_v40 }
 0x36e   : > { %v4091_v41 = vadd.f32 %v4049_v26, %v4011_v57 }
 0x36f   : > { %v4092_v7 = vadd.f32 %v4088_v14, %v4012_v25 }
 0x370   : > { %v4093_v45 = vmax.f32 %v7957_v59, %v4091_v41 }
 0x371   : > { %v4037_v13 = vpop.f32.mrf.mxu3  ;;  %v4063_v27 = vpop.f32.mrf.mxu1  ;;  %v4094_v53 = vmax.f32 %v7983_v9, %v4092_v7 }
 0x372   : > { %v4076_v29 = vpop.f32.mrf.mxu2  ;;  %v4101_v22 = vadd.f32 %v4097_v60, %v4093_v45  ;;  %v4089_v59 = vpop.f32.mrf.mxu0 }
 0x373   : > { %v4102_v46 = vadd.f32 %v4098_v54, %v4094_v53 }
 0x374   : > { %v4103_v5 = vmax.f32 %v4101_v22, 0.0 }
 0x375   : > { %v4104_v43 = vmax.f32 %v4102_v46, 0.0 }
 0x377   : > { %v4105_v61 = vpack.c.bf16 %v4104_v43, %v4103_v5 }
 0x379   : > { %v4114_v55 = vsel %vm4112_vm7, %v4105_v61, %v4113_v17 }
 0x37a   : > { %4115 = vst [vmem:[%s202_s7] sm:$0xff] %v4114_v55 }
 0x37b PF: > { %s15_s12 = sadd.s32 1, %s6190_s12  }
 0x37c   : > { %p12_p7 = scmp.ge.s32.totalorder %s15_s12, 4  }
 0x37e   :  { %14 = sbr.rel (!%p12_p7) target bundleno = 2 (0x2), region = 81 }
 0x383   :  { %4137 = vsyncpa [#allocation3], 1 }
 0x384   :  { %4139 = vsyncpa [#allocation3 + $0x1], 1 }
 0x385   :  { %4140 = vsyncpa [#allocation5], 1 }

</bundles_post_ra>
